<compile_context>
chip_gen: v7x
topology: tpu7x:2x2x1
jax: 0.10.0
libtpu: 0.0.40
codegen_flags: <defaults>
</compile_context>

<pallas_src>
import functools

import jax
import jax.numpy as jnp
from jax import lax
from jax.experimental import pallas as pl
from jax.experimental.pallas import tpu as pltpu

_BN_EPS = 1e-5
_VMEM = pl.BlockSpec(memory_space=pltpu.MemorySpace.VMEM)


def _round_up(x, m):
    return (x + m - 1) // m * m


# --------------------------------------------------------------------------
# Static model configuration (NEVER passed through jit -> no tracer pads)
# --------------------------------------------------------------------------
_BLOCK_CFG = [
    # (inplanes, planes, stage, block, dilations)  -- ResNet18.dilated_layers
    (64, 64, 0, 0, (1, 2)),
    (64, 64, 0, 1, (4, 8)),
    (64, 128, 1, 0, (1, 2)),
    (128, 128, 1, 1, (4, 8)),
    (128, 256, 2, 0, (1, 2)),
    (256, 256, 2, 1, (4, 8)),
    (256, 512, 3, 0, (1, 2)),
    (512, 512, 3, 1, (4, 8)),
]


def _block_stride(stage, block):
    return 1 if (block != 0 or stage == 0) else 2


# --------------------------------------------------------------------------
# Fused (matmul + BN affine [+ residual] [+ ReLU]) Pallas kernel, gridded
# --------------------------------------------------------------------------
def _mm_affine_kernel(x_ref, w_ref, s_ref, b_ref, o_ref, acc_ref, *, relu):
    k = pl.program_id(2)

    @pl.when(k == 0)
    def _init():
        acc_ref[...] = jnp.zeros_like(acc_ref)

    acc_ref[...] += jnp.dot(x_ref[...], w_ref[...],
                            preferred_element_type=jnp.float32)

    @pl.when(k == pl.num_programs(2) - 1)
    def _fin():
        y = acc_ref[...] * s_ref[...] + b_ref[...]
        if relu:
            y = jnp.maximum(y, 0.0)
        o_ref[...] = y


def _mm_affine_res_kernel(x_ref, w_ref, s_ref, b_ref, r_ref, o_ref, acc_ref):
    # Epilogue: y = relu((x@w)*scale + bias + residual)   (residual block tail)
    k = pl.program_id(2)

    @pl.when(k == 0)
    def _init():
        acc_ref[...] = jnp.zeros_like(acc_ref)

    acc_ref[...] += jnp.dot(x_ref[...], w_ref[...],
                            preferred_element_type=jnp.float32)

    @pl.when(k == pl.num_programs(2) - 1)
    def _fin():
        o_ref[...] = jnp.maximum(
            acc_ref[...] * s_ref[...] + b_ref[...] + r_ref[...], 0.0)


def _pad_k(k_dim):
    # Contraction-dim padding: keep tiny K (e.g. stem's k*Cin = 7) small
    # instead of blowing it up to 128 with zeros.
    if k_dim < 128:
        return _round_up(k_dim, 8)
    if k_dim <= 256:
        return _round_up(k_dim, 128)
    return _round_up(k_dim, 256)


def _pad_n(n_dim):
    if n_dim <= 256:
        return _round_up(n_dim, 128)
    return _round_up(n_dim, 256)


def _mm_plan(m, kp, np_):
    if m <= 256:
        tm = _round_up(m, 16)
        mp = tm
    else:
        tm = 256
        mp = _round_up(m, 256)
    tn = np_ if np_ <= 256 else 256
    tk = kp if kp <= 256 else 256
    return tm, tn, tk, mp


def mm_affine(x, packed, *, n_out, relu, residual=None):
    """y = relu?((x @ W) * scale + bias [+ residual]).

    `packed` holds pre-transposed / pre-padded / bf16 weights plus f32
    per-output-channel scale & bias (folded eval-mode BatchNorm or FC bias).
    Tiled with a (M, N, K) grid, f32 VMEM accumulator, bf16 MXU operands.
    """
    w, s, b = packed["w"], packed["s"], packed["b"]
    m, k_log = x.shape
    kp, np_ = w.shape
    tm, tn, tk, mp = _mm_plan(m, kp, np_)

    xp = jnp.zeros((mp, kp), jnp.bfloat16).at[:m, :k_log].set(
        x.astype(jnp.bfloat16))

    grid = (mp // tm, np_ // tn, kp // tk)
    x_spec = pl.BlockSpec((tm, tk), lambda i, j, kk: (i, kk))
    w_spec = pl.BlockSpec((tk, tn), lambda i, j, kk: (kk, j))
    v_spec = pl.BlockSpec((1, tn), lambda i, j, kk: (0, j))
    o_spec = pl.BlockSpec((tm, tn), lambda i, j, kk: (i, j))
    scratch = [pltpu.VMEM((tm, tn), jnp.float32)]

    cparams = pltpu.CompilerParams(
        dimension_semantics=("parallel", "parallel", "arbitrary"),
        vmem_limit_bytes=32 * 1024 * 1024)
    cost = pl.CostEstimate(
        flops=2 * mp * kp * np_,
        transcendentals=0,
        bytes_accessed=mp * kp * 2 + kp * np_ * 2 + mp * np_ * 4)

    if residual is None:
        out = pl.pallas_call(
            functools.partial(_mm_affine_kernel, relu=relu),
            out_shape=jax.ShapeDtypeStruct((mp, np_), jnp.float32),
            grid_spec=pltpu.PrefetchScalarGridSpec(
                num_scalar_prefetch=0, grid=grid,
                in_specs=[x_spec, w_spec, v_spec, v_spec],
                out_specs=o_spec, scratch_shapes=scratch),
            compiler_params=cparams, cost_estimate=cost,
        )(xp, w, s, b)
    else:
        rp = jnp.zeros((mp, np_), jnp.float32).at[:m, :n_out].set(
            residual.astype(jnp.float32))
        out = pl.pallas_call(
            _mm_affine_res_kernel,
            out_shape=jax.ShapeDtypeStruct((mp, np_), jnp.float32),
            grid_spec=pltpu.PrefetchScalarGridSpec(
                num_scalar_prefetch=0, grid=grid,
                in_specs=[x_spec, w_spec, v_spec, v_spec, o_spec],
                out_specs=o_spec, scratch_shapes=scratch),
            compiler_params=cparams, cost_estimate=cost,
        )(xp, w, s, b, rp)
    return out[:m, :n_out]


# --------------------------------------------------------------------------
# Small elementwise / reduction kernels
# --------------------------------------------------------------------------
def _max3_kernel(a_ref, b_ref, c_ref, o_ref):
    o_ref[...] = jnp.maximum(jnp.maximum(a_ref[...], b_ref[...]), c_ref[...])


def _avgpool_kernel(x_ref, o_ref):
    # x: (B, L, C) -> o: (B, C)   (AdaptiveAvgPool1d(1))
    o_ref[...] = jnp.mean(x_ref[...], axis=1)


def global_avgpool(x):
    B, L, C = x.shape
    return pl.pallas_call(
        _avgpool_kernel,
        out_shape=jax.ShapeDtypeStruct((B, C), jnp.float32),
        in_specs=[_VMEM],
        out_specs=_VMEM,
    )(x)


def _softmax_kernel(x_ref, o_ref):
    x = x_ref[...]
    m = jnp.max(x, axis=-1, keepdims=True)
    e = jnp.exp(x - m)
    o_ref[...] = e / jnp.sum(e, axis=-1, keepdims=True)


def softmax_rows(x):
    B, N = x.shape
    Bp, Np = _round_up(B, 8), _round_up(N, 128)
    xp = jnp.full((Bp, Np), -1e30, jnp.float32).at[:B, :N].set(x)
    out = pl.pallas_call(
        _softmax_kernel,
        out_shape=jax.ShapeDtypeStruct((Bp, Np), jnp.float32),
        in_specs=[_VMEM],
        out_specs=_VMEM,
    )(xp)
    return out[:B, :N]


# --------------------------------------------------------------------------
# Conv / pool building blocks
# --------------------------------------------------------------------------
def conv1d_bn(x, packed, *, n_out, k, stride, padding, dilation, relu,
              residual=None):
    """Conv1d(bias=False) + folded BN [+ residual] [+ ReLU].

    x: (B, L, Cin).  Patches are built from k strided lax.slice taps
    (no gather) with column ordering j*Cin + c, matching the packed weight.
    """
    B, L, Cin = x.shape
    L_out = (L + 2 * padding - dilation * (k - 1) - 1) // stride + 1
    xp = jnp.pad(x, ((0, 0), (padding, padding), (0, 0))) if padding else x
    taps = []
    for j in range(k):
        start = j * dilation
        limit = start + (L_out - 1) * stride + 1
        taps.append(lax.slice(xp, (0, start, 0), (B, limit, Cin),
                              (1, stride, 1)))
    if k == 1:
        patches = taps[0].reshape(B * L_out, Cin)
    else:
        patches = jnp.stack(taps, axis=2).reshape(B * L_out, k * Cin)
    res2 = None if residual is None else residual.reshape(B * L_out, n_out)
    out = mm_affine(patches, packed, n_out=n_out, relu=relu, residual=res2)
    return out.reshape(B, L_out, n_out)


def maxpool1d_k3s2p1(x):
    """nn.MaxPool1d(kernel_size=3, stride=2, padding=1); x: (B, L, C)."""
    B, L, C = x.shape
    L_out = (L + 2 - 3) // 2 + 1
    # pad to length 2*L_out + 2 so the even/odd reshape trick gives the three
    # window taps as contiguous slices (no strided gathers).
    right = 2 * L_out + 1 - L
    xp = jnp.pad(x, ((0, 0), (1, right), (0, 0)),
                 constant_values=-jnp.inf)
    r = xp.reshape(B, L_out + 1, 2, C)
    a0 = r[:, :L_out, 0, :].reshape(B * L_out, C)
    a1 = r[:, :L_out, 1, :].reshape(B * L_out, C)
    a2 = r[:, 1:, 0, :].reshape(B * L_out, C)
    out = pl.pallas_call(
        _max3_kernel,
        out_shape=jax.ShapeDtypeStruct((B * L_out, C), jnp.float32),
        in_specs=[_VMEM, _VMEM, _VMEM],
        out_specs=_VMEM,
    )(a0, a1, a2)
    return out.reshape(B, L_out, C)


# --------------------------------------------------------------------------
# Parameter init (synthetic, deterministic; weights packed once here)
# --------------------------------------------------------------------------
def _bn_params(key, c):
    k1, k2, k3, k4 = jax.random.split(key, 4)
    gamma = jax.random.uniform(k1, (c,), minval=0.5, maxval=1.5)
    beta = 0.1 * jax.random.normal(k2, (c,))
    mean = 0.1 * jax.random.normal(k3, (c,))
    var = jax.random.uniform(k4, (c,), minval=0.5, maxval=1.5)
    scale = gamma / jnp.sqrt(var + _BN_EPS)      # eval-mode BN -> scale/bias
    bias = beta - mean * scale
    return scale.astype(jnp.float32), bias.astype(jnp.float32)


def _conv_w(key, cout, cin, k):
    return (jax.random.normal(key, (cout, cin, k)) /
            jnp.sqrt(cin * k)).astype(jnp.float32)


def _linear_params(key, cin, cout):
    k1, k2 = jax.random.split(key)
    w = (jax.random.normal(k1, (cout, cin)) / jnp.sqrt(cin)).astype(jnp.float32)
    b = (0.1 * jax.random.normal(k2, (cout,))).astype(jnp.float32)
    return w, b


def _pack_mm(w2, scale, bias):
    """w2: (K, N) f32; returns pre-padded bf16 weight + f32 scale/bias rows."""
    K, N = w2.shape
    Kp, Np = _pad_k(K), _pad_n(N)
    w = jnp.zeros((Kp, Np), jnp.bfloat16).at[:K, :N].set(
        w2.astype(jnp.bfloat16))
    s = jnp.zeros((1, Np), jnp.float32).at[:, :N].set(
        scale.reshape(1, N).astype(jnp.float32))
    b = jnp.zeros((1, Np), jnp.float32).at[:, :N].set(
        bias.reshape(1, N).astype(jnp.float32))
    return {"w": w, "s": s, "b": b}


def _pack_conv(w, scale, bias):
    cout, cin, k = w.shape
    w2 = jnp.transpose(w, (2, 1, 0)).reshape(k * cin, cout)  # row = j*Cin + c
    return _pack_mm(w2, scale, bias)


def init_resnet(key):
    keys = jax.random.split(key, 2 + len(_BLOCK_CFG))
    stem_w = _conv_w(keys[0], 64, 1, 7)
    s, b = _bn_params(keys[1], 64)
    params = {"stem": _pack_conv(stem_w, s, b), "blocks": []}
    for cfg, bk in zip(_BLOCK_CFG, keys[2:]):
        inpl, planes, stage, blk, _dil = cfg
        bkeys = jax.random.split(bk, 6)
        w1 = _conv_w(bkeys[0], planes, inpl, 3)
        s1, b1 = _bn_params(bkeys[1], planes)
        w2 = _conv_w(bkeys[2], planes, planes, 3)
        s2, b2 = _bn_params(bkeys[3], planes)
        bp = {"conv1": _pack_conv(w1, s1, b1),
              "conv2": _pack_conv(w2, s2, b2)}
        if blk == 0:
            w3 = _conv_w(bkeys[4], planes, inpl, 1)
            s3, b3 = _bn_params(bkeys[5], planes)
            bp["conv3"] = _pack_conv(w3, s3, b3)
        params["blocks"].append(bp)
    return params


def init_combined(key, nb_classes):
    k1, k2, k3, k4, k5 = jax.random.split(key, 5)
    fc_w, fc_b = _linear_params(k3, 1024, 1024)
    bn_s, bn_b = _bn_params(k4, 1024)
    lw, lb = _linear_params(k5, 1024, nb_classes)
    return {
        "resnet_time": init_resnet(k1),
        "resnet_dir": init_resnet(k2),
        # fc -> bn -> relu fused: (x@W.T + b)*s + t  ==  x@W.T * s + (b*s + t)
        "fc": _pack_mm(fc_w.T, bn_s, fc_b * bn_s + bn_b),
        "last_fc": _pack_mm(lw.T, jnp.ones((nb_classes,), jnp.float32), lb),
    }


# --------------------------------------------------------------------------
# Forward passes
# --------------------------------------------------------------------------
def resnet_forward(params, x_nlc):
    # x_nlc: (B, L, 1)
    out = conv1d_bn(x_nlc, params["stem"], n_out=64, k=7, stride=2, padding=3,
                    dilation=1, relu=True)
    out = maxpool1d_k3s2p1(out)
    for cfg, bp in zip(_BLOCK_CFG, params["blocks"]):
        inpl, planes, stage, blk, dil = cfg
        stride = _block_stride(stage, blk)
        if blk == 0:
            identity = conv1d_bn(out, bp["conv3"], n_out=planes, k=1,
                                 stride=stride, padding=0, dilation=1,
                                 relu=False)
        else:
            identity = out
        y = conv1d_bn(out, bp["conv1"], n_out=planes, k=3, stride=stride,
                      padding=dil[0], dilation=dil[0], relu=True)
        # conv2 + BN + residual add + ReLU fused into one kernel epilogue
        out = conv1d_bn(y, bp["conv2"], n_out=planes, k=3, stride=1,
                        padding=dil[1], dilation=dil[1], relu=True,
                        residual=identity)
    return global_avgpool(out)  # (B, 512) == AdaptiveAvgPool1d(1) + view(-1, 512)


def combined_forward(params, dir_input, time_input, *, nb_classes):
    # dir_input, time_input: PyTorch NCL (B, 1, L)
    d_x = jnp.transpose(dir_input, (0, 2, 1)).astype(jnp.float32)
    t_x = jnp.transpose(time_input, (0, 2, 1)).astype(jnp.float32)
    t = resnet_forward(params["resnet_time"], t_x)   # (B, 512)
    d = resnet_forward(params["resnet_dir"], d_x)    # (B, 512)
    out = jnp.concatenate([d, t], axis=1)            # (B, 1024), torch.cat((d, t))

    out = mm_affine(out, params["fc"], n_out=1024, relu=True)   # fc+bn+relu
    # TODO(synk): nn.Dropout(p=0.5) is identity in eval mode; training dropout omitted.
    out = mm_affine(out, params["last_fc"], n_out=nb_classes, relu=False)
    return softmax_rows(out)                         # torch.softmax(dim=1)


# --------------------------------------------------------------------------
if __name__ == "__main__":
    B, L, NB_CLASSES = 2, 64, 10
    key = jax.random.PRNGKey(0)
    kp, kd, kt = jax.random.split(key, 3)

    params = init_combined(kp, NB_CLASSES)
    dir_input = jax.random.normal(kd, (B, 1, L), dtype=jnp.float32)    # NCL
    time_input = jax.random.normal(kt, (B, 1, L), dtype=jnp.float32)

    fwd = jax.jit(functools.partial(combined_forward, nb_classes=NB_CLASSES))
    out = jax.block_until_ready(fwd(params, dir_input, time_input))

    assert out.shape == (B, NB_CLASSES)
    assert bool(jnp.all(jnp.isfinite(out)))
    # rows of a softmax sum to 1
    assert bool(jnp.allclose(jnp.sum(out, axis=1), 1.0, atol=1e-3))
    print("KERNEL_OK")
</pallas_src>

<mosaic_0001>
module attributes {stable_mosaic.version = 11 : i64} {
  func.func @_max3_kernel(%arg0: memref<32x64xf32, #tpu.memory_space<vmem>>, %arg1: memref<32x64xf32, #tpu.memory_space<vmem>>, %arg2: memref<32x64xf32, #tpu.memory_space<vmem>>, %arg3: memref<32x64xf32, #tpu.memory_space<vmem>>) attributes {dimension_semantics = [], scalar_prefetch = 0 : i64, scratch_operands = 0 : i64, tpu.core_type = #tpu.core_type<tc>} {
    %c0 = arith.constant 0 : index
    %c0_0 = arith.constant 0 : index
    %0 = vector.load %arg0[%c0, %c0_0] : memref<32x64xf32, #tpu.memory_space<vmem>>, vector<32x64xf32>
    %c0_1 = arith.constant 0 : index
    %c0_2 = arith.constant 0 : index
    %1 = vector.load %arg1[%c0_1, %c0_2] : memref<32x64xf32, #tpu.memory_space<vmem>>, vector<32x64xf32>
    %2 = arith.maximumf %0, %1 : vector<32x64xf32>
    %c0_3 = arith.constant 0 : index
    %c0_4 = arith.constant 0 : index
    %3 = vector.load %arg2[%c0_3, %c0_4] : memref<32x64xf32, #tpu.memory_space<vmem>>, vector<32x64xf32>
    %4 = arith.maximumf %2, %3 : vector<32x64xf32>
    %c0_5 = arith.constant 0 : index
    %c0_6 = arith.constant 0 : index
    %5 = vector.load %arg3[%c0_5, %c0_6] : memref<32x64xf32, #tpu.memory_space<vmem>>, vector<32x64xf32>
    tpu.vector_store %arg3[%c0_5, %c0_6], %4 {strides = array<i32>} : memref<32x64xf32, #tpu.memory_space<vmem>>, vector<32x64xf32>,
    return
  }
}

module attributes {stable_mosaic.version = 11 : i64} {
  func.func @_mm_affine_kernel(%arg0: i32, %arg1: i32, %arg2: i32, %arg3: memref<64x8xbf16, #tpu.memory_space<vmem>>, %arg4: memref<8x128xbf16, #tpu.memory_space<vmem>>, %arg5: memref<1x128xf32, #tpu.memory_space<vmem>>, %arg6: memref<1x128xf32, #tpu.memory_space<vmem>>, %arg7: memref<64x128xf32, #tpu.memory_space<vmem>>, %arg8: memref<64x128xf32, #tpu.memory_space<vmem>>) attributes {dimension_semantics = [#tpu.dimension_semantics<parallel>, #tpu.dimension_semantics<parallel>, #tpu.dimension_semantics<arbitrary>], iteration_bounds = array<i64: 1, 1, 1>, scalar_prefetch = 0 : i64, scratch_operands = 1 : i64, tpu.core_type = #tpu.core_type<tc>, window_params = [{transform_indices = @transform_0, window_bounds = array<i64: 64, 8>}, {transform_indices = @transform_1, window_bounds = array<i64: 8, 128>}, {transform_indices = @transform_2, window_bounds = array<i64: 1, 128>}, {transform_indices = @transform_3, window_bounds = array<i64: 1, 128>}, {transform_indices = @transform_4, window_bounds = array<i64: 64, 128>}]} {
    %c0_i32 = arith.constant 0 : i32
    %0 = arith.cmpi eq, %arg2, %c0_i32 : i32
    %1 = arith.extui %0 : i1 to i32
    %c0_i32_0 = arith.constant 0 : i32
    %2 = arith.cmpi ne, %1, %c0_i32_0 : i32
    scf.if %2 {
      %cst_10 = arith.constant 0.000000e+00 : f32
      %12 = vector.broadcast %cst_10 : f32 to vector<64x128xf32>
      %c0_11 = arith.constant 0 : index
      %c0_12 = arith.constant 0 : index
      %13 = vector.load %arg8[%c0_11, %c0_12] : memref<64x128xf32, #tpu.memory_space<vmem>>, vector<64x128xf32>
      tpu.vector_store %arg8[%c0_11, %c0_12], %12 {strides = array<i32>} : memref<64x128xf32, #tpu.memory_space<vmem>>, vector<64x128xf32>,
    } else {
    }
    %c0 = arith.constant 0 : index
    %c0_1 = arith.constant 0 : index
    %3 = vector.load %arg8[%c0, %c0_1] : memref<64x128xf32, #tpu.memory_space<vmem>>, vector<64x128xf32>
    %c0_2 = arith.constant 0 : index
    %c0_3 = arith.constant 0 : index
    %4 = vector.load %arg3[%c0_2, %c0_3] : memref<64x8xbf16, #tpu.memory_space<vmem>>, vector<64x8xbf16>
    %c0_4 = arith.constant 0 : index
    %c0_5 = arith.constant 0 : index
    %5 = vector.load %arg4[%c0_4, %c0_5] : memref<8x128xbf16, #tpu.memory_space<vmem>>, vector<8x128xbf16>
    %cst = arith.constant dense<0.000000e+00> : vector<64x128xf32>
    %6 = tpu.matmul %4, %5, %cst {dimension_numbers = #tpu.dot_dimension_numbers<[1], [0], [0], [1], [0, 0, 1, 1], [], []>} : vector<64x8xbf16>, vector<8x128xbf16>, vector<64x128xf32> -> vector<64x128xf32>
    %7 = arith.addf %3, %6 : vector<64x128xf32>
    %c0_6 = arith.constant 0 : index
    %c0_7 = arith.constant 0 : index
    %8 = vector.load %arg8[%c0_6, %c0_7] : memref<64x128xf32, #tpu.memory_space<vmem>>, vector<64x128xf32>
    tpu.vector_store %arg8[%c0_6, %c0_7], %7 {strides = array<i32>} : memref<64x128xf32, #tpu.memory_space<vmem>>, vector<64x128xf32>,
    %c0_i32_8 = arith.constant 0 : i32
    %9 = arith.cmpi eq, %arg2, %c0_i32_8 : i32
    %10 = arith.extui %9 : i1 to i32
    %c0_i32_9 = arith.constant 0 : i32
    %11 = arith.cmpi ne, %10, %c0_i32_9 : i32
    scf.if %11 {
      %c0_10 = arith.constant 0 : index
      %c0_11 = arith.constant 0 : index
      %12 = vector.load %arg8[%c0_10, %c0_11] : memref<64x128xf32, #tpu.memory_space<vmem>>, vector<64x128xf32>
      %c0_12 = arith.constant 0 : index
      %c0_13 = arith.constant 0 : index
      %13 = vector.load %arg5[%c0_12, %c0_13] : memref<1x128xf32, #tpu.memory_space<vmem>>, vector<1x128xf32>
      %14 = vector.broadcast %13 : vector<1x128xf32> to vector<64x128xf32>
      %15 = arith.mulf %12, %14 : vector<64x128xf32>
      %c0_14 = arith.constant 0 : index
      %c0_15 = arith.constant 0 : index
      %16 = vector.load %arg6[%c0_14, %c0_15] : memref<1x128xf32, #tpu.memory_space<vmem>>, vector<1x128xf32>
      %17 = vector.broadcast %16 : vector<1x128xf32> to vector<64x128xf32>
      %18 = arith.addf %15, %17 : vector<64x128xf32>
      %cst_16 = arith.constant 0.000000e+00 : f32
      %19 = vector.broadcast %cst_16 : f32 to vector<64x128xf32>
      %20 = arith.maximumf %18, %19 : vector<64x128xf32>
      %c0_17 = arith.constant 0 : index
      %c0_18 = arith.constant 0 : index
      %21 = vector.load %arg7[%c0_17, %c0_18] : memref<64x128xf32, #tpu.memory_space<vmem>>, vector<64x128xf32>
      tpu.vector_store %arg7[%c0_17, %c0_18], %20 {strides = array<i32>} : memref<64x128xf32, #tpu.memory_space<vmem>>, vector<64x128xf32>,
    } else {
    }
    return
  }
  func.func @transform_0(%arg0: i32, %arg1: i32, %arg2: i32) -> (i32, i32) {
    %c0_i32 = arith.constant 0 : i32
    return %arg0, %arg2 : i32, i32
  }
  func.func @transform_1(%arg0: i32, %arg1: i32, %arg2: i32) -> (i32, i32) {
    %c0_i32 = arith.constant 0 : i32
    return %arg2, %arg1 : i32, i32
  }
  func.func @transform_2(%arg0: i32, %arg1: i32, %arg2: i32) -> (i32, i32) {
    %c0_i32 = arith.constant 0 : i32
    %c0_i32_0 = arith.constant 0 : i32
    return %c0_i32, %arg1 : i32, i32
  }
  func.func @transform_3(%arg0: i32, %arg1: i32, %arg2: i32) -> (i32, i32) {
    %c0_i32 = arith.constant 0 : i32
    %c0_i32_0 = arith.constant 0 : i32
    return %c0_i32, %arg1 : i32, i32
  }
  func.func @transform_4(%arg0: i32, %arg1: i32, %arg2: i32) -> (i32, i32) {
    %c0_i32 = arith.constant 0 : i32
    return %arg0, %arg1 : i32, i32
  }
}

module attributes {stable_mosaic.version = 11 : i64} {
  func.func @_mm_affine_kernel(%arg0: i32, %arg1: i32, %arg2: i32, %arg3: memref<32x64xbf16, #tpu.memory_space<vmem>>, %arg4: memref<64x128xbf16, #tpu.memory_space<vmem>>, %arg5: memref<1x128xf32, #tpu.memory_space<vmem>>, %arg6: memref<1x128xf32, #tpu.memory_space<vmem>>, %arg7: memref<32x128xf32, #tpu.memory_space<vmem>>, %arg8: memref<32x128xf32, #tpu.memory_space<vmem>>) attributes {dimension_semantics = [#tpu.dimension_semantics<parallel>, #tpu.dimension_semantics<parallel>, #tpu.dimension_semantics<arbitrary>], iteration_bounds = array<i64: 1, 1, 1>, scalar_prefetch = 0 : i64, scratch_operands = 1 : i64, tpu.core_type = #tpu.core_type<tc>, window_params = [{transform_indices = @transform_0, window_bounds = array<i64: 32, 64>}, {transform_indices = @transform_1, window_bounds = array<i64: 64, 128>}, {transform_indices = @transform_2, window_bounds = array<i64: 1, 128>}, {transform_indices = @transform_3, window_bounds = array<i64: 1, 128>}, {transform_indices = @transform_4, window_bounds = array<i64: 32, 128>}]} {
    %c0_i32 = arith.constant 0 : i32
    %0 = arith.cmpi eq, %arg2, %c0_i32 : i32
    %1 = arith.extui %0 : i1 to i32
    %c0_i32_0 = arith.constant 0 : i32
    %2 = arith.cmpi ne, %1, %c0_i32_0 : i32
    scf.if %2 {
      %cst_10 = arith.constant 0.000000e+00 : f32
      %12 = vector.broadcast %cst_10 : f32 to vector<32x128xf32>
      %c0_11 = arith.constant 0 : index
      %c0_12 = arith.constant 0 : index
      %13 = vector.load %arg8[%c0_11, %c0_12] : memref<32x128xf32, #tpu.memory_space<vmem>>, vector<32x128xf32>
      tpu.vector_store %arg8[%c0_11, %c0_12], %12 {strides = array<i32>} : memref<32x128xf32, #tpu.memory_space<vmem>>, vector<32x128xf32>,
    } else {
    }
    %c0 = arith.constant 0 : index
    %c0_1 = arith.constant 0 : index
    %3 = vector.load %arg8[%c0, %c0_1] : memref<32x128xf32, #tpu.memory_space<vmem>>, vector<32x128xf32>
    %c0_2 = arith.constant 0 : index
    %c0_3 = arith.constant 0 : index
    %4 = vector.load %arg3[%c0_2, %c0_3] : memref<32x64xbf16, #tpu.memory_space<vmem>>, vector<32x64xbf16>
    %c0_4 = arith.constant 0 : index
    %c0_5 = arith.constant 0 : index
    %5 = vector.load %arg4[%c0_4, %c0_5] : memref<64x128xbf16, #tpu.memory_space<vmem>>, vector<64x128xbf16>
    %cst = arith.constant dense<0.000000e+00> : vector<32x128xf32>
    %6 = tpu.matmul %4, %5, %cst {dimension_numbers = #tpu.dot_dimension_numbers<[1], [0], [0], [1], [0, 0, 1, 1], [], []>} : vector<32x64xbf16>, vector<64x128xbf16>, vector<32x128xf32> -> vector<32x128xf32>
    %7 = arith.addf %3, %6 : vector<32x128xf32>
    %c0_6 = arith.constant 0 : index
    %c0_7 = arith.constant 0 : index
    %8 = vector.load %arg8[%c0_6, %c0_7] : memref<32x128xf32, #tpu.memory_space<vmem>>, vector<32x128xf32>
    tpu.vector_store %arg8[%c0_6, %c0_7], %7 {strides = array<i32>} : memref<32x128xf32, #tpu.memory_space<vmem>>, vector<32x128xf32>,
    %c0_i32_8 = arith.constant 0 : i32
    %9 = arith.cmpi eq, %arg2, %c0_i32_8 : i32
    %10 = arith.extui %9 : i1 to i32
    %c0_i32_9 = arith.constant 0 : i32
    %11 = arith.cmpi ne, %10, %c0_i32_9 : i32
    scf.if %11 {
      %c0_10 = arith.constant 0 : index
      %c0_11 = arith.constant 0 : index
      %12 = vector.load %arg8[%c0_10, %c0_11] : memref<32x128xf32, #tpu.memory_space<vmem>>, vector<32x128xf32>
      %c0_12 = arith.constant 0 : index
      %c0_13 = arith.constant 0 : index
      %13 = vector.load %arg5[%c0_12, %c0_13] : memref<1x128xf32, #tpu.memory_space<vmem>>, vector<1x128xf32>
      %14 = vector.broadcast %13 : vector<1x128xf32> to vector<32x128xf32>
      %15 = arith.mulf %12, %14 : vector<32x128xf32>
      %c0_14 = arith.constant 0 : index
      %c0_15 = arith.constant 0 : index
      %16 = vector.load %arg6[%c0_14, %c0_15] : memref<1x128xf32, #tpu.memory_space<vmem>>, vector<1x128xf32>
      %17 = vector.broadcast %16 : vector<1x128xf32> to vector<32x128xf32>
      %18 = arith.addf %15, %17 : vector<32x128xf32>
      %c0_16 = arith.constant 0 : index
      %c0_17 = arith.constant 0 : index
      %19 = vector.load %arg7[%c0_16, %c0_17] : memref<32x128xf32, #tpu.memory_space<vmem>>, vector<32x128xf32>
      tpu.vector_store %arg7[%c0_16, %c0_17], %18 {strides = array<i32>} : memref<32x128xf32, #tpu.memory_space<vmem>>, vector<32x128xf32>,
    } else {
    }
    return
  }
  func.func @transform_0(%arg0: i32, %arg1: i32, %arg2: i32) -> (i32, i32) {
    %c0_i32 = arith.constant 0 : i32
    return %arg0, %arg2 : i32, i32
  }
  func.func @transform_1(%arg0: i32, %arg1: i32, %arg2: i32) -> (i32, i32) {
    %c0_i32 = arith.constant 0 : i32
    return %arg2, %arg1 : i32, i32
  }
  func.func @transform_2(%arg0: i32, %arg1: i32, %arg2: i32) -> (i32, i32) {
    %c0_i32 = arith.constant 0 : i32
    %c0_i32_0 = arith.constant 0 : i32
    return %c0_i32, %arg1 : i32, i32
  }
  func.func @transform_3(%arg0: i32, %arg1: i32, %arg2: i32) -> (i32, i32) {
    %c0_i32 = arith.constant 0 : i32
    %c0_i32_0 = arith.constant 0 : i32
    return %c0_i32, %arg1 : i32, i32
  }
  func.func @transform_4(%arg0: i32, %arg1: i32, %arg2: i32) -> (i32, i32) {
    %c0_i32 = arith.constant 0 : i32
    return %arg0, %arg1 : i32, i32
  }
}

module attributes {stable_mosaic.version = 11 : i64} {
  func.func @_mm_affine_kernel(%arg0: i32, %arg1: i32, %arg2: i32, %arg3: memref<32x256xbf16, #tpu.memory_space<vmem>>, %arg4: memref<256x128xbf16, #tpu.memory_space<vmem>>, %arg5: memref<1x128xf32, #tpu.memory_space<vmem>>, %arg6: memref<1x128xf32, #tpu.memory_space<vmem>>, %arg7: memref<32x128xf32, #tpu.memory_space<vmem>>, %arg8: memref<32x128xf32, #tpu.memory_space<vmem>>) attributes {dimension_semantics = [#tpu.dimension_semantics<parallel>, #tpu.dimension_semantics<parallel>, #tpu.dimension_semantics<arbitrary>], iteration_bounds = array<i64: 1, 1, 1>, scalar_prefetch = 0 : i64, scratch_operands = 1 : i64, tpu.core_type = #tpu.core_type<tc>, window_params = [{transform_indices = @transform_0, window_bounds = array<i64: 32, 256>}, {transform_indices = @transform_1, window_bounds = array<i64: 256, 128>}, {transform_indices = @transform_2, window_bounds = array<i64: 1, 128>}, {transform_indices = @transform_3, window_bounds = array<i64: 1, 128>}, {transform_indices = @transform_4, window_bounds = array<i64: 32, 128>}]} {
    %c0_i32 = arith.constant 0 : i32
    %0 = arith.cmpi eq, %arg2, %c0_i32 : i32
    %1 = arith.extui %0 : i1 to i32
    %c0_i32_0 = arith.constant 0 : i32
    %2 = arith.cmpi ne, %1, %c0_i32_0 : i32
    scf.if %2 {
      %cst_10 = arith.constant 0.000000e+00 : f32
      %12 = vector.broadcast %cst_10 : f32 to vector<32x128xf32>
      %c0_11 = arith.constant 0 : index
      %c0_12 = arith.constant 0 : index
      %13 = vector.load %arg8[%c0_11, %c0_12] : memref<32x128xf32, #tpu.memory_space<vmem>>, vector<32x128xf32>
      tpu.vector_store %arg8[%c0_11, %c0_12], %12 {strides = array<i32>} : memref<32x128xf32, #tpu.memory_space<vmem>>, vector<32x128xf32>,
    } else {
    }
    %c0 = arith.constant 0 : index
    %c0_1 = arith.constant 0 : index
    %3 = vector.load %arg8[%c0, %c0_1] : memref<32x128xf32, #tpu.memory_space<vmem>>, vector<32x128xf32>
    %c0_2 = arith.constant 0 : index
    %c0_3 = arith.constant 0 : index
    %4 = vector.load %arg3[%c0_2, %c0_3] : memref<32x256xbf16, #tpu.memory_space<vmem>>, vector<32x256xbf16>
    %c0_4 = arith.constant 0 : index
    %c0_5 = arith.constant 0 : index
    %5 = vector.load %arg4[%c0_4, %c0_5] : memref<256x128xbf16, #tpu.memory_space<vmem>>, vector<256x128xbf16>
    %cst = arith.constant dense<0.000000e+00> : vector<32x128xf32>
    %6 = tpu.matmul %4, %5, %cst {dimension_numbers = #tpu.dot_dimension_numbers<[1], [0], [0], [1], [0, 0, 1, 1], [], []>} : vector<32x256xbf16>, vector<256x128xbf16>, vector<32x128xf32> -> vector<32x128xf32>
    %7 = arith.addf %3, %6 : vector<32x128xf32>
    %c0_6 = arith.constant 0 : index
    %c0_7 = arith.constant 0 : index
    %8 = vector.load %arg8[%c0_6, %c0_7] : memref<32x128xf32, #tpu.memory_space<vmem>>, vector<32x128xf32>
    tpu.vector_store %arg8[%c0_6, %c0_7], %7 {strides = array<i32>} : memref<32x128xf32, #tpu.memory_space<vmem>>, vector<32x128xf32>,
    %c0_i32_8 = arith.constant 0 : i32
    %9 = arith.cmpi eq, %arg2, %c0_i32_8 : i32
    %10 = arith.extui %9 : i1 to i32
    %c0_i32_9 = arith.constant 0 : i32
    %11 = arith.cmpi ne, %10, %c0_i32_9 : i32
    scf.if %11 {
      %c0_10 = arith.constant 0 : index
      %c0_11 = arith.constant 0 : index
      %12 = vector.load %arg8[%c0_10, %c0_11] : memref<32x128xf32, #tpu.memory_space<vmem>>, vector<32x128xf32>
      %c0_12 = arith.constant 0 : index
      %c0_13 = arith.constant 0 : index
      %13 = vector.load %arg5[%c0_12, %c0_13] : memref<1x128xf32, #tpu.memory_space<vmem>>, vector<1x128xf32>
      %14 = vector.broadcast %13 : vector<1x128xf32> to vector<32x128xf32>
      %15 = arith.mulf %12, %14 : vector<32x128xf32>
      %c0_14 = arith.constant 0 : index
      %c0_15 = arith.constant 0 : index
      %16 = vector.load %arg6[%c0_14, %c0_15] : memref<1x128xf32, #tpu.memory_space<vmem>>, vector<1x128xf32>
      %17 = vector.broadcast %16 : vector<1x128xf32> to vector<32x128xf32>
      %18 = arith.addf %15, %17 : vector<32x128xf32>
      %cst_16 = arith.constant 0.000000e+00 : f32
      %19 = vector.broadcast %cst_16 : f32 to vector<32x128xf32>
      %20 = arith.maximumf %18, %19 : vector<32x128xf32>
      %c0_17 = arith.constant 0 : index
      %c0_18 = arith.constant 0 : index
      %21 = vector.load %arg7[%c0_17, %c0_18] : memref<32x128xf32, #tpu.memory_space<vmem>>, vector<32x128xf32>
      tpu.vector_store %arg7[%c0_17, %c0_18], %20 {strides = array<i32>} : memref<32x128xf32, #tpu.memory_space<vmem>>, vector<32x128xf32>,
    } else {
    }
    return
  }
  func.func @transform_0(%arg0: i32, %arg1: i32, %arg2: i32) -> (i32, i32) {
    %c0_i32 = arith.constant 0 : i32
    return %arg0, %arg2 : i32, i32
  }
  func.func @transform_1(%arg0: i32, %arg1: i32, %arg2: i32) -> (i32, i32) {
    %c0_i32 = arith.constant 0 : i32
    return %arg2, %arg1 : i32, i32
  }
  func.func @transform_2(%arg0: i32, %arg1: i32, %arg2: i32) -> (i32, i32) {
    %c0_i32 = arith.constant 0 : i32
    %c0_i32_0 = arith.constant 0 : i32
    return %c0_i32, %arg1 : i32, i32
  }
  func.func @transform_3(%arg0: i32, %arg1: i32, %arg2: i32) -> (i32, i32) {
    %c0_i32 = arith.constant 0 : i32
    %c0_i32_0 = arith.constant 0 : i32
    return %c0_i32, %arg1 : i32, i32
  }
  func.func @transform_4(%arg0: i32, %arg1: i32, %arg2: i32) -> (i32, i32) {
    %c0_i32 = arith.constant 0 : i32
    return %arg0, %arg1 : i32, i32
  }
}

module attributes {stable_mosaic.version = 11 : i64} {
  func.func @_mm_affine_kernel(%arg0: i32, %arg1: i32, %arg2: i32, %arg3: memref<32x64xbf16, #tpu.memory_space<vmem>>, %arg4: memref<64x128xbf16, #tpu.memory_space<vmem>>, %arg5: memref<1x128xf32, #tpu.memory_space<vmem>>, %arg6: memref<1x128xf32, #tpu.memory_space<vmem>>, %arg7: memref<32x128xf32, #tpu.memory_space<vmem>>, %arg8: memref<32x128xf32, #tpu.memory_space<vmem>>) attributes {dimension_semantics = [#tpu.dimension_semantics<parallel>, #tpu.dimension_semantics<parallel>, #tpu.dimension_semantics<arbitrary>], iteration_bounds = array<i64: 1, 1, 1>, scalar_prefetch = 0 : i64, scratch_operands = 1 : i64, tpu.core_type = #tpu.core_type<tc>, window_params = [{transform_indices = @transform_0, window_bounds = array<i64: 32, 64>}, {transform_indices = @transform_1, window_bounds = array<i64: 64, 128>}, {transform_indices = @transform_2, window_bounds = array<i64: 1, 128>}, {transform_indices = @transform_3, window_bounds = array<i64: 1, 128>}, {transform_indices = @transform_4, window_bounds = array<i64: 32, 128>}]} {
    %c0_i32 = arith.constant 0 : i32
    %0 = arith.cmpi eq, %arg2, %c0_i32 : i32
    %1 = arith.extui %0 : i1 to i32
    %c0_i32_0 = arith.constant 0 : i32
    %2 = arith.cmpi ne, %1, %c0_i32_0 : i32
    scf.if %2 {
      %cst_10 = arith.constant 0.000000e+00 : f32
      %12 = vector.broadcast %cst_10 : f32 to vector<32x128xf32>
      %c0_11 = arith.constant 0 : index
      %c0_12 = arith.constant 0 : index
      %13 = vector.load %arg8[%c0_11, %c0_12] : memref<32x128xf32, #tpu.memory_space<vmem>>, vector<32x128xf32>
      tpu.vector_store %arg8[%c0_11, %c0_12], %12 {strides = array<i32>} : memref<32x128xf32, #tpu.memory_space<vmem>>, vector<32x128xf32>,
    } else {
    }
    %c0 = arith.constant 0 : index
    %c0_1 = arith.constant 0 : index
    %3 = vector.load %arg8[%c0, %c0_1] : memref<32x128xf32, #tpu.memory_space<vmem>>, vector<32x128xf32>
    %c0_2 = arith.constant 0 : index
    %c0_3 = arith.constant 0 : index
    %4 = vector.load %arg3[%c0_2, %c0_3] : memref<32x64xbf16, #tpu.memory_space<vmem>>, vector<32x64xbf16>
    %c0_4 = arith.constant 0 : index
    %c0_5 = arith.constant 0 : index
    %5 = vector.load %arg4[%c0_4, %c0_5] : memref<64x128xbf16, #tpu.memory_space<vmem>>, vector<64x128xbf16>
    %cst = arith.constant dense<0.000000e+00> : vector<32x128xf32>
    %6 = tpu.matmul %4, %5, %cst {dimension_numbers = #tpu.dot_dimension_numbers<[1], [0], [0], [1], [0, 0, 1, 1], [], []>} : vector<32x64xbf16>, vector<64x128xbf16>, vector<32x128xf32> -> vector<32x128xf32>
    %7 = arith.addf %3, %6 : vector<32x128xf32>
    %c0_6 = arith.constant 0 : index
    %c0_7 = arith.constant 0 : index
    %8 = vector.load %arg8[%c0_6, %c0_7] : memref<32x128xf32, #tpu.memory_space<vmem>>, vector<32x128xf32>
    tpu.vector_store %arg8[%c0_6, %c0_7], %7 {strides = array<i32>} : memref<32x128xf32, #tpu.memory_space<vmem>>, vector<32x128xf32>,
    %c0_i32_8 = arith.constant 0 : i32
    %9 = arith.cmpi eq, %arg2, %c0_i32_8 : i32
    %10 = arith.extui %9 : i1 to i32
    %c0_i32_9 = arith.constant 0 : i32
    %11 = arith.cmpi ne, %10, %c0_i32_9 : i32
    scf.if %11 {
      %c0_10 = arith.constant 0 : index
      %c0_11 = arith.constant 0 : index
      %12 = vector.load %arg8[%c0_10, %c0_11] : memref<32x128xf32, #tpu.memory_space<vmem>>, vector<32x128xf32>
      %c0_12 = arith.constant 0 : index
      %c0_13 = arith.constant 0 : index
      %13 = vector.load %arg5[%c0_12, %c0_13] : memref<1x128xf32, #tpu.memory_space<vmem>>, vector<1x128xf32>
      %14 = vector.broadcast %13 : vector<1x128xf32> to vector<32x128xf32>
      %15 = arith.mulf %12, %14 : vector<32x128xf32>
      %c0_14 = arith.constant 0 : index
      %c0_15 = arith.constant 0 : index
      %16 = vector.load %arg6[%c0_14, %c0_15] : memref<1x128xf32, #tpu.memory_space<vmem>>, vector<1x128xf32>
      %17 = vector.broadcast %16 : vector<1x128xf32> to vector<32x128xf32>
      %18 = arith.addf %15, %17 : vector<32x128xf32>
      %c0_16 = arith.constant 0 : index
      %c0_17 = arith.constant 0 : index
      %19 = vector.load %arg7[%c0_16, %c0_17] : memref<32x128xf32, #tpu.memory_space<vmem>>, vector<32x128xf32>
      tpu.vector_store %arg7[%c0_16, %c0_17], %18 {strides = array<i32>} : memref<32x128xf32, #tpu.memory_space<vmem>>, vector<32x128xf32>,
    } else {
    }
    return
  }
  func.func @transform_0(%arg0: i32, %arg1: i32, %arg2: i32) -> (i32, i32) {
    %c0_i32 = arith.constant 0 : i32
    return %arg0, %arg2 : i32, i32
  }
  func.func @transform_1(%arg0: i32, %arg1: i32, %arg2: i32) -> (i32, i32) {
    %c0_i32 = arith.constant 0 : i32
    return %arg2, %arg1 : i32, i32
  }
  func.func @transform_2(%arg0: i32, %arg1: i32, %arg2: i32) -> (i32, i32) {
    %c0_i32 = arith.constant 0 : i32
    %c0_i32_0 = arith.constant 0 : i32
    return %c0_i32, %arg1 : i32, i32
  }
  func.func @transform_3(%arg0: i32, %arg1: i32, %arg2: i32) -> (i32, i32) {
    %c0_i32 = arith.constant 0 : i32
    %c0_i32_0 = arith.constant 0 : i32
    return %c0_i32, %arg1 : i32, i32
  }
  func.func @transform_4(%arg0: i32, %arg1: i32, %arg2: i32) -> (i32, i32) {
    %c0_i32 = arith.constant 0 : i32
    return %arg0, %arg1 : i32, i32
  }
}

module attributes {stable_mosaic.version = 11 : i64} {
  func.func @_mm_affine_res_kernel(%arg0: i32, %arg1: i32, %arg2: i32, %arg3: memref<32x256xbf16, #tpu.memory_space<vmem>>, %arg4: memref<256x128xbf16, #tpu.memory_space<vmem>>, %arg5: memref<1x128xf32, #tpu.memory_space<vmem>>, %arg6: memref<1x128xf32, #tpu.memory_space<vmem>>, %arg7: memref<32x128xf32, #tpu.memory_space<vmem>>, %arg8: memref<32x128xf32, #tpu.memory_space<vmem>>, %arg9: memref<32x128xf32, #tpu.memory_space<vmem>>) attributes {dimension_semantics = [#tpu.dimension_semantics<parallel>, #tpu.dimension_semantics<parallel>, #tpu.dimension_semantics<arbitrary>], iteration_bounds = array<i64: 1, 1, 1>, scalar_prefetch = 0 : i64, scratch_operands = 1 : i64, tpu.core_type = #tpu.core_type<tc>, window_params = [{transform_indices = @transform_0, window_bounds = array<i64: 32, 256>}, {transform_indices = @transform_1, window_bounds = array<i64: 256, 128>}, {transform_indices = @transform_2, window_bounds = array<i64: 1, 128>}, {transform_indices = @transform_3, window_bounds = array<i64: 1, 128>}, {transform_indices = @transform_4, window_bounds = array<i64: 32, 128>}, {transform_indices = @transform_5, window_bounds = array<i64: 32, 128>}]} {
    %c0_i32 = arith.constant 0 : i32
    %0 = arith.cmpi eq, %arg2, %c0_i32 : i32
    %1 = arith.extui %0 : i1 to i32
    %c0_i32_0 = arith.constant 0 : i32
    %2 = arith.cmpi ne, %1, %c0_i32_0 : i32
    scf.if %2 {
      %cst_10 = arith.constant 0.000000e+00 : f32
      %12 = vector.broadcast %cst_10 : f32 to vector<32x128xf32>
      %c0_11 = arith.constant 0 : index
      %c0_12 = arith.constant 0 : index
      %13 = vector.load %arg9[%c0_11, %c0_12] : memref<32x128xf32, #tpu.memory_space<vmem>>, vector<32x128xf32>
      tpu.vector_store %arg9[%c0_11, %c0_12], %12 {strides = array<i32>} : memref<32x128xf32, #tpu.memory_space<vmem>>, vector<32x128xf32>,
    } else {
    }
    %c0 = arith.constant 0 : index
    %c0_1 = arith.constant 0 : index
    %3 = vector.load %arg9[%c0, %c0_1] : memref<32x128xf32, #tpu.memory_space<vmem>>, vector<32x128xf32>
    %c0_2 = arith.constant 0 : index
    %c0_3 = arith.constant 0 : index
    %4 = vector.load %arg3[%c0_2, %c0_3] : memref<32x256xbf16, #tpu.memory_space<vmem>>, vector<32x256xbf16>
    %c0_4 = arith.constant 0 : index
    %c0_5 = arith.constant 0 : index
    %5 = vector.load %arg4[%c0_4, %c0_5] : memref<256x128xbf16, #tpu.memory_space<vmem>>, vector<256x128xbf16>
    %cst = arith.constant dense<0.000000e+00> : vector<32x128xf32>
    %6 = tpu.matmul %4, %5, %cst {dimension_numbers = #tpu.dot_dimension_numbers<[1], [0], [0], [1], [0, 0, 1, 1], [], []>} : vector<32x256xbf16>, vector<256x128xbf16>, vector<32x128xf32> -> vector<32x128xf32>
    %7 = arith.addf %3, %6 : vector<32x128xf32>
    %c0_6 = arith.constant 0 : index
    %c0_7 = arith.constant 0 : index
    %8 = vector.load %arg9[%c0_6, %c0_7] : memref<32x128xf32, #tpu.memory_space<vmem>>, vector<32x128xf32>
    tpu.vector_store %arg9[%c0_6, %c0_7], %7 {strides = array<i32>} : memref<32x128xf32, #tpu.memory_space<vmem>>, vector<32x128xf32>,
    %c0_i32_8 = arith.constant 0 : i32
    %9 = arith.cmpi eq, %arg2, %c0_i32_8 : i32
    %10 = arith.extui %9 : i1 to i32
    %c0_i32_9 = arith.constant 0 : i32
    %11 = arith.cmpi ne, %10, %c0_i32_9 : i32
    scf.if %11 {
      %c0_10 = arith.constant 0 : index
      %c0_11 = arith.constant 0 : index
      %12 = vector.load %arg9[%c0_10, %c0_11] : memref<32x128xf32, #tpu.memory_space<vmem>>, vector<32x128xf32>
      %c0_12 = arith.constant 0 : index
      %c0_13 = arith.constant 0 : index
      %13 = vector.load %arg5[%c0_12, %c0_13] : memref<1x128xf32, #tpu.memory_space<vmem>>, vector<1x128xf32>
      %14 = vector.broadcast %13 : vector<1x128xf32> to vector<32x128xf32>
      %15 = arith.mulf %12, %14 : vector<32x128xf32>
      %c0_14 = arith.constant 0 : index
      %c0_15 = arith.constant 0 : index
      %16 = vector.load %arg6[%c0_14, %c0_15] : memref<1x128xf32, #tpu.memory_space<vmem>>, vector<1x128xf32>
      %17 = vector.broadcast %16 : vector<1x128xf32> to vector<32x128xf32>
      %18 = arith.addf %15, %17 : vector<32x128xf32>
      %c0_16 = arith.constant 0 : index
      %c0_17 = arith.constant 0 : index
      %19 = vector.load %arg7[%c0_16, %c0_17] : memref<32x128xf32, #tpu.memory_space<vmem>>, vector<32x128xf32>
      %20 = arith.addf %18, %19 : vector<32x128xf32>
      %cst_18 = arith.constant 0.000000e+00 : f32
      %21 = vector.broadcast %cst_18 : f32 to vector<32x128xf32>
      %22 = arith.maximumf %20, %21 : vector<32x128xf32>
      %c0_19 = arith.constant 0 : index
      %c0_20 = arith.constant 0 : index
      %23 = vector.load %arg8[%c0_19, %c0_20] : memref<32x128xf32, #tpu.memory_space<vmem>>, vector<32x128xf32>
      tpu.vector_store %arg8[%c0_19, %c0_20], %22 {strides = array<i32>} : memref<32x128xf32, #tpu.memory_space<vmem>>, vector<32x128xf32>,
    } else {
    }
    return
  }
  func.func @transform_0(%arg0: i32, %arg1: i32, %arg2: i32) -> (i32, i32) {
    %c0_i32 = arith.constant 0 : i32
    return %arg0, %arg2 : i32, i32
  }
  func.func @transform_1(%arg0: i32, %arg1: i32, %arg2: i32) -> (i32, i32) {
    %c0_i32 = arith.constant 0 : i32
    return %arg2, %arg1 : i32, i32
  }
  func.func @transform_2(%arg0: i32, %arg1: i32, %arg2: i32) -> (i32, i32) {
    %c0_i32 = arith.constant 0 : i32
    %c0_i32_0 = arith.constant 0 : i32
    return %c0_i32, %arg1 : i32, i32
  }
  func.func @transform_3(%arg0: i32, %arg1: i32, %arg2: i32) -> (i32, i32) {
    %c0_i32 = arith.constant 0 : i32
    %c0_i32_0 = arith.constant 0 : i32
    return %c0_i32, %arg1 : i32, i32
  }
  func.func @transform_4(%arg0: i32, %arg1: i32, %arg2: i32) -> (i32, i32) {
    %c0_i32 = arith.constant 0 : i32
    return %arg0, %arg1 : i32, i32
  }
  func.func @transform_5(%arg0: i32, %arg1: i32, %arg2: i32) -> (i32, i32) {
    %c0_i32 = arith.constant 0 : i32
    return %arg0, %arg1 : i32, i32
  }
}

module attributes {stable_mosaic.version = 11 : i64} {
  func.func @_mm_affine_kernel(%arg0: i32, %arg1: i32, %arg2: i32, %arg3: memref<16x64xbf16, #tpu.memory_space<vmem>>, %arg4: memref<64x128xbf16, #tpu.memory_space<vmem>>, %arg5: memref<1x128xf32, #tpu.memory_space<vmem>>, %arg6: memref<1x128xf32, #tpu.memory_space<vmem>>, %arg7: memref<16x128xf32, #tpu.memory_space<vmem>>, %arg8: memref<16x128xf32, #tpu.memory_space<vmem>>) attributes {dimension_semantics = [#tpu.dimension_semantics<parallel>, #tpu.dimension_semantics<parallel>, #tpu.dimension_semantics<arbitrary>], iteration_bounds = array<i64: 1, 1, 1>, scalar_prefetch = 0 : i64, scratch_operands = 1 : i64, tpu.core_type = #tpu.core_type<tc>, window_params = [{transform_indices = @transform_0, window_bounds = array<i64: 16, 64>}, {transform_indices = @transform_1, window_bounds = array<i64: 64, 128>}, {transform_indices = @transform_2, window_bounds = array<i64: 1, 128>}, {transform_indices = @transform_3, window_bounds = array<i64: 1, 128>}, {transform_indices = @transform_4, window_bounds = array<i64: 16, 128>}]} {
    %c0_i32 = arith.constant 0 : i32
    %0 = arith.cmpi eq, %arg2, %c0_i32 : i32
    %1 = arith.extui %0 : i1 to i32
    %c0_i32_0 = arith.constant 0 : i32
    %2 = arith.cmpi ne, %1, %c0_i32_0 : i32
    scf.if %2 {
      %cst_10 = arith.constant 0.000000e+00 : f32
      %12 = vector.broadcast %cst_10 : f32 to vector<16x128xf32>
      %c0_11 = arith.constant 0 : index
      %c0_12 = arith.constant 0 : index
      %13 = vector.load %arg8[%c0_11, %c0_12] : memref<16x128xf32, #tpu.memory_space<vmem>>, vector<16x128xf32>
      tpu.vector_store %arg8[%c0_11, %c0_12], %12 {strides = array<i32>} : memref<16x128xf32, #tpu.memory_space<vmem>>, vector<16x128xf32>,
    } else {
    }
    %c0 = arith.constant 0 : index
    %c0_1 = arith.constant 0 : index
    %3 = vector.load %arg8[%c0, %c0_1] : memref<16x128xf32, #tpu.memory_space<vmem>>, vector<16x128xf32>
    %c0_2 = arith.constant 0 : index
    %c0_3 = arith.constant 0 : index
    %4 = vector.load %arg3[%c0_2, %c0_3] : memref<16x64xbf16, #tpu.memory_space<vmem>>, vector<16x64xbf16>
    %c0_4 = arith.constant 0 : index
    %c0_5 = arith.constant 0 : index
    %5 = vector.load %arg4[%c0_4, %c0_5] : memref<64x128xbf16, #tpu.memory_space<vmem>>, vector<64x128xbf16>
    %cst = arith.constant dense<0.000000e+00> : vector<16x128xf32>
    %6 = tpu.matmul %4, %5, %cst {dimension_numbers = #tpu.dot_dimension_numbers<[1], [0], [0], [1], [0, 0, 1, 1], [], []>} : vector<16x64xbf16>, vector<64x128xbf16>, vector<16x128xf32> -> vector<16x128xf32>
    %7 = arith.addf %3, %6 : vector<16x128xf32>
    %c0_6 = arith.constant 0 : index
    %c0_7 = arith.constant 0 : index
    %8 = vector.load %arg8[%c0_6, %c0_7] : memref<16x128xf32, #tpu.memory_space<vmem>>, vector<16x128xf32>
    tpu.vector_store %arg8[%c0_6, %c0_7], %7 {strides = array<i32>} : memref<16x128xf32, #tpu.memory_space<vmem>>, vector<16x128xf32>,
    %c0_i32_8 = arith.constant 0 : i32
    %9 = arith.cmpi eq, %arg2, %c0_i32_8 : i32
    %10 = arith.extui %9 : i1 to i32
    %c0_i32_9 = arith.constant 0 : i32
    %11 = arith.cmpi ne, %10, %c0_i32_9 : i32
    scf.if %11 {
      %c0_10 = arith.constant 0 : index
      %c0_11 = arith.constant 0 : index
      %12 = vector.load %arg8[%c0_10, %c0_11] : memref<16x128xf32, #tpu.memory_space<vmem>>, vector<16x128xf32>
      %c0_12 = arith.constant 0 : index
      %c0_13 = arith.constant 0 : index
      %13 = vector.load %arg5[%c0_12, %c0_13] : memref<1x128xf32, #tpu.memory_space<vmem>>, vector<1x128xf32>
      %14 = vector.broadcast %13 : vector<1x128xf32> to vector<16x128xf32>
      %15 = arith.mulf %12, %14 : vector<16x128xf32>
      %c0_14 = arith.constant 0 : index
      %c0_15 = arith.constant 0 : index
      %16 = vector.load %arg6[%c0_14, %c0_15] : memref<1x128xf32, #tpu.memory_space<vmem>>, vector<1x128xf32>
      %17 = vector.broadcast %16 : vector<1x128xf32> to vector<16x128xf32>
      %18 = arith.addf %15, %17 : vector<16x128xf32>
      %c0_16 = arith.constant 0 : index
      %c0_17 = arith.constant 0 : index
      %19 = vector.load %arg7[%c0_16, %c0_17] : memref<16x128xf32, #tpu.memory_space<vmem>>, vector<16x128xf32>
      tpu.vector_store %arg7[%c0_16, %c0_17], %18 {strides = array<i32>} : memref<16x128xf32, #tpu.memory_space<vmem>>, vector<16x128xf32>,
    } else {
    }
    return
  }
  func.func @transform_0(%arg0: i32, %arg1: i32, %arg2: i32) -> (i32, i32) {
    %c0_i32 = arith.constant 0 : i32
    return %arg0, %arg2 : i32, i32
  }
  func.func @transform_1(%arg0: i32, %arg1: i32, %arg2: i32) -> (i32, i32) {
    %c0_i32 = arith.constant 0 : i32
    return %arg2, %arg1 : i32, i32
  }
  func.func @transform_2(%arg0: i32, %arg1: i32, %arg2: i32) -> (i32, i32) {
    %c0_i32 = arith.constant 0 : i32
    %c0_i32_0 = arith.constant 0 : i32
    return %c0_i32, %arg1 : i32, i32
  }
  func.func @transform_3(%arg0: i32, %arg1: i32, %arg2: i32) -> (i32, i32) {
    %c0_i32 = arith.constant 0 : i32
    %c0_i32_0 = arith.constant 0 : i32
    return %c0_i32, %arg1 : i32, i32
  }
  func.func @transform_4(%arg0: i32, %arg1: i32, %arg2: i32) -> (i32, i32) {
    %c0_i32 = arith.constant 0 : i32
    return %arg0, %arg1 : i32, i32
  }
}

module attributes {stable_mosaic.version = 11 : i64} {
  func.func @_mm_affine_kernel(%arg0: i32, %arg1: i32, %arg2: i32, %arg3: memref<16x256xbf16, #tpu.memory_space<vmem>>, %arg4: memref<256x128xbf16, #tpu.memory_space<vmem>>, %arg5: memref<1x128xf32, #tpu.memory_space<vmem>>, %arg6: memref<1x128xf32, #tpu.memory_space<vmem>>, %arg7: memref<16x128xf32, #tpu.memory_space<vmem>>, %arg8: memref<16x128xf32, #tpu.memory_space<vmem>>) attributes {dimension_semantics = [#tpu.dimension_semantics<parallel>, #tpu.dimension_semantics<parallel>, #tpu.dimension_semantics<arbitrary>], iteration_bounds = array<i64: 1, 1, 1>, scalar_prefetch = 0 : i64, scratch_operands = 1 : i64, tpu.core_type = #tpu.core_type<tc>, window_params = [{transform_indices = @transform_0, window_bounds = array<i64: 16, 256>}, {transform_indices = @transform_1, window_bounds = array<i64: 256, 128>}, {transform_indices = @transform_2, window_bounds = array<i64: 1, 128>}, {transform_indices = @transform_3, window_bounds = array<i64: 1, 128>}, {transform_indices = @transform_4, window_bounds = array<i64: 16, 128>}]} {
    %c0_i32 = arith.constant 0 : i32
    %0 = arith.cmpi eq, %arg2, %c0_i32 : i32
    %1 = arith.extui %0 : i1 to i32
    %c0_i32_0 = arith.constant 0 : i32
    %2 = arith.cmpi ne, %1, %c0_i32_0 : i32
    scf.if %2 {
      %cst_10 = arith.constant 0.000000e+00 : f32
      %12 = vector.broadcast %cst_10 : f32 to vector<16x128xf32>
      %c0_11 = arith.constant 0 : index
      %c0_12 = arith.constant 0 : index
      %13 = vector.load %arg8[%c0_11, %c0_12] : memref<16x128xf32, #tpu.memory_space<vmem>>, vector<16x128xf32>
      tpu.vector_store %arg8[%c0_11, %c0_12], %12 {strides = array<i32>} : memref<16x128xf32, #tpu.memory_space<vmem>>, vector<16x128xf32>,
    } else {
    }
    %c0 = arith.constant 0 : index
    %c0_1 = arith.constant 0 : index
    %3 = vector.load %arg8[%c0, %c0_1] : memref<16x128xf32, #tpu.memory_space<vmem>>, vector<16x128xf32>
    %c0_2 = arith.constant 0 : index
    %c0_3 = arith.constant 0 : index
    %4 = vector.load %arg3[%c0_2, %c0_3] : memref<16x256xbf16, #tpu.memory_space<vmem>>, vector<16x256xbf16>
    %c0_4 = arith.constant 0 : index
    %c0_5 = arith.constant 0 : index
    %5 = vector.load %arg4[%c0_4, %c0_5] : memref<256x128xbf16, #tpu.memory_space<vmem>>, vector<256x128xbf16>
    %cst = arith.constant dense<0.000000e+00> : vector<16x128xf32>
    %6 = tpu.matmul %4, %5, %cst {dimension_numbers = #tpu.dot_dimension_numbers<[1], [0], [0], [1], [0, 0, 1, 1], [], []>} : vector<16x256xbf16>, vector<256x128xbf16>, vector<16x128xf32> -> vector<16x128xf32>
    %7 = arith.addf %3, %6 : vector<16x128xf32>
    %c0_6 = arith.constant 0 : index
    %c0_7 = arith.constant 0 : index
    %8 = vector.load %arg8[%c0_6, %c0_7] : memref<16x128xf32, #tpu.memory_space<vmem>>, vector<16x128xf32>
    tpu.vector_store %arg8[%c0_6, %c0_7], %7 {strides = array<i32>} : memref<16x128xf32, #tpu.memory_space<vmem>>, vector<16x128xf32>,
    %c0_i32_8 = arith.constant 0 : i32
    %9 = arith.cmpi eq, %arg2, %c0_i32_8 : i32
    %10 = arith.extui %9 : i1 to i32
    %c0_i32_9 = arith.constant 0 : i32
    %11 = arith.cmpi ne, %10, %c0_i32_9 : i32
    scf.if %11 {
      %c0_10 = arith.constant 0 : index
      %c0_11 = arith.constant 0 : index
      %12 = vector.load %arg8[%c0_10, %c0_11] : memref<16x128xf32, #tpu.memory_space<vmem>>, vector<16x128xf32>
      %c0_12 = arith.constant 0 : index
      %c0_13 = arith.constant 0 : index
      %13 = vector.load %arg5[%c0_12, %c0_13] : memref<1x128xf32, #tpu.memory_space<vmem>>, vector<1x128xf32>
      %14 = vector.broadcast %13 : vector<1x128xf32> to vector<16x128xf32>
      %15 = arith.mulf %12, %14 : vector<16x128xf32>
      %c0_14 = arith.constant 0 : index
      %c0_15 = arith.constant 0 : index
      %16 = vector.load %arg6[%c0_14, %c0_15] : memref<1x128xf32, #tpu.memory_space<vmem>>, vector<1x128xf32>
      %17 = vector.broadcast %16 : vector<1x128xf32> to vector<16x128xf32>
      %18 = arith.addf %15, %17 : vector<16x128xf32>
      %cst_16 = arith.constant 0.000000e+00 : f32
      %19 = vector.broadcast %cst_16 : f32 to vector<16x128xf32>
      %20 = arith.maximumf %18, %19 : vector<16x128xf32>
      %c0_17 = arith.constant 0 : index
      %c0_18 = arith.constant 0 : index
      %21 = vector.load %arg7[%c0_17, %c0_18] : memref<16x128xf32, #tpu.memory_space<vmem>>, vector<16x128xf32>
      tpu.vector_store %arg7[%c0_17, %c0_18], %20 {strides = array<i32>} : memref<16x128xf32, #tpu.memory_space<vmem>>, vector<16x128xf32>,
    } else {
    }
    return
  }
  func.func @transform_0(%arg0: i32, %arg1: i32, %arg2: i32) -> (i32, i32) {
    %c0_i32 = arith.constant 0 : i32
    return %arg0, %arg2 : i32, i32
  }
  func.func @transform_1(%arg0: i32, %arg1: i32, %arg2: i32) -> (i32, i32) {
    %c0_i32 = arith.constant 0 : i32
    return %arg2, %arg1 : i32, i32
  }
  func.func @transform_2(%arg0: i32, %arg1: i32, %arg2: i32) -> (i32, i32) {
    %c0_i32 = arith.constant 0 : i32
    %c0_i32_0 = arith.constant 0 : i32
    return %c0_i32, %arg1 : i32, i32
  }
  func.func @transform_3(%arg0: i32, %arg1: i32, %arg2: i32) -> (i32, i32) {
    %c0_i32 = arith.constant 0 : i32
    %c0_i32_0 = arith.constant 0 : i32
    return %c0_i32, %arg1 : i32, i32
  }
  func.func @transform_4(%arg0: i32, %arg1: i32, %arg2: i32) -> (i32, i32) {
    %c0_i32 = arith.constant 0 : i32
    return %arg0, %arg1 : i32, i32
  }
}

module attributes {stable_mosaic.version = 11 : i64} {
  func.func @_mm_affine_res_kernel(%arg0: i32, %arg1: i32, %arg2: i32, %arg3: memref<16x256xbf16, #tpu.memory_space<vmem>>, %arg4: memref<256x128xbf16, #tpu.memory_space<vmem>>, %arg5: memref<1x128xf32, #tpu.memory_space<vmem>>, %arg6: memref<1x128xf32, #tpu.memory_space<vmem>>, %arg7: memref<16x128xf32, #tpu.memory_space<vmem>>, %arg8: memref<16x128xf32, #tpu.memory_space<vmem>>, %arg9: memref<16x128xf32, #tpu.memory_space<vmem>>) attributes {dimension_semantics = [#tpu.dimension_semantics<parallel>, #tpu.dimension_semantics<parallel>, #tpu.dimension_semantics<arbitrary>], iteration_bounds = array<i64: 1, 1, 2>, scalar_prefetch = 0 : i64, scratch_operands = 1 : i64, tpu.core_type = #tpu.core_type<tc>, window_params = [{transform_indices = @transform_0, window_bounds = array<i64: 16, 256>}, {transform_indices = @transform_1, window_bounds = array<i64: 256, 128>}, {transform_indices = @transform_2, window_bounds = array<i64: 1, 128>}, {transform_indices = @transform_3, window_bounds = array<i64: 1, 128>}, {transform_indices = @transform_4, window_bounds = array<i64: 16, 128>}, {transform_indices = @transform_5, window_bounds = array<i64: 16, 128>}]} {
    %c0_i32 = arith.constant 0 : i32
    %0 = arith.cmpi eq, %arg2, %c0_i32 : i32
    %1 = arith.extui %0 : i1 to i32
    %c0_i32_0 = arith.constant 0 : i32
    %2 = arith.cmpi ne, %1, %c0_i32_0 : i32
    scf.if %2 {
      %cst_9 = arith.constant 0.000000e+00 : f32
      %12 = vector.broadcast %cst_9 : f32 to vector<16x128xf32>
      %c0_10 = arith.constant 0 : index
      %c0_11 = arith.constant 0 : index
      %13 = vector.load %arg9[%c0_10, %c0_11] : memref<16x128xf32, #tpu.memory_space<vmem>>, vector<16x128xf32>
      tpu.vector_store %arg9[%c0_10, %c0_11], %12 {strides = array<i32>} : memref<16x128xf32, #tpu.memory_space<vmem>>, vector<16x128xf32>,
    } else {
    }
    %c0 = arith.constant 0 : index
    %c0_1 = arith.constant 0 : index
    %3 = vector.load %arg9[%c0, %c0_1] : memref<16x128xf32, #tpu.memory_space<vmem>>, vector<16x128xf32>
    %c0_2 = arith.constant 0 : index
    %c0_3 = arith.constant 0 : index
    %4 = vector.load %arg3[%c0_2, %c0_3] : memref<16x256xbf16, #tpu.memory_space<vmem>>, vector<16x256xbf16>
    %c0_4 = arith.constant 0 : index
    %c0_5 = arith.constant 0 : index
    %5 = vector.load %arg4[%c0_4, %c0_5] : memref<256x128xbf16, #tpu.memory_space<vmem>>, vector<256x128xbf16>
    %cst = arith.constant dense<0.000000e+00> : vector<16x128xf32>
    %6 = tpu.matmul %4, %5, %cst {dimension_numbers = #tpu.dot_dimension_numbers<[1], [0], [0], [1], [0, 0, 1, 1], [], []>} : vector<16x256xbf16>, vector<256x128xbf16>, vector<16x128xf32> -> vector<16x128xf32>
    %7 = arith.addf %3, %6 : vector<16x128xf32>
    %c0_6 = arith.constant 0 : index
    %c0_7 = arith.constant 0 : index
    %8 = vector.load %arg9[%c0_6, %c0_7] : memref<16x128xf32, #tpu.memory_space<vmem>>, vector<16x128xf32>
    tpu.vector_store %arg9[%c0_6, %c0_7], %7 {strides = array<i32>} : memref<16x128xf32, #tpu.memory_space<vmem>>, vector<16x128xf32>,
    %c1_i32 = arith.constant 1 : i32
    %9 = arith.cmpi eq, %arg2, %c1_i32 : i32
    %10 = arith.extui %9 : i1 to i32
    %c0_i32_8 = arith.constant 0 : i32
    %11 = arith.cmpi ne, %10, %c0_i32_8 : i32
    scf.if %11 {
      %c0_9 = arith.constant 0 : index
      %c0_10 = arith.constant 0 : index
      %12 = vector.load %arg9[%c0_9, %c0_10] : memref<16x128xf32, #tpu.memory_space<vmem>>, vector<16x128xf32>
      %c0_11 = arith.constant 0 : index
      %c0_12 = arith.constant 0 : index
      %13 = vector.load %arg5[%c0_11, %c0_12] : memref<1x128xf32, #tpu.memory_space<vmem>>, vector<1x128xf32>
      %14 = vector.broadcast %13 : vector<1x128xf32> to vector<16x128xf32>
      %15 = arith.mulf %12, %14 : vector<16x128xf32>
      %c0_13 = arith.constant 0 : index
      %c0_14 = arith.constant 0 : index
      %16 = vector.load %arg6[%c0_13, %c0_14] : memref<1x128xf32, #tpu.memory_space<vmem>>, vector<1x128xf32>
      %17 = vector.broadcast %16 : vector<1x128xf32> to vector<16x128xf32>
      %18 = arith.addf %15, %17 : vector<16x128xf32>
      %c0_15 = arith.constant 0 : index
      %c0_16 = arith.constant 0 : index
      %19 = vector.load %arg7[%c0_15, %c0_16] : memref<16x128xf32, #tpu.memory_space<vmem>>, vector<16x128xf32>
      %20 = arith.addf %18, %19 : vector<16x128xf32>
      %cst_17 = arith.constant 0.000000e+00 : f32
      %21 = vector.broadcast %cst_17 : f32 to vector<16x128xf32>
      %22 = arith.maximumf %20, %21 : vector<16x128xf32>
      %c0_18 = arith.constant 0 : index
      %c0_19 = arith.constant 0 : index
      %23 = vector.load %arg8[%c0_18, %c0_19] : memref<16x128xf32, #tpu.memory_space<vmem>>, vector<16x128xf32>
      tpu.vector_store %arg8[%c0_18, %c0_19], %22 {strides = array<i32>} : memref<16x128xf32, #tpu.memory_space<vmem>>, vector<16x128xf32>,
    } else {
    }
    return
  }
  func.func @transform_0(%arg0: i32, %arg1: i32, %arg2: i32) -> (i32, i32) {
    %c0_i32 = arith.constant 0 : i32
    return %arg0, %arg2 : i32, i32
  }
  func.func @transform_1(%arg0: i32, %arg1: i32, %arg2: i32) -> (i32, i32) {
    %c0_i32 = arith.constant 0 : i32
    return %arg2, %arg1 : i32, i32
  }
  func.func @transform_2(%arg0: i32, %arg1: i32, %arg2: i32) -> (i32, i32) {
    %c0_i32 = arith.constant 0 : i32
    %c0_i32_0 = arith.constant 0 : i32
    return %c0_i32, %arg1 : i32, i32
  }
  func.func @transform_3(%arg0: i32, %arg1: i32, %arg2: i32) -> (i32, i32) {
    %c0_i32 = arith.constant 0 : i32
    %c0_i32_0 = arith.constant 0 : i32
    return %c0_i32, %arg1 : i32, i32
  }
  func.func @transform_4(%arg0: i32, %arg1: i32, %arg2: i32) -> (i32, i32) {
    %c0_i32 = arith.constant 0 : i32
    return %arg0, %arg1 : i32, i32
  }
  func.func @transform_5(%arg0: i32, %arg1: i32, %arg2: i32) -> (i32, i32) {
    %c0_i32 = arith.constant 0 : i32
    return %arg0, %arg1 : i32, i32
  }
}

module attributes {stable_mosaic.version = 11 : i64} {
  func.func @_mm_affine_kernel(%arg0: i32, %arg1: i32, %arg2: i32, %arg3: memref<16x256xbf16, #tpu.memory_space<vmem>>, %arg4: memref<256x128xbf16, #tpu.memory_space<vmem>>, %arg5: memref<1x128xf32, #tpu.memory_space<vmem>>, %arg6: memref<1x128xf32, #tpu.memory_space<vmem>>, %arg7: memref<16x128xf32, #tpu.memory_space<vmem>>, %arg8: memref<16x128xf32, #tpu.memory_space<vmem>>) attributes {dimension_semantics = [#tpu.dimension_semantics<parallel>, #tpu.dimension_semantics<parallel>, #tpu.dimension_semantics<arbitrary>], iteration_bounds = array<i64: 1, 1, 2>, scalar_prefetch = 0 : i64, scratch_operands = 1 : i64, tpu.core_type = #tpu.core_type<tc>, window_params = [{transform_indices = @transform_0, window_bounds = array<i64: 16, 256>}, {transform_indices = @transform_1, window_bounds = array<i64: 256, 128>}, {transform_indices = @transform_2, window_bounds = array<i64: 1, 128>}, {transform_indices = @transform_3, window_bounds = array<i64: 1, 128>}, {transform_indices = @transform_4, window_bounds = array<i64: 16, 128>}]} {
    %c0_i32 = arith.constant 0 : i32
    %0 = arith.cmpi eq, %arg2, %c0_i32 : i32
    %1 = arith.extui %0 : i1 to i32
    %c0_i32_0 = arith.constant 0 : i32
    %2 = arith.cmpi ne, %1, %c0_i32_0 : i32
    scf.if %2 {
      %cst_9 = arith.constant 0.000000e+00 : f32
      %12 = vector.broadcast %cst_9 : f32 to vector<16x128xf32>
      %c0_10 = arith.constant 0 : index
      %c0_11 = arith.constant 0 : index
      %13 = vector.load %arg8[%c0_10, %c0_11] : memref<16x128xf32, #tpu.memory_space<vmem>>, vector<16x128xf32>
      tpu.vector_store %arg8[%c0_10, %c0_11], %12 {strides = array<i32>} : memref<16x128xf32, #tpu.memory_space<vmem>>, vector<16x128xf32>,
    } else {
    }
    %c0 = arith.constant 0 : index
    %c0_1 = arith.constant 0 : index
    %3 = vector.load %arg8[%c0, %c0_1] : memref<16x128xf32, #tpu.memory_space<vmem>>, vector<16x128xf32>
    %c0_2 = arith.constant 0 : index
    %c0_3 = arith.constant 0 : index
    %4 = vector.load %arg3[%c0_2, %c0_3] : memref<16x256xbf16, #tpu.memory_space<vmem>>, vector<16x256xbf16>
    %c0_4 = arith.constant 0 : index
    %c0_5 = arith.constant 0 : index
    %5 = vector.load %arg4[%c0_4, %c0_5] : memref<256x128xbf16, #tpu.memory_space<vmem>>, vector<256x128xbf16>
    %cst = arith.constant dense<0.000000e+00> : vector<16x128xf32>
    %6 = tpu.matmul %4, %5, %cst {dimension_numbers = #tpu.dot_dimension_numbers<[1], [0], [0], [1], [0, 0, 1, 1], [], []>} : vector<16x256xbf16>, vector<256x128xbf16>, vector<16x128xf32> -> vector<16x128xf32>
    %7 = arith.addf %3, %6 : vector<16x128xf32>
    %c0_6 = arith.constant 0 : index
    %c0_7 = arith.constant 0 : index
    %8 = vector.load %arg8[%c0_6, %c0_7] : memref<16x128xf32, #tpu.memory_space<vmem>>, vector<16x128xf32>
    tpu.vector_store %arg8[%c0_6, %c0_7], %7 {strides = array<i32>} : memref<16x128xf32, #tpu.memory_space<vmem>>, vector<16x128xf32>,
    %c1_i32 = arith.constant 1 : i32
    %9 = arith.cmpi eq, %arg2, %c1_i32 : i32
    %10 = arith.extui %9 : i1 to i32
    %c0_i32_8 = arith.constant 0 : i32
    %11 = arith.cmpi ne, %10, %c0_i32_8 : i32
    scf.if %11 {
      %c0_9 = arith.constant 0 : index
      %c0_10 = arith.constant 0 : index
      %12 = vector.load %arg8[%c0_9, %c0_10] : memref<16x128xf32, #tpu.memory_space<vmem>>, vector<16x128xf32>
      %c0_11 = arith.constant 0 : index
      %c0_12 = arith.constant 0 : index
      %13 = vector.load %arg5[%c0_11, %c0_12] : memref<1x128xf32, #tpu.memory_space<vmem>>, vector<1x128xf32>
      %14 = vector.broadcast %13 : vector<1x128xf32> to vector<16x128xf32>
      %15 = arith.mulf %12, %14 : vector<16x128xf32>
      %c0_13 = arith.constant 0 : index
      %c0_14 = arith.constant 0 : index
      %16 = vector.load %arg6[%c0_13, %c0_14] : memref<1x128xf32, #tpu.memory_space<vmem>>, vector<1x128xf32>
      %17 = vector.broadcast %16 : vector<1x128xf32> to vector<16x128xf32>
      %18 = arith.addf %15, %17 : vector<16x128xf32>
      %cst_15 = arith.constant 0.000000e+00 : f32
      %19 = vector.broadcast %cst_15 : f32 to vector<16x128xf32>
      %20 = arith.maximumf %18, %19 : vector<16x128xf32>
      %c0_16 = arith.constant 0 : index
      %c0_17 = arith.constant 0 : index
      %21 = vector.load %arg7[%c0_16, %c0_17] : memref<16x128xf32, #tpu.memory_space<vmem>>, vector<16x128xf32>
      tpu.vector_store %arg7[%c0_16, %c0_17], %20 {strides = array<i32>} : memref<16x128xf32, #tpu.memory_space<vmem>>, vector<16x128xf32>,
    } else {
    }
    return
  }
  func.func @transform_0(%arg0: i32, %arg1: i32, %arg2: i32) -> (i32, i32) {
    %c0_i32 = arith.constant 0 : i32
    return %arg0, %arg2 : i32, i32
  }
  func.func @transform_1(%arg0: i32, %arg1: i32, %arg2: i32) -> (i32, i32) {
    %c0_i32 = arith.constant 0 : i32
    return %arg2, %arg1 : i32, i32
  }
  func.func @transform_2(%arg0: i32, %arg1: i32, %arg2: i32) -> (i32, i32) {
    %c0_i32 = arith.constant 0 : i32
    %c0_i32_0 = arith.constant 0 : i32
    return %c0_i32, %arg1 : i32, i32
  }
  func.func @transform_3(%arg0: i32, %arg1: i32, %arg2: i32) -> (i32, i32) {
    %c0_i32 = arith.constant 0 : i32
    %c0_i32_0 = arith.constant 0 : i32
    return %c0_i32, %arg1 : i32, i32
  }
  func.func @transform_4(%arg0: i32, %arg1: i32, %arg2: i32) -> (i32, i32) {
    %c0_i32 = arith.constant 0 : i32
    return %arg0, %arg1 : i32, i32
  }
}

module attributes {stable_mosaic.version = 11 : i64} {
  func.func @_mm_affine_kernel(%arg0: i32, %arg1: i32, %arg2: i32, %arg3: memref<16x64xbf16, #tpu.memory_space<vmem>>, %arg4: memref<64x128xbf16, #tpu.memory_space<vmem>>, %arg5: memref<1x128xf32, #tpu.memory_space<vmem>>, %arg6: memref<1x128xf32, #tpu.memory_space<vmem>>, %arg7: memref<16x128xf32, #tpu.memory_space<vmem>>, %arg8: memref<16x128xf32, #tpu.memory_space<vmem>>) attributes {dimension_semantics = [#tpu.dimension_semantics<parallel>, #tpu.dimension_semantics<parallel>, #tpu.dimension_semantics<arbitrary>], iteration_bounds = array<i64: 1, 1, 1>, scalar_prefetch = 0 : i64, scratch_operands = 1 : i64, tpu.core_type = #tpu.core_type<tc>, window_params = [{transform_indices = @transform_0, window_bounds = array<i64: 16, 64>}, {transform_indices = @transform_1, window_bounds = array<i64: 64, 128>}, {transform_indices = @transform_2, window_bounds = array<i64: 1, 128>}, {transform_indices = @transform_3, window_bounds = array<i64: 1, 128>}, {transform_indices = @transform_4, window_bounds = array<i64: 16, 128>}]} {
    %c0_i32 = arith.constant 0 : i32
    %0 = arith.cmpi eq, %arg2, %c0_i32 : i32
    %1 = arith.extui %0 : i1 to i32
    %c0_i32_0 = arith.constant 0 : i32
    %2 = arith.cmpi ne, %1, %c0_i32_0 : i32
    scf.if %2 {
      %cst_10 = arith.constant 0.000000e+00 : f32
      %12 = vector.broadcast %cst_10 : f32 to vector<16x128xf32>
      %c0_11 = arith.constant 0 : index
      %c0_12 = arith.constant 0 : index
      %13 = vector.load %arg8[%c0_11, %c0_12] : memref<16x128xf32, #tpu.memory_space<vmem>>, vector<16x128xf32>
      tpu.vector_store %arg8[%c0_11, %c0_12], %12 {strides = array<i32>} : memref<16x128xf32, #tpu.memory_space<vmem>>, vector<16x128xf32>,
    } else {
    }
    %c0 = arith.constant 0 : index
    %c0_1 = arith.constant 0 : index
    %3 = vector.load %arg8[%c0, %c0_1] : memref<16x128xf32, #tpu.memory_space<vmem>>, vector<16x128xf32>
    %c0_2 = arith.constant 0 : index
    %c0_3 = arith.constant 0 : index
    %4 = vector.load %arg3[%c0_2, %c0_3] : memref<16x64xbf16, #tpu.memory_space<vmem>>, vector<16x64xbf16>
    %c0_4 = arith.constant 0 : index
    %c0_5 = arith.constant 0 : index
    %5 = vector.load %arg4[%c0_4, %c0_5] : memref<64x128xbf16, #tpu.memory_space<vmem>>, vector<64x128xbf16>
    %cst = arith.constant dense<0.000000e+00> : vector<16x128xf32>
    %6 = tpu.matmul %4, %5, %cst {dimension_numbers = #tpu.dot_dimension_numbers<[1], [0], [0], [1], [0, 0, 1, 1], [], []>} : vector<16x64xbf16>, vector<64x128xbf16>, vector<16x128xf32> -> vector<16x128xf32>
    %7 = arith.addf %3, %6 : vector<16x128xf32>
    %c0_6 = arith.constant 0 : index
    %c0_7 = arith.constant 0 : index
    %8 = vector.load %arg8[%c0_6, %c0_7] : memref<16x128xf32, #tpu.memory_space<vmem>>, vector<16x128xf32>
    tpu.vector_store %arg8[%c0_6, %c0_7], %7 {strides = array<i32>} : memref<16x128xf32, #tpu.memory_space<vmem>>, vector<16x128xf32>,
    %c0_i32_8 = arith.constant 0 : i32
    %9 = arith.cmpi eq, %arg2, %c0_i32_8 : i32
    %10 = arith.extui %9 : i1 to i32
    %c0_i32_9 = arith.constant 0 : i32
    %11 = arith.cmpi ne, %10, %c0_i32_9 : i32
    scf.if %11 {
      %c0_10 = arith.constant 0 : index
      %c0_11 = arith.constant 0 : index
      %12 = vector.load %arg8[%c0_10, %c0_11] : memref<16x128xf32, #tpu.memory_space<vmem>>, vector<16x128xf32>
      %c0_12 = arith.constant 0 : index
      %c0_13 = arith.constant 0 : index
      %13 = vector.load %arg5[%c0_12, %c0_13] : memref<1x128xf32, #tpu.memory_space<vmem>>, vector<1x128xf32>
      %14 = vector.broadcast %13 : vector<1x128xf32> to vector<16x128xf32>
      %15 = arith.mulf %12, %14 : vector<16x128xf32>
      %c0_14 = arith.constant 0 : index
      %c0_15 = arith.constant 0 : index
      %16 = vector.load %arg6[%c0_14, %c0_15] : memref<1x128xf32, #tpu.memory_space<vmem>>, vector<1x128xf32>
      %17 = vector.broadcast %16 : vector<1x128xf32> to vector<16x128xf32>
      %18 = arith.addf %15, %17 : vector<16x128xf32>
      %c0_16 = arith.constant 0 : index
      %c0_17 = arith.constant 0 : index
      %19 = vector.load %arg7[%c0_16, %c0_17] : memref<16x128xf32, #tpu.memory_space<vmem>>, vector<16x128xf32>
      tpu.vector_store %arg7[%c0_16, %c0_17], %18 {strides = array<i32>} : memref<16x128xf32, #tpu.memory_space<vmem>>, vector<16x128xf32>,
    } else {
    }
    return
  }
  func.func @transform_0(%arg0: i32, %arg1: i32, %arg2: i32) -> (i32, i32) {
    %c0_i32 = arith.constant 0 : i32
    return %arg0, %arg2 : i32, i32
  }
  func.func @transform_1(%arg0: i32, %arg1: i32, %arg2: i32) -> (i32, i32) {
    %c0_i32 = arith.constant 0 : i32
    return %arg2, %arg1 : i32, i32
  }
  func.func @transform_2(%arg0: i32, %arg1: i32, %arg2: i32) -> (i32, i32) {
    %c0_i32 = arith.constant 0 : i32
    %c0_i32_0 = arith.constant 0 : i32
    return %c0_i32, %arg1 : i32, i32
  }
  func.func @transform_3(%arg0: i32, %arg1: i32, %arg2: i32) -> (i32, i32) {
    %c0_i32 = arith.constant 0 : i32
    %c0_i32_0 = arith.constant 0 : i32
    return %c0_i32, %arg1 : i32, i32
  }
  func.func @transform_4(%arg0: i32, %arg1: i32, %arg2: i32) -> (i32, i32) {
    %c0_i32 = arith.constant 0 : i32
    return %arg0, %arg1 : i32, i32
  }
}

module attributes {stable_mosaic.version = 11 : i64} {
  func.func @_mm_affine_kernel(%arg0: i32, %arg1: i32, %arg2: i32, %arg3: memref<16x256xbf16, #tpu.memory_space<vmem>>, %arg4: memref<256x128xbf16, #tpu.memory_space<vmem>>, %arg5: memref<1x128xf32, #tpu.memory_space<vmem>>, %arg6: memref<1x128xf32, #tpu.memory_space<vmem>>, %arg7: memref<16x128xf32, #tpu.memory_space<vmem>>, %arg8: memref<16x128xf32, #tpu.memory_space<vmem>>) attributes {dimension_semantics = [#tpu.dimension_semantics<parallel>, #tpu.dimension_semantics<parallel>, #tpu.dimension_semantics<arbitrary>], iteration_bounds = array<i64: 1, 1, 2>, scalar_prefetch = 0 : i64, scratch_operands = 1 : i64, tpu.core_type = #tpu.core_type<tc>, window_params = [{transform_indices = @transform_0, window_bounds = array<i64: 16, 256>}, {transform_indices = @transform_1, window_bounds = array<i64: 256, 128>}, {transform_indices = @transform_2, window_bounds = array<i64: 1, 128>}, {transform_indices = @transform_3, window_bounds = array<i64: 1, 128>}, {transform_indices = @transform_4, window_bounds = array<i64: 16, 128>}]} {
    %c0_i32 = arith.constant 0 : i32
    %0 = arith.cmpi eq, %arg2, %c0_i32 : i32
    %1 = arith.extui %0 : i1 to i32
    %c0_i32_0 = arith.constant 0 : i32
    %2 = arith.cmpi ne, %1, %c0_i32_0 : i32
    scf.if %2 {
      %cst_9 = arith.constant 0.000000e+00 : f32
      %12 = vector.broadcast %cst_9 : f32 to vector<16x128xf32>
      %c0_10 = arith.constant 0 : index
      %c0_11 = arith.constant 0 : index
      %13 = vector.load %arg8[%c0_10, %c0_11] : memref<16x128xf32, #tpu.memory_space<vmem>>, vector<16x128xf32>
      tpu.vector_store %arg8[%c0_10, %c0_11], %12 {strides = array<i32>} : memref<16x128xf32, #tpu.memory_space<vmem>>, vector<16x128xf32>,
    } else {
    }
    %c0 = arith.constant 0 : index
    %c0_1 = arith.constant 0 : index
    %3 = vector.load %arg8[%c0, %c0_1] : memref<16x128xf32, #tpu.memory_space<vmem>>, vector<16x128xf32>
    %c0_2 = arith.constant 0 : index
    %c0_3 = arith.constant 0 : index
    %4 = vector.load %arg3[%c0_2, %c0_3] : memref<16x256xbf16, #tpu.memory_space<vmem>>, vector<16x256xbf16>
    %c0_4 = arith.constant 0 : index
    %c0_5 = arith.constant 0 : index
    %5 = vector.load %arg4[%c0_4, %c0_5] : memref<256x128xbf16, #tpu.memory_space<vmem>>, vector<256x128xbf16>
    %cst = arith.constant dense<0.000000e+00> : vector<16x128xf32>
    %6 = tpu.matmul %4, %5, %cst {dimension_numbers = #tpu.dot_dimension_numbers<[1], [0], [0], [1], [0, 0, 1, 1], [], []>} : vector<16x256xbf16>, vector<256x128xbf16>, vector<16x128xf32> -> vector<16x128xf32>
    %7 = arith.addf %3, %6 : vector<16x128xf32>
    %c0_6 = arith.constant 0 : index
    %c0_7 = arith.constant 0 : index
    %8 = vector.load %arg8[%c0_6, %c0_7] : memref<16x128xf32, #tpu.memory_space<vmem>>, vector<16x128xf32>
    tpu.vector_store %arg8[%c0_6, %c0_7], %7 {strides = array<i32>} : memref<16x128xf32, #tpu.memory_space<vmem>>, vector<16x128xf32>,
    %c1_i32 = arith.constant 1 : i32
    %9 = arith.cmpi eq, %arg2, %c1_i32 : i32
    %10 = arith.extui %9 : i1 to i32
    %c0_i32_8 = arith.constant 0 : i32
    %11 = arith.cmpi ne, %10, %c0_i32_8 : i32
    scf.if %11 {
      %c0_9 = arith.constant 0 : index
      %c0_10 = arith.constant 0 : index
      %12 = vector.load %arg8[%c0_9, %c0_10] : memref<16x128xf32, #tpu.memory_space<vmem>>, vector<16x128xf32>
      %c0_11 = arith.constant 0 : index
      %c0_12 = arith.constant 0 : index
      %13 = vector.load %arg5[%c0_11, %c0_12] : memref<1x128xf32, #tpu.memory_space<vmem>>, vector<1x128xf32>
      %14 = vector.broadcast %13 : vector<1x128xf32> to vector<16x128xf32>
      %15 = arith.mulf %12, %14 : vector<16x128xf32>
      %c0_13 = arith.constant 0 : index
      %c0_14 = arith.constant 0 : index
      %16 = vector.load %arg6[%c0_13, %c0_14] : memref<1x128xf32, #tpu.memory_space<vmem>>, vector<1x128xf32>
      %17 = vector.broadcast %16 : vector<1x128xf32> to vector<16x128xf32>
      %18 = arith.addf %15, %17 : vector<16x128xf32>
      %cst_15 = arith.constant 0.000000e+00 : f32
      %19 = vector.broadcast %cst_15 : f32 to vector<16x128xf32>
      %20 = arith.maximumf %18, %19 : vector<16x128xf32>
      %c0_16 = arith.constant 0 : index
      %c0_17 = arith.constant 0 : index
      %21 = vector.load %arg7[%c0_16, %c0_17] : memref<16x128xf32, #tpu.memory_space<vmem>>, vector<16x128xf32>
      tpu.vector_store %arg7[%c0_16, %c0_17], %20 {strides = array<i32>} : memref<16x128xf32, #tpu.memory_space<vmem>>, vector<16x128xf32>,
    } else {
    }
    return
  }
  func.func @transform_0(%arg0: i32, %arg1: i32, %arg2: i32) -> (i32, i32) {
    %c0_i32 = arith.constant 0 : i32
    return %arg0, %arg2 : i32, i32
  }
  func.func @transform_1(%arg0: i32, %arg1: i32, %arg2: i32) -> (i32, i32) {
    %c0_i32 = arith.constant 0 : i32
    return %arg2, %arg1 : i32, i32
  }
  func.func @transform_2(%arg0: i32, %arg1: i32, %arg2: i32) -> (i32, i32) {
    %c0_i32 = arith.constant 0 : i32
    %c0_i32_0 = arith.constant 0 : i32
    return %c0_i32, %arg1 : i32, i32
  }
  func.func @transform_3(%arg0: i32, %arg1: i32, %arg2: i32) -> (i32, i32) {
    %c0_i32 = arith.constant 0 : i32
    %c0_i32_0 = arith.constant 0 : i32
    return %c0_i32, %arg1 : i32, i32
  }
  func.func @transform_4(%arg0: i32, %arg1: i32, %arg2: i32) -> (i32, i32) {
    %c0_i32 = arith.constant 0 : i32
    return %arg0, %arg1 : i32, i32
  }
}

module attributes {stable_mosaic.version = 11 : i64} {
  func.func @_mm_affine_kernel(%arg0: i32, %arg1: i32, %arg2: i32, %arg3: memref<16x256xbf16, #tpu.memory_space<vmem>>, %arg4: memref<256x256xbf16, #tpu.memory_space<vmem>>, %arg5: memref<1x256xf32, #tpu.memory_space<vmem>>, %arg6: memref<1x256xf32, #tpu.memory_space<vmem>>, %arg7: memref<16x256xf32, #tpu.memory_space<vmem>>, %arg8: memref<16x256xf32, #tpu.memory_space<vmem>>) attributes {dimension_semantics = [#tpu.dimension_semantics<parallel>, #tpu.dimension_semantics<parallel>, #tpu.dimension_semantics<arbitrary>], iteration_bounds = array<i64: 1, 1, 2>, scalar_prefetch = 0 : i64, scratch_operands = 1 : i64, tpu.core_type = #tpu.core_type<tc>, window_params = [{transform_indices = @transform_0, window_bounds = array<i64: 16, 256>}, {transform_indices = @transform_1, window_bounds = array<i64: 256, 256>}, {transform_indices = @transform_2, window_bounds = array<i64: 1, 256>}, {transform_indices = @transform_3, window_bounds = array<i64: 1, 256>}, {transform_indices = @transform_4, window_bounds = array<i64: 16, 256>}]} {
    %c0_i32 = arith.constant 0 : i32
    %0 = arith.cmpi eq, %arg2, %c0_i32 : i32
    %1 = arith.extui %0 : i1 to i32
    %c0_i32_0 = arith.constant 0 : i32
    %2 = arith.cmpi ne, %1, %c0_i32_0 : i32
    scf.if %2 {
      %cst_9 = arith.constant 0.000000e+00 : f32
      %12 = vector.broadcast %cst_9 : f32 to vector<16x256xf32>
      %c0_10 = arith.constant 0 : index
      %c0_11 = arith.constant 0 : index
      %13 = vector.load %arg8[%c0_10, %c0_11] : memref<16x256xf32, #tpu.memory_space<vmem>>, vector<16x256xf32>
      tpu.vector_store %arg8[%c0_10, %c0_11], %12 {strides = array<i32>} : memref<16x256xf32, #tpu.memory_space<vmem>>, vector<16x256xf32>,
    } else {
    }
    %c0 = arith.constant 0 : index
    %c0_1 = arith.constant 0 : index
    %3 = vector.load %arg8[%c0, %c0_1] : memref<16x256xf32, #tpu.memory_space<vmem>>, vector<16x256xf32>
    %c0_2 = arith.constant 0 : index
    %c0_3 = arith.constant 0 : index
    %4 = vector.load %arg3[%c0_2, %c0_3] : memref<16x256xbf16, #tpu.memory_space<vmem>>, vector<16x256xbf16>
    %c0_4 = arith.constant 0 : index
    %c0_5 = arith.constant 0 : index
    %5 = vector.load %arg4[%c0_4, %c0_5] : memref<256x256xbf16, #tpu.memory_space<vmem>>, vector<256x256xbf16>
    %cst = arith.constant dense<0.000000e+00> : vector<16x256xf32>
    %6 = tpu.matmul %4, %5, %cst {dimension_numbers = #tpu.dot_dimension_numbers<[1], [0], [0], [1], [0, 0, 1, 1], [], []>} : vector<16x256xbf16>, vector<256x256xbf16>, vector<16x256xf32> -> vector<16x256xf32>
    %7 = arith.addf %3, %6 : vector<16x256xf32>
    %c0_6 = arith.constant 0 : index
    %c0_7 = arith.constant 0 : index
    %8 = vector.load %arg8[%c0_6, %c0_7] : memref<16x256xf32, #tpu.memory_space<vmem>>, vector<16x256xf32>
    tpu.vector_store %arg8[%c0_6, %c0_7], %7 {strides = array<i32>} : memref<16x256xf32, #tpu.memory_space<vmem>>, vector<16x256xf32>,
    %c1_i32 = arith.constant 1 : i32
    %9 = arith.cmpi eq, %arg2, %c1_i32 : i32
    %10 = arith.extui %9 : i1 to i32
    %c0_i32_8 = arith.constant 0 : i32
    %11 = arith.cmpi ne, %10, %c0_i32_8 : i32
    scf.if %11 {
      %c0_9 = arith.constant 0 : index
      %c0_10 = arith.constant 0 : index
      %12 = vector.load %arg8[%c0_9, %c0_10] : memref<16x256xf32, #tpu.memory_space<vmem>>, vector<16x256xf32>
      %c0_11 = arith.constant 0 : index
      %c0_12 = arith.constant 0 : index
      %13 = vector.load %arg5[%c0_11, %c0_12] : memref<1x256xf32, #tpu.memory_space<vmem>>, vector<1x256xf32>
      %14 = vector.broadcast %13 : vector<1x256xf32> to vector<16x256xf32>
      %15 = arith.mulf %12, %14 : vector<16x256xf32>
      %c0_13 = arith.constant 0 : index
      %c0_14 = arith.constant 0 : index
      %16 = vector.load %arg6[%c0_13, %c0_14] : memref<1x256xf32, #tpu.memory_space<vmem>>, vector<1x256xf32>
      %17 = vector.broadcast %16 : vector<1x256xf32> to vector<16x256xf32>
      %18 = arith.addf %15, %17 : vector<16x256xf32>
      %cst_15 = arith.constant 0.000000e+00 : f32
      %19 = vector.broadcast %cst_15 : f32 to vector<16x256xf32>
      %20 = arith.maximumf %18, %19 : vector<16x256xf32>
      %c0_16 = arith.constant 0 : index
      %c0_17 = arith.constant 0 : index
      %21 = vector.load %arg7[%c0_16, %c0_17] : memref<16x256xf32, #tpu.memory_space<vmem>>, vector<16x256xf32>
      tpu.vector_store %arg7[%c0_16, %c0_17], %20 {strides = array<i32>} : memref<16x256xf32, #tpu.memory_space<vmem>>, vector<16x256xf32>,
    } else {
    }
    return
  }
  func.func @transform_0(%arg0: i32, %arg1: i32, %arg2: i32) -> (i32, i32) {
    %c0_i32 = arith.constant 0 : i32
    return %arg0, %arg2 : i32, i32
  }
  func.func @transform_1(%arg0: i32, %arg1: i32, %arg2: i32) -> (i32, i32) {
    %c0_i32 = arith.constant 0 : i32
    return %arg2, %arg1 : i32, i32
  }
  func.func @transform_2(%arg0: i32, %arg1: i32, %arg2: i32) -> (i32, i32) {
    %c0_i32 = arith.constant 0 : i32
    %c0_i32_0 = arith.constant 0 : i32
    return %c0_i32, %arg1 : i32, i32
  }
  func.func @transform_3(%arg0: i32, %arg1: i32, %arg2: i32) -> (i32, i32) {
    %c0_i32 = arith.constant 0 : i32
    %c0_i32_0 = arith.constant 0 : i32
    return %c0_i32, %arg1 : i32, i32
  }
  func.func @transform_4(%arg0: i32, %arg1: i32, %arg2: i32) -> (i32, i32) {
    %c0_i32 = arith.constant 0 : i32
    return %arg0, %arg1 : i32, i32
  }
}

module attributes {stable_mosaic.version = 11 : i64} {
  func.func @_mm_affine_kernel(%arg0: i32, %arg1: i32, %arg2: i32, %arg3: memref<16x128xbf16, #tpu.memory_space<vmem>>, %arg4: memref<128x256xbf16, #tpu.memory_space<vmem>>, %arg5: memref<1x256xf32, #tpu.memory_space<vmem>>, %arg6: memref<1x256xf32, #tpu.memory_space<vmem>>, %arg7: memref<16x256xf32, #tpu.memory_space<vmem>>, %arg8: memref<16x256xf32, #tpu.memory_space<vmem>>) attributes {dimension_semantics = [#tpu.dimension_semantics<parallel>, #tpu.dimension_semantics<parallel>, #tpu.dimension_semantics<arbitrary>], iteration_bounds = array<i64: 1, 1, 1>, scalar_prefetch = 0 : i64, scratch_operands = 1 : i64, tpu.core_type = #tpu.core_type<tc>, window_params = [{transform_indices = @transform_0, window_bounds = array<i64: 16, 128>}, {transform_indices = @transform_1, window_bounds = array<i64: 128, 256>}, {transform_indices = @transform_2, window_bounds = array<i64: 1, 256>}, {transform_indices = @transform_3, window_bounds = array<i64: 1, 256>}, {transform_indices = @transform_4, window_bounds = array<i64: 16, 256>}]} {
    %c0_i32 = arith.constant 0 : i32
    %0 = arith.cmpi eq, %arg2, %c0_i32 : i32
    %1 = arith.extui %0 : i1 to i32
    %c0_i32_0 = arith.constant 0 : i32
    %2 = arith.cmpi ne, %1, %c0_i32_0 : i32
    scf.if %2 {
      %cst_10 = arith.constant 0.000000e+00 : f32
      %12 = vector.broadcast %cst_10 : f32 to vector<16x256xf32>
      %c0_11 = arith.constant 0 : index
      %c0_12 = arith.constant 0 : index
      %13 = vector.load %arg8[%c0_11, %c0_12] : memref<16x256xf32, #tpu.memory_space<vmem>>, vector<16x256xf32>
      tpu.vector_store %arg8[%c0_11, %c0_12], %12 {strides = array<i32>} : memref<16x256xf32, #tpu.memory_space<vmem>>, vector<16x256xf32>,
    } else {
    }
    %c0 = arith.constant 0 : index
    %c0_1 = arith.constant 0 : index
    %3 = vector.load %arg8[%c0, %c0_1] : memref<16x256xf32, #tpu.memory_space<vmem>>, vector<16x256xf32>
    %c0_2 = arith.constant 0 : index
    %c0_3 = arith.constant 0 : index
    %4 = vector.load %arg3[%c0_2, %c0_3] : memref<16x128xbf16, #tpu.memory_space<vmem>>, vector<16x128xbf16>
    %c0_4 = arith.constant 0 : index
    %c0_5 = arith.constant 0 : index
    %5 = vector.load %arg4[%c0_4, %c0_5] : memref<128x256xbf16, #tpu.memory_space<vmem>>, vector<128x256xbf16>
    %cst = arith.constant dense<0.000000e+00> : vector<16x256xf32>
    %6 = tpu.matmul %4, %5, %cst {dimension_numbers = #tpu.dot_dimension_numbers<[1], [0], [0], [1], [0, 0, 1, 1], [], []>} : vector<16x128xbf16>, vector<128x256xbf16>, vector<16x256xf32> -> vector<16x256xf32>
    %7 = arith.addf %3, %6 : vector<16x256xf32>
    %c0_6 = arith.constant 0 : index
    %c0_7 = arith.constant 0 : index
    %8 = vector.load %arg8[%c0_6, %c0_7] : memref<16x256xf32, #tpu.memory_space<vmem>>, vector<16x256xf32>
    tpu.vector_store %arg8[%c0_6, %c0_7], %7 {strides = array<i32>} : memref<16x256xf32, #tpu.memory_space<vmem>>, vector<16x256xf32>,
    %c0_i32_8 = arith.constant 0 : i32
    %9 = arith.cmpi eq, %arg2, %c0_i32_8 : i32
    %10 = arith.extui %9 : i1 to i32
    %c0_i32_9 = arith.constant 0 : i32
    %11 = arith.cmpi ne, %10, %c0_i32_9 : i32
    scf.if %11 {
      %c0_10 = arith.constant 0 : index
      %c0_11 = arith.constant 0 : index
      %12 = vector.load %arg8[%c0_10, %c0_11] : memref<16x256xf32, #tpu.memory_space<vmem>>, vector<16x256xf32>
      %c0_12 = arith.constant 0 : index
      %c0_13 = arith.constant 0 : index
      %13 = vector.load %arg5[%c0_12, %c0_13] : memref<1x256xf32, #tpu.memory_space<vmem>>, vector<1x256xf32>
      %14 = vector.broadcast %13 : vector<1x256xf32> to vector<16x256xf32>
      %15 = arith.mulf %12, %14 : vector<16x256xf32>
      %c0_14 = arith.constant 0 : index
      %c0_15 = arith.constant 0 : index
      %16 = vector.load %arg6[%c0_14, %c0_15] : memref<1x256xf32, #tpu.memory_space<vmem>>, vector<1x256xf32>
      %17 = vector.broadcast %16 : vector<1x256xf32> to vector<16x256xf32>
      %18 = arith.addf %15, %17 : vector<16x256xf32>
      %c0_16 = arith.constant 0 : index
      %c0_17 = arith.constant 0 : index
      %19 = vector.load %arg7[%c0_16, %c0_17] : memref<16x256xf32, #tpu.memory_space<vmem>>, vector<16x256xf32>
      tpu.vector_store %arg7[%c0_16, %c0_17], %18 {strides = array<i32>} : memref<16x256xf32, #tpu.memory_space<vmem>>, vector<16x256xf32>,
    } else {
    }
    return
  }
  func.func @transform_0(%arg0: i32, %arg1: i32, %arg2: i32) -> (i32, i32) {
    %c0_i32 = arith.constant 0 : i32
    return %arg0, %arg2 : i32, i32
  }
  func.func @transform_1(%arg0: i32, %arg1: i32, %arg2: i32) -> (i32, i32) {
    %c0_i32 = arith.constant 0 : i32
    return %arg2, %arg1 : i32, i32
  }
  func.func @transform_2(%arg0: i32, %arg1: i32, %arg2: i32) -> (i32, i32) {
    %c0_i32 = arith.constant 0 : i32
    %c0_i32_0 = arith.constant 0 : i32
    return %c0_i32, %arg1 : i32, i32
  }
  func.func @transform_3(%arg0: i32, %arg1: i32, %arg2: i32) -> (i32, i32) {
    %c0_i32 = arith.constant 0 : i32
    %c0_i32_0 = arith.constant 0 : i32
    return %c0_i32, %arg1 : i32, i32
  }
  func.func @transform_4(%arg0: i32, %arg1: i32, %arg2: i32) -> (i32, i32) {
    %c0_i32 = arith.constant 0 : i32
    return %arg0, %arg1 : i32, i32
  }
}

module attributes {stable_mosaic.version = 11 : i64} {
  func.func @_mm_affine_kernel(%arg0: i32, %arg1: i32, %arg2: i32, %arg3: memref<16x256xbf16, #tpu.memory_space<vmem>>, %arg4: memref<256x256xbf16, #tpu.memory_space<vmem>>, %arg5: memref<1x256xf32, #tpu.memory_space<vmem>>, %arg6: memref<1x256xf32, #tpu.memory_space<vmem>>, %arg7: memref<16x256xf32, #tpu.memory_space<vmem>>, %arg8: memref<16x256xf32, #tpu.memory_space<vmem>>) attributes {dimension_semantics = [#tpu.dimension_semantics<parallel>, #tpu.dimension_semantics<parallel>, #tpu.dimension_semantics<arbitrary>], iteration_bounds = array<i64: 1, 1, 3>, scalar_prefetch = 0 : i64, scratch_operands = 1 : i64, tpu.core_type = #tpu.core_type<tc>, window_params = [{transform_indices = @transform_0, window_bounds = array<i64: 16, 256>}, {transform_indices = @transform_1, window_bounds = array<i64: 256, 256>}, {transform_indices = @transform_2, window_bounds = array<i64: 1, 256>}, {transform_indices = @transform_3, window_bounds = array<i64: 1, 256>}, {transform_indices = @transform_4, window_bounds = array<i64: 16, 256>}]} {
    %c0_i32 = arith.constant 0 : i32
    %0 = arith.cmpi eq, %arg2, %c0_i32 : i32
    %1 = arith.extui %0 : i1 to i32
    %c0_i32_0 = arith.constant 0 : i32
    %2 = arith.cmpi ne, %1, %c0_i32_0 : i32
    scf.if %2 {
      %cst_9 = arith.constant 0.000000e+00 : f32
      %12 = vector.broadcast %cst_9 : f32 to vector<16x256xf32>
      %c0_10 = arith.constant 0 : index
      %c0_11 = arith.constant 0 : index
      %13 = vector.load %arg8[%c0_10, %c0_11] : memref<16x256xf32, #tpu.memory_space<vmem>>, vector<16x256xf32>
      tpu.vector_store %arg8[%c0_10, %c0_11], %12 {strides = array<i32>} : memref<16x256xf32, #tpu.memory_space<vmem>>, vector<16x256xf32>,
    } else {
    }
    %c0 = arith.constant 0 : index
    %c0_1 = arith.constant 0 : index
    %3 = vector.load %arg8[%c0, %c0_1] : memref<16x256xf32, #tpu.memory_space<vmem>>, vector<16x256xf32>
    %c0_2 = arith.constant 0 : index
    %c0_3 = arith.constant 0 : index
    %4 = vector.load %arg3[%c0_2, %c0_3] : memref<16x256xbf16, #tpu.memory_space<vmem>>, vector<16x256xbf16>
    %c0_4 = arith.constant 0 : index
    %c0_5 = arith.constant 0 : index
    %5 = vector.load %arg4[%c0_4, %c0_5] : memref<256x256xbf16, #tpu.memory_space<vmem>>, vector<256x256xbf16>
    %cst = arith.constant dense<0.000000e+00> : vector<16x256xf32>
    %6 = tpu.matmul %4, %5, %cst {dimension_numbers = #tpu.dot_dimension_numbers<[1], [0], [0], [1], [0, 0, 1, 1], [], []>} : vector<16x256xbf16>, vector<256x256xbf16>, vector<16x256xf32> -> vector<16x256xf32>
    %7 = arith.addf %3, %6 : vector<16x256xf32>
    %c0_6 = arith.constant 0 : index
    %c0_7 = arith.constant 0 : index
    %8 = vector.load %arg8[%c0_6, %c0_7] : memref<16x256xf32, #tpu.memory_space<vmem>>, vector<16x256xf32>
    tpu.vector_store %arg8[%c0_6, %c0_7], %7 {strides = array<i32>} : memref<16x256xf32, #tpu.memory_space<vmem>>, vector<16x256xf32>,
    %c2_i32 = arith.constant 2 : i32
    %9 = arith.cmpi eq, %arg2, %c2_i32 : i32
    %10 = arith.extui %9 : i1 to i32
    %c0_i32_8 = arith.constant 0 : i32
    %11 = arith.cmpi ne, %10, %c0_i32_8 : i32
    scf.if %11 {
      %c0_9 = arith.constant 0 : index
      %c0_10 = arith.constant 0 : index
      %12 = vector.load %arg8[%c0_9, %c0_10] : memref<16x256xf32, #tpu.memory_space<vmem>>, vector<16x256xf32>
      %c0_11 = arith.constant 0 : index
      %c0_12 = arith.constant 0 : index
      %13 = vector.load %arg5[%c0_11, %c0_12] : memref<1x256xf32, #tpu.memory_space<vmem>>, vector<1x256xf32>
      %14 = vector.broadcast %13 : vector<1x256xf32> to vector<16x256xf32>
      %15 = arith.mulf %12, %14 : vector<16x256xf32>
      %c0_13 = arith.constant 0 : index
      %c0_14 = arith.constant 0 : index
      %16 = vector.load %arg6[%c0_13, %c0_14] : memref<1x256xf32, #tpu.memory_space<vmem>>, vector<1x256xf32>
      %17 = vector.broadcast %16 : vector<1x256xf32> to vector<16x256xf32>
      %18 = arith.addf %15, %17 : vector<16x256xf32>
      %cst_15 = arith.constant 0.000000e+00 : f32
      %19 = vector.broadcast %cst_15 : f32 to vector<16x256xf32>
      %20 = arith.maximumf %18, %19 : vector<16x256xf32>
      %c0_16 = arith.constant 0 : index
      %c0_17 = arith.constant 0 : index
      %21 = vector.load %arg7[%c0_16, %c0_17] : memref<16x256xf32, #tpu.memory_space<vmem>>, vector<16x256xf32>
      tpu.vector_store %arg7[%c0_16, %c0_17], %20 {strides = array<i32>} : memref<16x256xf32, #tpu.memory_space<vmem>>, vector<16x256xf32>,
    } else {
    }
    return
  }
  func.func @transform_0(%arg0: i32, %arg1: i32, %arg2: i32) -> (i32, i32) {
    %c0_i32 = arith.constant 0 : i32
    return %arg0, %arg2 : i32, i32
  }
  func.func @transform_1(%arg0: i32, %arg1: i32, %arg2: i32) -> (i32, i32) {
    %c0_i32 = arith.constant 0 : i32
    return %arg2, %arg1 : i32, i32
  }
  func.func @transform_2(%arg0: i32, %arg1: i32, %arg2: i32) -> (i32, i32) {
    %c0_i32 = arith.constant 0 : i32
    %c0_i32_0 = arith.constant 0 : i32
    return %c0_i32, %arg1 : i32, i32
  }
  func.func @transform_3(%arg0: i32, %arg1: i32, %arg2: i32) -> (i32, i32) {
    %c0_i32 = arith.constant 0 : i32
    %c0_i32_0 = arith.constant 0 : i32
    return %c0_i32, %arg1 : i32, i32
  }
  func.func @transform_4(%arg0: i32, %arg1: i32, %arg2: i32) -> (i32, i32) {
    %c0_i32 = arith.constant 0 : i32
    return %arg0, %arg1 : i32, i32
  }
}

module attributes {stable_mosaic.version = 11 : i64} {
  func.func @_mm_affine_res_kernel(%arg0: i32, %arg1: i32, %arg2: i32, %arg3: memref<16x256xbf16, #tpu.memory_space<vmem>>, %arg4: memref<256x256xbf16, #tpu.memory_space<vmem>>, %arg5: memref<1x256xf32, #tpu.memory_space<vmem>>, %arg6: memref<1x256xf32, #tpu.memory_space<vmem>>, %arg7: memref<16x256xf32, #tpu.memory_space<vmem>>, %arg8: memref<16x256xf32, #tpu.memory_space<vmem>>, %arg9: memref<16x256xf32, #tpu.memory_space<vmem>>) attributes {dimension_semantics = [#tpu.dimension_semantics<parallel>, #tpu.dimension_semantics<parallel>, #tpu.dimension_semantics<arbitrary>], iteration_bounds = array<i64: 1, 1, 3>, scalar_prefetch = 0 : i64, scratch_operands = 1 : i64, tpu.core_type = #tpu.core_type<tc>, window_params = [{transform_indices = @transform_0, window_bounds = array<i64: 16, 256>}, {transform_indices = @transform_1, window_bounds = array<i64: 256, 256>}, {transform_indices = @transform_2, window_bounds = array<i64: 1, 256>}, {transform_indices = @transform_3, window_bounds = array<i64: 1, 256>}, {transform_indices = @transform_4, window_bounds = array<i64: 16, 256>}, {transform_indices = @transform_5, window_bounds = array<i64: 16, 256>}]} {
    %c0_i32 = arith.constant 0 : i32
    %0 = arith.cmpi eq, %arg2, %c0_i32 : i32
    %1 = arith.extui %0 : i1 to i32
    %c0_i32_0 = arith.constant 0 : i32
    %2 = arith.cmpi ne, %1, %c0_i32_0 : i32
    scf.if %2 {
      %cst_9 = arith.constant 0.000000e+00 : f32
      %12 = vector.broadcast %cst_9 : f32 to vector<16x256xf32>
      %c0_10 = arith.constant 0 : index
      %c0_11 = arith.constant 0 : index
      %13 = vector.load %arg9[%c0_10, %c0_11] : memref<16x256xf32, #tpu.memory_space<vmem>>, vector<16x256xf32>
      tpu.vector_store %arg9[%c0_10, %c0_11], %12 {strides = array<i32>} : memref<16x256xf32, #tpu.memory_space<vmem>>, vector<16x256xf32>,
    } else {
    }
    %c0 = arith.constant 0 : index
    %c0_1 = arith.constant 0 : index
    %3 = vector.load %arg9[%c0, %c0_1] : memref<16x256xf32, #tpu.memory_space<vmem>>, vector<16x256xf32>
    %c0_2 = arith.constant 0 : index
    %c0_3 = arith.constant 0 : index
    %4 = vector.load %arg3[%c0_2, %c0_3] : memref<16x256xbf16, #tpu.memory_space<vmem>>, vector<16x256xbf16>
    %c0_4 = arith.constant 0 : index
    %c0_5 = arith.constant 0 : index
    %5 = vector.load %arg4[%c0_4, %c0_5] : memref<256x256xbf16, #tpu.memory_space<vmem>>, vector<256x256xbf16>
    %cst = arith.constant dense<0.000000e+00> : vector<16x256xf32>
    %6 = tpu.matmul %4, %5, %cst {dimension_numbers = #tpu.dot_dimension_numbers<[1], [0], [0], [1], [0, 0, 1, 1], [], []>} : vector<16x256xbf16>, vector<256x256xbf16>, vector<16x256xf32> -> vector<16x256xf32>
    %7 = arith.addf %3, %6 : vector<16x256xf32>
    %c0_6 = arith.constant 0 : index
    %c0_7 = arith.constant 0 : index
    %8 = vector.load %arg9[%c0_6, %c0_7] : memref<16x256xf32, #tpu.memory_space<vmem>>, vector<16x256xf32>
    tpu.vector_store %arg9[%c0_6, %c0_7], %7 {strides = array<i32>} : memref<16x256xf32, #tpu.memory_space<vmem>>, vector<16x256xf32>,
    %c2_i32 = arith.constant 2 : i32
    %9 = arith.cmpi eq, %arg2, %c2_i32 : i32
    %10 = arith.extui %9 : i1 to i32
    %c0_i32_8 = arith.constant 0 : i32
    %11 = arith.cmpi ne, %10, %c0_i32_8 : i32
    scf.if %11 {
      %c0_9 = arith.constant 0 : index
      %c0_10 = arith.constant 0 : index
      %12 = vector.load %arg9[%c0_9, %c0_10] : memref<16x256xf32, #tpu.memory_space<vmem>>, vector<16x256xf32>
      %c0_11 = arith.constant 0 : index
      %c0_12 = arith.constant 0 : index
      %13 = vector.load %arg5[%c0_11, %c0_12] : memref<1x256xf32, #tpu.memory_space<vmem>>, vector<1x256xf32>
      %14 = vector.broadcast %13 : vector<1x256xf32> to vector<16x256xf32>
      %15 = arith.mulf %12, %14 : vector<16x256xf32>
      %c0_13 = arith.constant 0 : index
      %c0_14 = arith.constant 0 : index
      %16 = vector.load %arg6[%c0_13, %c0_14] : memref<1x256xf32, #tpu.memory_space<vmem>>, vector<1x256xf32>
      %17 = vector.broadcast %16 : vector<1x256xf32> to vector<16x256xf32>
      %18 = arith.addf %15, %17 : vector<16x256xf32>
      %c0_15 = arith.constant 0 : index
      %c0_16 = arith.constant 0 : index
      %19 = vector.load %arg7[%c0_15, %c0_16] : memref<16x256xf32, #tpu.memory_space<vmem>>, vector<16x256xf32>
      %20 = arith.addf %18, %19 : vector<16x256xf32>
      %cst_17 = arith.constant 0.000000e+00 : f32
      %21 = vector.broadcast %cst_17 : f32 to vector<16x256xf32>
      %22 = arith.maximumf %20, %21 : vector<16x256xf32>
      %c0_18 = arith.constant 0 : index
      %c0_19 = arith.constant 0 : index
      %23 = vector.load %arg8[%c0_18, %c0_19] : memref<16x256xf32, #tpu.memory_space<vmem>>, vector<16x256xf32>
      tpu.vector_store %arg8[%c0_18, %c0_19], %22 {strides = array<i32>} : memref<16x256xf32, #tpu.memory_space<vmem>>, vector<16x256xf32>,
    } else {
    }
    return
  }
  func.func @transform_0(%arg0: i32, %arg1: i32, %arg2: i32) -> (i32, i32) {
    %c0_i32 = arith.constant 0 : i32
    return %arg0, %arg2 : i32, i32
  }
  func.func @transform_1(%arg0: i32, %arg1: i32, %arg2: i32) -> (i32, i32) {
    %c0_i32 = arith.constant 0 : i32
    return %arg2, %arg1 : i32, i32
  }
  func.func @transform_2(%arg0: i32, %arg1: i32, %arg2: i32) -> (i32, i32) {
    %c0_i32 = arith.constant 0 : i32
    %c0_i32_0 = arith.constant 0 : i32
    return %c0_i32, %arg1 : i32, i32
  }
  func.func @transform_3(%arg0: i32, %arg1: i32, %arg2: i32) -> (i32, i32) {
    %c0_i32 = arith.constant 0 : i32
    %c0_i32_0 = arith.constant 0 : i32
    return %c0_i32, %arg1 : i32, i32
  }
  func.func @transform_4(%arg0: i32, %arg1: i32, %arg2: i32) -> (i32, i32) {
    %c0_i32 = arith.constant 0 : i32
    return %arg0, %arg1 : i32, i32
  }
  func.func @transform_5(%arg0: i32, %arg1: i32, %arg2: i32) -> (i32, i32) {
    %c0_i32 = arith.constant 0 : i32
    return %arg0, %arg1 : i32, i32
  }
}

module attributes {stable_mosaic.version = 11 : i64} {
  func.func @_mm_affine_kernel(%arg0: i32, %arg1: i32, %arg2: i32, %arg3: memref<16x256xbf16, #tpu.memory_space<vmem>>, %arg4: memref<256x256xbf16, #tpu.memory_space<vmem>>, %arg5: memref<1x256xf32, #tpu.memory_space<vmem>>, %arg6: memref<1x256xf32, #tpu.memory_space<vmem>>, %arg7: memref<16x256xf32, #tpu.memory_space<vmem>>, %arg8: memref<16x256xf32, #tpu.memory_space<vmem>>) attributes {dimension_semantics = [#tpu.dimension_semantics<parallel>, #tpu.dimension_semantics<parallel>, #tpu.dimension_semantics<arbitrary>], iteration_bounds = array<i64: 1, 2, 3>, scalar_prefetch = 0 : i64, scratch_operands = 1 : i64, tpu.core_type = #tpu.core_type<tc>, window_params = [{transform_indices = @transform_0, window_bounds = array<i64: 16, 256>}, {transform_indices = @transform_1, window_bounds = array<i64: 256, 256>}, {transform_indices = @transform_2, window_bounds = array<i64: 1, 256>}, {transform_indices = @transform_3, window_bounds = array<i64: 1, 256>}, {transform_indices = @transform_4, window_bounds = array<i64: 16, 256>}]} {
    %c0_i32 = arith.constant 0 : i32
    %0 = arith.cmpi eq, %arg2, %c0_i32 : i32
    %1 = arith.extui %0 : i1 to i32
    %c0_i32_0 = arith.constant 0 : i32
    %2 = arith.cmpi ne, %1, %c0_i32_0 : i32
    scf.if %2 {
      %cst_9 = arith.constant 0.000000e+00 : f32
      %12 = vector.broadcast %cst_9 : f32 to vector<16x256xf32>
      %c0_10 = arith.constant 0 : index
      %c0_11 = arith.constant 0 : index
      %13 = vector.load %arg8[%c0_10, %c0_11] : memref<16x256xf32, #tpu.memory_space<vmem>>, vector<16x256xf32>
      tpu.vector_store %arg8[%c0_10, %c0_11], %12 {strides = array<i32>} : memref<16x256xf32, #tpu.memory_space<vmem>>, vector<16x256xf32>,
    } else {
    }
    %c0 = arith.constant 0 : index
    %c0_1 = arith.constant 0 : index
    %3 = vector.load %arg8[%c0, %c0_1] : memref<16x256xf32, #tpu.memory_space<vmem>>, vector<16x256xf32>
    %c0_2 = arith.constant 0 : index
    %c0_3 = arith.constant 0 : index
    %4 = vector.load %arg3[%c0_2, %c0_3] : memref<16x256xbf16, #tpu.memory_space<vmem>>, vector<16x256xbf16>
    %c0_4 = arith.constant 0 : index
    %c0_5 = arith.constant 0 : index
    %5 = vector.load %arg4[%c0_4, %c0_5] : memref<256x256xbf16, #tpu.memory_space<vmem>>, vector<256x256xbf16>
    %cst = arith.constant dense<0.000000e+00> : vector<16x256xf32>
    %6 = tpu.matmul %4, %5, %cst {dimension_numbers = #tpu.dot_dimension_numbers<[1], [0], [0], [1], [0, 0, 1, 1], [], []>} : vector<16x256xbf16>, vector<256x256xbf16>, vector<16x256xf32> -> vector<16x256xf32>
    %7 = arith.addf %3, %6 : vector<16x256xf32>
    %c0_6 = arith.constant 0 : index
    %c0_7 = arith.constant 0 : index
    %8 = vector.load %arg8[%c0_6, %c0_7] : memref<16x256xf32, #tpu.memory_space<vmem>>, vector<16x256xf32>
    tpu.vector_store %arg8[%c0_6, %c0_7], %7 {strides = array<i32>} : memref<16x256xf32, #tpu.memory_space<vmem>>, vector<16x256xf32>,
    %c2_i32 = arith.constant 2 : i32
    %9 = arith.cmpi eq, %arg2, %c2_i32 : i32
    %10 = arith.extui %9 : i1 to i32
    %c0_i32_8 = arith.constant 0 : i32
    %11 = arith.cmpi ne, %10, %c0_i32_8 : i32
    scf.if %11 {
      %c0_9 = arith.constant 0 : index
      %c0_10 = arith.constant 0 : index
      %12 = vector.load %arg8[%c0_9, %c0_10] : memref<16x256xf32, #tpu.memory_space<vmem>>, vector<16x256xf32>
      %c0_11 = arith.constant 0 : index
      %c0_12 = arith.constant 0 : index
      %13 = vector.load %arg5[%c0_11, %c0_12] : memref<1x256xf32, #tpu.memory_space<vmem>>, vector<1x256xf32>
      %14 = vector.broadcast %13 : vector<1x256xf32> to vector<16x256xf32>
      %15 = arith.mulf %12, %14 : vector<16x256xf32>
      %c0_13 = arith.constant 0 : index
      %c0_14 = arith.constant 0 : index
      %16 = vector.load %arg6[%c0_13, %c0_14] : memref<1x256xf32, #tpu.memory_space<vmem>>, vector<1x256xf32>
      %17 = vector.broadcast %16 : vector<1x256xf32> to vector<16x256xf32>
      %18 = arith.addf %15, %17 : vector<16x256xf32>
      %cst_15 = arith.constant 0.000000e+00 : f32
      %19 = vector.broadcast %cst_15 : f32 to vector<16x256xf32>
      %20 = arith.maximumf %18, %19 : vector<16x256xf32>
      %c0_16 = arith.constant 0 : index
      %c0_17 = arith.constant 0 : index
      %21 = vector.load %arg7[%c0_16, %c0_17] : memref<16x256xf32, #tpu.memory_space<vmem>>, vector<16x256xf32>
      tpu.vector_store %arg7[%c0_16, %c0_17], %20 {strides = array<i32>} : memref<16x256xf32, #tpu.memory_space<vmem>>, vector<16x256xf32>,
    } else {
    }
    return
  }
  func.func @transform_0(%arg0: i32, %arg1: i32, %arg2: i32) -> (i32, i32) {
    %c0_i32 = arith.constant 0 : i32
    return %arg0, %arg2 : i32, i32
  }
  func.func @transform_1(%arg0: i32, %arg1: i32, %arg2: i32) -> (i32, i32) {
    %c0_i32 = arith.constant 0 : i32
    return %arg2, %arg1 : i32, i32
  }
  func.func @transform_2(%arg0: i32, %arg1: i32, %arg2: i32) -> (i32, i32) {
    %c0_i32 = arith.constant 0 : i32
    %c0_i32_0 = arith.constant 0 : i32
    return %c0_i32, %arg1 : i32, i32
  }
  func.func @transform_3(%arg0: i32, %arg1: i32, %arg2: i32) -> (i32, i32) {
    %c0_i32 = arith.constant 0 : i32
    %c0_i32_0 = arith.constant 0 : i32
    return %c0_i32, %arg1 : i32, i32
  }
  func.func @transform_4(%arg0: i32, %arg1: i32, %arg2: i32) -> (i32, i32) {
    %c0_i32 = arith.constant 0 : i32
    return %arg0, %arg1 : i32, i32
  }
}

module attributes {stable_mosaic.version = 11 : i64} {
  func.func @_mm_affine_kernel(%arg0: i32, %arg1: i32, %arg2: i32, %arg3: memref<16x256xbf16, #tpu.memory_space<vmem>>, %arg4: memref<256x256xbf16, #tpu.memory_space<vmem>>, %arg5: memref<1x256xf32, #tpu.memory_space<vmem>>, %arg6: memref<1x256xf32, #tpu.memory_space<vmem>>, %arg7: memref<16x256xf32, #tpu.memory_space<vmem>>, %arg8: memref<16x256xf32, #tpu.memory_space<vmem>>) attributes {dimension_semantics = [#tpu.dimension_semantics<parallel>, #tpu.dimension_semantics<parallel>, #tpu.dimension_semantics<arbitrary>], iteration_bounds = array<i64: 1, 2, 6>, scalar_prefetch = 0 : i64, scratch_operands = 1 : i64, tpu.core_type = #tpu.core_type<tc>, window_params = [{transform_indices = @transform_0, window_bounds = array<i64: 16, 256>}, {transform_indices = @transform_1, window_bounds = array<i64: 256, 256>}, {transform_indices = @transform_2, window_bounds = array<i64: 1, 256>}, {transform_indices = @transform_3, window_bounds = array<i64: 1, 256>}, {transform_indices = @transform_4, window_bounds = array<i64: 16, 256>}]} {
    %c0_i32 = arith.constant 0 : i32
    %0 = arith.cmpi eq, %arg2, %c0_i32 : i32
    %1 = arith.extui %0 : i1 to i32
    %c0_i32_0 = arith.constant 0 : i32
    %2 = arith.cmpi ne, %1, %c0_i32_0 : i32
    scf.if %2 {
      %cst_9 = arith.constant 0.000000e+00 : f32
      %12 = vector.broadcast %cst_9 : f32 to vector<16x256xf32>
      %c0_10 = arith.constant 0 : index
      %c0_11 = arith.constant 0 : index
      %13 = vector.load %arg8[%c0_10, %c0_11] : memref<16x256xf32, #tpu.memory_space<vmem>>, vector<16x256xf32>
      tpu.vector_store %arg8[%c0_10, %c0_11], %12 {strides = array<i32>} : memref<16x256xf32, #tpu.memory_space<vmem>>, vector<16x256xf32>,
    } else {
    }
    %c0 = arith.constant 0 : index
    %c0_1 = arith.constant 0 : index
    %3 = vector.load %arg8[%c0, %c0_1] : memref<16x256xf32, #tpu.memory_space<vmem>>, vector<16x256xf32>
    %c0_2 = arith.constant 0 : index
    %c0_3 = arith.constant 0 : index
    %4 = vector.load %arg3[%c0_2, %c0_3] : memref<16x256xbf16, #tpu.memory_space<vmem>>, vector<16x256xbf16>
    %c0_4 = arith.constant 0 : index
    %c0_5 = arith.constant 0 : index
    %5 = vector.load %arg4[%c0_4, %c0_5] : memref<256x256xbf16, #tpu.memory_space<vmem>>, vector<256x256xbf16>
    %cst = arith.constant dense<0.000000e+00> : vector<16x256xf32>
    %6 = tpu.matmul %4, %5, %cst {dimension_numbers = #tpu.dot_dimension_numbers<[1], [0], [0], [1], [0, 0, 1, 1], [], []>} : vector<16x256xbf16>, vector<256x256xbf16>, vector<16x256xf32> -> vector<16x256xf32>
    %7 = arith.addf %3, %6 : vector<16x256xf32>
    %c0_6 = arith.constant 0 : index
    %c0_7 = arith.constant 0 : index
    %8 = vector.load %arg8[%c0_6, %c0_7] : memref<16x256xf32, #tpu.memory_space<vmem>>, vector<16x256xf32>
    tpu.vector_store %arg8[%c0_6, %c0_7], %7 {strides = array<i32>} : memref<16x256xf32, #tpu.memory_space<vmem>>, vector<16x256xf32>,
    %c5_i32 = arith.constant 5 : i32
    %9 = arith.cmpi eq, %arg2, %c5_i32 : i32
    %10 = arith.extui %9 : i1 to i32
    %c0_i32_8 = arith.constant 0 : i32
    %11 = arith.cmpi ne, %10, %c0_i32_8 : i32
    scf.if %11 {
      %c0_9 = arith.constant 0 : index
      %c0_10 = arith.constant 0 : index
      %12 = vector.load %arg8[%c0_9, %c0_10] : memref<16x256xf32, #tpu.memory_space<vmem>>, vector<16x256xf32>
      %c0_11 = arith.constant 0 : index
      %c0_12 = arith.constant 0 : index
      %13 = vector.load %arg5[%c0_11, %c0_12] : memref<1x256xf32, #tpu.memory_space<vmem>>, vector<1x256xf32>
      %14 = vector.broadcast %13 : vector<1x256xf32> to vector<16x256xf32>
      %15 = arith.mulf %12, %14 : vector<16x256xf32>
      %c0_13 = arith.constant 0 : index
      %c0_14 = arith.constant 0 : index
      %16 = vector.load %arg6[%c0_13, %c0_14] : memref<1x256xf32, #tpu.memory_space<vmem>>, vector<1x256xf32>
      %17 = vector.broadcast %16 : vector<1x256xf32> to vector<16x256xf32>
      %18 = arith.addf %15, %17 : vector<16x256xf32>
      %cst_15 = arith.constant 0.000000e+00 : f32
      %19 = vector.broadcast %cst_15 : f32 to vector<16x256xf32>
      %20 = arith.maximumf %18, %19 : vector<16x256xf32>
      %c0_16 = arith.constant 0 : index
      %c0_17 = arith.constant 0 : index
      %21 = vector.load %arg7[%c0_16, %c0_17] : memref<16x256xf32, #tpu.memory_space<vmem>>, vector<16x256xf32>
      tpu.vector_store %arg7[%c0_16, %c0_17], %20 {strides = array<i32>} : memref<16x256xf32, #tpu.memory_space<vmem>>, vector<16x256xf32>,
    } else {
    }
    return
  }
  func.func @transform_0(%arg0: i32, %arg1: i32, %arg2: i32) -> (i32, i32) {
    %c0_i32 = arith.constant 0 : i32
    return %arg0, %arg2 : i32, i32
  }
  func.func @transform_1(%arg0: i32, %arg1: i32, %arg2: i32) -> (i32, i32) {
    %c0_i32 = arith.constant 0 : i32
    return %arg2, %arg1 : i32, i32
  }
  func.func @transform_2(%arg0: i32, %arg1: i32, %arg2: i32) -> (i32, i32) {
    %c0_i32 = arith.constant 0 : i32
    %c0_i32_0 = arith.constant 0 : i32
    return %c0_i32, %arg1 : i32, i32
  }
  func.func @transform_3(%arg0: i32, %arg1: i32, %arg2: i32) -> (i32, i32) {
    %c0_i32 = arith.constant 0 : i32
    %c0_i32_0 = arith.constant 0 : i32
    return %c0_i32, %arg1 : i32, i32
  }
  func.func @transform_4(%arg0: i32, %arg1: i32, %arg2: i32) -> (i32, i32) {
    %c0_i32 = arith.constant 0 : i32
    return %arg0, %arg1 : i32, i32
  }
}

module attributes {stable_mosaic.version = 11 : i64} {
  func.func @_mm_affine_kernel(%arg0: i32, %arg1: i32, %arg2: i32, %arg3: memref<16x256xbf16, #tpu.memory_space<vmem>>, %arg4: memref<256x256xbf16, #tpu.memory_space<vmem>>, %arg5: memref<1x256xf32, #tpu.memory_space<vmem>>, %arg6: memref<1x256xf32, #tpu.memory_space<vmem>>, %arg7: memref<16x256xf32, #tpu.memory_space<vmem>>, %arg8: memref<16x256xf32, #tpu.memory_space<vmem>>) attributes {dimension_semantics = [#tpu.dimension_semantics<parallel>, #tpu.dimension_semantics<parallel>, #tpu.dimension_semantics<arbitrary>], iteration_bounds = array<i64: 1, 2, 1>, scalar_prefetch = 0 : i64, scratch_operands = 1 : i64, tpu.core_type = #tpu.core_type<tc>, window_params = [{transform_indices = @transform_0, window_bounds = array<i64: 16, 256>}, {transform_indices = @transform_1, window_bounds = array<i64: 256, 256>}, {transform_indices = @transform_2, window_bounds = array<i64: 1, 256>}, {transform_indices = @transform_3, window_bounds = array<i64: 1, 256>}, {transform_indices = @transform_4, window_bounds = array<i64: 16, 256>}]} {
    %c0_i32 = arith.constant 0 : i32
    %0 = arith.cmpi eq, %arg2, %c0_i32 : i32
    %1 = arith.extui %0 : i1 to i32
    %c0_i32_0 = arith.constant 0 : i32
    %2 = arith.cmpi ne, %1, %c0_i32_0 : i32
    scf.if %2 {
      %cst_10 = arith.constant 0.000000e+00 : f32
      %12 = vector.broadcast %cst_10 : f32 to vector<16x256xf32>
      %c0_11 = arith.constant 0 : index
      %c0_12 = arith.constant 0 : index
      %13 = vector.load %arg8[%c0_11, %c0_12] : memref<16x256xf32, #tpu.memory_space<vmem>>, vector<16x256xf32>
      tpu.vector_store %arg8[%c0_11, %c0_12], %12 {strides = array<i32>} : memref<16x256xf32, #tpu.memory_space<vmem>>, vector<16x256xf32>,
    } else {
    }
    %c0 = arith.constant 0 : index
    %c0_1 = arith.constant 0 : index
    %3 = vector.load %arg8[%c0, %c0_1] : memref<16x256xf32, #tpu.memory_space<vmem>>, vector<16x256xf32>
    %c0_2 = arith.constant 0 : index
    %c0_3 = arith.constant 0 : index
    %4 = vector.load %arg3[%c0_2, %c0_3] : memref<16x256xbf16, #tpu.memory_space<vmem>>, vector<16x256xbf16>
    %c0_4 = arith.constant 0 : index
    %c0_5 = arith.constant 0 : index
    %5 = vector.load %arg4[%c0_4, %c0_5] : memref<256x256xbf16, #tpu.memory_space<vmem>>, vector<256x256xbf16>
    %cst = arith.constant dense<0.000000e+00> : vector<16x256xf32>
    %6 = tpu.matmul %4, %5, %cst {dimension_numbers = #tpu.dot_dimension_numbers<[1], [0], [0], [1], [0, 0, 1, 1], [], []>} : vector<16x256xbf16>, vector<256x256xbf16>, vector<16x256xf32> -> vector<16x256xf32>
    %7 = arith.addf %3, %6 : vector<16x256xf32>
    %c0_6 = arith.constant 0 : index
    %c0_7 = arith.constant 0 : index
    %8 = vector.load %arg8[%c0_6, %c0_7] : memref<16x256xf32, #tpu.memory_space<vmem>>, vector<16x256xf32>
    tpu.vector_store %arg8[%c0_6, %c0_7], %7 {strides = array<i32>} : memref<16x256xf32, #tpu.memory_space<vmem>>, vector<16x256xf32>,
    %c0_i32_8 = arith.constant 0 : i32
    %9 = arith.cmpi eq, %arg2, %c0_i32_8 : i32
    %10 = arith.extui %9 : i1 to i32
    %c0_i32_9 = arith.constant 0 : i32
    %11 = arith.cmpi ne, %10, %c0_i32_9 : i32
    scf.if %11 {
      %c0_10 = arith.constant 0 : index
      %c0_11 = arith.constant 0 : index
      %12 = vector.load %arg8[%c0_10, %c0_11] : memref<16x256xf32, #tpu.memory_space<vmem>>, vector<16x256xf32>
      %c0_12 = arith.constant 0 : index
      %c0_13 = arith.constant 0 : index
      %13 = vector.load %arg5[%c0_12, %c0_13] : memref<1x256xf32, #tpu.memory_space<vmem>>, vector<1x256xf32>
      %14 = vector.broadcast %13 : vector<1x256xf32> to vector<16x256xf32>
      %15 = arith.mulf %12, %14 : vector<16x256xf32>
      %c0_14 = arith.constant 0 : index
      %c0_15 = arith.constant 0 : index
      %16 = vector.load %arg6[%c0_14, %c0_15] : memref<1x256xf32, #tpu.memory_space<vmem>>, vector<1x256xf32>
      %17 = vector.broadcast %16 : vector<1x256xf32> to vector<16x256xf32>
      %18 = arith.addf %15, %17 : vector<16x256xf32>
      %c0_16 = arith.constant 0 : index
      %c0_17 = arith.constant 0 : index
      %19 = vector.load %arg7[%c0_16, %c0_17] : memref<16x256xf32, #tpu.memory_space<vmem>>, vector<16x256xf32>
      tpu.vector_store %arg7[%c0_16, %c0_17], %18 {strides = array<i32>} : memref<16x256xf32, #tpu.memory_space<vmem>>, vector<16x256xf32>,
    } else {
    }
    return
  }
  func.func @transform_0(%arg0: i32, %arg1: i32, %arg2: i32) -> (i32, i32) {
    %c0_i32 = arith.constant 0 : i32
    return %arg0, %arg2 : i32, i32
  }
  func.func @transform_1(%arg0: i32, %arg1: i32, %arg2: i32) -> (i32, i32) {
    %c0_i32 = arith.constant 0 : i32
    return %arg2, %arg1 : i32, i32
  }
  func.func @transform_2(%arg0: i32, %arg1: i32, %arg2: i32) -> (i32, i32) {
    %c0_i32 = arith.constant 0 : i32
    %c0_i32_0 = arith.constant 0 : i32
    return %c0_i32, %arg1 : i32, i32
  }
  func.func @transform_3(%arg0: i32, %arg1: i32, %arg2: i32) -> (i32, i32) {
    %c0_i32 = arith.constant 0 : i32
    %c0_i32_0 = arith.constant 0 : i32
    return %c0_i32, %arg1 : i32, i32
  }
  func.func @transform_4(%arg0: i32, %arg1: i32, %arg2: i32) -> (i32, i32) {
    %c0_i32 = arith.constant 0 : i32
    return %arg0, %arg1 : i32, i32
  }
}

module attributes {stable_mosaic.version = 11 : i64} {
  func.func @_mm_affine_res_kernel(%arg0: i32, %arg1: i32, %arg2: i32, %arg3: memref<16x256xbf16, #tpu.memory_space<vmem>>, %arg4: memref<256x256xbf16, #tpu.memory_space<vmem>>, %arg5: memref<1x256xf32, #tpu.memory_space<vmem>>, %arg6: memref<1x256xf32, #tpu.memory_space<vmem>>, %arg7: memref<16x256xf32, #tpu.memory_space<vmem>>, %arg8: memref<16x256xf32, #tpu.memory_space<vmem>>, %arg9: memref<16x256xf32, #tpu.memory_space<vmem>>) attributes {dimension_semantics = [#tpu.dimension_semantics<parallel>, #tpu.dimension_semantics<parallel>, #tpu.dimension_semantics<arbitrary>], iteration_bounds = array<i64: 1, 2, 6>, scalar_prefetch = 0 : i64, scratch_operands = 1 : i64, tpu.core_type = #tpu.core_type<tc>, window_params = [{transform_indices = @transform_0, window_bounds = array<i64: 16, 256>}, {transform_indices = @transform_1, window_bounds = array<i64: 256, 256>}, {transform_indices = @transform_2, window_bounds = array<i64: 1, 256>}, {transform_indices = @transform_3, window_bounds = array<i64: 1, 256>}, {transform_indices = @transform_4, window_bounds = array<i64: 16, 256>}, {transform_indices = @transform_5, window_bounds = array<i64: 16, 256>}]} {
    %c0_i32 = arith.constant 0 : i32
    %0 = arith.cmpi eq, %arg2, %c0_i32 : i32
    %1 = arith.extui %0 : i1 to i32
    %c0_i32_0 = arith.constant 0 : i32
    %2 = arith.cmpi ne, %1, %c0_i32_0 : i32
    scf.if %2 {
      %cst_9 = arith.constant 0.000000e+00 : f32
      %12 = vector.broadcast %cst_9 : f32 to vector<16x256xf32>
      %c0_10 = arith.constant 0 : index
      %c0_11 = arith.constant 0 : index
      %13 = vector.load %arg9[%c0_10, %c0_11] : memref<16x256xf32, #tpu.memory_space<vmem>>, vector<16x256xf32>
      tpu.vector_store %arg9[%c0_10, %c0_11], %12 {strides = array<i32>} : memref<16x256xf32, #tpu.memory_space<vmem>>, vector<16x256xf32>,
    } else {
    }
    %c0 = arith.constant 0 : index
    %c0_1 = arith.constant 0 : index
    %3 = vector.load %arg9[%c0, %c0_1] : memref<16x256xf32, #tpu.memory_space<vmem>>, vector<16x256xf32>
    %c0_2 = arith.constant 0 : index
    %c0_3 = arith.constant 0 : index
    %4 = vector.load %arg3[%c0_2, %c0_3] : memref<16x256xbf16, #tpu.memory_space<vmem>>, vector<16x256xbf16>
    %c0_4 = arith.constant 0 : index
    %c0_5 = arith.constant 0 : index
    %5 = vector.load %arg4[%c0_4, %c0_5] : memref<256x256xbf16, #tpu.memory_space<vmem>>, vector<256x256xbf16>
    %cst = arith.constant dense<0.000000e+00> : vector<16x256xf32>
    %6 = tpu.matmul %4, %5, %cst {dimension_numbers = #tpu.dot_dimension_numbers<[1], [0], [0], [1], [0, 0, 1, 1], [], []>} : vector<16x256xbf16>, vector<256x256xbf16>, vector<16x256xf32> -> vector<16x256xf32>
    %7 = arith.addf %3, %6 : vector<16x256xf32>
    %c0_6 = arith.constant 0 : index
    %c0_7 = arith.constant 0 : index
    %8 = vector.load %arg9[%c0_6, %c0_7] : memref<16x256xf32, #tpu.memory_space<vmem>>, vector<16x256xf32>
    tpu.vector_store %arg9[%c0_6, %c0_7], %7 {strides = array<i32>} : memref<16x256xf32, #tpu.memory_space<vmem>>, vector<16x256xf32>,
    %c5_i32 = arith.constant 5 : i32
    %9 = arith.cmpi eq, %arg2, %c5_i32 : i32
    %10 = arith.extui %9 : i1 to i32
    %c0_i32_8 = arith.constant 0 : i32
    %11 = arith.cmpi ne, %10, %c0_i32_8 : i32
    scf.if %11 {
      %c0_9 = arith.constant 0 : index
      %c0_10 = arith.constant 0 : index
      %12 = vector.load %arg9[%c0_9, %c0_10] : memref<16x256xf32, #tpu.memory_space<vmem>>, vector<16x256xf32>
      %c0_11 = arith.constant 0 : index
      %c0_12 = arith.constant 0 : index
      %13 = vector.load %arg5[%c0_11, %c0_12] : memref<1x256xf32, #tpu.memory_space<vmem>>, vector<1x256xf32>
      %14 = vector.broadcast %13 : vector<1x256xf32> to vector<16x256xf32>
      %15 = arith.mulf %12, %14 : vector<16x256xf32>
      %c0_13 = arith.constant 0 : index
      %c0_14 = arith.constant 0 : index
      %16 = vector.load %arg6[%c0_13, %c0_14] : memref<1x256xf32, #tpu.memory_space<vmem>>, vector<1x256xf32>
      %17 = vector.broadcast %16 : vector<1x256xf32> to vector<16x256xf32>
      %18 = arith.addf %15, %17 : vector<16x256xf32>
      %c0_15 = arith.constant 0 : index
      %c0_16 = arith.constant 0 : index
      %19 = vector.load %arg7[%c0_15, %c0_16] : memref<16x256xf32, #tpu.memory_space<vmem>>, vector<16x256xf32>
      %20 = arith.addf %18, %19 : vector<16x256xf32>
      %cst_17 = arith.constant 0.000000e+00 : f32
      %21 = vector.broadcast %cst_17 : f32 to vector<16x256xf32>
      %22 = arith.maximumf %20, %21 : vector<16x256xf32>
      %c0_18 = arith.constant 0 : index
      %c0_19 = arith.constant 0 : index
      %23 = vector.load %arg8[%c0_18, %c0_19] : memref<16x256xf32, #tpu.memory_space<vmem>>, vector<16x256xf32>
      tpu.vector_store %arg8[%c0_18, %c0_19], %22 {strides = array<i32>} : memref<16x256xf32, #tpu.memory_space<vmem>>, vector<16x256xf32>,
    } else {
    }
    return
  }
  func.func @transform_0(%arg0: i32, %arg1: i32, %arg2: i32) -> (i32, i32) {
    %c0_i32 = arith.constant 0 : i32
    return %arg0, %arg2 : i32, i32
  }
  func.func @transform_1(%arg0: i32, %arg1: i32, %arg2: i32) -> (i32, i32) {
    %c0_i32 = arith.constant 0 : i32
    return %arg2, %arg1 : i32, i32
  }
  func.func @transform_2(%arg0: i32, %arg1: i32, %arg2: i32) -> (i32, i32) {
    %c0_i32 = arith.constant 0 : i32
    %c0_i32_0 = arith.constant 0 : i32
    return %c0_i32, %arg1 : i32, i32
  }
  func.func @transform_3(%arg0: i32, %arg1: i32, %arg2: i32) -> (i32, i32) {
    %c0_i32 = arith.constant 0 : i32
    %c0_i32_0 = arith.constant 0 : i32
    return %c0_i32, %arg1 : i32, i32
  }
  func.func @transform_4(%arg0: i32, %arg1: i32, %arg2: i32) -> (i32, i32) {
    %c0_i32 = arith.constant 0 : i32
    return %arg0, %arg1 : i32, i32
  }
  func.func @transform_5(%arg0: i32, %arg1: i32, %arg2: i32) -> (i32, i32) {
    %c0_i32 = arith.constant 0 : i32
    return %arg0, %arg1 : i32, i32
  }
}

module attributes {stable_mosaic.version = 11 : i64} {
  func.func @_mm_affine_kernel(%arg0: i32, %arg1: i32, %arg2: i32, %arg3: memref<16x256xbf16, #tpu.memory_space<vmem>>, %arg4: memref<256x128xbf16, #tpu.memory_space<vmem>>, %arg5: memref<1x128xf32, #tpu.memory_space<vmem>>, %arg6: memref<1x128xf32, #tpu.memory_space<vmem>>, %arg7: memref<16x128xf32, #tpu.memory_space<vmem>>, %arg8: memref<16x128xf32, #tpu.memory_space<vmem>>) attributes {dimension_semantics = [#tpu.dimension_semantics<parallel>, #tpu.dimension_semantics<parallel>, #tpu.dimension_semantics<arbitrary>], iteration_bounds = array<i64: 1, 1, 4>, scalar_prefetch = 0 : i64, scratch_operands = 1 : i64, tpu.core_type = #tpu.core_type<tc>, window_params = [{transform_indices = @transform_0, window_bounds = array<i64: 16, 256>}, {transform_indices = @transform_1, window_bounds = array<i64: 256, 128>}, {transform_indices = @transform_2, window_bounds = array<i64: 1, 128>}, {transform_indices = @transform_3, window_bounds = array<i64: 1, 128>}, {transform_indices = @transform_4, window_bounds = array<i64: 16, 128>}]} {
    %c0_i32 = arith.constant 0 : i32
    %0 = arith.cmpi eq, %arg2, %c0_i32 : i32
    %1 = arith.extui %0 : i1 to i32
    %c0_i32_0 = arith.constant 0 : i32
    %2 = arith.cmpi ne, %1, %c0_i32_0 : i32
    scf.if %2 {
      %cst_9 = arith.constant 0.000000e+00 : f32
      %12 = vector.broadcast %cst_9 : f32 to vector<16x128xf32>
      %c0_10 = arith.constant 0 : index
      %c0_11 = arith.constant 0 : index
      %13 = vector.load %arg8[%c0_10, %c0_11] : memref<16x128xf32, #tpu.memory_space<vmem>>, vector<16x128xf32>
      tpu.vector_store %arg8[%c0_10, %c0_11], %12 {strides = array<i32>} : memref<16x128xf32, #tpu.memory_space<vmem>>, vector<16x128xf32>,
    } else {
    }
    %c0 = arith.constant 0 : index
    %c0_1 = arith.constant 0 : index
    %3 = vector.load %arg8[%c0, %c0_1] : memref<16x128xf32, #tpu.memory_space<vmem>>, vector<16x128xf32>
    %c0_2 = arith.constant 0 : index
    %c0_3 = arith.constant 0 : index
    %4 = vector.load %arg3[%c0_2, %c0_3] : memref<16x256xbf16, #tpu.memory_space<vmem>>, vector<16x256xbf16>
    %c0_4 = arith.constant 0 : index
    %c0_5 = arith.constant 0 : index
    %5 = vector.load %arg4[%c0_4, %c0_5] : memref<256x128xbf16, #tpu.memory_space<vmem>>, vector<256x128xbf16>
    %cst = arith.constant dense<0.000000e+00> : vector<16x128xf32>
    %6 = tpu.matmul %4, %5, %cst {dimension_numbers = #tpu.dot_dimension_numbers<[1], [0], [0], [1], [0, 0, 1, 1], [], []>} : vector<16x256xbf16>, vector<256x128xbf16>, vector<16x128xf32> -> vector<16x128xf32>
    %7 = arith.addf %3, %6 : vector<16x128xf32>
    %c0_6 = arith.constant 0 : index
    %c0_7 = arith.constant 0 : index
    %8 = vector.load %arg8[%c0_6, %c0_7] : memref<16x128xf32, #tpu.memory_space<vmem>>, vector<16x128xf32>
    tpu.vector_store %arg8[%c0_6, %c0_7], %7 {strides = array<i32>} : memref<16x128xf32, #tpu.memory_space<vmem>>, vector<16x128xf32>,
    %c3_i32 = arith.constant 3 : i32
    %9 = arith.cmpi eq, %arg2, %c3_i32 : i32
    %10 = arith.extui %9 : i1 to i32
    %c0_i32_8 = arith.constant 0 : i32
    %11 = arith.cmpi ne, %10, %c0_i32_8 : i32
    scf.if %11 {
      %c0_9 = arith.constant 0 : index
      %c0_10 = arith.constant 0 : index
      %12 = vector.load %arg8[%c0_9, %c0_10] : memref<16x128xf32, #tpu.memory_space<vmem>>, vector<16x128xf32>
      %c0_11 = arith.constant 0 : index
      %c0_12 = arith.constant 0 : index
      %13 = vector.load %arg5[%c0_11, %c0_12] : memref<1x128xf32, #tpu.memory_space<vmem>>, vector<1x128xf32>
      %14 = vector.broadcast %13 : vector<1x128xf32> to vector<16x128xf32>
      %15 = arith.mulf %12, %14 : vector<16x128xf32>
      %c0_13 = arith.constant 0 : index
      %c0_14 = arith.constant 0 : index
      %16 = vector.load %arg6[%c0_13, %c0_14] : memref<1x128xf32, #tpu.memory_space<vmem>>, vector<1x128xf32>
      %17 = vector.broadcast %16 : vector<1x128xf32> to vector<16x128xf32>
      %18 = arith.addf %15, %17 : vector<16x128xf32>
      %c0_15 = arith.constant 0 : index
      %c0_16 = arith.constant 0 : index
      %19 = vector.load %arg7[%c0_15, %c0_16] : memref<16x128xf32, #tpu.memory_space<vmem>>, vector<16x128xf32>
      tpu.vector_store %arg7[%c0_15, %c0_16], %18 {strides = array<i32>} : memref<16x128xf32, #tpu.memory_space<vmem>>, vector<16x128xf32>,
    } else {
    }
    return
  }
  func.func @transform_0(%arg0: i32, %arg1: i32, %arg2: i32) -> (i32, i32) {
    %c0_i32 = arith.constant 0 : i32
    return %arg0, %arg2 : i32, i32
  }
  func.func @transform_1(%arg0: i32, %arg1: i32, %arg2: i32) -> (i32, i32) {
    %c0_i32 = arith.constant 0 : i32
    return %arg2, %arg1 : i32, i32
  }
  func.func @transform_2(%arg0: i32, %arg1: i32, %arg2: i32) -> (i32, i32) {
    %c0_i32 = arith.constant 0 : i32
    %c0_i32_0 = arith.constant 0 : i32
    return %c0_i32, %arg1 : i32, i32
  }
  func.func @transform_3(%arg0: i32, %arg1: i32, %arg2: i32) -> (i32, i32) {
    %c0_i32 = arith.constant 0 : i32
    %c0_i32_0 = arith.constant 0 : i32
    return %c0_i32, %arg1 : i32, i32
  }
  func.func @transform_4(%arg0: i32, %arg1: i32, %arg2: i32) -> (i32, i32) {
    %c0_i32 = arith.constant 0 : i32
    return %arg0, %arg1 : i32, i32
  }
}

module attributes {stable_mosaic.version = 11 : i64} {
  func.func @_mm_affine_kernel(%arg0: i32, %arg1: i32, %arg2: i32, %arg3: memref<16x256xbf16, #tpu.memory_space<vmem>>, %arg4: memref<256x256xbf16, #tpu.memory_space<vmem>>, %arg5: memref<1x256xf32, #tpu.memory_space<vmem>>, %arg6: memref<1x256xf32, #tpu.memory_space<vmem>>, %arg7: memref<16x256xf32, #tpu.memory_space<vmem>>, %arg8: memref<16x256xf32, #tpu.memory_space<vmem>>) attributes {dimension_semantics = [#tpu.dimension_semantics<parallel>, #tpu.dimension_semantics<parallel>, #tpu.dimension_semantics<arbitrary>], iteration_bounds = array<i64: 1, 4, 4>, scalar_prefetch = 0 : i64, scratch_operands = 1 : i64, tpu.core_type = #tpu.core_type<tc>, window_params = [{transform_indices = @transform_0, window_bounds = array<i64: 16, 256>}, {transform_indices = @transform_1, window_bounds = array<i64: 256, 256>}, {transform_indices = @transform_2, window_bounds = array<i64: 1, 256>}, {transform_indices = @transform_3, window_bounds = array<i64: 1, 256>}, {transform_indices = @transform_4, window_bounds = array<i64: 16, 256>}]} {
    %c0_i32 = arith.constant 0 : i32
    %0 = arith.cmpi eq, %arg2, %c0_i32 : i32
    %1 = arith.extui %0 : i1 to i32
    %c0_i32_0 = arith.constant 0 : i32
    %2 = arith.cmpi ne, %1, %c0_i32_0 : i32
    scf.if %2 {
      %cst_9 = arith.constant 0.000000e+00 : f32
      %12 = vector.broadcast %cst_9 : f32 to vector<16x256xf32>
      %c0_10 = arith.constant 0 : index
      %c0_11 = arith.constant 0 : index
      %13 = vector.load %arg8[%c0_10, %c0_11] : memref<16x256xf32, #tpu.memory_space<vmem>>, vector<16x256xf32>
      tpu.vector_store %arg8[%c0_10, %c0_11], %12 {strides = array<i32>} : memref<16x256xf32, #tpu.memory_space<vmem>>, vector<16x256xf32>,
    } else {
    }
    %c0 = arith.constant 0 : index
    %c0_1 = arith.constant 0 : index
    %3 = vector.load %arg8[%c0, %c0_1] : memref<16x256xf32, #tpu.memory_space<vmem>>, vector<16x256xf32>
    %c0_2 = arith.constant 0 : index
    %c0_3 = arith.constant 0 : index
    %4 = vector.load %arg3[%c0_2, %c0_3] : memref<16x256xbf16, #tpu.memory_space<vmem>>, vector<16x256xbf16>
    %c0_4 = arith.constant 0 : index
    %c0_5 = arith.constant 0 : index
    %5 = vector.load %arg4[%c0_4, %c0_5] : memref<256x256xbf16, #tpu.memory_space<vmem>>, vector<256x256xbf16>
    %cst = arith.constant dense<0.000000e+00> : vector<16x256xf32>
    %6 = tpu.matmul %4, %5, %cst {dimension_numbers = #tpu.dot_dimension_numbers<[1], [0], [0], [1], [0, 0, 1, 1], [], []>} : vector<16x256xbf16>, vector<256x256xbf16>, vector<16x256xf32> -> vector<16x256xf32>
    %7 = arith.addf %3, %6 : vector<16x256xf32>
    %c0_6 = arith.constant 0 : index
    %c0_7 = arith.constant 0 : index
    %8 = vector.load %arg8[%c0_6, %c0_7] : memref<16x256xf32, #tpu.memory_space<vmem>>, vector<16x256xf32>
    tpu.vector_store %arg8[%c0_6, %c0_7], %7 {strides = array<i32>} : memref<16x256xf32, #tpu.memory_space<vmem>>, vector<16x256xf32>,
    %c3_i32 = arith.constant 3 : i32
    %9 = arith.cmpi eq, %arg2, %c3_i32 : i32
    %10 = arith.extui %9 : i1 to i32
    %c0_i32_8 = arith.constant 0 : i32
    %11 = arith.cmpi ne, %10, %c0_i32_8 : i32
    scf.if %11 {
      %c0_9 = arith.constant 0 : index
      %c0_10 = arith.constant 0 : index
      %12 = vector.load %arg8[%c0_9, %c0_10] : memref<16x256xf32, #tpu.memory_space<vmem>>, vector<16x256xf32>
      %c0_11 = arith.constant 0 : index
      %c0_12 = arith.constant 0 : index
      %13 = vector.load %arg5[%c0_11, %c0_12] : memref<1x256xf32, #tpu.memory_space<vmem>>, vector<1x256xf32>
      %14 = vector.broadcast %13 : vector<1x256xf32> to vector<16x256xf32>
      %15 = arith.mulf %12, %14 : vector<16x256xf32>
      %c0_13 = arith.constant 0 : index
      %c0_14 = arith.constant 0 : index
      %16 = vector.load %arg6[%c0_13, %c0_14] : memref<1x256xf32, #tpu.memory_space<vmem>>, vector<1x256xf32>
      %17 = vector.broadcast %16 : vector<1x256xf32> to vector<16x256xf32>
      %18 = arith.addf %15, %17 : vector<16x256xf32>
      %cst_15 = arith.constant 0.000000e+00 : f32
      %19 = vector.broadcast %cst_15 : f32 to vector<16x256xf32>
      %20 = arith.maximumf %18, %19 : vector<16x256xf32>
      %c0_16 = arith.constant 0 : index
      %c0_17 = arith.constant 0 : index
      %21 = vector.load %arg7[%c0_16, %c0_17] : memref<16x256xf32, #tpu.memory_space<vmem>>, vector<16x256xf32>
      tpu.vector_store %arg7[%c0_16, %c0_17], %20 {strides = array<i32>} : memref<16x256xf32, #tpu.memory_space<vmem>>, vector<16x256xf32>,
    } else {
    }
    return
  }
  func.func @transform_0(%arg0: i32, %arg1: i32, %arg2: i32) -> (i32, i32) {
    %c0_i32 = arith.constant 0 : i32
    return %arg0, %arg2 : i32, i32
  }
  func.func @transform_1(%arg0: i32, %arg1: i32, %arg2: i32) -> (i32, i32) {
    %c0_i32 = arith.constant 0 : i32
    return %arg2, %arg1 : i32, i32
  }
  func.func @transform_2(%arg0: i32, %arg1: i32, %arg2: i32) -> (i32, i32) {
    %c0_i32 = arith.constant 0 : i32
    %c0_i32_0 = arith.constant 0 : i32
    return %c0_i32, %arg1 : i32, i32
  }
  func.func @transform_3(%arg0: i32, %arg1: i32, %arg2: i32) -> (i32, i32) {
    %c0_i32 = arith.constant 0 : i32
    %c0_i32_0 = arith.constant 0 : i32
    return %c0_i32, %arg1 : i32, i32
  }
  func.func @transform_4(%arg0: i32, %arg1: i32, %arg2: i32) -> (i32, i32) {
    %c0_i32 = arith.constant 0 : i32
    return %arg0, %arg1 : i32, i32
  }
}

module attributes {stable_mosaic.version = 11 : i64} {
  func.func @_avgpool_kernel(%arg0: memref<2x2x512xf32, #tpu.memory_space<vmem>>, %arg1: memref<2x512xf32, #tpu.memory_space<vmem>>) attributes {dimension_semantics = [], scalar_prefetch = 0 : i64, scratch_operands = 0 : i64, tpu.core_type = #tpu.core_type<tc>} {
    %c0 = arith.constant 0 : index
    %c0_0 = arith.constant 0 : index
    %c0_1 = arith.constant 0 : index
    %0 = vector.load %arg0[%c0, %c0_0, %c0_1] : memref<2x2x512xf32, #tpu.memory_space<vmem>>, vector<2x2x512xf32>
    %cst = arith.constant dense<0.000000e+00> : vector<2x512xf32>
    %1 = vector.multi_reduction <add>, %0, %cst [1] : vector<2x2x512xf32> to vector<2x512xf32>
    %cst_2 = arith.constant 2.000000e+00 : f32
    %2 = vector.broadcast %cst_2 : f32 to vector<2x512xf32>
    %3 = arith.divf %1, %2 : vector<2x512xf32>
    %c0_3 = arith.constant 0 : index
    %c0_4 = arith.constant 0 : index
    %4 = vector.load %arg1[%c0_3, %c0_4] : memref<2x512xf32, #tpu.memory_space<vmem>>, vector<2x512xf32>
    tpu.vector_store %arg1[%c0_3, %c0_4], %3 {strides = array<i32>} : memref<2x512xf32, #tpu.memory_space<vmem>>, vector<2x512xf32>,
    return
  }
}

module attributes {stable_mosaic.version = 11 : i64} {
  func.func @_softmax_kernel(%arg0: memref<8x128xf32, #tpu.memory_space<vmem>>, %arg1: memref<8x128xf32, #tpu.memory_space<vmem>>) attributes {dimension_semantics = [], scalar_prefetch = 0 : i64, scratch_operands = 0 : i64, tpu.core_type = #tpu.core_type<tc>} {
    %c0 = arith.constant 0 : index
    %c0_0 = arith.constant 0 : index
    %0 = vector.load %arg0[%c0, %c0_0] : memref<8x128xf32, #tpu.memory_space<vmem>>, vector<8x128xf32>
    %cst = arith.constant dense<0xFF800000> : vector<8xf32>
    %1 = vector.multi_reduction <maximumf>, %0, %cst [1] : vector<8x128xf32> to vector<8xf32>
    %2 = vector.shape_cast %1 : vector<8xf32> to vector<8x1xf32>
    %3 = vector.broadcast %2 : vector<8x1xf32> to vector<8x128xf32>
    %4 = arith.subf %0, %3 : vector<8x128xf32>
    %5 = math.exp %4 : vector<8x128xf32>
    %cst_1 = arith.constant dense<0.000000e+00> : vector<8xf32>
    %6 = vector.multi_reduction <add>, %5, %cst_1 [1] : vector<8x128xf32> to vector<8xf32>
    %7 = vector.shape_cast %6 : vector<8xf32> to vector<8x1xf32>
    %8 = vector.broadcast %7 : vector<8x1xf32> to vector<8x128xf32>
    %9 = arith.divf %5, %8 : vector<8x128xf32>
    %c0_2 = arith.constant 0 : index
    %c0_3 = arith.constant 0 : index
    %10 = vector.load %arg1[%c0_2, %c0_3] : memref<8x128xf32, #tpu.memory_space<vmem>>, vector<8x128xf32>
    tpu.vector_store %arg1[%c0_2, %c0_3], %9 {strides = array<i32>} : memref<8x128xf32, #tpu.memory_space<vmem>>, vector<8x128xf32>,
    return
  }
}

</mosaic_0001>

<bundles_post_ra>
// kernel: combined_forward.50
= control target key start
LH: loop header
LB: loop body
LE: loop exit
PB: predicated region body
PF: predicated region fallthrough
CT: control target
= control target key end

     0   :  { %vm34_vm0 = vcmask 523264   ;;  %s115_s0 = inlined_call_operand.vmem [shape: f32[32,64], index: 0, kind: input, shape index: {}]   ;;  %s116_s1 = inlined_call_operand.vmem [shape: f32[32,64], index: 1, kind: input, shape index: {}]   ;;  %s117_s2 = inlined_call_operand.vmem [shape: f32[32,64], index: 2, kind: input, shape index: {}]   ;;  %s118_s3 = inlined_call_operand.vmem [shape: f32[32,64], index: 3, kind: output, shape index: {}]  }
   0x1   :  { %v14_v0 = vld [vmem:[%s115_s0] sm:$0xff]  ;;  %v15_v4 = vld [vmem:[%s115_s0 + $0x8] sm:$0xff]  ;;  %v16_v8 = vld [vmem:[%s115_s0 + $0x10] sm:$0xff] }
   0x2   :  { %v18_v1 = vld [vmem:[%s116_s1] sm:$0xff]  ;;  %v19_v5 = vld [vmem:[%s116_s1 + $0x8] sm:$0xff]  ;;  %v20_v9 = vld [vmem:[%s116_s1 + $0x10] sm:$0xff] }
   0x3   :  { %v26_v2 = vld [vmem:[%s117_s2] sm:$0xff]  ;;  %v22_v3 = vmax.f32 %v14_v0, %v18_v1  ;;  %v27_v6 = vld [vmem:[%s117_s2 + $0x8] sm:$0xff]  ;;  %v23_v7 = vmax.f32 %v15_v4, %v19_v5  ;;  %v28_v10 = vld [vmem:[%s117_s2 + $0x10] sm:$0xff]  ;;  %v24_v12 = vmax.f32 %v16_v8, %v20_v9 }
   0x4   :  { %v17_v13 = vld [vmem:[%s115_s0 + $0x18] sm:$0xff] }
   0x5   :  { %v30_v11 = vmax.f32 %v22_v3, %v26_v2  ;;  %v21_v14 = vld [vmem:[%s116_s1 + $0x18] sm:$0xff]  ;;  %v31_v16 = vmax.f32 %v23_v7, %v27_v6  ;;  %v32_v18 = vmax.f32 %v24_v12, %v28_v10 }
   0x6   :  { %v29_v15 = vld [vmem:[%s117_s2 + $0x18] sm:$0xff]  ;;  %v25_v17 = vmax.f32 %v17_v13, %v21_v14 }
   0x7   :  { %35 = vst.msk [vmem:[%s118_s3] sm:$0xff] %vm34_vm0, %v30_v11  ;;  %36 = vst.msk [vmem:[%s118_s3 + $0x8] sm:$0xff] %vm34_vm0, %v31_v16 }
   0x8   :  { %v33_v19 = vmax.f32 %v25_v17, %v29_v15  ;;  %37 = vst.msk [vmem:[%s118_s3 + $0x10] sm:$0xff] %vm34_vm0, %v32_v18 }
   0xa   :  { %38 = vst.msk [vmem:[%s118_s3 + $0x18] sm:$0xff] %vm34_vm0, %v33_v19 }

// kernel: combined_forward.49
= control target key start
LH: loop header
LB: loop body
LE: loop exit
PB: predicated region body
PF: predicated region fallthrough
CT: control target
= control target key end

     0   :  { %9 = vsyncpa [#allocation4], 0  ;;  %s469_s0 = inlined_call_operand.vmem [shape: bf16[64,8], index: 0, kind: input, shape index: {}]   ;;  %s470_s1 = inlined_call_operand.hbm [shape: bf16[8,128], index: 1, kind: input, shape index: {}]   ;;  %s471_s2 = inlined_call_operand.hbm [shape: f32[1,128], index: 2, kind: input, shape index: {}]   ;;  %s472_s3 = inlined_call_operand.hbm [shape: f32[1,128], index: 3, kind: input, shape index: {}]   ;;  %s473_s4 = inlined_call_operand.vmem [shape: f32[64,128], index: 4, kind: output, shape index: {}]  }
   0x1   :  { %10 = vsyncpa [#allocation6], 0  ;;  %s369_s15 = smov [#allocation5]   ;;  %s370_s17 = smov [#allocation3]  }
   0x2   :  { %s29_s16 = sshll.u32 %s369_s15, 4  ;;  %s19_s18 = sshll.u32 %s370_s17, 4  ;;  %s30_s16 = int_to_ptr.vmem [resolvable:$true] %s29_s16  ;;  %s20_s18 = int_to_ptr.vmem [resolvable:$true] %s19_s18 }
   0x3   :  { %s299_s21 = scalar_lea.hbm %s471_s2, 16 }
   0x4   :  { %p300_p0 = scmp.ne.s32.totalorder %s471_s2, %s299_s21  ;;  %p303_p1 = scmp.lt.u32.totalorder %s299_s21, %s471_s2 }
   0x6   :  { %p305_p2 = pnand %p303_p1, %p300_p0 }
   0x8   :  { %308 = shalt.err (!%p305_p2)
}
   0x9   :  { %s309_s26 = scalar_lea.vmem %s30_s16, 16  ;;  %s313_s27 = scalar_lea.vmem %s30_s16, 32 }
   0xa   :  { %p310_p3 = scmp.ne.s32.totalorder %s30_s16, %s309_s26  ;;  %p314_p4 = scmp.lt.s32.totalorder %s30_s16, %s30_s16 }
   0xb   :  { %p315_p5 = scmp.lt.s32.totalorder %s313_s27, %s309_s26 }
   0xd   :  { %p316_p6 = por %p315_p5, %p314_p4 }
   0xf   :  { %p317_p7 = pnand %p316_p6, %p310_p3 }
  0x11   :  { %320 = shalt.err (!%p317_p7)
}
  0x12   :  { %32 = dma.hbm_to_vmem [thread:$0]  %s471_s2, 16, %s30_s16, [#allocation6]  }
  0x13   :  { %s321_s6 = scalar_lea.hbm %s470_s1, 64 }
  0x14   :  { %p322_p8 = scmp.ne.s32.totalorder %s470_s1, %s321_s6  ;;  %p325_p9 = scmp.lt.u32.totalorder %s321_s6, %s470_s1 }
  0x16   :  { %p327_p10 = pnand %p325_p9, %p322_p8 }
  0x18   :  { %330 = shalt.err (!%p327_p10)
}
  0x19   :  { %s331_s11 = scalar_lea.vmem %s20_s18, 64  ;;  %p336_p12 = scmp.lt.s32.totalorder %s20_s18, %s20_s18 }
  0x1a   :  { %p332_p11 = scmp.ne.s32.totalorder %s20_s18, %s331_s11  ;;  %p337_p13 = scmp.lt.s32.totalorder %s331_s11, %s331_s11 }
  0x1c   :  { %p338_p0 = por %p337_p13, %p336_p12 }
  0x1e   :  { %p339_p1 = pnand %p338_p0, %p332_p11 }
  0x20   :  { %342 = shalt.err (!%p339_p1)
}
  0x21   :  { %22 = dma.hbm_to_vmem [thread:$0]  %s470_s1, 64, %s20_s18, [#allocation4]  }
  0x22   :  { %s371_s13 = smov [#allocation7]   ;;  %s343_s17 = scalar_lea.hbm %s472_s3, 16 }
  0x23   :  { %s39_s14 = sshll.u32 %s371_s13, 4  ;;  %p344_p2 = scmp.ne.s32.totalorder %s472_s3, %s343_s17  ;;  %s40_s14 = int_to_ptr.vmem [resolvable:$true] %s39_s14 }
  0x24   :  { %p347_p3 = scmp.lt.u32.totalorder %s343_s17, %s472_s3 }
  0x26   :  { %p349_p4 = pnand %p347_p3, %p344_p2 }
  0x28   :  { %352 = shalt.err (!%p349_p4)
}
  0x29   :  { %s353_s23 = scalar_lea.vmem %s40_s14, 16  ;;  %s357_s1 = scalar_lea.vmem %s40_s14, 32 }
  0x2a   :  { %p354_p5 = scmp.ne.s32.totalorder %s40_s14, %s353_s23  ;;  %p358_p6 = scmp.lt.s32.totalorder %s40_s14, %s40_s14 }
  0x2b   :  { %p359_p7 = scmp.lt.s32.totalorder %s357_s1, %s353_s23 }
  0x2d   :  { %p360_p8 = por %p359_p7, %p358_p6 }
  0x2f   :  { %p361_p9 = pnand %p360_p8, %p354_p5 }
  0x31   :  { %364 = shalt.err (!%p361_p9)
}
  0x32   :  { %42 = dma.hbm_to_vmem [thread:$0]  %s472_s3, 16, %s40_s14, [#allocation6]  }
  0x33   :  { %365 = dma.done.wait [#allocation4], 64  }
  0x34   :  { %366 = vsyncadd [#allocation4], 4294967232 }
  0x35   :  { %367 = dma.done.wait [#allocation6], 32  }
  0x36   :  { %368 = vsyncadd [#allocation6], 4294967264  ;;  %vm115_vm0 = vcmask 1043456   ;;  %vm102_vm1 = vcmask 64512   ;;  %v81_v0 = vld [vmem:[#allocation3] sm:$0xf] }
  0x37   :  { %290 = vmatprep.subr.msk.bf16.mxu0 %vm115_vm0, %v81_v0  ;;  %291 = vmatprep.subr.msk.bf16.mxu1 %vm115_vm0, %v81_v0  ;;  %v117_v1 = vsel %vm115_vm0, %v81_v0, 0  ;;  %v295_v2 = vld [vmem:[%s469_s0] sm:$0xff]   ;;  %v296_v3 = vld [vmem:[%s469_s0 + $0x10] sm:$0xff]   ;;  %v297_v4 = vld [vmem:[%s469_s0 + $0x8] sm:$0xff]  }
  0x38   :  { %279 = vmatpush3.bf16.msra.mxu0 %v117_v1  ;;  %289 = vmatpush3.bf16.msra.mxu1 %v117_v1  ;;  %v298_v5 = vld [vmem:[%s469_s0 + $0x18] sm:$0xff]   ;;  %v271_v6 = vld [vmem:[#allocation5] ss:$0 sm:$0xff]  ;;  %v272_v8 = vld [vmem:[#allocation7] ss:$0 sm:$0xff] }
  0x39   :  { %280 = vmatprep.mubr.msk.bf16.mxu0 %vm102_vm1, %v295_v2  ;;  %284 = vmatprep.mubr.msk.bf16.mxu1 %vm102_vm1, %v296_v3 }
  0x3b   :  { %281 = vmatmul.mubr.msk.bf16.vlgmr.msra.gmra.mrb[0].mxu0 %vm102_vm1, %v297_v4  ;;  %285 = vmatmul.mubr.msk.bf16.vlgmr.msra.gmra.mrb[0].mxu1 %vm102_vm1, %v298_v5 }
 0x10e   :  { %v282_v7 = vpop.f32.mrb[0].mxu0  ;;  %v286_v10 = vpop.f32.mrb[0].mxu1 }
 0x10f   :  { %v220_v9 = vmul.f32 %v282_v7, %v271_v6  ;;  %v153_v11 = vpop.f32.mrb[1].mxu0  ;;  %v224_v12 = vmul.f32 %v286_v10, %v271_v6  ;;  %v169_v14 = vpop.f32.mrb[1].mxu1 }
 0x110   :  { %v218_v13 = vmul.f32 %v271_v6, %v153_v11  ;;  %v283_v15 = vpop.f32.mrb[2].mxu0  ;;  %v222_v17 = vmul.f32 %v271_v6, %v169_v14  ;;  %v287_v19 = vpop.f32.mrb[2].mxu1 }
 0x111   :  { %v235_v16 = vadd.f32 %v272_v8, %v220_v9  ;;  %v221_v18 = vmul.f32 %v283_v15, %v271_v6  ;;  %v156_v20 = vpop.f32.mrb[3].mxu0  ;;  %v239_v21 = vadd.f32 %v272_v8, %v224_v12  ;;  %v225_v23 = vmul.f32 %v287_v19, %v271_v6  ;;  %v172_v25 = vpop.f32.mrb[3].mxu1 }
 0x112   :  { %v233_v22 = vadd.f32 %v272_v8, %v218_v13  ;;  %v219_v24 = vmul.f32 %v271_v6, %v156_v20  ;;  %v237_v27 = vadd.f32 %v272_v8, %v222_v17  ;;  %v223_v29 = vmul.f32 %v271_v6, %v172_v25 }
 0x113   :  { %v243_v26 = vmax.f32 %v235_v16, 0.0  ;;  %v236_v28 = vadd.f32 %v272_v8, %v221_v18  ;;  %v247_v30 = vmax.f32 %v239_v21, 0.0  ;;  %v240_v32 = vadd.f32 %v272_v8, %v225_v23 }
 0x114   :  { %v241_v31 = vmax.f32 %v233_v22, 0.0  ;;  %v234_v33 = vadd.f32 %v272_v8, %v219_v24  ;;  %v245_v34 = vmax.f32 %v237_v27, 0.0  ;;  %v238_v36 = vadd.f32 %v272_v8, %v223_v29 }
 0x115   :  { %251 = vst [vmem:[%s473_s4 + $0x10] sm:$0xff] %v243_v26  ;;  %v244_v35 = vmax.f32 %v236_v28, 0.0  ;;  %255 = vst [vmem:[%s473_s4 + $0x30] sm:$0xff] %v247_v30  ;;  %v248_v37 = vmax.f32 %v240_v32, 0.0 }
 0x116   :  { %249 = vst [vmem:[%s473_s4] sm:$0xff] %v241_v31  ;;  %v242_v38 = vmax.f32 %v234_v33, 0.0  ;;  %253 = vst [vmem:[%s473_s4 + $0x20] sm:$0xff] %v245_v34  ;;  %v246_v39 = vmax.f32 %v238_v36, 0.0 }
 0x117   :  { %252 = vst [vmem:[%s473_s4 + $0x18] sm:$0xff] %v244_v35  ;;  %256 = vst [vmem:[%s473_s4 + $0x38] sm:$0xff] %v248_v37 }
 0x118   :  { %250 = vst [vmem:[%s473_s4 + $0x8] sm:$0xff] %v242_v38  ;;  %254 = vst [vmem:[%s473_s4 + $0x28] sm:$0xff] %v246_v39 }
 0x119   :  { %261 = vsyncpa [#allocation4], 1 }
 0x11a   :  { %262 = vsyncpa [#allocation6], 1 }

// kernel: combined_forward.75
= control target key start
LH: loop header
LB: loop body
LE: loop exit
PB: predicated region body
PF: predicated region fallthrough
CT: control target
= control target key end

     0   :  { %s471_s1 = inlined_call_operand.vmem [shape: bf16[256,128], index: 1, kind: input, shape index: {}]   ;;  %s472_s0 = inlined_call_operand.vmem [shape: bf16[32,256], index: 0, kind: input, shape index: {}]   ;;  %s473_s2 = inlined_call_operand.vmem [shape: f32[1,128], index: 2, kind: input, shape index: {}]   ;;  %s474_s3 = inlined_call_operand.vmem [shape: f32[1,128], index: 3, kind: input, shape index: {}]   ;;  %s475_s4 = inlined_call_operand.vmem [shape: f32[32,128], index: 4, kind: output, shape index: {}]  }
   0x1   :  { %v346_v0 = vld [vmem:[%s471_s1 + $0x40] sm:$0xff]   ;;  %v348_v2 = vld [vmem:[%s471_s1 + $0x48] sm:$0xff]   ;;  %v350_v4 = vld [vmem:[%s471_s1 + $0x50] sm:$0xff]  }
   0x2   :  { %v347_v1 = vld [vmem:[%s471_s1] sm:$0xff]   ;;  %302 = vmatprep.subr.bf16.mxu0 %v346_v0  ;;  %330 = vmatprep.subr.bf16.mxu1 %v346_v0  ;;  %v349_v3 = vld [vmem:[%s471_s1 + $0x8] sm:$0xff]   ;;  %v351_v5 = vld [vmem:[%s471_s1 + $0x10] sm:$0xff]  }
   0x3   :  { %303 = vmatpush3.bf16.msra.mxu0 %v347_v1  ;;  %338 = vmatpush3.bf16.msra.mxu1 %v347_v1  ;;  %v352_v6 = vld [vmem:[%s471_s1 + $0x58] sm:$0xff]   ;;  %v354_v8 = vld [vmem:[%s471_s1 + $0x60] sm:$0xff]   ;;  %v356_v10 = vld [vmem:[%s471_s1 + $0x68] sm:$0xff]  }
   0x4   :  { %304 = vmatprep.subr.bf16.mxu0 %v348_v2  ;;  %331 = vmatprep.subr.bf16.mxu1 %v348_v2  ;;  %v353_v7 = vld [vmem:[%s471_s1 + $0x18] sm:$0xff]   ;;  %v355_v9 = vld [vmem:[%s471_s1 + $0x20] sm:$0xff]   ;;  %v357_v13 = vld [vmem:[%s471_s1 + $0x28] sm:$0xff]  }
   0x5   :  { %v364_v11 = vld [vmem:[%s472_s0 + $0x4] ss:$8 sps:$4 sm:$0xff]   ;;  %v367_v12 = vld [vmem:[%s472_s0 + $0x14] ss:$8 sps:$4 sm:$0xff]   ;;  %v362_v18 = vld [vmem:[%s472_s0] ss:$8 sps:$4 sm:$0xff]  }
   0x6   :  { %v358_v14 = vld [vmem:[%s471_s1 + $0x70] sm:$0xff]   ;;  %214 = vmatprep.mubr.bf16.mxu0 %v364_v11  ;;  %222 = vmatprep.mubr.bf16.mxu1 %v367_v12  ;;  %v360_v16 = vld [vmem:[%s471_s1 + $0x78] sm:$0xff]   ;;  %v300_v23 = vld [vmem:[%s473_s2] ss:$0 sm:$0xff] }
   0x7   :  { %305 = vmatpush3.bf16.msra.mxu0 %v349_v3  ;;  %339 = vmatpush3.bf16.msra.mxu1 %v349_v3  ;;  %v359_v15 = vld [vmem:[%s471_s1 + $0x30] sm:$0xff]   ;;  %v361_v17 = vld [vmem:[%s471_s1 + $0x38] sm:$0xff]   ;;  %v301_v29 = vld [vmem:[%s474_s3] ss:$0 sm:$0xff] }
   0x8   :  { %306 = vmatprep.subr.bf16.mxu0 %v350_v4  ;;  %332 = vmatprep.subr.bf16.mxu1 %v350_v4  ;;  %v365_v19 = vld [vmem:[%s472_s0 + $0x10] ss:$8 sps:$4 sm:$0xff]  }
   0xb   :  { %307 = vmatpush3.bf16.msra.mxu0 %v351_v5  ;;  %340 = vmatpush3.bf16.msra.mxu1 %v351_v5 }
   0xc   :  { %308 = vmatprep.subr.bf16.mxu0 %v352_v6  ;;  %333 = vmatprep.subr.bf16.mxu1 %v352_v6 }
   0xf   :  { %309 = vmatpush3.bf16.msra.mxu0 %v353_v7  ;;  %341 = vmatpush3.bf16.msra.mxu1 %v353_v7 }
  0x10   :  { %310 = vmatprep.subr.bf16.mxu0 %v354_v8  ;;  %334 = vmatprep.subr.bf16.mxu1 %v354_v8 }
  0x13   :  { %311 = vmatpush3.bf16.msra.mxu0 %v355_v9  ;;  %342 = vmatpush3.bf16.msra.mxu1 %v355_v9 }
  0x14   :  { %312 = vmatprep.subr.bf16.mxu0 %v356_v10  ;;  %335 = vmatprep.subr.bf16.mxu1 %v356_v10 }
  0x17   :  { %313 = vmatpush3.bf16.msra.mxu0 %v357_v13  ;;  %343 = vmatpush3.bf16.msra.mxu1 %v357_v13 }
  0x18   :  { %314 = vmatprep.subr.bf16.mxu0 %v358_v14  ;;  %336 = vmatprep.subr.bf16.mxu1 %v358_v14 }
  0x1b   :  { %315 = vmatpush3.bf16.msra.mxu0 %v359_v15  ;;  %344 = vmatpush3.bf16.msra.mxu1 %v359_v15 }
  0x1c   :  { %316 = vmatprep.subr.bf16.mxu0 %v360_v16  ;;  %337 = vmatprep.subr.bf16.mxu1 %v360_v16 }
  0x1f   :  { %317 = vmatpush3.bf16.msra.mxu0 %v361_v17  ;;  %345 = vmatpush3.bf16.msra.mxu1 %v361_v17 }
  0x22   :  { %215 = vmatmul.mubr.bf16.vlgmr.msra.gmra.mrb[0].mxu0 %v362_v18  ;;  %223 = vmatmul.mubr.bf16.vlgmr.msra.gmra.mrb[0].mxu1 %v365_v19 }
  0xf5   :  { %v318_v20 = vpop.f32.mrb[0].mxu0  ;;  %v324_v21 = vpop.f32.mrb[0].mxu1 }
  0xf6   :  { %v319_v22 = vpop.f32.mrb[1].mxu0  ;;  %v325_v24 = vpop.f32.mrb[1].mxu1 }
  0xf7   :  { %v320_v25 = vadd.f32 %v319_v22, %v318_v20  ;;  %v326_v26 = vadd.f32 %v325_v24, %v324_v21  ;;  %v321_v27 = vpop.f32.mrb[2].mxu0  ;;  %v327_v28 = vpop.f32.mrb[2].mxu1 }
  0xf8   :  { %v322_v30 = vpop.f32.mrb[3].mxu0  ;;  %v328_v31 = vpop.f32.mrb[3].mxu1 }
  0xf9   :  { %v253_v32 = vmul.f32 %v320_v25, %v300_v23  ;;  %v255_v33 = vmul.f32 %v326_v26, %v300_v23  ;;  %v323_v34 = vadd.f32 %v322_v30, %v321_v27  ;;  %v329_v35 = vadd.f32 %v328_v31, %v327_v28 }
  0xfb   :  { %v264_v36 = vadd.f32 %v301_v29, %v253_v32  ;;  %v266_v37 = vadd.f32 %v301_v29, %v255_v33  ;;  %v254_v38 = vmul.f32 %v323_v34, %v300_v23  ;;  %v256_v39 = vmul.f32 %v329_v35, %v300_v23 }
  0xfd   :  { %v268_v40 = vmax.f32 %v264_v36, 0.0  ;;  %v270_v41 = vmax.f32 %v266_v37, 0.0  ;;  %v265_v42 = vadd.f32 %v301_v29, %v254_v38  ;;  %v267_v43 = vadd.f32 %v301_v29, %v256_v39 }
  0xff   :  { %272 = vst [vmem:[%s475_s4] sm:$0xff] %v268_v40  ;;  %274 = vst [vmem:[%s475_s4 + $0x10] sm:$0xff] %v270_v41  ;;  %v269_v44 = vmax.f32 %v265_v42, 0.0  ;;  %v271_v45 = vmax.f32 %v267_v43, 0.0 }
 0x101   :  { %273 = vst [vmem:[%s475_s4 + $0x8] sm:$0xff] %v269_v44  ;;  %275 = vst [vmem:[%s475_s4 + $0x18] sm:$0xff] %v271_v45 }

// kernel: combined_forward.51
= control target key start
LH: loop header
LB: loop body
LE: loop exit
PB: predicated region body
PF: predicated region fallthrough
CT: control target
= control target key end

     0   :  { %9 = vsyncpa [#allocation4], 0  ;;  %s416_s0 = inlined_call_operand.vmem [shape: bf16[32,64], index: 0, kind: input, shape index: {}]   ;;  %s417_s1 = inlined_call_operand.hbm [shape: bf16[64,128], index: 1, kind: input, shape index: {}]   ;;  %s418_s2 = inlined_call_operand.hbm [shape: f32[1,128], index: 2, kind: input, shape index: {}]   ;;  %s419_s3 = inlined_call_operand.hbm [shape: f32[1,128], index: 3, kind: input, shape index: {}]   ;;  %s420_s4 = inlined_call_operand.vmem [shape: f32[32,128], index: 4, kind: output, shape index: {}]  }
   0x1   :  { %10 = vsyncpa [#allocation6], 0  ;;  %s325_s15 = smov [#allocation5]   ;;  %s326_s17 = smov [#allocation3]  }
   0x2   :  { %s31_s16 = sshll.u32 %s325_s15, 4  ;;  %s18_s18 = sshll.u32 %s326_s17, 4  ;;  %s32_s16 = int_to_ptr.vmem [resolvable:$true] %s31_s16  ;;  %s355_s18 = int_to_ptr.vmem [resolvable:$true] %s18_s18 }
   0x3   :  { %s255_s21 = scalar_lea.hbm %s418_s2, 16 }
   0x4   :  { %p256_p0 = scmp.ne.s32.totalorder %s418_s2, %s255_s21  ;;  %p259_p1 = scmp.lt.u32.totalorder %s255_s21, %s418_s2 }
   0x6   :  { %p261_p2 = pnand %p259_p1, %p256_p0 }
   0x8   :  { %264 = shalt.err (!%p261_p2)
}
   0x9   :  { %s265_s26 = scalar_lea.vmem %s32_s16, 16  ;;  %s269_s27 = scalar_lea.vmem %s32_s16, 32 }
   0xa   :  { %p266_p3 = scmp.ne.s32.totalorder %s32_s16, %s265_s26  ;;  %p270_p4 = scmp.lt.s32.totalorder %s32_s16, %s32_s16 }
   0xb   :  { %p271_p5 = scmp.lt.s32.totalorder %s269_s27, %s265_s26 }
   0xd   :  { %p272_p6 = por %p271_p5, %p270_p4 }
   0xf   :  { %p273_p7 = pnand %p272_p6, %p266_p3 }
  0x11   :  { %276 = shalt.err (!%p273_p7)
}
  0x12   :  { %34 = dma.hbm_to_vmem [thread:$0]  %s418_s2, 16, %s32_s16, [#allocation6]  }
  0x13   :  { %s277_s6 = scalar_lea.hbm %s417_s1, 512 }
  0x14   :  { %p278_p8 = scmp.ne.s32.totalorder %s417_s1, %s277_s6  ;;  %p281_p9 = scmp.lt.u32.totalorder %s277_s6, %s417_s1 }
  0x16   :  { %p283_p10 = pnand %p281_p9, %p278_p8 }
  0x18   :  { %286 = shalt.err (!%p283_p10)
}
  0x19   :  { %s287_s11 = scalar_lea.vmem %s355_s18, 512  ;;  %p292_p12 = scmp.lt.s32.totalorder %s355_s18, %s355_s18 }
  0x1a   :  { %p288_p11 = scmp.ne.s32.totalorder %s355_s18, %s287_s11  ;;  %p293_p13 = scmp.lt.s32.totalorder %s287_s11, %s287_s11 }
  0x1c   :  { %p294_p0 = por %p293_p13, %p292_p12 }
  0x1e   :  { %p295_p1 = pnand %p294_p0, %p288_p11 }
  0x20   :  { %298 = shalt.err (!%p295_p1)
}
  0x21   :  { %s327_s2 = smov 64   ;;  %s328_s12 = smov 4  }
  0x22   :  { %24 = dma.hbm_to_vmem [thread:$0]  %s417_s1, 512, %s355_s18, [#allocation4], %s327_s2, %s327_s2, %s328_s12  }
  0x23   :  { %s329_s15 = smov [#allocation7]   ;;  %s299_s20 = scalar_lea.hbm %s419_s3, 16 }
  0x24   :  { %s41_s16 = sshll.u32 %s329_s15, 4  ;;  %p300_p2 = scmp.ne.s32.totalorder %s419_s3, %s299_s20  ;;  %s42_s16 = int_to_ptr.vmem [resolvable:$true] %s41_s16 }
  0x25   :  { %p303_p3 = scmp.lt.u32.totalorder %s299_s20, %s419_s3 }
  0x27   :  { %p305_p4 = pnand %p303_p3, %p300_p2 }
  0x29   :  { %308 = shalt.err (!%p305_p4)
}
  0x2a   :  { %s309_s25 = scalar_lea.vmem %s42_s16, 16  ;;  %s313_s1 = scalar_lea.vmem %s42_s16, 32 }
  0x2b   :  { %p310_p5 = scmp.ne.s32.totalorder %s42_s16, %s309_s25  ;;  %p314_p6 = scmp.lt.s32.totalorder %s42_s16, %s42_s16 }
  0x2c   :  { %p315_p7 = scmp.lt.s32.totalorder %s313_s1, %s309_s25 }
  0x2e   :  { %p316_p8 = por %p315_p7, %p314_p6 }
  0x30   :  { %p317_p9 = pnand %p316_p8, %p310_p5 }
  0x32   :  { %320 = shalt.err (!%p317_p9)
}
  0x33   :  { %44 = dma.hbm_to_vmem [thread:$0]  %s419_s3, 16, %s42_s16, [#allocation6]  }
  0x34   :  { %321 = dma.done.wait [#allocation4], 512  }
  0x35   :  { %322 = vsyncadd [#allocation4], 4294966784 }
  0x36   :  { %323 = dma.done.wait [#allocation6], 32  }
  0x37   :  { %324 = vsyncadd [#allocation6], 4294967264  ;;  %v249_v0 = vld [vmem:[#allocation3] sm:$0xff]   ;;  %v250_v1 = vld [vmem:[#allocation3 + $0x8] sm:$0xff]   ;;  %vm113_vm0 = vcmask 523264  }
  0x38   :  { %232 = vmatprep.subr.bf16.mxu0 %v249_v0  ;;  %v251_v2 = vld [vmem:[#allocation3 + $0x10] sm:$0xff]   ;;  %v253_v3 = vld [vmem:[%s416_s0] sm:$0xff]   ;;  %v252_v4 = vld [vmem:[#allocation3 + $0x18] sm:$0xff]  }
  0x39   :  { %233 = vmatpush3.bf16.msra.mxu0 %v249_v0  ;;  %240 = vmatprep.mubr.msk.bf16.mxu0 %vm113_vm0, %v253_v3  ;;  %v254_v5 = vld [vmem:[%s416_s0 + $0x8] sm:$0xff]   ;;  %v224_v6 = vld [vmem:[#allocation5] ss:$0 sm:$0xff]  ;;  %v225_v8 = vld [vmem:[#allocation7] ss:$0 sm:$0xff] }
  0x3a   :  { %234 = vmatprep.subr.bf16.mxu0 %v250_v1 }
  0x3d   :  { %235 = vmatpush3.bf16.msra.mxu0 %v250_v1 }
  0x3e   :  { %236 = vmatprep.subr.bf16.mxu0 %v251_v2 }
  0x41   :  { %237 = vmatpush3.bf16.msra.mxu0 %v251_v2 }
  0x42   :  { %238 = vmatprep.subr.bf16.mxu0 %v252_v4 }
  0x45   :  { %239 = vmatpush3.bf16.msra.mxu0 %v252_v4 }
  0x48   :  { %241 = vmatmul.mubr.msk.bf16.vlgmr.msra.gmra.mrb[0].mxu0 %vm113_vm0, %v254_v5 }
 0x11b   :  { %v242_v7 = vpop.f32.mrb[0].mxu0 }
 0x11c   :  { %v193_v9 = vmul.f32 %v242_v7, %v224_v6  ;;  %v154_v10 = vpop.f32.mrb[1].mxu0 }
 0x11d   :  { %v191_v11 = vmul.f32 %v224_v6, %v154_v10  ;;  %v243_v12 = vpop.f32.mrb[2].mxu0 }
 0x11e   :  { %v204_v13 = vadd.f32 %v225_v8, %v193_v9  ;;  %v194_v14 = vmul.f32 %v243_v12, %v224_v6  ;;  %v157_v15 = vpop.f32.mrb[3].mxu0 }
 0x11f   :  { %v202_v16 = vadd.f32 %v225_v8, %v191_v11  ;;  %v192_v17 = vmul.f32 %v224_v6, %v157_v15 }
 0x120   :  { %208 = vst [vmem:[%s420_s4 + $0x10] sm:$0xff] %v204_v13  ;;  %v205_v18 = vadd.f32 %v225_v8, %v194_v14 }
 0x121   :  { %206 = vst [vmem:[%s420_s4] sm:$0xff] %v202_v16  ;;  %v203_v19 = vadd.f32 %v225_v8, %v192_v17 }
 0x122   :  { %209 = vst [vmem:[%s420_s4 + $0x18] sm:$0xff] %v205_v18 }
 0x123   :  { %207 = vst [vmem:[%s420_s4 + $0x8] sm:$0xff] %v203_v19 }
 0x124   :  { %214 = vsyncpa [#allocation4], 1 }
 0x125   :  { %215 = vsyncpa [#allocation6], 1 }

// kernel: combined_forward.74
= control target key start
LH: loop header
LB: loop body
LE: loop exit
PB: predicated region body
PF: predicated region fallthrough
CT: control target
= control target key end

     0   :  { %vm76_vm0 = vcmask 523264   ;;  %s272_s1 = inlined_call_operand.vmem [shape: bf16[64,128], index: 1, kind: input, shape index: {}]   ;;  %s273_s0 = inlined_call_operand.vmem [shape: bf16[32,64], index: 0, kind: input, shape index: {}]   ;;  %s274_s2 = inlined_call_operand.vmem [shape: f32[1,128], index: 2, kind: input, shape index: {}]   ;;  %s275_s3 = inlined_call_operand.vmem [shape: f32[1,128], index: 3, kind: input, shape index: {}]   ;;  %s276_s4 = inlined_call_operand.vmem [shape: f32[32,128], index: 4, kind: output, shape index: {}]  }
   0x1   :  { %v205_v0 = vld [vmem:[%s272_s1] sm:$0xff]   ;;  %v206_v1 = vld [vmem:[%s272_s1 + $0x8] sm:$0xff]   ;;  %v207_v2 = vld [vmem:[%s272_s1 + $0x10] sm:$0xff]  }
   0x2   :  { %193 = vmatprep.subr.bf16.mxu0 %v205_v0  ;;  %v209_v3 = vld [vmem:[%s273_s0] sm:$0xff]   ;;  %v208_v4 = vld [vmem:[%s272_s1 + $0x18] sm:$0xff]   ;;  %v210_v5 = vld [vmem:[%s273_s0 + $0x8] sm:$0xff]  }
   0x3   :  { %194 = vmatpush3.bf16.msra.mxu0 %v205_v0  ;;  %201 = vmatprep.mubr.msk.bf16.mxu0 %vm76_vm0, %v209_v3  ;;  %v185_v6 = vld [vmem:[%s274_s2] ss:$0 sm:$0xff] }
   0x4   :  { %195 = vmatprep.subr.bf16.mxu0 %v206_v1  ;;  %v186_v8 = vld [vmem:[%s275_s3] ss:$0 sm:$0xff] }
   0x7   :  { %196 = vmatpush3.bf16.msra.mxu0 %v206_v1 }
   0x8   :  { %197 = vmatprep.subr.bf16.mxu0 %v207_v2 }
   0xb   :  { %198 = vmatpush3.bf16.msra.mxu0 %v207_v2 }
   0xc   :  { %199 = vmatprep.subr.bf16.mxu0 %v208_v4 }
   0xf   :  { %200 = vmatpush3.bf16.msra.mxu0 %v208_v4 }
  0x12   :  { %202 = vmatmul.mubr.msk.bf16.vlgmr.msra.gmra.mrb[0].mxu0 %vm76_vm0, %v210_v5 }
  0xe5   :  { %v203_v7 = vpop.f32.mrb[0].mxu0 }
  0xe6   :  { %v156_v9 = vmul.f32 %v203_v7, %v185_v6  ;;  %v117_v10 = vpop.f32.mrb[1].mxu0 }
  0xe7   :  { %v154_v11 = vmul.f32 %v185_v6, %v117_v10  ;;  %v204_v12 = vpop.f32.mrb[2].mxu0 }
  0xe8   :  { %v167_v13 = vadd.f32 %v186_v8, %v156_v9  ;;  %v157_v14 = vmul.f32 %v204_v12, %v185_v6  ;;  %v120_v15 = vpop.f32.mrb[3].mxu0 }
  0xe9   :  { %v165_v16 = vadd.f32 %v186_v8, %v154_v11  ;;  %v155_v17 = vmul.f32 %v185_v6, %v120_v15 }
  0xea   :  { %171 = vst [vmem:[%s276_s4 + $0x10] sm:$0xff] %v167_v13  ;;  %v168_v18 = vadd.f32 %v186_v8, %v157_v14 }
  0xeb   :  { %169 = vst [vmem:[%s276_s4] sm:$0xff] %v165_v16  ;;  %v166_v19 = vadd.f32 %v186_v8, %v155_v17 }
  0xec   :  { %172 = vst [vmem:[%s276_s4 + $0x18] sm:$0xff] %v168_v18 }
  0xed   :  { %170 = vst [vmem:[%s276_s4 + $0x8] sm:$0xff] %v166_v19 }

// kernel: combined_forward.76
= control target key start
LH: loop header
LB: loop body
LE: loop exit
PB: predicated region body
PF: predicated region fallthrough
CT: control target
= control target key end

     0   :  { %s499_s1 = inlined_call_operand.vmem [shape: bf16[256,128], index: 1, kind: input, shape index: {}]   ;;  %s500_s0 = inlined_call_operand.vmem [shape: bf16[32,256], index: 0, kind: input, shape index: {}]   ;;  %s501_s2 = inlined_call_operand.vmem [shape: f32[1,128], index: 2, kind: input, shape index: {}]   ;;  %s502_s3 = inlined_call_operand.vmem [shape: f32[1,128], index: 3, kind: input, shape index: {}]   ;;  %s503_s4 = inlined_call_operand.vmem [shape: f32[32,128], index: 4, kind: input, shape index: {}]   ;;  %s504_s5 = inlined_call_operand.vmem [shape: f32[32,128], index: 5, kind: output, shape index: {}]  }
   0x1   :  { %v357_v0 = vld [vmem:[%s499_s1 + $0x40] sm:$0xff]   ;;  %v359_v2 = vld [vmem:[%s499_s1 + $0x48] sm:$0xff]   ;;  %v361_v4 = vld [vmem:[%s499_s1 + $0x50] sm:$0xff]  }
   0x2   :  { %v358_v1 = vld [vmem:[%s499_s1] sm:$0xff]   ;;  %313 = vmatprep.subr.bf16.mxu0 %v357_v0  ;;  %341 = vmatprep.subr.bf16.mxu1 %v357_v0  ;;  %v360_v3 = vld [vmem:[%s499_s1 + $0x8] sm:$0xff]   ;;  %v362_v5 = vld [vmem:[%s499_s1 + $0x10] sm:$0xff]  }
   0x3   :  { %314 = vmatpush3.bf16.msra.mxu0 %v358_v1  ;;  %349 = vmatpush3.bf16.msra.mxu1 %v358_v1  ;;  %v363_v6 = vld [vmem:[%s499_s1 + $0x58] sm:$0xff]   ;;  %v365_v8 = vld [vmem:[%s499_s1 + $0x60] sm:$0xff]   ;;  %v367_v10 = vld [vmem:[%s499_s1 + $0x68] sm:$0xff]  }
   0x4   :  { %315 = vmatprep.subr.bf16.mxu0 %v359_v2  ;;  %342 = vmatprep.subr.bf16.mxu1 %v359_v2  ;;  %v364_v7 = vld [vmem:[%s499_s1 + $0x18] sm:$0xff]   ;;  %v366_v9 = vld [vmem:[%s499_s1 + $0x20] sm:$0xff]   ;;  %v368_v13 = vld [vmem:[%s499_s1 + $0x28] sm:$0xff]  }
   0x5   :  { %v375_v11 = vld [vmem:[%s500_s0 + $0x4] ss:$8 sps:$4 sm:$0xff]   ;;  %v378_v12 = vld [vmem:[%s500_s0 + $0x14] ss:$8 sps:$4 sm:$0xff]   ;;  %v373_v18 = vld [vmem:[%s500_s0] ss:$8 sps:$4 sm:$0xff]  }
   0x6   :  { %v369_v14 = vld [vmem:[%s499_s1 + $0x70] sm:$0xff]   ;;  %217 = vmatprep.mubr.bf16.mxu0 %v375_v11  ;;  %225 = vmatprep.mubr.bf16.mxu1 %v378_v12  ;;  %v371_v16 = vld [vmem:[%s499_s1 + $0x78] sm:$0xff]   ;;  %v311_v23 = vld [vmem:[%s501_s2] ss:$0 sm:$0xff] }
   0x7   :  { %316 = vmatpush3.bf16.msra.mxu0 %v360_v3  ;;  %350 = vmatpush3.bf16.msra.mxu1 %v360_v3  ;;  %v370_v15 = vld [vmem:[%s499_s1 + $0x30] sm:$0xff]   ;;  %v372_v17 = vld [vmem:[%s499_s1 + $0x38] sm:$0xff]   ;;  %v312_v29 = vld [vmem:[%s502_s3] ss:$0 sm:$0xff] }
   0x8   :  { %317 = vmatprep.subr.bf16.mxu0 %v361_v4  ;;  %343 = vmatprep.subr.bf16.mxu1 %v361_v4  ;;  %v376_v19 = vld [vmem:[%s500_s0 + $0x10] ss:$8 sps:$4 sm:$0xff]   ;;  %v271_v36 = vld [vmem:[%s503_s4] sm:$0xff]  ;;  %v272_v42 = vld [vmem:[%s503_s4 + $0x8] sm:$0xff] }
   0x9   :  { %v273_v37 = vld [vmem:[%s503_s4 + $0x10] sm:$0xff]  ;;  %v274_v43 = vld [vmem:[%s503_s4 + $0x18] sm:$0xff] }
   0xb   :  { %318 = vmatpush3.bf16.msra.mxu0 %v362_v5  ;;  %351 = vmatpush3.bf16.msra.mxu1 %v362_v5 }
   0xc   :  { %319 = vmatprep.subr.bf16.mxu0 %v363_v6  ;;  %344 = vmatprep.subr.bf16.mxu1 %v363_v6 }
   0xf   :  { %320 = vmatpush3.bf16.msra.mxu0 %v364_v7  ;;  %352 = vmatpush3.bf16.msra.mxu1 %v364_v7 }
  0x10   :  { %321 = vmatprep.subr.bf16.mxu0 %v365_v8  ;;  %345 = vmatprep.subr.bf16.mxu1 %v365_v8 }
  0x13   :  { %322 = vmatpush3.bf16.msra.mxu0 %v366_v9  ;;  %353 = vmatpush3.bf16.msra.mxu1 %v366_v9 }
  0x14   :  { %323 = vmatprep.subr.bf16.mxu0 %v367_v10  ;;  %346 = vmatprep.subr.bf16.mxu1 %v367_v10 }
  0x17   :  { %324 = vmatpush3.bf16.msra.mxu0 %v368_v13  ;;  %354 = vmatpush3.bf16.msra.mxu1 %v368_v13 }
  0x18   :  { %325 = vmatprep.subr.bf16.mxu0 %v369_v14  ;;  %347 = vmatprep.subr.bf16.mxu1 %v369_v14 }
  0x1b   :  { %326 = vmatpush3.bf16.msra.mxu0 %v370_v15  ;;  %355 = vmatpush3.bf16.msra.mxu1 %v370_v15 }
  0x1c   :  { %327 = vmatprep.subr.bf16.mxu0 %v371_v16  ;;  %348 = vmatprep.subr.bf16.mxu1 %v371_v16 }
  0x1f   :  { %328 = vmatpush3.bf16.msra.mxu0 %v372_v17  ;;  %356 = vmatpush3.bf16.msra.mxu1 %v372_v17 }
  0x22   :  { %218 = vmatmul.mubr.bf16.vlgmr.msra.gmra.mrb[0].mxu0 %v373_v18  ;;  %226 = vmatmul.mubr.bf16.vlgmr.msra.gmra.mrb[0].mxu1 %v376_v19 }
  0xf5   :  { %v329_v20 = vpop.f32.mrb[0].mxu0  ;;  %v335_v21 = vpop.f32.mrb[0].mxu1 }
  0xf6   :  { %v330_v22 = vpop.f32.mrb[1].mxu0  ;;  %v336_v24 = vpop.f32.mrb[1].mxu1 }
  0xf7   :  { %v331_v25 = vadd.f32 %v330_v22, %v329_v20  ;;  %v337_v26 = vadd.f32 %v336_v24, %v335_v21  ;;  %v332_v27 = vpop.f32.mrb[2].mxu0  ;;  %v338_v28 = vpop.f32.mrb[2].mxu1 }
  0xf8   :  { %v333_v30 = vpop.f32.mrb[3].mxu0  ;;  %v339_v31 = vpop.f32.mrb[3].mxu1 }
  0xf9   :  { %v256_v32 = vmul.f32 %v331_v25, %v311_v23  ;;  %v258_v33 = vmul.f32 %v337_v26, %v311_v23  ;;  %v334_v34 = vadd.f32 %v333_v30, %v332_v27  ;;  %v340_v35 = vadd.f32 %v339_v31, %v338_v28 }
  0xfb   :  { %v267_v38 = vadd.f32 %v312_v29, %v256_v32  ;;  %v269_v39 = vadd.f32 %v312_v29, %v258_v33  ;;  %v257_v40 = vmul.f32 %v334_v34, %v311_v23  ;;  %v259_v41 = vmul.f32 %v340_v35, %v311_v23 }
  0xfd   :  { %v275_v44 = vadd.f32 %v271_v36, %v267_v38  ;;  %v277_v45 = vadd.f32 %v273_v37, %v269_v39  ;;  %v268_v46 = vadd.f32 %v312_v29, %v257_v40  ;;  %v270_v47 = vadd.f32 %v312_v29, %v259_v41 }
  0xff   :  { %v279_v48 = vmax.f32 %v275_v44, 0.0  ;;  %v281_v49 = vmax.f32 %v277_v45, 0.0  ;;  %v276_v50 = vadd.f32 %v272_v42, %v268_v46  ;;  %v278_v51 = vadd.f32 %v274_v43, %v270_v47 }
 0x101   :  { %283 = vst [vmem:[%s504_s5] sm:$0xff] %v279_v48  ;;  %285 = vst [vmem:[%s504_s5 + $0x10] sm:$0xff] %v281_v49  ;;  %v280_v52 = vmax.f32 %v276_v50, 0.0  ;;  %v282_v53 = vmax.f32 %v278_v51, 0.0 }
 0x103   :  { %284 = vst [vmem:[%s504_s5 + $0x8] sm:$0xff] %v280_v52  ;;  %286 = vst [vmem:[%s504_s5 + $0x18] sm:$0xff] %v282_v53 }

// kernel: combined_forward.79
= control target key start
LH: loop header
LB: loop body
LE: loop exit
PB: predicated region body
PF: predicated region fallthrough
CT: control target
= control target key end

     0   :  { %v175_v0 = vmov 0.0   ;;  %vm176_vm0 = vmmov 0   ;;  %vm65_vm1 = vcmask 523264   ;;  %s229_s1 = inlined_call_operand.vmem [shape: bf16[64,128], index: 1, kind: input, shape index: {}]   ;;  %s230_s0 = inlined_call_operand.vmem [shape: bf16[16,64], index: 0, kind: input, shape index: {}]   ;;  %s231_s2 = inlined_call_operand.vmem [shape: f32[1,128], index: 2, kind: input, shape index: {}]   ;;  %s232_s3 = inlined_call_operand.vmem [shape: f32[1,128], index: 3, kind: input, shape index: {}]   ;;  %s233_s4 = inlined_call_operand.vmem [shape: f32[16,128], index: 4, kind: output, shape index: {}]  }
   0x1   :  { %156 = vmatprep.subr.bf16.mxu0 %v175_v0  ;;  %v170_v1 = vld [vmem:[%s229_s1] sm:$0xff]   ;;  %164 = vmatprep.mubr.msk.bf16.mxu0 %vm176_vm0, %v175_v0  ;;  %v171_v2 = vld [vmem:[%s229_s1 + $0x8] sm:$0xff]   ;;  %v172_v3 = vld [vmem:[%s229_s1 + $0x10] sm:$0xff]  }
   0x2   :  { %157 = vmatpush3.bf16.msra.mxu0 %v170_v1  ;;  %v173_v4 = vld [vmem:[%s229_s1 + $0x18] sm:$0xff]   ;;  %v174_v5 = vld [vmem:[%s230_s0] sm:$0xff]  }
   0x3   :  { %158 = vmatprep.subr.bf16.mxu0 %v175_v0  ;;  %v149_v6 = vld [vmem:[%s231_s2] ss:$0 sm:$0xff] }
   0x4   :  { %v150_v8 = vld [vmem:[%s232_s3] ss:$0 sm:$0xff] }
   0x6   :  { %159 = vmatpush3.bf16.msra.mxu0 %v171_v2 }
   0x7   :  { %160 = vmatprep.subr.bf16.mxu0 %v175_v0 }
   0xa   :  { %161 = vmatpush3.bf16.msra.mxu0 %v172_v3 }
   0xb   :  { %162 = vmatprep.subr.bf16.mxu0 %v175_v0 }
   0xe   :  { %163 = vmatpush3.bf16.msra.mxu0 %v173_v4 }
  0x11   :  { %165 = vmatmul.mubr.msk.bf16.vlgmr.msra.gmra.mrb[0].mxu0 %vm65_vm1, %v174_v5 }
  0xe4   :  { %v103_v7 = vpop.f32.mrb[0].mxu0 }
  0xe5   :  { %v126_v9 = vmul.f32 %v149_v6, %v103_v7  ;;  %v166_v10 = vpop.f32.mrb[1].mxu0 }
  0xe6   :  { %v106_v11 = vpop.f32.mrb[2].mxu0 }
  0xe7   :  { %v135_v12 = vadd.f32 %v150_v8, %v126_v9  ;;  %v127_v13 = vmul.f32 %v149_v6, %v106_v11  ;;  %v167_v14 = vpop.f32.mrb[3].mxu0 }
  0xe9   :  { %137 = vst [vmem:[%s233_s4] sm:$0xff] %v135_v12  ;;  %v136_v15 = vadd.f32 %v150_v8, %v127_v13 }
  0xeb   :  { %138 = vst [vmem:[%s233_s4 + $0x8] sm:$0xff] %v136_v15 }

// kernel: combined_forward.80
= control target key start
LH: loop header
LB: loop body
LE: loop exit
PB: predicated region body
PF: predicated region fallthrough
CT: control target
= control target key end

     0   :  { %9 = vsyncpa [#allocation4], 0  ;;  %s490_s0 = inlined_call_operand.vmem [shape: bf16[16,256], index: 0, kind: input, shape index: {}]   ;;  %s491_s1 = inlined_call_operand.vmem [shape: bf16[256,128], index: 1, kind: input, shape index: {}]   ;;  %s492_s2 = inlined_call_operand.hbm [shape: f32[1,128], index: 2, kind: input, shape index: {}]   ;;  %s493_s3 = inlined_call_operand.hbm [shape: f32[1,128], index: 3, kind: input, shape index: {}]   ;;  %s494_s4 = inlined_call_operand.vmem [shape: f32[16,128], index: 4, kind: output, shape index: {}]  }
   0x1   :  { %10 = vsyncpa [#allocation6], 0  ;;  %s379_s15 = smov [#allocation3]   ;;  %s380_s17 = smov [#allocation5]  }
   0x2   :  { %s21_s16 = sshll.u32 %s379_s15, 4  ;;  %s31_s18 = sshll.u32 %s380_s17, 4  ;;  %s22_s16 = int_to_ptr.vmem [resolvable:$true] %s21_s16  ;;  %s32_s18 = int_to_ptr.vmem [resolvable:$true] %s31_s18 }
   0x3   :  { %s331_s21 = scalar_lea.hbm %s492_s2, 16 }
   0x4   :  { %p332_p0 = scmp.ne.s32.totalorder %s492_s2, %s331_s21  ;;  %p335_p1 = scmp.lt.u32.totalorder %s331_s21, %s492_s2 }
   0x6   :  { %p337_p2 = pnand %p335_p1, %p332_p0 }
   0x8   :  { %340 = shalt.err (!%p337_p2)
}
   0x9   :  { %s341_s26 = scalar_lea.vmem %s22_s16, 16  ;;  %s345_s27 = scalar_lea.vmem %s22_s16, 32 }
   0xa   :  { %p342_p3 = scmp.ne.s32.totalorder %s22_s16, %s341_s26  ;;  %p346_p4 = scmp.lt.s32.totalorder %s22_s16, %s22_s16 }
   0xb   :  { %p347_p5 = scmp.lt.s32.totalorder %s345_s27, %s341_s26 }
   0xd   :  { %p348_p6 = por %p347_p5, %p346_p4 }
   0xf   :  { %p349_p7 = pnand %p348_p6, %p342_p3 }
  0x11   :  { %352 = shalt.err (!%p349_p7)
}
  0x12   :  { %24 = dma.hbm_to_vmem [thread:$0]  %s492_s2, 16, %s22_s16, [#allocation4]  }
  0x13   :  { %s353_s6 = scalar_lea.hbm %s493_s3, 16 }
  0x14   :  { %p354_p8 = scmp.ne.s32.totalorder %s493_s3, %s353_s6  ;;  %p357_p9 = scmp.lt.u32.totalorder %s353_s6, %s493_s3 }
  0x16   :  { %p359_p10 = pnand %p357_p9, %p354_p8 }
  0x18   :  { %362 = shalt.err (!%p359_p10)
}
  0x19   :  { %s363_s11 = scalar_lea.vmem %s32_s18, 16  ;;  %s367_s12 = scalar_lea.vmem %s32_s18, 32 }
  0x1a   :  { %p364_p11 = scmp.ne.s32.totalorder %s32_s18, %s363_s11  ;;  %p368_p12 = scmp.lt.s32.totalorder %s32_s18, %s32_s18 }
  0x1b   :  { %p369_p13 = scmp.lt.s32.totalorder %s367_s12, %s363_s11 }
  0x1d   :  { %p370_p0 = por %p369_p13, %p368_p12 }
  0x1f   :  { %p371_p1 = pnand %p370_p0, %p364_p11 }
  0x21   :  { %374 = shalt.err (!%p371_p1)
}
  0x22   :  { %34 = dma.hbm_to_vmem [thread:$0]  %s493_s3, 16, %s32_s18, [#allocation6]  }
  0x23   :  { %375 = dma.done.wait [#allocation4], 16  }
  0x24   :  { %376 = vsyncadd [#allocation4], 4294967280 }
  0x25   :  { %377 = dma.done.wait [#allocation6], 16  }
  0x26   :  { %378 = vsyncadd [#allocation6], 4294967280  ;;  %v312_v0 = vld [vmem:[%s491_s1 + $0x40] sm:$0xff]   ;;  %v314_v2 = vld [vmem:[%s491_s1 + $0x48] sm:$0xff]  }
  0x27   :  { %v313_v1 = vld [vmem:[%s491_s1] sm:$0xff]   ;;  %288 = vmatprep.subr.bf16.mxu0 %v312_v0  ;;  %v315_v3 = vld [vmem:[%s491_s1 + $0x8] sm:$0xff]   ;;  %v316_v4 = vld [vmem:[%s491_s1 + $0x50] sm:$0xff]  }
  0x28   :  { %289 = vmatpush3.bf16.msra.mxu0 %v313_v1  ;;  %v317_v5 = vld [vmem:[%s491_s1 + $0x10] sm:$0xff]   ;;  %v318_v6 = vld [vmem:[%s491_s1 + $0x58] sm:$0xff]   ;;  %v320_v8 = vld [vmem:[%s491_s1 + $0x60] sm:$0xff]  }
  0x29   :  { %290 = vmatprep.subr.bf16.mxu0 %v314_v2  ;;  %v319_v7 = vld [vmem:[%s491_s1 + $0x18] sm:$0xff]   ;;  %v321_v9 = vld [vmem:[%s491_s1 + $0x20] sm:$0xff]   ;;  %v322_v10 = vld [vmem:[%s491_s1 + $0x68] sm:$0xff]  }
  0x2a   :  { %v330_v11 = vld [vmem:[%s490_s0 + $0x4] ss:$8 sps:$4 sm:$0xff]   ;;  %v324_v13 = vld [vmem:[%s491_s1 + $0x70] sm:$0xff]   ;;  %v326_v15 = vld [vmem:[%s491_s1 + $0x78] sm:$0xff]  }
  0x2b   :  { %v323_v12 = vld [vmem:[%s491_s1 + $0x28] sm:$0xff]   ;;  %222 = vmatprep.mubr.bf16.mxu0 %v330_v11  ;;  %v325_v14 = vld [vmem:[%s491_s1 + $0x30] sm:$0xff]   ;;  %v327_v16 = vld [vmem:[%s491_s1 + $0x38] sm:$0xff]  }
  0x2c   :  { %291 = vmatpush3.bf16.msra.mxu0 %v315_v3  ;;  %v328_v17 = vld [vmem:[%s490_s0] ss:$8 sps:$4 sm:$0xff]  }
  0x2d   :  { %292 = vmatprep.subr.bf16.mxu0 %v316_v4  ;;  %v286_v20 = vld [vmem:[#allocation3] ss:$0 sm:$0xff]  ;;  %v287_v23 = vld [vmem:[#allocation5] ss:$0 sm:$0xff] }
  0x30   :  { %293 = vmatpush3.bf16.msra.mxu0 %v317_v5 }
  0x31   :  { %294 = vmatprep.subr.bf16.mxu0 %v318_v6 }
  0x34   :  { %295 = vmatpush3.bf16.msra.mxu0 %v319_v7 }
  0x35   :  { %296 = vmatprep.subr.bf16.mxu0 %v320_v8 }
  0x38   :  { %297 = vmatpush3.bf16.msra.mxu0 %v321_v9 }
  0x39   :  { %298 = vmatprep.subr.bf16.mxu0 %v322_v10 }
  0x3c   :  { %299 = vmatpush3.bf16.msra.mxu0 %v323_v12 }
  0x3d   :  { %300 = vmatprep.subr.bf16.mxu0 %v324_v13 }
  0x40   :  { %301 = vmatpush3.bf16.msra.mxu0 %v325_v14 }
  0x41   :  { %302 = vmatprep.subr.bf16.mxu0 %v326_v15 }
  0x44   :  { %303 = vmatpush3.bf16.msra.mxu0 %v327_v16 }
  0x47   :  { %223 = vmatmul.mubr.bf16.vlgmr.msra.gmra.mrb[0].mxu0 %v328_v17 }
 0x11a   :  { %v304_v18 = vpop.f32.mrb[0].mxu0 }
 0x11b   :  { %v305_v19 = vpop.f32.mrb[1].mxu0 }
 0x11c   :  { %v306_v21 = vadd.f32 %v305_v19, %v304_v18  ;;  %v307_v22 = vpop.f32.mrb[2].mxu0 }
 0x11d   :  { %v308_v24 = vpop.f32.mrb[3].mxu0 }
 0x11e   :  { %v247_v25 = vmul.f32 %v306_v21, %v286_v20  ;;  %v309_v26 = vadd.f32 %v308_v24, %v307_v22 }
 0x120   :  { %v256_v27 = vadd.f32 %v287_v23, %v247_v25  ;;  %v248_v28 = vmul.f32 %v309_v26, %v286_v20 }
 0x122   :  { %v258_v29 = vmax.f32 %v256_v27, 0.0  ;;  %v257_v30 = vadd.f32 %v287_v23, %v248_v28 }
 0x124   :  { %260 = vst [vmem:[%s494_s4] sm:$0xff] %v258_v29  ;;  %v259_v31 = vmax.f32 %v257_v30, 0.0 }
 0x126   :  { %261 = vst [vmem:[%s494_s4 + $0x8] sm:$0xff] %v259_v31 }
 0x127   :  { %266 = vsyncpa [#allocation4], 1 }
 0x128   :  { %267 = vsyncpa [#allocation6], 1 }

// kernel: combined_forward.81
= control target key start
LH: loop header
LB: loop body
LE: loop exit
PB: predicated region body
PF: predicated region fallthrough
CT: control target
= control target key end

     0   :  { %s953_s18 = smov 0   ;;  %s955_s19 = smov 0   ;;  %s1063_s0 = inlined_call_operand.vmem [shape: bf16[16,512], index: 0, kind: input, shape index: {}]   ;;  %s1064_s1 = inlined_call_operand.vmem [shape: bf16[512,128], index: 1, kind: input, shape index: {}]   ;;  %s1065_s2 = inlined_call_operand.vmem [shape: f32[1,128], index: 2, kind: input, shape index: {}]   ;;  %s1066_s3 = inlined_call_operand.vmem [shape: f32[1,128], index: 3, kind: input, shape index: {}]   ;;  %s1067_s4 = inlined_call_operand.vmem [shape: f32[16,128], index: 4, kind: input, shape index: {}]   ;;  %s1068_s5 = inlined_call_operand.vmem [shape: f32[16,128], index: 5, kind: output, shape index: {}]  }
   0x1   :  { %s957_s20 = smov 0   ;;  %s959_s21 = smov 0  }
   0x2   :  { %s961_s22 = smov 0  }
   0x3 LB: > { %s27_s23 = sadd.s32 1, %s916_s21  ;;  %p50_p1 = scmp.ne.s32.totalorder %s908_s19, %s904_s18  ;;  %s920_s22 = sphi %s961_s22, %s15_s22   ;;  %s916_s21 = sphi %s959_s21, %s1072_s21   ;;  %s912_s20 = sphi %s957_s20, %s1071_s20   ;;  %s908_s19 = sphi %s955_s19, %s1070_s19   ;;  %s904_s18 = sphi %s953_s18, %s1069_s18  }
   0x4   : > { %p28_p0 = scmp.ge.s32.totalorder %s27_s23, 2  ;;  %p51_p2 = scmp.eq.s32.totalorder %s920_s22, 0 }
   0x5   : > { %s43_s25 = sadd.s32 1, %s908_s19  ;;  %p765_p5 = scmp.ge.s32.totalorder %s920_s22, 2 }
   0x6   : > { %s1074_s23 = smov (%p28_p0, %s27_s23), 0  ;;  %p52_p3 = por %p51_p2, %p50_p1 }
   0x7   : > { %s39_s24 = ssub.s32 %s916_s21, %s1074_s23  ;;  %236 = sbr.rel (%p765_p5) target bundleno = 21 (0x15), region = 28 }
   0x8   : > { %p41_p4 = scmp.eq.s32.totalorder %s39_s24, 0 }
   0xa   : > { %s988_s26 = scalar_select %p41_p4, %s908_s19, %s43_s25  }
   0xe   : > { %239 = sbr.rel (!%p52_p3) target bundleno = 21 (0x15), region = 32  ;;  %s241_s27 = sand.u32 (%p52_p3), 1, %s908_s19  }
   0xf   : > { %s799_s28 = sshll.u32 (%p52_p3), %s916_s21, 3  ;;  %s766_s29 = sshll.u32 (%p52_p3), %s241_s27, 4 }
  0x10   : > { %s249_s7 = scalar_lea.vmem (%p52_p3), %s1063_s0, %s799_s28  ;;  %s243_s8 = scalar_lea.vmem (%p52_p3), [#allocation3], %s766_s29 }
  0x11   : > { %v279_v0 = vld [vmem:[%s249_s7] sm:$0xff] (%p52_p3)  ;;  %v281_v1 = vld [vmem:[%s249_s7 + $0x10] sm:$0xff] (%p52_p3) }
  0x12   : > { %280 = vst [vmem:[%s243_s8] sm:$0xff] (%p52_p3), %v279_v0  ;;  %282 = vst [vmem:[%s243_s8 + $0x8] sm:$0xff] (%p52_p3), %v281_v1 }
  0x15 PF: > { %p769_p6 = scmp.ge.s32.totalorder %s920_s22, 1  ;;  %p299_p7 = scmp.lt.s32.totalorder %s920_s22, 3 }
  0x17   : > { %p300_p8 = pnand %p769_p6, %p299_p7 }
  0x18   : > { %s306_s9 = sand.u32 (!%p300_p8), 1, %s904_s18   ;;  %s771_s10 = sshll.u32 (!%p300_p8), %s912_s20, 5 }
  0x19   : > { %303 = sbr.rel (%p300_p8) target bundleno = 308 (0x134), region = 74  ;;  %s1000_s11 = sshll.u32 (!%p300_p8), %s306_s9, 4 }
  0x1a   : > { %p361_p9 = scmp.lt.s32.totalorder (!%p300_p8), %s771_s10, 63  ;;  %s308_s16 = scalar_lea.vmem (!%p300_p8), [#allocation3], %s1000_s11 }
  0x1b   : > { %p773_p10 = scmp.ne.s32.totalorder (!%p300_p8), %s912_s20, 0 }
  0x20   : > { %s1076_s10 = smov (!%p361_p9, %s771_s10), 63  ;;  %397 = sbr.rel (%p773_p10) target bundleno = 39 (0x27), region = 82 }
  0x21   : > { %s772_s12 = sshll.u32 %s1076_s10, 2  ;;  %v922_v2 = vmov (!%p773_p10), 0.0  }
  0x22   : > { %s1005_s15 = scalar_lea.vmem %s1064_s1, %s772_s12  ;;  %398 = vst [vmem:[#allocation2] sm:$0xff] (!%p773_p10), %v922_v2  ;;  %399 = vst [vmem:[#allocation2 + $0x8] sm:$0xff] (!%p773_p10), %v922_v2 }
  0x27 PF: > { %v863_v3 = vld [vmem:[%s1005_s15 + $0x40] sm:$0xff]   ;;  %v865_v5 = vld [vmem:[%s1005_s15 + $0x48] sm:$0xff]   ;;  %v867_v7 = vld [vmem:[%s1005_s15 + $0x50] sm:$0xff]   ;;  %p792_p11 = scmp.ne.s32.totalorder %s912_s20, 1 }
  0x28   : > { %v864_v4 = vld [vmem:[%s1005_s15] sm:$0xff]   ;;  %800 = vmatprep.subr.bf16.mxu0 %v863_v3  ;;  %v866_v6 = vld [vmem:[%s1005_s15 + $0x8] sm:$0xff]   ;;  %v868_v8 = vld [vmem:[%s1005_s15 + $0x10] sm:$0xff]  }
  0x29   : > { %801 = vmatpush3.bf16.msra.mxu0 %v864_v4  ;;  %v869_v9 = vld [vmem:[%s1005_s15 + $0x58] sm:$0xff]   ;;  %v871_v11 = vld [vmem:[%s1005_s15 + $0x60] sm:$0xff]   ;;  %v873_v13 = vld [vmem:[%s1005_s15 + $0x68] sm:$0xff]  }
  0x2a   : > { %802 = vmatprep.subr.bf16.mxu0 %v865_v5  ;;  %v870_v10 = vld [vmem:[%s1005_s15 + $0x18] sm:$0xff]   ;;  %v872_v12 = vld [vmem:[%s1005_s15 + $0x20] sm:$0xff]   ;;  %v874_v15 = vld [vmem:[%s1005_s15 + $0x28] sm:$0xff]  }
  0x2b   : > { %v881_v14 = vld [vmem:[%s308_s16 + $0x4] ss:$8 sps:$4 sm:$0xff]   ;;  %v879_v20 = vld [vmem:[%s308_s16] ss:$8 sps:$4 sm:$0xff]  }
  0x2c   : > { %574 = vmatprep.mubr.bf16.mxu0 %v881_v14  ;;  %v875_v16 = vld [vmem:[%s1005_s15 + $0x70] sm:$0xff]   ;;  %v877_v18 = vld [vmem:[%s1005_s15 + $0x78] sm:$0xff]   ;;  %v400_v22 = vld [vmem:[#allocation2] sm:$0xff] }
  0x2d   : > { %803 = vmatpush3.bf16.msra.mxu0 %v866_v6  ;;  %v876_v17 = vld [vmem:[%s1005_s15 + $0x30] sm:$0xff]   ;;  %v878_v19 = vld [vmem:[%s1005_s15 + $0x38] sm:$0xff]   ;;  %v401_v26 = vld [vmem:[#allocation2 + $0x8] sm:$0xff] }
  0x2e   : > { %804 = vmatprep.subr.bf16.mxu0 %v867_v7  ;;  %v793_v32 = vld [vmem:[%s1065_s2] ss:$0 sm:$0xff] (!%p792_p11)  ;;  %v612_v39 = vld [vmem:[%s1067_s4 + $0x8] sm:$0xff] (!%p792_p11) }
  0x2f   : > { %v794_v33 = vld [vmem:[%s1066_s3] ss:$0 sm:$0xff] (!%p792_p11) }
  0x30   : > { %v611_v36 = vld [vmem:[%s1067_s4] sm:$0xff] (!%p792_p11) }
  0x31   : > { %805 = vmatpush3.bf16.msra.mxu0 %v868_v8 }
  0x32   : > { %806 = vmatprep.subr.bf16.mxu0 %v869_v9 }
  0x35   : > { %807 = vmatpush3.bf16.msra.mxu0 %v870_v10 }
  0x36   : > { %808 = vmatprep.subr.bf16.mxu0 %v871_v11 }
  0x39   : > { %809 = vmatpush3.bf16.msra.mxu0 %v872_v12 }
  0x3a   : > { %810 = vmatprep.subr.bf16.mxu0 %v873_v13 }
  0x3d   : > { %811 = vmatpush3.bf16.msra.mxu0 %v874_v15 }
  0x3e   : > { %812 = vmatprep.subr.bf16.mxu0 %v875_v16 }
  0x41   : > { %813 = vmatpush3.bf16.msra.mxu0 %v876_v17 }
  0x42   : > { %814 = vmatprep.subr.bf16.mxu0 %v877_v18 }
  0x45   : > { %815 = vmatpush3.bf16.msra.mxu0 %v878_v19 }
  0x48   : > { %575 = vmatmul.mubr.bf16.vlgmr.msra.gmra.mrb[0].mxu0 %v879_v20 }
 0x11b   : > { %v816_v21 = vpop.f32.mrb[0].mxu0 }
 0x11c   : > { %v817_v23 = vpop.f32.mrb[1].mxu0 }
 0x11d   : > { %v818_v24 = vadd.f32 %v817_v23, %v816_v21  ;;  %v819_v25 = vpop.f32.mrb[2].mxu0  ;;  %590 = sbr.rel (%p792_p11) target bundleno = 308 (0x134), region = 86 }
 0x11e   : > { %v820_v27 = vpop.f32.mrb[3].mxu0 }
 0x11f   : > { %v583_v28 = vadd.f32 %v818_v24, %v400_v22  ;;  %v821_v29 = vadd.f32 %v820_v27, %v819_v25 }
 0x121   : > { %585 = vst [vmem:[#allocation2] sm:$0xff] %v583_v28  ;;  %v584_v30 = vadd.f32 %v821_v29, %v401_v26 }
 0x123   : > { %586 = vst [vmem:[#allocation2 + $0x8] sm:$0xff] %v584_v30 }
 0x128   : > { %v591_v31 = vld [vmem:[#allocation2] sm:$0xff] }
 0x129   : > { %v600_v34 = vmul.f32 %v793_v32, %v591_v31 }
 0x12a   : > { %v592_v35 = vld [vmem:[#allocation2 + $0x8] sm:$0xff] }
 0x12b   : > { %v601_v37 = vmul.f32 %v793_v32, %v592_v35  ;;  %v609_v38 = vadd.f32 %v794_v33, %v600_v34 }
 0x12d   : > { %v610_v40 = vadd.f32 %v794_v33, %v601_v37  ;;  %v613_v41 = vadd.f32 %v611_v36, %v609_v38 }
 0x12f   : > { %v614_v42 = vadd.f32 %v612_v39, %v610_v40  ;;  %v615_v43 = vmax.f32 %v613_v41, 0.0 }
 0x131   : > { %v616_v44 = vmax.f32 %v614_v42, 0.0  ;;  %617 = vst [vmem:[%s1068_s5] sm:$0xff] %v615_v43 }
 0x133   : > { %618 = vst [vmem:[%s1068_s5 + $0x8] sm:$0xff] %v616_v44 }
 0x134 PF: > { %s15_s22 = sadd.s32 1, %s920_s22   ;;  %s1069_s18 = smov %s908_s19 }
 0x135   : > { %p12_p12 = scmp.ge.s32.totalorder %s15_s22, 4   ;;  %s1070_s19 = smov %s988_s26 }
 0x136   : > { %s1071_s20 = smov %s916_s21  ;;  %s1072_s21 = smov %s1074_s23 }
 0x137   :  { %14 = sbr.rel (!%p12_p12) target bundleno = 3 (0x3), region = 133 }

// kernel: combined_forward.82
= control target key start
LH: loop header
LB: loop body
LE: loop exit
PB: predicated region body
PF: predicated region fallthrough
CT: control target
= control target key end

     0   :  { %s865_s15 = smov 0   ;;  %s867_s16 = smov 0   ;;  %s969_s0 = inlined_call_operand.vmem [shape: bf16[16,512], index: 0, kind: input, shape index: {}]   ;;  %s970_s1 = inlined_call_operand.vmem [shape: bf16[512,128], index: 1, kind: input, shape index: {}]   ;;  %s971_s2 = inlined_call_operand.vmem [shape: f32[1,128], index: 2, kind: input, shape index: {}]   ;;  %s972_s3 = inlined_call_operand.vmem [shape: f32[1,128], index: 3, kind: input, shape index: {}]   ;;  %s973_s4 = inlined_call_operand.vmem [shape: f32[16,128], index: 4, kind: output, shape index: {}]  }
   0x1   :  { %s869_s17 = smov 0   ;;  %s871_s18 = smov 0  }
   0x2   :  { %s873_s19 = smov 0  }
   0x3 LB: > { %s26_s20 = sadd.s32 1, %s833_s18  ;;  %p49_p1 = scmp.ne.s32.totalorder %s825_s16, %s821_s15  ;;  %s837_s19 = sphi %s873_s19, %s14_s19   ;;  %s833_s18 = sphi %s871_s18, %s977_s18   ;;  %s829_s17 = sphi %s869_s17, %s976_s17   ;;  %s825_s16 = sphi %s867_s16, %s975_s16   ;;  %s821_s15 = sphi %s865_s15, %s974_s15  }
   0x4   : > { %p27_p0 = scmp.ge.s32.totalorder %s26_s20, 2  ;;  %p50_p2 = scmp.eq.s32.totalorder %s837_s19, 0 }
   0x5   : > { %s42_s22 = sadd.s32 1, %s825_s16  ;;  %p682_p5 = scmp.ge.s32.totalorder %s837_s19, 2 }
   0x6   : > { %s979_s20 = smov (%p27_p0, %s26_s20), 0  ;;  %p51_p3 = por %p50_p2, %p49_p1 }
   0x7   : > { %s38_s21 = ssub.s32 %s833_s18, %s979_s20  ;;  %195 = sbr.rel (%p682_p5) target bundleno = 21 (0x15), region = 24 }
   0x8   : > { %p40_p4 = scmp.eq.s32.totalorder %s38_s21, 0 }
   0xa   : > { %s900_s23 = scalar_select %p40_p4, %s825_s16, %s42_s22  }
   0xe   : > { %198 = sbr.rel (!%p51_p3) target bundleno = 21 (0x15), region = 28  ;;  %s200_s24 = sand.u32 (%p51_p3), 1, %s825_s16  }
   0xf   : > { %s716_s25 = sshll.u32 (%p51_p3), %s833_s18, 3  ;;  %s683_s26 = sshll.u32 (%p51_p3), %s200_s24, 4 }
  0x10   : > { %s208_s29 = scalar_lea.vmem (%p51_p3), %s969_s0, %s716_s25  ;;  %s202_s30 = scalar_lea.vmem (%p51_p3), [#allocation3], %s683_s26 }
  0x11   : > { %v238_v0 = vld [vmem:[%s208_s29] sm:$0xff] (%p51_p3)  ;;  %v240_v1 = vld [vmem:[%s208_s29 + $0x10] sm:$0xff] (%p51_p3) }
  0x12   : > { %239 = vst [vmem:[%s202_s30] sm:$0xff] (%p51_p3), %v238_v0  ;;  %241 = vst [vmem:[%s202_s30 + $0x8] sm:$0xff] (%p51_p3), %v240_v1 }
  0x15 PF: > { %p686_p6 = scmp.ge.s32.totalorder %s837_s19, 1  ;;  %p258_p7 = scmp.lt.s32.totalorder %s837_s19, 3 }
  0x17   : > { %p259_p8 = pnand %p686_p6, %p258_p7 }
  0x18   : > { %s265_s5 = sand.u32 (!%p259_p8), 1, %s821_s15   ;;  %s688_s6 = sshll.u32 (!%p259_p8), %s829_s17, 5 }
  0x19   : > { %262 = sbr.rel (%p259_p8) target bundleno = 306 (0x132), region = 70  ;;  %s912_s7 = sshll.u32 (!%p259_p8), %s265_s5, 4 }
  0x1a   : > { %p310_p9 = scmp.lt.s32.totalorder (!%p259_p8), %s688_s6, 63  ;;  %s267_s12 = scalar_lea.vmem (!%p259_p8), [#allocation3], %s912_s7 }
  0x1b   : > { %p690_p10 = scmp.ne.s32.totalorder (!%p259_p8), %s829_s17, 0 }
  0x20   : > { %s981_s6 = smov (!%p310_p9, %s688_s6), 63  ;;  %337 = sbr.rel (%p690_p10) target bundleno = 39 (0x27), region = 78 }
  0x21   : > { %s689_s8 = sshll.u32 %s981_s6, 2  ;;  %v839_v2 = vmov (!%p690_p10), 0.0  }
  0x22   : > { %s917_s11 = scalar_lea.vmem %s970_s1, %s689_s8  ;;  %338 = vst [vmem:[#allocation2] sm:$0xff] (!%p690_p10), %v839_v2  ;;  %339 = vst [vmem:[#allocation2 + $0x8] sm:$0xff] (!%p690_p10), %v839_v2 }
  0x27 PF: > { %v780_v3 = vld [vmem:[%s917_s11 + $0x40] sm:$0xff]   ;;  %v782_v5 = vld [vmem:[%s917_s11 + $0x48] sm:$0xff]   ;;  %v784_v7 = vld [vmem:[%s917_s11 + $0x50] sm:$0xff]   ;;  %p709_p11 = scmp.ne.s32.totalorder %s829_s17, 1 }
  0x28   : > { %v781_v4 = vld [vmem:[%s917_s11] sm:$0xff]   ;;  %717 = vmatprep.subr.bf16.mxu0 %v780_v3  ;;  %v783_v6 = vld [vmem:[%s917_s11 + $0x8] sm:$0xff]   ;;  %v785_v8 = vld [vmem:[%s917_s11 + $0x10] sm:$0xff]  }
  0x29   : > { %718 = vmatpush3.bf16.msra.mxu0 %v781_v4  ;;  %v786_v9 = vld [vmem:[%s917_s11 + $0x58] sm:$0xff]   ;;  %v788_v11 = vld [vmem:[%s917_s11 + $0x60] sm:$0xff]   ;;  %v790_v13 = vld [vmem:[%s917_s11 + $0x68] sm:$0xff]  }
  0x2a   : > { %719 = vmatprep.subr.bf16.mxu0 %v782_v5  ;;  %v787_v10 = vld [vmem:[%s917_s11 + $0x18] sm:$0xff]   ;;  %v789_v12 = vld [vmem:[%s917_s11 + $0x20] sm:$0xff]   ;;  %v791_v15 = vld [vmem:[%s917_s11 + $0x28] sm:$0xff]  }
  0x2b   : > { %v798_v14 = vld [vmem:[%s267_s12 + $0x4] ss:$8 sps:$4 sm:$0xff]   ;;  %v796_v20 = vld [vmem:[%s267_s12] ss:$8 sps:$4 sm:$0xff]  }
  0x2c   : > { %514 = vmatprep.mubr.bf16.mxu0 %v798_v14  ;;  %v792_v16 = vld [vmem:[%s917_s11 + $0x70] sm:$0xff]   ;;  %v794_v18 = vld [vmem:[%s917_s11 + $0x78] sm:$0xff]   ;;  %v340_v22 = vld [vmem:[#allocation2] sm:$0xff] }
  0x2d   : > { %720 = vmatpush3.bf16.msra.mxu0 %v783_v6  ;;  %v793_v17 = vld [vmem:[%s917_s11 + $0x30] sm:$0xff]   ;;  %v795_v19 = vld [vmem:[%s917_s11 + $0x38] sm:$0xff]   ;;  %v341_v26 = vld [vmem:[#allocation2 + $0x8] sm:$0xff] }
  0x2e   : > { %721 = vmatprep.subr.bf16.mxu0 %v784_v7  ;;  %v710_v32 = vld [vmem:[%s971_s2] ss:$0 sm:$0xff] (!%p709_p11) }
  0x2f   : > { %v711_v33 = vld [vmem:[%s972_s3] ss:$0 sm:$0xff] (!%p709_p11) }
  0x31   : > { %722 = vmatpush3.bf16.msra.mxu0 %v785_v8 }
  0x32   : > { %723 = vmatprep.subr.bf16.mxu0 %v786_v9 }
  0x35   : > { %724 = vmatpush3.bf16.msra.mxu0 %v787_v10 }
  0x36   : > { %725 = vmatprep.subr.bf16.mxu0 %v788_v11 }
  0x39   : > { %726 = vmatpush3.bf16.msra.mxu0 %v789_v12 }
  0x3a   : > { %727 = vmatprep.subr.bf16.mxu0 %v790_v13 }
  0x3d   : > { %728 = vmatpush3.bf16.msra.mxu0 %v791_v15 }
  0x3e   : > { %729 = vmatprep.subr.bf16.mxu0 %v792_v16 }
  0x41   : > { %730 = vmatpush3.bf16.msra.mxu0 %v793_v17 }
  0x42   : > { %731 = vmatprep.subr.bf16.mxu0 %v794_v18 }
  0x45   : > { %732 = vmatpush3.bf16.msra.mxu0 %v795_v19 }
  0x48   : > { %515 = vmatmul.mubr.bf16.vlgmr.msra.gmra.mrb[0].mxu0 %v796_v20 }
 0x11b   : > { %v733_v21 = vpop.f32.mrb[0].mxu0 }
 0x11c   : > { %v734_v23 = vpop.f32.mrb[1].mxu0 }
 0x11d   : > { %v735_v24 = vadd.f32 %v734_v23, %v733_v21  ;;  %v736_v25 = vpop.f32.mrb[2].mxu0  ;;  %530 = sbr.rel (%p709_p11) target bundleno = 306 (0x132), region = 82 }
 0x11e   : > { %v737_v27 = vpop.f32.mrb[3].mxu0 }
 0x11f   : > { %v523_v28 = vadd.f32 %v735_v24, %v340_v22  ;;  %v738_v29 = vadd.f32 %v737_v27, %v736_v25 }
 0x121   : > { %525 = vst [vmem:[#allocation2] sm:$0xff] %v523_v28  ;;  %v524_v30 = vadd.f32 %v738_v29, %v341_v26 }
 0x123   : > { %526 = vst [vmem:[#allocation2 + $0x8] sm:$0xff] %v524_v30 }
 0x128   : > { %v531_v31 = vld [vmem:[#allocation2] sm:$0xff] }
 0x129   : > { %v540_v34 = vmul.f32 %v710_v32, %v531_v31 }
 0x12a   : > { %v532_v35 = vld [vmem:[#allocation2 + $0x8] sm:$0xff] }
 0x12b   : > { %v541_v36 = vmul.f32 %v710_v32, %v532_v35  ;;  %v549_v37 = vadd.f32 %v711_v33, %v540_v34 }
 0x12d   : > { %v550_v38 = vadd.f32 %v711_v33, %v541_v36  ;;  %v551_v39 = vmax.f32 %v549_v37, 0.0 }
 0x12f   : > { %v552_v40 = vmax.f32 %v550_v38, 0.0  ;;  %553 = vst [vmem:[%s973_s4] sm:$0xff] %v551_v39 }
 0x131   : > { %554 = vst [vmem:[%s973_s4 + $0x8] sm:$0xff] %v552_v40 }
 0x132 PF: > { %s14_s19 = sadd.s32 1, %s837_s19   ;;  %s974_s15 = smov %s825_s16 }
 0x133   : > { %p11_p12 = scmp.ge.s32.totalorder %s14_s19, 4   ;;  %s975_s16 = smov %s900_s23 }
 0x134   : > { %s976_s17 = smov %s833_s18  ;;  %s977_s18 = smov %s979_s20 }
 0x135   :  { %13 = sbr.rel (!%p11_p12) target bundleno = 3 (0x3), region = 126 }

// kernel: combined_forward.56
= control target key start
LH: loop header
LB: loop body
LE: loop exit
PB: predicated region body
PF: predicated region fallthrough
CT: control target
= control target key end

     0   :  { %9 = vsyncpa [#allocation4], 0  ;;  %s213_s15 = smov [#allocation3]   ;;  %s277_s0 = inlined_call_operand.vmem [shape: bf16[16,64], index: 0, kind: input, shape index: {}]   ;;  %s278_s1 = inlined_call_operand.vmem [shape: bf16[64,128], index: 1, kind: input, shape index: {}]   ;;  %s279_s2 = inlined_call_operand.vmem [shape: f32[1,128], index: 2, kind: input, shape index: {}]   ;;  %s280_s3 = inlined_call_operand.hbm [shape: f32[1,128], index: 3, kind: input, shape index: {}]   ;;  %s281_s4 = inlined_call_operand.vmem [shape: f32[16,128], index: 4, kind: output, shape index: {}]  }
   0x1   :  { %s22_s16 = sshll.u32 %s213_s15, 4  ;;  %s189_s19 = scalar_lea.hbm %s280_s3, 16  ;;  %s23_s16 = int_to_ptr.vmem [resolvable:$true] %s22_s16 }
   0x2   :  { %p190_p0 = scmp.ne.s32.totalorder %s280_s3, %s189_s19  ;;  %p193_p1 = scmp.lt.u32.totalorder %s189_s19, %s280_s3 }
   0x4   :  { %p195_p2 = pnand %p193_p1, %p190_p0 }
   0x6   :  { %198 = shalt.err (!%p195_p2)
}
   0x7   :  { %s199_s24 = scalar_lea.vmem %s23_s16, 16  ;;  %s203_s25 = scalar_lea.vmem %s23_s16, 32 }
   0x8   :  { %p200_p3 = scmp.ne.s32.totalorder %s23_s16, %s199_s24  ;;  %p204_p4 = scmp.lt.s32.totalorder %s23_s16, %s23_s16 }
   0x9   :  { %p205_p5 = scmp.lt.s32.totalorder %s203_s25, %s199_s24 }
   0xb   :  { %p206_p6 = por %p205_p5, %p204_p4 }
   0xd   :  { %p207_p7 = pnand %p206_p6, %p200_p3 }
   0xf   :  { %210 = shalt.err (!%p207_p7)
}
  0x10   :  { %25 = dma.hbm_to_vmem [thread:$0]  %s280_s3, 16, %s23_s16, [#allocation4]  }
  0x11   :  { %211 = dma.done.wait [#allocation4], 16  }
  0x12   :  { %212 = vsyncadd [#allocation4], 4294967280  ;;  %v214_v0 = vmov 0.0   ;;  %vm215_vm0 = vmmov 0   ;;  %v184_v1 = vld [vmem:[%s278_s1] sm:$0xff]   ;;  %v185_v2 = vld [vmem:[%s278_s1 + $0x8] sm:$0xff]  }
  0x13   :  { %169 = vmatprep.subr.bf16.mxu0 %v214_v0  ;;  %177 = vmatprep.mubr.msk.bf16.mxu0 %vm215_vm0, %v214_v0  ;;  %v186_v3 = vld [vmem:[%s278_s1 + $0x10] sm:$0xff]   ;;  %v187_v4 = vld [vmem:[%s278_s1 + $0x18] sm:$0xff]   ;;  %v188_v5 = vld [vmem:[%s277_s0] sm:$0xff]   ;;  %vm77_vm1 = vcmask 523264  }
  0x14   :  { %170 = vmatpush3.bf16.msra.mxu0 %v184_v1  ;;  %v162_v6 = vld [vmem:[%s279_s2] ss:$0 sm:$0xff] }
  0x15   :  { %171 = vmatprep.subr.bf16.mxu0 %v214_v0  ;;  %v163_v8 = vld [vmem:[#allocation3] ss:$0 sm:$0xff] }
  0x18   :  { %172 = vmatpush3.bf16.msra.mxu0 %v185_v2 }
  0x19   :  { %173 = vmatprep.subr.bf16.mxu0 %v214_v0 }
  0x1c   :  { %174 = vmatpush3.bf16.msra.mxu0 %v186_v3 }
  0x1d   :  { %175 = vmatprep.subr.bf16.mxu0 %v214_v0 }
  0x20   :  { %176 = vmatpush3.bf16.msra.mxu0 %v187_v4 }
  0x23   :  { %178 = vmatmul.mubr.msk.bf16.vlgmr.msra.gmra.mrb[0].mxu0 %vm77_vm1, %v188_v5 }
  0xf6   :  { %v115_v7 = vpop.f32.mrb[0].mxu0 }
  0xf7   :  { %v138_v9 = vmul.f32 %v162_v6, %v115_v7  ;;  %v179_v10 = vpop.f32.mrb[1].mxu0 }
  0xf8   :  { %v118_v11 = vpop.f32.mrb[2].mxu0 }
  0xf9   :  { %v147_v12 = vadd.f32 %v163_v8, %v138_v9  ;;  %v139_v13 = vmul.f32 %v162_v6, %v118_v11  ;;  %v180_v14 = vpop.f32.mrb[3].mxu0 }
  0xfb   :  { %149 = vst [vmem:[%s281_s4] sm:$0xff] %v147_v12  ;;  %v148_v15 = vadd.f32 %v163_v8, %v139_v13 }
  0xfd   :  { %150 = vst [vmem:[%s281_s4 + $0x8] sm:$0xff] %v148_v15 }
  0xfe   :  { %155 = vsyncpa [#allocation4], 1 }

// kernel: combined_forward.59
= control target key start
LH: loop header
LB: loop body
LE: loop exit
PB: predicated region body
PF: predicated region fallthrough
CT: control target
= control target key end

     0   :  { %9 = vsyncpa [#allocation5], 0  ;;  %s918_s15 = smov 0   ;;  %s920_s16 = smov 0   ;;  %s1064_s0 = inlined_call_operand.vmem [shape: bf16[16,512], index: 0, kind: input, shape index: {}]   ;;  %s1065_s1 = inlined_call_operand.vmem [shape: bf16[512,128], index: 1, kind: input, shape index: {}]   ;;  %s1066_s2 = inlined_call_operand.vmem [shape: f32[1,128], index: 2, kind: input, shape index: {}]   ;;  %s1067_s3 = inlined_call_operand.hbm [shape: f32[1,128], index: 3, kind: input, shape index: {}]   ;;  %s1068_s4 = inlined_call_operand.vmem [shape: f32[16,128], index: 4, kind: output, shape index: {}]  }
   0x1   :  { %s922_s17 = smov 0   ;;  %s924_s18 = smov 0  }
   0x2   :  { %s926_s19 = smov 0  }
   0x3 LB: > { %s686_s20 = sadd.s32 4294967295, %s889_s19   ;;  %s27_s21 = sadd.s32 1, %s885_s18  ;;  %s889_s19 = sphi %s926_s19, %s15_s19   ;;  %s885_s18 = sphi %s924_s18, %s1082_s18   ;;  %s881_s17 = sphi %s922_s17, %s1081_s17   ;;  %s877_s16 = sphi %s920_s16, %s1080_s16   ;;  %s873_s15 = sphi %s918_s15, %s1079_s15  }
   0x4   : > { %p28_p0 = scmp.ge.s32.totalorder %s27_s21, 2  ;;  %s43_s22 = sadd.s32 1, %s877_s16 }
   0x5   : > { %p50_p1 = scmp.ne.s32.totalorder %s877_s16, %s873_s15  ;;  %p51_p2 = scmp.eq.s32.totalorder %s889_s19, 0 }
   0x6   : > { %s1084_s21 = smov (%p28_p0, %s27_s21), 0  ;;  %p687_p4 = scmp.ge.s32.totalorder %s889_s19, 1 }
   0x7   : > { %p951_p3 = por %p51_p2, %p50_p1  ;;  %s39_s24 = ssub.s32 %s885_s18, %s1084_s21 }
   0x8   : > { %p175_p5 = scmp.lt.s32.totalorder %s889_s19, 3  ;;  %p41_p6 = scmp.eq.s32.totalorder %s39_s24, 0 }
   0x9   : > { %s1072_s23 = scalar_select %p951_p3, 1, 0 }
   0xa   : > { %p959_p7 = pnand %p687_p4, %p175_p5  ;;  %p963_p8 = scmp.eq.s32.totalorder %s686_s20, 0 }
   0xb   : > { %s968_s27 = scalar_select %p41_p6, %s877_s16, %s43_s22  }
   0xc   : > { %s1073_s25 = scalar_select %p959_p7, 1, 0 }
   0xd   : > { %s1074_s26 = scalar_select %p963_p8, 1, 0 }
   0xe   : > { %p752_p9 = pneg %p959_p7  ;;  %s891_s28 = smov [#allocation4]  }
   0xf   : > { %s196_s29 = sshll.u32 %s891_s28, 4  ;;  %s819_s7 = scalar_lea.hbm %s1067_s3, 16  ;;  %s197_s29 = int_to_ptr.vmem [resolvable:$true] %s196_s29 }
  0x10   : > { %p974_p10 = pnand %p963_p8, %p752_p9  ;;  %p820_p11 = scmp.ne.s32.totalorder %s1067_s3, %s819_s7 }
  0x11   : > { %p826_p1 = scmp.lt.u32.totalorder %s819_s7, %s1067_s3 }
  0x12   : > { %p821_p12 = pneg %p974_p10 }
  0x14   : > { %p822_p13 = pnand %p821_p12, %p820_p11 }
  0x16   : > { %p823_p0 = pneg %p822_p13 }
  0x18   : > { %p828_p2 = pnand %p826_p1, %p823_p0 }
  0x1a   : > { %831 = shalt.err (!%p828_p2)
}
  0x1b   : > { %s832_s12 = scalar_lea.vmem %s197_s29, 16  ;;  %s839_s13 = scalar_lea.vmem %s197_s29, 32 }
  0x1c   : > { %p833_p4 = scmp.ne.s32.totalorder %s197_s29, %s832_s12  ;;  %p840_p9 = scmp.lt.s32.totalorder %s197_s29, %s197_s29 }
  0x1d   : > { %p841_p8 = scmp.lt.s32.totalorder %s839_s13, %s832_s12 }
  0x1e   : > { %p835_p5 = pnand %p833_p4, %p821_p12 }
  0x1f   : > { %p842_p7 = por %p841_p8, %p840_p9 }
  0x20   : > { %p836_p6 = pneg %p835_p5 }
  0x22   : > { %p843_p3 = pnand %p842_p7, %p836_p6 }
  0x24   : > { %846 = shalt.err (!%p843_p3)
}
  0x25   : > { %755 = dma.hbm_to_vmem [thread:$0]  (!%p974_p10), %s1067_s3, 16, %s197_s29, [#allocation5]  }
  0x26   : > { %p690_p11 = scmp.ge.s32.totalorder %s889_s19, 2 }
  0x27   : > { %p1076_p13 = scmp.ne.s32.totalorder (!%p690_p11), %s1072_s23, 0 }
  0x28   : > { %203 = sbr.rel (%p690_p11) target bundleno = 54 (0x36), region = 24 }
  0x2f   : > { %206 = sbr.rel (!%p1076_p13) target bundleno = 54 (0x36), region = 28  ;;  %s208_s22 = sand.u32 (%p1076_p13), 1, %s877_s16  }
  0x30   : > { %s725_s24 = sshll.u32 (%p1076_p13), %s885_s18, 3  ;;  %s691_s28 = sshll.u32 (%p1076_p13), %s208_s22, 4 }
  0x31   : > { %s216_s7 = scalar_lea.vmem (%p1076_p13), %s1064_s0, %s725_s24  ;;  %s210_s30 = scalar_lea.vmem (%p1076_p13), [#allocation3], %s691_s28 }
  0x32   : > { %v246_v0 = vld [vmem:[%s216_s7] sm:$0xff] (%p1076_p13)  ;;  %v248_v1 = vld [vmem:[%s216_s7 + $0x10] sm:$0xff] (%p1076_p13) }
  0x33   : > { %247 = vst [vmem:[%s210_s30] sm:$0xff] (%p1076_p13), %v246_v0  ;;  %249 = vst [vmem:[%s210_s30 + $0x8] sm:$0xff] (%p1076_p13), %v248_v1 }
  0x36 PF: > { %p1077_p3 = scmp.ne.s32.totalorder %s1073_s25, 0 }
  0x37   : > { %s273_s23 = sand.u32 (!%p1077_p3), 1, %s873_s15   ;;  %p1078_p7 = scmp.ne.s32.totalorder (!%p1077_p3), %s1074_s26, 0 }
  0x38   : > { %270 = sbr.rel (%p1077_p3) target bundleno = 340 (0x154), region = 70  ;;  %s1005_s29 = sshll.u32 (!%p1077_p3), %s273_s23, 4 }
  0x39   : > { %s275_s8 = scalar_lea.vmem (!%p1077_p3), [#allocation3], %s1005_s29 }
  0x3f   : > { %868 = dma.done.wait (%p1078_p7), [#allocation5], 16  }
  0x40   : > { %870 = vsyncadd (%p1078_p7), [#allocation5], 4294967280  ;;  %s697_s9 = sshll.u32 %s881_s17, 5  ;;  %p699_p10 = scmp.ne.s32.totalorder %s881_s17, 0 }
  0x41   : > { %p319_p8 = scmp.lt.s32.totalorder %s697_s9, 63  ;;  %v892_v2 = vmov (!%p699_p10), 0.0  }
  0x42   : > { %343 = sbr.rel (%p699_p10) target bundleno = 73 (0x49), region = 82  ;;  %344 = vst [vmem:[#allocation2] sm:$0xff] (!%p699_p10), %v892_v2  ;;  %345 = vst [vmem:[#allocation2 + $0x8] sm:$0xff] (!%p699_p10), %v892_v2 }
  0x43   : > { %s1086_s9 = smov (!%p319_p8, %s697_s9), 63 }
  0x44   : > { %s698_s10 = sshll.u32 %s1086_s9, 2 }
  0x45   : > { %s1016_s12 = scalar_lea.vmem %s1065_s1, %s698_s10 }
  0x49 PF: > { %v800_v3 = vld [vmem:[%s1016_s12 + $0x40] sm:$0xff]   ;;  %v802_v5 = vld [vmem:[%s1016_s12 + $0x48] sm:$0xff]   ;;  %v804_v7 = vld [vmem:[%s1016_s12 + $0x50] sm:$0xff]   ;;  %p718_p12 = scmp.ne.s32.totalorder %s881_s17, 1 }
  0x4a   : > { %v801_v4 = vld [vmem:[%s1016_s12] sm:$0xff]   ;;  %726 = vmatprep.subr.bf16.mxu0 %v800_v3  ;;  %v803_v6 = vld [vmem:[%s1016_s12 + $0x8] sm:$0xff]   ;;  %v805_v8 = vld [vmem:[%s1016_s12 + $0x10] sm:$0xff]  }
  0x4b   : > { %727 = vmatpush3.bf16.msra.mxu0 %v801_v4  ;;  %v806_v9 = vld [vmem:[%s1016_s12 + $0x58] sm:$0xff]   ;;  %v808_v11 = vld [vmem:[%s1016_s12 + $0x60] sm:$0xff]   ;;  %v810_v13 = vld [vmem:[%s1016_s12 + $0x68] sm:$0xff]  }
  0x4c   : > { %728 = vmatprep.subr.bf16.mxu0 %v802_v5  ;;  %v807_v10 = vld [vmem:[%s1016_s12 + $0x18] sm:$0xff]   ;;  %v809_v12 = vld [vmem:[%s1016_s12 + $0x20] sm:$0xff]   ;;  %v811_v15 = vld [vmem:[%s1016_s12 + $0x28] sm:$0xff]  }
  0x4d   : > { %v818_v14 = vld [vmem:[%s275_s8 + $0x4] ss:$8 sps:$4 sm:$0xff]   ;;  %v816_v20 = vld [vmem:[%s275_s8] ss:$8 sps:$4 sm:$0xff]  }
  0x4e   : > { %520 = vmatprep.mubr.bf16.mxu0 %v818_v14  ;;  %v812_v16 = vld [vmem:[%s1016_s12 + $0x70] sm:$0xff]   ;;  %v814_v18 = vld [vmem:[%s1016_s12 + $0x78] sm:$0xff]   ;;  %v346_v22 = vld [vmem:[#allocation2] sm:$0xff] }
  0x4f   : > { %729 = vmatpush3.bf16.msra.mxu0 %v803_v6  ;;  %v813_v17 = vld [vmem:[%s1016_s12 + $0x30] sm:$0xff]   ;;  %v815_v19 = vld [vmem:[%s1016_s12 + $0x38] sm:$0xff]   ;;  %v347_v26 = vld [vmem:[#allocation2 + $0x8] sm:$0xff] }
  0x50   : > { %730 = vmatprep.subr.bf16.mxu0 %v804_v7  ;;  %v719_v32 = vld [vmem:[%s1066_s2] ss:$0 sm:$0xff] (!%p718_p12)  ;;  %v720_v33 = vld [vmem:[#allocation4] ss:$0 sm:$0xff] (!%p718_p12) }
  0x53   : > { %731 = vmatpush3.bf16.msra.mxu0 %v805_v8 }
  0x54   : > { %732 = vmatprep.subr.bf16.mxu0 %v806_v9 }
  0x57   : > { %733 = vmatpush3.bf16.msra.mxu0 %v807_v10 }
  0x58   : > { %734 = vmatprep.subr.bf16.mxu0 %v808_v11 }
  0x5b   : > { %735 = vmatpush3.bf16.msra.mxu0 %v809_v12 }
  0x5c   : > { %736 = vmatprep.subr.bf16.mxu0 %v810_v13 }
  0x5f   : > { %737 = vmatpush3.bf16.msra.mxu0 %v811_v15 }
  0x60   : > { %738 = vmatprep.subr.bf16.mxu0 %v812_v16 }
  0x63   : > { %739 = vmatpush3.bf16.msra.mxu0 %v813_v17 }
  0x64   : > { %740 = vmatprep.subr.bf16.mxu0 %v814_v18 }
  0x67   : > { %741 = vmatpush3.bf16.msra.mxu0 %v815_v19 }
  0x6a   : > { %521 = vmatmul.mubr.bf16.vlgmr.msra.gmra.mrb[0].mxu0 %v816_v20 }
 0x13d   : > { %v742_v21 = vpop.f32.mrb[0].mxu0 }
 0x13e   : > { %v743_v23 = vpop.f32.mrb[1].mxu0 }
 0x13f   : > { %v744_v24 = vadd.f32 %v743_v23, %v742_v21  ;;  %v745_v25 = vpop.f32.mrb[2].mxu0  ;;  %536 = sbr.rel (%p718_p12) target bundleno = 340 (0x154), region = 86 }
 0x140   : > { %v746_v27 = vpop.f32.mrb[3].mxu0 }
 0x141   : > { %v529_v28 = vadd.f32 %v744_v24, %v346_v22  ;;  %v747_v29 = vadd.f32 %v746_v27, %v745_v25 }
 0x143   : > { %531 = vst [vmem:[#allocation2] sm:$0xff] %v529_v28  ;;  %v530_v30 = vadd.f32 %v747_v29, %v347_v26 }
 0x145   : > { %532 = vst [vmem:[#allocation2 + $0x8] sm:$0xff] %v530_v30 }
 0x14a   : > { %v537_v31 = vld [vmem:[#allocation2] sm:$0xff] }
 0x14b   : > { %v546_v34 = vmul.f32 %v719_v32, %v537_v31 }
 0x14c   : > { %v538_v35 = vld [vmem:[#allocation2 + $0x8] sm:$0xff] }
 0x14d   : > { %v547_v36 = vmul.f32 %v719_v32, %v538_v35  ;;  %v555_v37 = vadd.f32 %v720_v33, %v546_v34 }
 0x14f   : > { %v556_v38 = vadd.f32 %v720_v33, %v547_v36  ;;  %v557_v39 = vmax.f32 %v555_v37, 0.0 }
 0x151   : > { %v558_v40 = vmax.f32 %v556_v38, 0.0  ;;  %559 = vst [vmem:[%s1068_s4] sm:$0xff] %v557_v39 }
 0x153   : > { %560 = vst [vmem:[%s1068_s4 + $0x8] sm:$0xff] %v558_v40 }
 0x154 PF: > { %s15_s19 = sadd.s32 1, %s889_s19   ;;  %s1079_s15 = smov %s877_s16 }
 0x155   : > { %p12_p0 = scmp.ge.s32.totalorder %s15_s19, 4   ;;  %s1080_s16 = smov %s968_s27 }
 0x156   : > { %s1081_s17 = smov %s885_s18  ;;  %s1082_s18 = smov %s1084_s21 }
 0x157   :  { %14 = sbr.rel (!%p12_p0) target bundleno = 3 (0x3), region = 129 }
 0x15e   :  { %589 = vsyncpa [#allocation5], 1 }
 0x15f   :  { %591 = vsyncpa [#allocation5 + $0x1], 1 }

// kernel: combined_forward.85
= control target key start
LH: loop header
LB: loop body
LE: loop exit
PB: predicated region body
PF: predicated region fallthrough
CT: control target
= control target key end

     0   :  { %s1019_s15 = smov 0   ;;  %s1021_s16 = smov 0   ;;  %s1145_s0 = inlined_call_operand.vmem [shape: bf16[16,512], index: 0, kind: input, shape index: {}]   ;;  %s1146_s1 = inlined_call_operand.vmem [shape: bf16[512,256], index: 1, kind: input, shape index: {}]   ;;  %s1147_s2 = inlined_call_operand.vmem [shape: f32[1,256], index: 2, kind: input, shape index: {}]   ;;  %s1148_s3 = inlined_call_operand.vmem [shape: f32[1,256], index: 3, kind: input, shape index: {}]   ;;  %s1149_s4 = inlined_call_operand.vmem [shape: f32[16,256], index: 4, kind: output, shape index: {}]  }
   0x1   :  { %s1023_s17 = smov 0   ;;  %s1025_s18 = smov 0  }
   0x2   :  { %s1027_s19 = smov 0  }
   0x3 LB: > { %s26_s20 = sadd.s32 1, %s987_s18  ;;  %p49_p1 = scmp.ne.s32.totalorder %s979_s16, %s975_s15  ;;  %s991_s19 = sphi %s1027_s19, %s14_s19   ;;  %s987_s18 = sphi %s1025_s18, %s1153_s18   ;;  %s983_s17 = sphi %s1023_s17, %s1152_s17   ;;  %s979_s16 = sphi %s1021_s16, %s1151_s16   ;;  %s975_s15 = sphi %s1019_s15, %s1150_s15  }
   0x4   : > { %p27_p0 = scmp.ge.s32.totalorder %s26_s20, 2  ;;  %p50_p2 = scmp.eq.s32.totalorder %s991_s19, 0 }
   0x5   : > { %s42_s22 = sadd.s32 1, %s979_s16  ;;  %p810_p5 = scmp.ge.s32.totalorder %s991_s19, 2 }
   0x6   : > { %s1155_s20 = smov (%p27_p0, %s26_s20), 0  ;;  %p51_p3 = por %p50_p2, %p49_p1 }
   0x7   : > { %s38_s21 = ssub.s32 %s987_s18, %s1155_s20  ;;  %199 = sbr.rel (%p810_p5) target bundleno = 21 (0x15), region = 24 }
   0x8   : > { %p40_p4 = scmp.eq.s32.totalorder %s38_s21, 0 }
   0xa   : > { %s1054_s23 = scalar_select %p40_p4, %s979_s16, %s42_s22  }
   0xe   : > { %202 = sbr.rel (!%p51_p3) target bundleno = 21 (0x15), region = 28  ;;  %s204_s24 = sand.u32 (%p51_p3), 1, %s979_s16  }
   0xf   : > { %s859_s25 = sshll.u32 (%p51_p3), %s987_s18, 3  ;;  %s811_s26 = sshll.u32 (%p51_p3), %s204_s24, 4 }
  0x10   : > { %s212_s29 = scalar_lea.vmem (%p51_p3), %s1145_s0, %s859_s25  ;;  %s206_s30 = scalar_lea.vmem (%p51_p3), [#allocation3], %s811_s26 }
  0x11   : > { %v242_v0 = vld [vmem:[%s212_s29] sm:$0xff] (%p51_p3)  ;;  %v244_v1 = vld [vmem:[%s212_s29 + $0x10] sm:$0xff] (%p51_p3) }
  0x12   : > { %243 = vst [vmem:[%s206_s30] sm:$0xff] (%p51_p3), %v242_v0  ;;  %245 = vst [vmem:[%s206_s30 + $0x8] sm:$0xff] (%p51_p3), %v244_v1 }
  0x15 PF: > { %p814_p6 = scmp.ge.s32.totalorder %s991_s19, 1  ;;  %p265_p7 = scmp.lt.s32.totalorder %s991_s19, 3 }
  0x17   : > { %p266_p8 = pnand %p814_p6, %p265_p7 }
  0x18   : > { %s272_s5 = sand.u32 (!%p266_p8), 1, %s975_s15   ;;  %s816_s6 = sshll.u32 (!%p266_p8), %s983_s17, 5 }
  0x19   : > { %269 = sbr.rel (%p266_p8) target bundleno = 336 (0x150), region = 70  ;;  %s1066_s7 = sshll.u32 (!%p266_p8), %s272_s5, 4 }
  0x1a   : > { %p324_p9 = scmp.lt.s32.totalorder (!%p266_p8), %s816_s6, 63  ;;  %s274_s12 = scalar_lea.vmem (!%p266_p8), [#allocation3], %s1066_s7 }
  0x1b   : > { %p819_p10 = scmp.ne.s32.totalorder (!%p266_p8), %s983_s17, 0 }
  0x20   : > { %s1157_s6 = smov (!%p324_p9, %s816_s6), 63  ;;  %359 = sbr.rel (%p819_p10) target bundleno = 39 (0x27), region = 78 }
  0x21   : > { %s860_s8 = sshll.u32 %s1157_s6, 3  ;;  %v993_v2 = vmov (!%p819_p10), 0.0  }
  0x22   : > { %s1071_s11 = scalar_lea.vmem %s1146_s1, %s860_s8  ;;  %360 = vst [vmem:[#allocation2] sm:$0xff] (!%p819_p10), %v993_v2  ;;  %361 = vst [vmem:[#allocation2 + $0x8] sm:$0xff] (!%p819_p10), %v993_v2 }
  0x23   : > { %362 = vst [vmem:[#allocation2 + $0x10] sm:$0xff] (!%p819_p10), %v993_v2  ;;  %363 = vst [vmem:[#allocation2 + $0x18] sm:$0xff] (!%p819_p10), %v993_v2 }
  0x27 PF: > { %v902_v3 = vld [vmem:[%s1071_s11 + $0x4] ss:$8 sps:$4 sm:$0xff]   ;;  %v904_v4 = vld [vmem:[%s1071_s11] ss:$8 sps:$4 sm:$0xff]   ;;  %v905_v5 = vld [vmem:[%s1071_s11 + $0x14] ss:$8 sps:$4 sm:$0xff]  }
  0x28   : > { %572 = vmatprep.subr.bf16.mxu0 %v902_v3  ;;  %v907_v6 = vld [vmem:[%s1071_s11 + $0x10] ss:$8 sps:$4 sm:$0xff]   ;;  %v908_v7 = vld [vmem:[%s1071_s11 + $0x24] ss:$8 sps:$4 sm:$0xff]   ;;  %v910_v8 = vld [vmem:[%s1071_s11 + $0x20] ss:$8 sps:$4 sm:$0xff]  }
  0x29   : > { %573 = vmatpush1.bf16.msra.mxu0 %v904_v4  ;;  %v911_v9 = vld [vmem:[%s1071_s11 + $0x34] ss:$8 sps:$4 sm:$0xff]   ;;  %v913_v10 = vld [vmem:[%s1071_s11 + $0x30] ss:$8 sps:$4 sm:$0xff]   ;;  %v914_v11 = vld [vmem:[%s1071_s11 + $0x44] ss:$8 sps:$4 sm:$0xff]  }
  0x2a   : > { %574 = vmatprep.subr.bf16.mxu0 %v905_v5  ;;  %v916_v12 = vld [vmem:[%s1071_s11 + $0x40] ss:$8 sps:$4 sm:$0xff]   ;;  %v917_v13 = vld [vmem:[%s1071_s11 + $0x54] ss:$8 sps:$4 sm:$0xff]   ;;  %v919_v14 = vld [vmem:[%s1071_s11 + $0x50] ss:$8 sps:$4 sm:$0xff]  }
  0x2b   : > { %v920_v15 = vld [vmem:[%s1071_s11 + $0x64] ss:$8 sps:$4 sm:$0xff]   ;;  %v922_v17 = vld [vmem:[%s1071_s11 + $0x60] ss:$8 sps:$4 sm:$0xff]   ;;  %v923_v18 = vld [vmem:[%s1071_s11 + $0x74] ss:$8 sps:$4 sm:$0xff]  }
  0x2c   : > { %v952_v16 = vld [vmem:[%s274_s12 + $0x4] ss:$8 sps:$4 sm:$0xff]   ;;  %v925_v19 = vld [vmem:[%s1071_s11 + $0x70] ss:$8 sps:$4 sm:$0xff]   ;;  %v928_v21 = vld [vmem:[%s1071_s11 + $0x80] ss:$8 sps:$4 sm:$0xff]  }
  0x2d   : > { %575 = vmatpush1.bf16.msra.mxu0 %v907_v6  ;;  %604 = vmatprep.mubr.bf16.mxu0 %v952_v16  ;;  %v926_v20 = vld [vmem:[%s1071_s11 + $0x84] ss:$8 sps:$4 sm:$0xff]   ;;  %v929_v22 = vld [vmem:[%s1071_s11 + $0x94] ss:$8 sps:$4 sm:$0xff]   ;;  %v931_v23 = vld [vmem:[%s1071_s11 + $0x90] ss:$8 sps:$4 sm:$0xff]  }
  0x2e   : > { %576 = vmatprep.subr.bf16.mxu0 %v908_v7  ;;  %v932_v24 = vld [vmem:[%s1071_s11 + $0xa4] ss:$8 sps:$4 sm:$0xff]   ;;  %v934_v25 = vld [vmem:[%s1071_s11 + $0xa0] ss:$8 sps:$4 sm:$0xff]   ;;  %v935_v26 = vld [vmem:[%s1071_s11 + $0xb4] ss:$8 sps:$4 sm:$0xff]  }
  0x2f   : > { %v937_v27 = vld [vmem:[%s1071_s11 + $0xb0] ss:$8 sps:$4 sm:$0xff]   ;;  %v938_v28 = vld [vmem:[%s1071_s11 + $0xc4] ss:$8 sps:$4 sm:$0xff]   ;;  %v940_v29 = vld [vmem:[%s1071_s11 + $0xc0] ss:$8 sps:$4 sm:$0xff]  }
  0x30   : > { %v941_v30 = vld [vmem:[%s1071_s11 + $0xd4] ss:$8 sps:$4 sm:$0xff]   ;;  %v943_v31 = vld [vmem:[%s1071_s11 + $0xd0] ss:$8 sps:$4 sm:$0xff]   ;;  %v944_v32 = vld [vmem:[%s1071_s11 + $0xe4] ss:$8 sps:$4 sm:$0xff]  }
  0x31   : > { %577 = vmatpush1.bf16.msra.mxu0 %v910_v8  ;;  %v946_v33 = vld [vmem:[%s1071_s11 + $0xe0] ss:$8 sps:$4 sm:$0xff]   ;;  %v947_v34 = vld [vmem:[%s1071_s11 + $0xf4] ss:$8 sps:$4 sm:$0xff]   ;;  %v949_v35 = vld [vmem:[%s1071_s11 + $0xf0] ss:$8 sps:$4 sm:$0xff]  }
  0x32   : > { %578 = vmatprep.subr.bf16.mxu0 %v911_v9  ;;  %v950_v36 = vld [vmem:[%s274_s12] ss:$8 sps:$4 sm:$0xff]   ;;  %p854_p11 = scmp.ne.s32.totalorder %s983_s17, 1 }
  0x33   : > { %v364_v37 = vld [vmem:[#allocation2] sm:$0xff]  ;;  %v365_v38 = vld [vmem:[#allocation2 + $0x8] sm:$0xff]  ;;  %v366_v40 = vld [vmem:[#allocation2 + $0x10] sm:$0xff]  ;;  %v633_v49 = vlaneseq (!%p854_p11) }
  0x34   : > { %v367_v43 = vld [vmem:[#allocation2 + $0x18] sm:$0xff]  ;;  %v631_v51 = vld [vmem:[%s1147_s2] sm:$0x3] (!%p854_p11) }
  0x35   : > { %579 = vmatpush1.bf16.msra.mxu0 %v913_v10  ;;  %v634_v50 = vshrl.u32 (!%p854_p11), %v633_v49, 7  ;;  %v647_v52 = vld [vmem:[%s1148_s3] sm:$0x3] (!%p854_p11) }
  0x36   : > { %580 = vmatprep.subr.bf16.mxu0 %v914_v11 }
  0x37   : > { %v635_v54 = vsub.s32 (!%p854_p11), 0, %v634_v50  ;;  %v639_v55 = vsub.s32 (!%p854_p11), 1, %v634_v50 }
  0x39   : > { %581 = vmatpush1.bf16.msra.mxu0 %v916_v12  ;;  %v636_v59 = vrot.slane (!%p854_p11), %v631_v51, %v635_v54  ;;  %v652_v60 = vrot.slane (!%p854_p11), %v647_v52, %v635_v54  ;;  %v640_v61 = vrot.slane (!%p854_p11), %v631_v51, %v639_v55  ;;  %v656_v62 = vrot.slane (!%p854_p11), %v647_v52, %v639_v55 }
  0x3a   : > { %582 = vmatprep.subr.bf16.mxu0 %v917_v13 }
  0x3d   : > { %583 = vmatpush1.bf16.msra.mxu0 %v919_v14 }
  0x3e   : > { %584 = vmatprep.subr.bf16.mxu0 %v920_v15 }
  0x41   : > { %585 = vmatpush1.bf16.msra.mxu0 %v922_v17 }
  0x42   : > { %586 = vmatprep.subr.bf16.mxu0 %v923_v18 }
  0x45   : > { %587 = vmatpush1.bf16.msra.mxu0 %v925_v19 }
  0x46   : > { %588 = vmatprep.subr.bf16.mxu0 %v926_v20 }
  0x49   : > { %589 = vmatpush1.bf16.msra.mxu0 %v928_v21 }
  0x4a   : > { %590 = vmatprep.subr.bf16.mxu0 %v929_v22 }
  0x4d   : > { %591 = vmatpush1.bf16.msra.mxu0 %v931_v23 }
  0x4e   : > { %592 = vmatprep.subr.bf16.mxu0 %v932_v24 }
  0x51   : > { %593 = vmatpush1.bf16.msra.mxu0 %v934_v25 }
  0x52   : > { %594 = vmatprep.subr.bf16.mxu0 %v935_v26 }
  0x55   : > { %595 = vmatpush1.bf16.msra.mxu0 %v937_v27 }
  0x56   : > { %596 = vmatprep.subr.bf16.mxu0 %v938_v28 }
  0x59   : > { %597 = vmatpush1.bf16.msra.mxu0 %v940_v29 }
  0x5a   : > { %598 = vmatprep.subr.bf16.mxu0 %v941_v30 }
  0x5d   : > { %599 = vmatpush1.bf16.msra.mxu0 %v943_v31 }
  0x5e   : > { %600 = vmatprep.subr.bf16.mxu0 %v944_v32 }
  0x61   : > { %601 = vmatpush1.bf16.msra.mxu0 %v946_v33 }
  0x62   : > { %602 = vmatprep.subr.bf16.mxu0 %v947_v34 }
  0x65   : > { %603 = vmatpush1.bf16.msra.mxu0 %v949_v35 }
  0x68   : > { %605 = vmatmul.mubr.bf16.vlgmr.msra.gmra.mrb[0].mxu0 %v950_v36 }
 0x13b   : > { %v606_v39 = vpop.f32.mrb[0].mxu0  ;;  %626 = sbr.rel (%p854_p11) target bundleno = 336 (0x150), region = 82 }
 0x13c   : > { %v615_v41 = vadd.f32 %v606_v39, %v364_v37  ;;  %v608_v42 = vpop.f32.mrb[1].mxu0 }
 0x13d   : > { %v616_v44 = vadd.f32 %v608_v42, %v365_v38  ;;  %v610_v45 = vpop.f32.mrb[2].mxu0 }
 0x13e   : > { %619 = vst [vmem:[#allocation2] sm:$0xff] %v615_v41  ;;  %v617_v46 = vadd.f32 %v610_v45, %v366_v40  ;;  %v612_v47 = vpop.f32.mrb[3].mxu0 }
 0x13f   : > { %620 = vst [vmem:[#allocation2 + $0x8] sm:$0xff] %v616_v44  ;;  %v618_v48 = vadd.f32 %v612_v47, %v367_v43 }
 0x140   : > { %621 = vst [vmem:[#allocation2 + $0x10] sm:$0xff] %v617_v46 }
 0x141   : > { %622 = vst [vmem:[#allocation2 + $0x18] sm:$0xff] %v618_v48 }
 0x145   : > { %v627_v53 = vld [vmem:[#allocation2] sm:$0xff] }
 0x146   : > { %v628_v56 = vld [vmem:[#allocation2 + $0x8] sm:$0xff]  ;;  %v643_v63 = vmul.f32 %v636_v59, %v627_v53 }
 0x147   : > { %v629_v57 = vld [vmem:[#allocation2 + $0x10] sm:$0xff]  ;;  %v644_v0 = vmul.f32 %v640_v61, %v628_v56 }
 0x148   : > { %v630_v58 = vld [vmem:[#allocation2 + $0x18] sm:$0xff]  ;;  %v645_v1 = vmul.f32 %v636_v59, %v629_v57  ;;  %v659_v3 = vadd.f32 %v652_v60, %v643_v63 }
 0x149   : > { %v646_v2 = vmul.f32 %v640_v61, %v630_v58  ;;  %v660_v4 = vadd.f32 %v656_v62, %v644_v0 }
 0x14a   : > { %v661_v5 = vadd.f32 %v652_v60, %v645_v1  ;;  %v663_v7 = vmax.f32 %v659_v3, 0.0 }
 0x14b   : > { %v662_v6 = vadd.f32 %v656_v62, %v646_v2  ;;  %v664_v8 = vmax.f32 %v660_v4, 0.0 }
 0x14c   : > { %v665_v9 = vmax.f32 %v661_v5, 0.0  ;;  %667 = vst [vmem:[%s1149_s4] sm:$0xff] %v663_v7 }
 0x14d   : > { %v666_v10 = vmax.f32 %v662_v6, 0.0  ;;  %668 = vst [vmem:[%s1149_s4 + $0x8] sm:$0xff] %v664_v8 }
 0x14e   : > { %669 = vst [vmem:[%s1149_s4 + $0x10] sm:$0xff] %v665_v9 }
 0x14f   : > { %670 = vst [vmem:[%s1149_s4 + $0x18] sm:$0xff] %v666_v10 }
 0x150 PF: > { %s14_s19 = sadd.s32 1, %s991_s19   ;;  %s1150_s15 = smov %s979_s16 }
 0x151   : > { %p11_p12 = scmp.ge.s32.totalorder %s14_s19, 4   ;;  %s1151_s16 = smov %s1054_s23 }
 0x152   : > { %s1152_s17 = smov %s987_s18  ;;  %s1153_s18 = smov %s1155_s20 }
 0x153   :  { %13 = sbr.rel (!%p11_p12) target bundleno = 3 (0x3), region = 126 }

// kernel: combined_forward.84
= control target key start
LH: loop header
LB: loop body
LE: loop exit
PB: predicated region body
PF: predicated region fallthrough
CT: control target
= control target key end

     0   :  { %v275_v1 = vmov 0   ;;  %v194_v18 = vlaneseq  ;;  %s370_s1 = inlined_call_operand.vmem [shape: bf16[128,256], index: 1, kind: input, shape index: {}]   ;;  %s371_s0 = inlined_call_operand.vmem [shape: bf16[16,128], index: 0, kind: input, shape index: {}]   ;;  %s372_s2 = inlined_call_operand.vmem [shape: f32[1,256], index: 2, kind: input, shape index: {}]   ;;  %s373_s3 = inlined_call_operand.vmem [shape: f32[1,256], index: 3, kind: input, shape index: {}]   ;;  %s374_s4 = inlined_call_operand.vmem [shape: f32[16,256], index: 4, kind: output, shape index: {}]  }
   0x1   :  { %v250_v0 = vld [vmem:[%s370_s1 + $0x4] ss:$8 sps:$4 sm:$0xff]   ;;  %166 = vmatprep.mubr.bf16.mxu0 %v275_v1  ;;  %v252_v2 = vld [vmem:[%s370_s1] ss:$8 sps:$4 sm:$0xff]   ;;  %v253_v3 = vld [vmem:[%s370_s1 + $0x14] ss:$8 sps:$4 sm:$0xff]  }
   0x2   :  { %134 = vmatprep.subr.bf16.mxu0 %v250_v0  ;;  %v255_v4 = vld [vmem:[%s370_s1 + $0x10] ss:$8 sps:$4 sm:$0xff]   ;;  %v256_v5 = vld [vmem:[%s370_s1 + $0x24] ss:$8 sps:$4 sm:$0xff]   ;;  %v258_v6 = vld [vmem:[%s370_s1 + $0x20] ss:$8 sps:$4 sm:$0xff]  }
   0x3   :  { %135 = vmatpush1.bf16.msra.mxu0 %v252_v2  ;;  %v259_v7 = vld [vmem:[%s370_s1 + $0x34] ss:$8 sps:$4 sm:$0xff]   ;;  %v261_v8 = vld [vmem:[%s370_s1 + $0x30] ss:$8 sps:$4 sm:$0xff]   ;;  %v262_v9 = vld [vmem:[%s370_s1 + $0x44] ss:$8 sps:$4 sm:$0xff]  }
   0x4   :  { %136 = vmatprep.subr.bf16.mxu0 %v253_v3  ;;  %v264_v10 = vld [vmem:[%s370_s1 + $0x40] ss:$8 sps:$4 sm:$0xff]   ;;  %v265_v11 = vld [vmem:[%s370_s1 + $0x54] ss:$8 sps:$4 sm:$0xff]   ;;  %v267_v12 = vld [vmem:[%s370_s1 + $0x50] ss:$8 sps:$4 sm:$0xff]  }
   0x5   :  { %v268_v13 = vld [vmem:[%s370_s1 + $0x64] ss:$8 sps:$4 sm:$0xff]   ;;  %v270_v14 = vld [vmem:[%s370_s1 + $0x60] ss:$8 sps:$4 sm:$0xff]   ;;  %v271_v15 = vld [vmem:[%s370_s1 + $0x74] ss:$8 sps:$4 sm:$0xff]  }
   0x6   :  { %v273_v16 = vld [vmem:[%s370_s1 + $0x70] ss:$8 sps:$4 sm:$0xff]   ;;  %v274_v17 = vld [vmem:[%s371_s0] sm:$0xff]   ;;  %v195_v19 = vshrl.u32 %v194_v18, 7 }
   0x7   :  { %137 = vmatpush1.bf16.msra.mxu0 %v255_v4  ;;  %v192_v21 = vld [vmem:[%s372_s2] sm:$0x3] }
   0x8   :  { %138 = vmatprep.subr.bf16.mxu0 %v256_v5  ;;  %v196_v20 = vsub.s32 0, %v195_v19  ;;  %v200_v22 = vsub.s32 1, %v195_v19  ;;  %v208_v23 = vld [vmem:[%s373_s3] sm:$0x3] }
   0xa   :  { %v197_v24 = vrot.slane %v192_v21, %v196_v20  ;;  %v201_v25 = vrot.slane %v192_v21, %v200_v22  ;;  %v213_v26 = vrot.slane %v208_v23, %v196_v20  ;;  %v217_v28 = vrot.slane %v208_v23, %v200_v22 }
   0xb   :  { %139 = vmatpush1.bf16.msra.mxu0 %v258_v6 }
   0xc   :  { %140 = vmatprep.subr.bf16.mxu0 %v259_v7 }
   0xf   :  { %141 = vmatpush1.bf16.msra.mxu0 %v261_v8 }
  0x10   :  { %142 = vmatprep.subr.bf16.mxu0 %v262_v9 }
  0x13   :  { %143 = vmatpush1.bf16.msra.mxu0 %v264_v10 }
  0x14   :  { %144 = vmatprep.subr.bf16.mxu0 %v265_v11 }
  0x17   :  { %145 = vmatpush1.bf16.msra.mxu0 %v267_v12 }
  0x18   :  { %146 = vmatprep.subr.bf16.mxu0 %v268_v13 }
  0x1b   :  { %147 = vmatpush1.bf16.msra.mxu0 %v270_v14 }
  0x1c   :  { %148 = vmatprep.subr.bf16.mxu0 %v271_v15 }
  0x1f   :  { %149 = vmatpush1.bf16.msra.mxu0 %v273_v16 }
  0x22   :  { %167 = vmatmul.mubr.bf16.vlgmr.msra.gmra.mrb[0].mxu0 %v274_v17 }
  0xf5   :  { %v168_v27 = vpop.f32.mrb[0].mxu0 }
  0xf6   :  { %v204_v29 = vmul.f32 %v197_v24, %v168_v27  ;;  %v170_v30 = vpop.f32.mrb[1].mxu0 }
  0xf7   :  { %v205_v31 = vmul.f32 %v201_v25, %v170_v30  ;;  %v172_v32 = vpop.f32.mrb[2].mxu0 }
  0xf8   :  { %v220_v33 = vadd.f32 %v213_v26, %v204_v29  ;;  %v206_v34 = vmul.f32 %v197_v24, %v172_v32  ;;  %v174_v35 = vpop.f32.mrb[3].mxu0 }
  0xf9   :  { %v221_v36 = vadd.f32 %v217_v28, %v205_v31  ;;  %v207_v37 = vmul.f32 %v201_v25, %v174_v35 }
  0xfa   :  { %224 = vst [vmem:[%s374_s4] sm:$0xff] %v220_v33  ;;  %v222_v38 = vadd.f32 %v213_v26, %v206_v34 }
  0xfb   :  { %225 = vst [vmem:[%s374_s4 + $0x8] sm:$0xff] %v221_v36  ;;  %v223_v39 = vadd.f32 %v217_v28, %v207_v37 }
  0xfc   :  { %226 = vst [vmem:[%s374_s4 + $0x10] sm:$0xff] %v222_v38 }
  0xfd   :  { %227 = vst [vmem:[%s374_s4 + $0x18] sm:$0xff] %v223_v39 }

// kernel: combined_forward.87
= control target key start
LH: loop header
LB: loop body
LE: loop exit
PB: predicated region body
PF: predicated region fallthrough
CT: control target
= control target key end

     0   :  { %s1019_s15 = smov 0   ;;  %s1021_s16 = smov 0   ;;  %s1145_s0 = inlined_call_operand.vmem [shape: bf16[16,768], index: 0, kind: input, shape index: {}]   ;;  %s1146_s1 = inlined_call_operand.vmem [shape: bf16[768,256], index: 1, kind: input, shape index: {}]   ;;  %s1147_s2 = inlined_call_operand.vmem [shape: f32[1,256], index: 2, kind: input, shape index: {}]   ;;  %s1148_s3 = inlined_call_operand.vmem [shape: f32[1,256], index: 3, kind: input, shape index: {}]   ;;  %s1149_s4 = inlined_call_operand.vmem [shape: f32[16,256], index: 4, kind: output, shape index: {}]  }
   0x1   :  { %s1023_s17 = smov 0   ;;  %s1025_s18 = smov 0  }
   0x2   :  { %s1027_s19 = smov 0  }
   0x3 LB: > { %s26_s20 = sadd.s32 1, %s987_s18  ;;  %p49_p1 = scmp.ne.s32.totalorder %s979_s16, %s975_s15  ;;  %s991_s19 = sphi %s1027_s19, %s14_s19   ;;  %s987_s18 = sphi %s1025_s18, %s1153_s18   ;;  %s983_s17 = sphi %s1023_s17, %s1152_s17   ;;  %s979_s16 = sphi %s1021_s16, %s1151_s16   ;;  %s975_s15 = sphi %s1019_s15, %s1150_s15  }
   0x4   : > { %p27_p0 = scmp.ge.s32.totalorder %s26_s20, 3  ;;  %p50_p2 = scmp.eq.s32.totalorder %s991_s19, 0 }
   0x5   : > { %s42_s22 = sadd.s32 1, %s979_s16  ;;  %p810_p5 = scmp.ge.s32.totalorder %s991_s19, 3 }
   0x6   : > { %s1155_s20 = smov (%p27_p0, %s26_s20), 0  ;;  %p51_p3 = por %p50_p2, %p49_p1 }
   0x7   : > { %s38_s21 = ssub.s32 %s987_s18, %s1155_s20  ;;  %199 = sbr.rel (%p810_p5) target bundleno = 21 (0x15), region = 24 }
   0x8   : > { %p40_p4 = scmp.eq.s32.totalorder %s38_s21, 0 }
   0xa   : > { %s1054_s23 = scalar_select %p40_p4, %s979_s16, %s42_s22  }
   0xe   : > { %202 = sbr.rel (!%p51_p3) target bundleno = 21 (0x15), region = 28  ;;  %s204_s24 = sand.u32 (%p51_p3), 1, %s979_s16  }
   0xf   : > { %s859_s25 = sshll.u32 (%p51_p3), %s987_s18, 3  ;;  %s811_s26 = sshll.u32 (%p51_p3), %s204_s24, 4 }
  0x10   : > { %s212_s29 = scalar_lea.vmem (%p51_p3), %s1145_s0, %s859_s25  ;;  %s206_s30 = scalar_lea.vmem (%p51_p3), [#allocation3], %s811_s26 }
  0x11   : > { %v242_v0 = vld [vmem:[%s212_s29] sm:$0xff] (%p51_p3)  ;;  %v244_v1 = vld [vmem:[%s212_s29 + $0x18] sm:$0xff] (%p51_p3) }
  0x12   : > { %243 = vst [vmem:[%s206_s30] sm:$0xff] (%p51_p3), %v242_v0  ;;  %245 = vst [vmem:[%s206_s30 + $0x8] sm:$0xff] (%p51_p3), %v244_v1 }
  0x15 PF: > { %p814_p6 = scmp.ge.s32.totalorder %s991_s19, 1  ;;  %p265_p7 = scmp.lt.s32.totalorder %s991_s19, 4 }
  0x17   : > { %p266_p8 = pnand %p814_p6, %p265_p7 }
  0x18   : > { %s272_s5 = sand.u32 (!%p266_p8), 1, %s975_s15   ;;  %s816_s6 = sshll.u32 (!%p266_p8), %s983_s17, 5 }
  0x19   : > { %269 = sbr.rel (%p266_p8) target bundleno = 336 (0x150), region = 70  ;;  %s1066_s7 = sshll.u32 (!%p266_p8), %s272_s5, 4 }
  0x1a   : > { %p324_p9 = scmp.lt.s32.totalorder (!%p266_p8), %s816_s6, 95  ;;  %s274_s12 = scalar_lea.vmem (!%p266_p8), [#allocation3], %s1066_s7 }
  0x1b   : > { %p819_p10 = scmp.ne.s32.totalorder (!%p266_p8), %s983_s17, 0 }
  0x20   : > { %s1157_s6 = smov (!%p324_p9, %s816_s6), 95  ;;  %359 = sbr.rel (%p819_p10) target bundleno = 39 (0x27), region = 78 }
  0x21   : > { %s860_s8 = sshll.u32 %s1157_s6, 3  ;;  %v993_v2 = vmov (!%p819_p10), 0.0  }
  0x22   : > { %s1071_s11 = scalar_lea.vmem %s1146_s1, %s860_s8  ;;  %360 = vst [vmem:[#allocation2] sm:$0xff] (!%p819_p10), %v993_v2  ;;  %361 = vst [vmem:[#allocation2 + $0x8] sm:$0xff] (!%p819_p10), %v993_v2 }
  0x23   : > { %362 = vst [vmem:[#allocation2 + $0x10] sm:$0xff] (!%p819_p10), %v993_v2  ;;  %363 = vst [vmem:[#allocation2 + $0x18] sm:$0xff] (!%p819_p10), %v993_v2 }
  0x27 PF: > { %v902_v3 = vld [vmem:[%s1071_s11 + $0x4] ss:$8 sps:$4 sm:$0xff]   ;;  %v904_v4 = vld [vmem:[%s1071_s11] ss:$8 sps:$4 sm:$0xff]   ;;  %v905_v5 = vld [vmem:[%s1071_s11 + $0x14] ss:$8 sps:$4 sm:$0xff]  }
  0x28   : > { %572 = vmatprep.subr.bf16.mxu0 %v902_v3  ;;  %v907_v6 = vld [vmem:[%s1071_s11 + $0x10] ss:$8 sps:$4 sm:$0xff]   ;;  %v908_v7 = vld [vmem:[%s1071_s11 + $0x24] ss:$8 sps:$4 sm:$0xff]   ;;  %v910_v8 = vld [vmem:[%s1071_s11 + $0x20] ss:$8 sps:$4 sm:$0xff]  }
  0x29   : > { %573 = vmatpush1.bf16.msra.mxu0 %v904_v4  ;;  %v911_v9 = vld [vmem:[%s1071_s11 + $0x34] ss:$8 sps:$4 sm:$0xff]   ;;  %v913_v10 = vld [vmem:[%s1071_s11 + $0x30] ss:$8 sps:$4 sm:$0xff]   ;;  %v914_v11 = vld [vmem:[%s1071_s11 + $0x44] ss:$8 sps:$4 sm:$0xff]  }
  0x2a   : > { %574 = vmatprep.subr.bf16.mxu0 %v905_v5  ;;  %v916_v12 = vld [vmem:[%s1071_s11 + $0x40] ss:$8 sps:$4 sm:$0xff]   ;;  %v917_v13 = vld [vmem:[%s1071_s11 + $0x54] ss:$8 sps:$4 sm:$0xff]   ;;  %v919_v14 = vld [vmem:[%s1071_s11 + $0x50] ss:$8 sps:$4 sm:$0xff]  }
  0x2b   : > { %v920_v15 = vld [vmem:[%s1071_s11 + $0x64] ss:$8 sps:$4 sm:$0xff]   ;;  %v922_v17 = vld [vmem:[%s1071_s11 + $0x60] ss:$8 sps:$4 sm:$0xff]   ;;  %v923_v18 = vld [vmem:[%s1071_s11 + $0x74] ss:$8 sps:$4 sm:$0xff]  }
  0x2c   : > { %v952_v16 = vld [vmem:[%s274_s12 + $0x4] ss:$8 sps:$4 sm:$0xff]   ;;  %v925_v19 = vld [vmem:[%s1071_s11 + $0x70] ss:$8 sps:$4 sm:$0xff]   ;;  %v928_v21 = vld [vmem:[%s1071_s11 + $0x80] ss:$8 sps:$4 sm:$0xff]  }
  0x2d   : > { %575 = vmatpush1.bf16.msra.mxu0 %v907_v6  ;;  %604 = vmatprep.mubr.bf16.mxu0 %v952_v16  ;;  %v926_v20 = vld [vmem:[%s1071_s11 + $0x84] ss:$8 sps:$4 sm:$0xff]   ;;  %v929_v22 = vld [vmem:[%s1071_s11 + $0x94] ss:$8 sps:$4 sm:$0xff]   ;;  %v931_v23 = vld [vmem:[%s1071_s11 + $0x90] ss:$8 sps:$4 sm:$0xff]  }
  0x2e   : > { %576 = vmatprep.subr.bf16.mxu0 %v908_v7  ;;  %v932_v24 = vld [vmem:[%s1071_s11 + $0xa4] ss:$8 sps:$4 sm:$0xff]   ;;  %v934_v25 = vld [vmem:[%s1071_s11 + $0xa0] ss:$8 sps:$4 sm:$0xff]   ;;  %v935_v26 = vld [vmem:[%s1071_s11 + $0xb4] ss:$8 sps:$4 sm:$0xff]  }
  0x2f   : > { %v937_v27 = vld [vmem:[%s1071_s11 + $0xb0] ss:$8 sps:$4 sm:$0xff]   ;;  %v938_v28 = vld [vmem:[%s1071_s11 + $0xc4] ss:$8 sps:$4 sm:$0xff]   ;;  %v940_v29 = vld [vmem:[%s1071_s11 + $0xc0] ss:$8 sps:$4 sm:$0xff]  }
  0x30   : > { %v941_v30 = vld [vmem:[%s1071_s11 + $0xd4] ss:$8 sps:$4 sm:$0xff]   ;;  %v943_v31 = vld [vmem:[%s1071_s11 + $0xd0] ss:$8 sps:$4 sm:$0xff]   ;;  %v944_v32 = vld [vmem:[%s1071_s11 + $0xe4] ss:$8 sps:$4 sm:$0xff]  }
  0x31   : > { %577 = vmatpush1.bf16.msra.mxu0 %v910_v8  ;;  %v946_v33 = vld [vmem:[%s1071_s11 + $0xe0] ss:$8 sps:$4 sm:$0xff]   ;;  %v947_v34 = vld [vmem:[%s1071_s11 + $0xf4] ss:$8 sps:$4 sm:$0xff]   ;;  %v949_v35 = vld [vmem:[%s1071_s11 + $0xf0] ss:$8 sps:$4 sm:$0xff]  }
  0x32   : > { %578 = vmatprep.subr.bf16.mxu0 %v911_v9  ;;  %v950_v36 = vld [vmem:[%s274_s12] ss:$8 sps:$4 sm:$0xff]   ;;  %p854_p11 = scmp.ne.s32.totalorder %s983_s17, 2 }
  0x33   : > { %v364_v37 = vld [vmem:[#allocation2] sm:$0xff]  ;;  %v365_v38 = vld [vmem:[#allocation2 + $0x8] sm:$0xff]  ;;  %v366_v40 = vld [vmem:[#allocation2 + $0x10] sm:$0xff]  ;;  %v633_v49 = vlaneseq (!%p854_p11) }
  0x34   : > { %v367_v43 = vld [vmem:[#allocation2 + $0x18] sm:$0xff]  ;;  %v631_v51 = vld [vmem:[%s1147_s2] sm:$0x3] (!%p854_p11) }
  0x35   : > { %579 = vmatpush1.bf16.msra.mxu0 %v913_v10  ;;  %v634_v50 = vshrl.u32 (!%p854_p11), %v633_v49, 7  ;;  %v647_v52 = vld [vmem:[%s1148_s3] sm:$0x3] (!%p854_p11) }
  0x36   : > { %580 = vmatprep.subr.bf16.mxu0 %v914_v11 }
  0x37   : > { %v635_v54 = vsub.s32 (!%p854_p11), 0, %v634_v50  ;;  %v639_v55 = vsub.s32 (!%p854_p11), 1, %v634_v50 }
  0x39   : > { %581 = vmatpush1.bf16.msra.mxu0 %v916_v12  ;;  %v636_v59 = vrot.slane (!%p854_p11), %v631_v51, %v635_v54  ;;  %v652_v60 = vrot.slane (!%p854_p11), %v647_v52, %v635_v54  ;;  %v640_v61 = vrot.slane (!%p854_p11), %v631_v51, %v639_v55  ;;  %v656_v62 = vrot.slane (!%p854_p11), %v647_v52, %v639_v55 }
  0x3a   : > { %582 = vmatprep.subr.bf16.mxu0 %v917_v13 }
  0x3d   : > { %583 = vmatpush1.bf16.msra.mxu0 %v919_v14 }
  0x3e   : > { %584 = vmatprep.subr.bf16.mxu0 %v920_v15 }
  0x41   : > { %585 = vmatpush1.bf16.msra.mxu0 %v922_v17 }
  0x42   : > { %586 = vmatprep.subr.bf16.mxu0 %v923_v18 }
  0x45   : > { %587 = vmatpush1.bf16.msra.mxu0 %v925_v19 }
  0x46   : > { %588 = vmatprep.subr.bf16.mxu0 %v926_v20 }
  0x49   : > { %589 = vmatpush1.bf16.msra.mxu0 %v928_v21 }
  0x4a   : > { %590 = vmatprep.subr.bf16.mxu0 %v929_v22 }
  0x4d   : > { %591 = vmatpush1.bf16.msra.mxu0 %v931_v23 }
  0x4e   : > { %592 = vmatprep.subr.bf16.mxu0 %v932_v24 }
  0x51   : > { %593 = vmatpush1.bf16.msra.mxu0 %v934_v25 }
  0x52   : > { %594 = vmatprep.subr.bf16.mxu0 %v935_v26 }
  0x55   : > { %595 = vmatpush1.bf16.msra.mxu0 %v937_v27 }
  0x56   : > { %596 = vmatprep.subr.bf16.mxu0 %v938_v28 }
  0x59   : > { %597 = vmatpush1.bf16.msra.mxu0 %v940_v29 }
  0x5a   : > { %598 = vmatprep.subr.bf16.mxu0 %v941_v30 }
  0x5d   : > { %599 = vmatpush1.bf16.msra.mxu0 %v943_v31 }
  0x5e   : > { %600 = vmatprep.subr.bf16.mxu0 %v944_v32 }
  0x61   : > { %601 = vmatpush1.bf16.msra.mxu0 %v946_v33 }
  0x62   : > { %602 = vmatprep.subr.bf16.mxu0 %v947_v34 }
  0x65   : > { %603 = vmatpush1.bf16.msra.mxu0 %v949_v35 }
  0x68   : > { %605 = vmatmul.mubr.bf16.vlgmr.msra.gmra.mrb[0].mxu0 %v950_v36 }
 0x13b   : > { %v606_v39 = vpop.f32.mrb[0].mxu0  ;;  %626 = sbr.rel (%p854_p11) target bundleno = 336 (0x150), region = 82 }
 0x13c   : > { %v615_v41 = vadd.f32 %v606_v39, %v364_v37  ;;  %v608_v42 = vpop.f32.mrb[1].mxu0 }
 0x13d   : > { %v616_v44 = vadd.f32 %v608_v42, %v365_v38  ;;  %v610_v45 = vpop.f32.mrb[2].mxu0 }
 0x13e   : > { %619 = vst [vmem:[#allocation2] sm:$0xff] %v615_v41  ;;  %v617_v46 = vadd.f32 %v610_v45, %v366_v40  ;;  %v612_v47 = vpop.f32.mrb[3].mxu0 }
 0x13f   : > { %620 = vst [vmem:[#allocation2 + $0x8] sm:$0xff] %v616_v44  ;;  %v618_v48 = vadd.f32 %v612_v47, %v367_v43 }
 0x140   : > { %621 = vst [vmem:[#allocation2 + $0x10] sm:$0xff] %v617_v46 }
 0x141   : > { %622 = vst [vmem:[#allocation2 + $0x18] sm:$0xff] %v618_v48 }
 0x145   : > { %v627_v53 = vld [vmem:[#allocation2] sm:$0xff] }
 0x146   : > { %v628_v56 = vld [vmem:[#allocation2 + $0x8] sm:$0xff]  ;;  %v643_v63 = vmul.f32 %v636_v59, %v627_v53 }
 0x147   : > { %v629_v57 = vld [vmem:[#allocation2 + $0x10] sm:$0xff]  ;;  %v644_v0 = vmul.f32 %v640_v61, %v628_v56 }
 0x148   : > { %v630_v58 = vld [vmem:[#allocation2 + $0x18] sm:$0xff]  ;;  %v645_v1 = vmul.f32 %v636_v59, %v629_v57  ;;  %v659_v3 = vadd.f32 %v652_v60, %v643_v63 }
 0x149   : > { %v646_v2 = vmul.f32 %v640_v61, %v630_v58  ;;  %v660_v4 = vadd.f32 %v656_v62, %v644_v0 }
 0x14a   : > { %v661_v5 = vadd.f32 %v652_v60, %v645_v1  ;;  %v663_v7 = vmax.f32 %v659_v3, 0.0 }
 0x14b   : > { %v662_v6 = vadd.f32 %v656_v62, %v646_v2  ;;  %v664_v8 = vmax.f32 %v660_v4, 0.0 }
 0x14c   : > { %v665_v9 = vmax.f32 %v661_v5, 0.0  ;;  %667 = vst [vmem:[%s1149_s4] sm:$0xff] %v663_v7 }
 0x14d   : > { %v666_v10 = vmax.f32 %v662_v6, 0.0  ;;  %668 = vst [vmem:[%s1149_s4 + $0x8] sm:$0xff] %v664_v8 }
 0x14e   : > { %669 = vst [vmem:[%s1149_s4 + $0x10] sm:$0xff] %v665_v9 }
 0x14f   : > { %670 = vst [vmem:[%s1149_s4 + $0x18] sm:$0xff] %v666_v10 }
 0x150 PF: > { %s14_s19 = sadd.s32 1, %s991_s19   ;;  %s1150_s15 = smov %s979_s16 }
 0x151   : > { %p11_p12 = scmp.ge.s32.totalorder %s14_s19, 5   ;;  %s1151_s16 = smov %s1054_s23 }
 0x152   : > { %s1152_s17 = smov %s987_s18  ;;  %s1153_s18 = smov %s1155_s20 }
 0x153   :  { %13 = sbr.rel (!%p11_p12) target bundleno = 3 (0x3), region = 126 }

// kernel: combined_forward.86
= control target key start
LH: loop header
LB: loop body
LE: loop exit
PB: predicated region body
PF: predicated region fallthrough
CT: control target
= control target key end

     0   :  { %s1122_s18 = smov 0   ;;  %s1124_s19 = smov 0   ;;  %s1260_s0 = inlined_call_operand.vmem [shape: bf16[16,768], index: 0, kind: input, shape index: {}]   ;;  %s1261_s1 = inlined_call_operand.vmem [shape: bf16[768,256], index: 1, kind: input, shape index: {}]   ;;  %s1262_s2 = inlined_call_operand.vmem [shape: f32[1,256], index: 2, kind: input, shape index: {}]   ;;  %s1263_s3 = inlined_call_operand.vmem [shape: f32[1,256], index: 3, kind: input, shape index: {}]   ;;  %s1264_s4 = inlined_call_operand.vmem [shape: f32[16,256], index: 4, kind: input, shape index: {}]   ;;  %s1265_s5 = inlined_call_operand.vmem [shape: f32[16,256], index: 5, kind: output, shape index: {}]  }
   0x1   :  { %s1126_s20 = smov 0   ;;  %s1128_s21 = smov 0  }
   0x2   :  { %s1130_s22 = smov 0  }
   0x3 LB: > { %s27_s23 = sadd.s32 1, %s1085_s21  ;;  %p50_p1 = scmp.ne.s32.totalorder %s1077_s19, %s1073_s18  ;;  %s1089_s22 = sphi %s1130_s22, %s15_s22   ;;  %s1085_s21 = sphi %s1128_s21, %s1269_s21   ;;  %s1081_s20 = sphi %s1126_s20, %s1268_s20   ;;  %s1077_s19 = sphi %s1124_s19, %s1267_s19   ;;  %s1073_s18 = sphi %s1122_s18, %s1266_s18  }
   0x4   : > { %p28_p0 = scmp.ge.s32.totalorder %s27_s23, 3  ;;  %p51_p2 = scmp.eq.s32.totalorder %s1089_s22, 0 }
   0x5   : > { %s43_s25 = sadd.s32 1, %s1077_s19  ;;  %p908_p5 = scmp.ge.s32.totalorder %s1089_s22, 3 }
   0x6   : > { %s1271_s23 = smov (%p28_p0, %s27_s23), 0  ;;  %p52_p3 = por %p51_p2, %p50_p1 }
   0x7   : > { %s39_s24 = ssub.s32 %s1085_s21, %s1271_s23  ;;  %243 = sbr.rel (%p908_p5) target bundleno = 21 (0x15), region = 28 }
   0x8   : > { %p41_p4 = scmp.eq.s32.totalorder %s39_s24, 0 }
   0xa   : > { %s1157_s26 = scalar_select %p41_p4, %s1077_s19, %s43_s25  }
   0xe   : > { %246 = sbr.rel (!%p52_p3) target bundleno = 21 (0x15), region = 32  ;;  %s248_s27 = sand.u32 (%p52_p3), 1, %s1077_s19  }
   0xf   : > { %s957_s28 = sshll.u32 (%p52_p3), %s1085_s21, 3  ;;  %s909_s29 = sshll.u32 (%p52_p3), %s248_s27, 4 }
  0x10   : > { %s256_s7 = scalar_lea.vmem (%p52_p3), %s1260_s0, %s957_s28  ;;  %s250_s8 = scalar_lea.vmem (%p52_p3), [#allocation3], %s909_s29 }
  0x11   : > { %v286_v0 = vld [vmem:[%s256_s7] sm:$0xff] (%p52_p3)  ;;  %v288_v1 = vld [vmem:[%s256_s7 + $0x18] sm:$0xff] (%p52_p3) }
  0x12   : > { %287 = vst [vmem:[%s250_s8] sm:$0xff] (%p52_p3), %v286_v0  ;;  %289 = vst [vmem:[%s250_s8 + $0x8] sm:$0xff] (%p52_p3), %v288_v1 }
  0x15 PF: > { %p912_p6 = scmp.ge.s32.totalorder %s1089_s22, 1  ;;  %p309_p7 = scmp.lt.s32.totalorder %s1089_s22, 4 }
  0x17   : > { %p310_p8 = pnand %p912_p6, %p309_p7 }
  0x18   : > { %s316_s9 = sand.u32 (!%p310_p8), 1, %s1073_s18   ;;  %s914_s10 = sshll.u32 (!%p310_p8), %s1081_s20, 5 }
  0x19   : > { %313 = sbr.rel (%p310_p8) target bundleno = 338 (0x152), region = 74  ;;  %s1169_s11 = sshll.u32 (!%p310_p8), %s316_s9, 4 }
  0x1a   : > { %p380_p9 = scmp.lt.s32.totalorder (!%p310_p8), %s914_s10, 95  ;;  %s318_s16 = scalar_lea.vmem (!%p310_p8), [#allocation3], %s1169_s11 }
  0x1b   : > { %p917_p10 = scmp.ne.s32.totalorder (!%p310_p8), %s1081_s20, 0 }
  0x20   : > { %s1273_s10 = smov (!%p380_p9, %s914_s10), 95  ;;  %427 = sbr.rel (%p917_p10) target bundleno = 39 (0x27), region = 82 }
  0x21   : > { %s958_s12 = sshll.u32 %s1273_s10, 3  ;;  %v1091_v2 = vmov (!%p917_p10), 0.0  }
  0x22   : > { %s1174_s15 = scalar_lea.vmem %s1261_s1, %s958_s12  ;;  %428 = vst [vmem:[#allocation2] sm:$0xff] (!%p917_p10), %v1091_v2  ;;  %429 = vst [vmem:[#allocation2 + $0x8] sm:$0xff] (!%p917_p10), %v1091_v2 }
  0x23   : > { %430 = vst [vmem:[#allocation2 + $0x10] sm:$0xff] (!%p917_p10), %v1091_v2  ;;  %431 = vst [vmem:[#allocation2 + $0x18] sm:$0xff] (!%p917_p10), %v1091_v2 }
  0x27 PF: > { %v1000_v3 = vld [vmem:[%s1174_s15 + $0x4] ss:$8 sps:$4 sm:$0xff]   ;;  %v1002_v4 = vld [vmem:[%s1174_s15] ss:$8 sps:$4 sm:$0xff]   ;;  %v1003_v5 = vld [vmem:[%s1174_s15 + $0x14] ss:$8 sps:$4 sm:$0xff]  }
  0x28   : > { %640 = vmatprep.subr.bf16.mxu0 %v1000_v3  ;;  %v1005_v6 = vld [vmem:[%s1174_s15 + $0x10] ss:$8 sps:$4 sm:$0xff]   ;;  %v1006_v7 = vld [vmem:[%s1174_s15 + $0x24] ss:$8 sps:$4 sm:$0xff]   ;;  %v1008_v8 = vld [vmem:[%s1174_s15 + $0x20] ss:$8 sps:$4 sm:$0xff]  }
  0x29   : > { %641 = vmatpush1.bf16.msra.mxu0 %v1002_v4  ;;  %v1009_v9 = vld [vmem:[%s1174_s15 + $0x34] ss:$8 sps:$4 sm:$0xff]   ;;  %v1011_v10 = vld [vmem:[%s1174_s15 + $0x30] ss:$8 sps:$4 sm:$0xff]   ;;  %v1012_v11 = vld [vmem:[%s1174_s15 + $0x44] ss:$8 sps:$4 sm:$0xff]  }
  0x2a   : > { %642 = vmatprep.subr.bf16.mxu0 %v1003_v5  ;;  %v1014_v12 = vld [vmem:[%s1174_s15 + $0x40] ss:$8 sps:$4 sm:$0xff]   ;;  %v1015_v13 = vld [vmem:[%s1174_s15 + $0x54] ss:$8 sps:$4 sm:$0xff]   ;;  %v1017_v14 = vld [vmem:[%s1174_s15 + $0x50] ss:$8 sps:$4 sm:$0xff]  }
  0x2b   : > { %v1018_v15 = vld [vmem:[%s1174_s15 + $0x64] ss:$8 sps:$4 sm:$0xff]   ;;  %v1020_v17 = vld [vmem:[%s1174_s15 + $0x60] ss:$8 sps:$4 sm:$0xff]   ;;  %v1021_v18 = vld [vmem:[%s1174_s15 + $0x74] ss:$8 sps:$4 sm:$0xff]  }
  0x2c   : > { %v1050_v16 = vld [vmem:[%s318_s16 + $0x4] ss:$8 sps:$4 sm:$0xff]   ;;  %v1023_v19 = vld [vmem:[%s1174_s15 + $0x70] ss:$8 sps:$4 sm:$0xff]   ;;  %v1026_v21 = vld [vmem:[%s1174_s15 + $0x80] ss:$8 sps:$4 sm:$0xff]  }
  0x2d   : > { %643 = vmatpush1.bf16.msra.mxu0 %v1005_v6  ;;  %672 = vmatprep.mubr.bf16.mxu0 %v1050_v16  ;;  %v1024_v20 = vld [vmem:[%s1174_s15 + $0x84] ss:$8 sps:$4 sm:$0xff]   ;;  %v1027_v22 = vld [vmem:[%s1174_s15 + $0x94] ss:$8 sps:$4 sm:$0xff]   ;;  %v1029_v23 = vld [vmem:[%s1174_s15 + $0x90] ss:$8 sps:$4 sm:$0xff]  }
  0x2e   : > { %644 = vmatprep.subr.bf16.mxu0 %v1006_v7  ;;  %v1030_v24 = vld [vmem:[%s1174_s15 + $0xa4] ss:$8 sps:$4 sm:$0xff]   ;;  %v1032_v25 = vld [vmem:[%s1174_s15 + $0xa0] ss:$8 sps:$4 sm:$0xff]   ;;  %v1033_v26 = vld [vmem:[%s1174_s15 + $0xb4] ss:$8 sps:$4 sm:$0xff]  }
  0x2f   : > { %v1035_v27 = vld [vmem:[%s1174_s15 + $0xb0] ss:$8 sps:$4 sm:$0xff]   ;;  %v1036_v28 = vld [vmem:[%s1174_s15 + $0xc4] ss:$8 sps:$4 sm:$0xff]   ;;  %v1038_v29 = vld [vmem:[%s1174_s15 + $0xc0] ss:$8 sps:$4 sm:$0xff]  }
  0x30   : > { %v1039_v30 = vld [vmem:[%s1174_s15 + $0xd4] ss:$8 sps:$4 sm:$0xff]   ;;  %v1041_v31 = vld [vmem:[%s1174_s15 + $0xd0] ss:$8 sps:$4 sm:$0xff]   ;;  %v1042_v32 = vld [vmem:[%s1174_s15 + $0xe4] ss:$8 sps:$4 sm:$0xff]  }
  0x31   : > { %645 = vmatpush1.bf16.msra.mxu0 %v1008_v8  ;;  %v1044_v33 = vld [vmem:[%s1174_s15 + $0xe0] ss:$8 sps:$4 sm:$0xff]   ;;  %v1045_v34 = vld [vmem:[%s1174_s15 + $0xf4] ss:$8 sps:$4 sm:$0xff]   ;;  %v1047_v35 = vld [vmem:[%s1174_s15 + $0xf0] ss:$8 sps:$4 sm:$0xff]  }
  0x32   : > { %646 = vmatprep.subr.bf16.mxu0 %v1009_v9  ;;  %v1048_v36 = vld [vmem:[%s318_s16] ss:$8 sps:$4 sm:$0xff]   ;;  %p952_p11 = scmp.ne.s32.totalorder %s1081_s20, 2 }
  0x33   : > { %v432_v37 = vld [vmem:[#allocation2] sm:$0xff]  ;;  %v433_v38 = vld [vmem:[#allocation2 + $0x8] sm:$0xff]  ;;  %v434_v40 = vld [vmem:[#allocation2 + $0x10] sm:$0xff]  ;;  %v701_v49 = vlaneseq (!%p952_p11) }
  0x34   : > { %v435_v43 = vld [vmem:[#allocation2 + $0x18] sm:$0xff]  ;;  %v699_v51 = vld [vmem:[%s1262_s2] sm:$0x3] (!%p952_p11)  ;;  %v732_v4 = vld [vmem:[%s1264_s4 + $0x8] sm:$0xff] (!%p952_p11) }
  0x35   : > { %647 = vmatpush1.bf16.msra.mxu0 %v1011_v10  ;;  %v702_v50 = vshrl.u32 (!%p952_p11), %v701_v49, 7  ;;  %v715_v52 = vld [vmem:[%s1263_s3] sm:$0x3] (!%p952_p11)  ;;  %v733_v5 = vld [vmem:[%s1264_s4 + $0x10] sm:$0xff] (!%p952_p11)  ;;  %v734_v6 = vld [vmem:[%s1264_s4 + $0x18] sm:$0xff] (!%p952_p11) }
  0x36   : > { %648 = vmatprep.subr.bf16.mxu0 %v1012_v11  ;;  %v731_v0 = vld [vmem:[%s1264_s4] sm:$0xff] (!%p952_p11) }
  0x37   : > { %v703_v54 = vsub.s32 (!%p952_p11), 0, %v702_v50  ;;  %v707_v55 = vsub.s32 (!%p952_p11), 1, %v702_v50 }
  0x39   : > { %649 = vmatpush1.bf16.msra.mxu0 %v1014_v12  ;;  %v704_v59 = vrot.slane (!%p952_p11), %v699_v51, %v703_v54  ;;  %v720_v60 = vrot.slane (!%p952_p11), %v715_v52, %v703_v54  ;;  %v708_v61 = vrot.slane (!%p952_p11), %v699_v51, %v707_v55  ;;  %v724_v62 = vrot.slane (!%p952_p11), %v715_v52, %v707_v55 }
  0x3a   : > { %650 = vmatprep.subr.bf16.mxu0 %v1015_v13 }
  0x3d   : > { %651 = vmatpush1.bf16.msra.mxu0 %v1017_v14 }
  0x3e   : > { %652 = vmatprep.subr.bf16.mxu0 %v1018_v15 }
  0x41   : > { %653 = vmatpush1.bf16.msra.mxu0 %v1020_v17 }
  0x42   : > { %654 = vmatprep.subr.bf16.mxu0 %v1021_v18 }
  0x45   : > { %655 = vmatpush1.bf16.msra.mxu0 %v1023_v19 }
  0x46   : > { %656 = vmatprep.subr.bf16.mxu0 %v1024_v20 }
  0x49   : > { %657 = vmatpush1.bf16.msra.mxu0 %v1026_v21 }
  0x4a   : > { %658 = vmatprep.subr.bf16.mxu0 %v1027_v22 }
  0x4d   : > { %659 = vmatpush1.bf16.msra.mxu0 %v1029_v23 }
  0x4e   : > { %660 = vmatprep.subr.bf16.mxu0 %v1030_v24 }
  0x51   : > { %661 = vmatpush1.bf16.msra.mxu0 %v1032_v25 }
  0x52   : > { %662 = vmatprep.subr.bf16.mxu0 %v1033_v26 }
  0x55   : > { %663 = vmatpush1.bf16.msra.mxu0 %v1035_v27 }
  0x56   : > { %664 = vmatprep.subr.bf16.mxu0 %v1036_v28 }
  0x59   : > { %665 = vmatpush1.bf16.msra.mxu0 %v1038_v29 }
  0x5a   : > { %666 = vmatprep.subr.bf16.mxu0 %v1039_v30 }
  0x5d   : > { %667 = vmatpush1.bf16.msra.mxu0 %v1041_v31 }
  0x5e   : > { %668 = vmatprep.subr.bf16.mxu0 %v1042_v32 }
  0x61   : > { %669 = vmatpush1.bf16.msra.mxu0 %v1044_v33 }
  0x62   : > { %670 = vmatprep.subr.bf16.mxu0 %v1045_v34 }
  0x65   : > { %671 = vmatpush1.bf16.msra.mxu0 %v1047_v35 }
  0x68   : > { %673 = vmatmul.mubr.bf16.vlgmr.msra.gmra.mrb[0].mxu0 %v1048_v36 }
 0x13b   : > { %v674_v39 = vpop.f32.mrb[0].mxu0  ;;  %694 = sbr.rel (%p952_p11) target bundleno = 338 (0x152), region = 86 }
 0x13c   : > { %v683_v41 = vadd.f32 %v674_v39, %v432_v37  ;;  %v676_v42 = vpop.f32.mrb[1].mxu0 }
 0x13d   : > { %v684_v44 = vadd.f32 %v676_v42, %v433_v38  ;;  %v678_v45 = vpop.f32.mrb[2].mxu0 }
 0x13e   : > { %687 = vst [vmem:[#allocation2] sm:$0xff] %v683_v41  ;;  %v685_v46 = vadd.f32 %v678_v45, %v434_v40  ;;  %v680_v47 = vpop.f32.mrb[3].mxu0 }
 0x13f   : > { %688 = vst [vmem:[#allocation2 + $0x8] sm:$0xff] %v684_v44  ;;  %v686_v48 = vadd.f32 %v680_v47, %v435_v43 }
 0x140   : > { %689 = vst [vmem:[#allocation2 + $0x10] sm:$0xff] %v685_v46 }
 0x141   : > { %690 = vst [vmem:[#allocation2 + $0x18] sm:$0xff] %v686_v48 }
 0x145   : > { %v695_v53 = vld [vmem:[#allocation2] sm:$0xff] }
 0x146   : > { %v696_v56 = vld [vmem:[#allocation2 + $0x8] sm:$0xff]  ;;  %v711_v63 = vmul.f32 %v704_v59, %v695_v53 }
 0x147   : > { %v697_v57 = vld [vmem:[#allocation2 + $0x10] sm:$0xff]  ;;  %v712_v1 = vmul.f32 %v708_v61, %v696_v56 }
 0x148   : > { %v698_v58 = vld [vmem:[#allocation2 + $0x18] sm:$0xff]  ;;  %v713_v2 = vmul.f32 %v704_v59, %v697_v57  ;;  %v727_v7 = vadd.f32 %v720_v60, %v711_v63 }
 0x149   : > { %v714_v3 = vmul.f32 %v708_v61, %v698_v58  ;;  %v728_v8 = vadd.f32 %v724_v62, %v712_v1 }
 0x14a   : > { %v729_v9 = vadd.f32 %v720_v60, %v713_v2  ;;  %v735_v11 = vadd.f32 %v731_v0, %v727_v7 }
 0x14b   : > { %v730_v10 = vadd.f32 %v724_v62, %v714_v3  ;;  %v736_v12 = vadd.f32 %v732_v4, %v728_v8 }
 0x14c   : > { %v737_v13 = vadd.f32 %v733_v5, %v729_v9  ;;  %v739_v15 = vmax.f32 %v735_v11, 0.0 }
 0x14d   : > { %v738_v14 = vadd.f32 %v734_v6, %v730_v10  ;;  %v740_v16 = vmax.f32 %v736_v12, 0.0 }
 0x14e   : > { %v741_v17 = vmax.f32 %v737_v13, 0.0  ;;  %743 = vst [vmem:[%s1265_s5] sm:$0xff] %v739_v15 }
 0x14f   : > { %v742_v18 = vmax.f32 %v738_v14, 0.0  ;;  %744 = vst [vmem:[%s1265_s5 + $0x8] sm:$0xff] %v740_v16 }
 0x150   : > { %745 = vst [vmem:[%s1265_s5 + $0x10] sm:$0xff] %v741_v17 }
 0x151   : > { %746 = vst [vmem:[%s1265_s5 + $0x18] sm:$0xff] %v742_v18 }
 0x152 PF: > { %s15_s22 = sadd.s32 1, %s1089_s22   ;;  %s1266_s18 = smov %s1077_s19 }
 0x153   : > { %p12_p12 = scmp.ge.s32.totalorder %s15_s22, 5   ;;  %s1267_s19 = smov %s1157_s26 }
 0x154   : > { %s1268_s20 = smov %s1085_s21  ;;  %s1269_s21 = smov %s1271_s23 }
 0x155   :  { %14 = sbr.rel (!%p12_p12) target bundleno = 3 (0x3), region = 133 }

// kernel: combined_forward.90
= control target key start
LH: loop header
LB: loop body
LE: loop exit
PB: predicated region body
PF: predicated region fallthrough
CT: control target
= control target key end

     0   :  { %s1268_s15 = smov 0   ;;  %s1270_s16 = smov 0   ;;  %s1568_s0 = inlined_call_operand.vmem [shape: bf16[16,768], index: 0, kind: input, shape index: {}]   ;;  %s1569_s1 = inlined_call_operand.vmem [shape: bf16[768,512], index: 1, kind: input, shape index: {}]   ;;  %s1570_s2 = inlined_call_operand.vmem [shape: f32[1,512], index: 2, kind: input, shape index: {}]   ;;  %s1571_s3 = inlined_call_operand.vmem [shape: f32[1,512], index: 3, kind: input, shape index: {}]   ;;  %s1572_s4 = inlined_call_operand.vmem [shape: f32[16,512], index: 4, kind: output, shape index: {}]  }
   0x1   :  { %s1272_s17 = smov 0   ;;  %s1274_s18 = smov 0  }
   0x2   :  { %s1276_s19 = smov 0   ;;  %s1278_s20 = smov 0  }
   0x3   :  { %s1280_s21 = smov 0   ;;  %s1282_s22 = smov 0  }
   0x4   :  { %s1284_s23 = smov 0   ;;  %s1286_s24 = smov 0  }
   0x5   :  { %s1288_s25 = smov 0  }
   0x6 LB: > { %1576 = sst [smem:[#allocation6_spill]] %s1220_s20  ;;  %s952_s26 = sadd.s32 4294967295, %s1240_s25   ;;  %s1240_s25 = sphi %s1288_s25, %s14_s25   ;;  %s1236_s24 = sphi %s1286_s24, %s1594_s24   ;;  %s1232_s23 = sphi %s1284_s23, %s1593_s23   ;;  %s1228_s22 = sphi %s1282_s22, %s1592_s22   ;;  %s1224_s21 = sphi %s1280_s21, %s1591_s21   ;;  %s1220_s20 = sphi %s1278_s20, %s1584_s20   ;;  %s1216_s19 = sphi %s1276_s19, %s1583_s19   ;;  %s1212_s18 = sphi %s1274_s18, %s1590_s18   ;;  %s1208_s17 = sphi %s1272_s17, %s1589_s17   ;;  %s1204_s16 = sphi %s1270_s16, %s1588_s16   ;;  %s1200_s15 = sphi %s1268_s15, %s1587_s15  }
   0x7   : > { %s26_s27 = sadd.s32 1, %s1232_s23  ;;  %s29_s28 = sadd.s32 1, %s1236_s24 }
   0x8   : > { %p27_p0 = scmp.ge.s32.totalorder %s26_s27, 3  ;;  %s42_s29 = sadd.s32 1, %s1220_s20 }
   0x9   : > { %p49_p1 = scmp.ne.s32.totalorder %s1220_s20, %s1216_s19  ;;  %p50_p2 = scmp.eq.s32.totalorder %s1240_s25, 0 }
   0xa   : > { %s1596_s27 = smov (%p27_p0, %s26_s27), 0  ;;  %s1598_s28 = smov (!%p27_p0, %s29_s28), %s1236_s24 }
   0xb   : > { %1577 = sst [smem:[#allocation7_spill]] %s1596_s27  ;;  %s38_s30 = ssub.s32 %s1232_s23, %s1596_s27 }
   0xc   : > { %p31_p3 = scmp.ge.s32.totalorder %s1598_s28, 2  ;;  %p40_p4 = scmp.eq.s32.totalorder %s38_s30, 0 }
   0xd   : > { %p1335_p5 = por %p50_p2, %p49_p1  ;;  %s70_s6 = sadd.s32 1, %s1212_s18 }
   0xe   : > { %s1600_s28 = smov (%p31_p3, %s1598_s28), 0  ;;  %p77_p6 = scmp.ne.s32.totalorder %s1212_s18, %s1208_s17 }
   0xf   : > { %1579 = sst [smem:[#allocation8_spill]] %s1600_s28  ;;  %s66_s8 = ssub.s32 %s1236_s24, %s1600_s28 }
  0x10   : > { %s1343_s7 = scalar_select %p40_p4, %s1220_s20, %s42_s29  }
  0x11   : > { %s67_s9 = sor.u32 %s66_s8, %s38_s30  ;;  %p148_p7 = scmp.eq.s32.totalorder %s66_s8, 0 }
  0x12   : > { %1580 = sst [smem:[#allocation9_spill]] %s1343_s7  ;;  %p68_p8 = scmp.eq.s32.totalorder %s67_s9, 0 }
  0x13   : > { %p1349_p9 = por %p77_p6, %p50_p2  ;;  %s150_s11 = sadd.s32 1, %s1204_s16 }
  0x14   : > { %p160_p10 = scmp.ne.s32.totalorder %s1204_s16, %s1200_s15  ;;  %p161_p11 = scmp.eq.s32.totalorder %s952_s26, 5 }
  0x15   : > { %s1357_s12 = scalar_select %p68_p8, %s1212_s18, %s70_s6  }
  0x16   : > { %s1360_s13 = scalar_select %p148_p7, %s1204_s16, %s150_s11  }
  0x17   : > { %p1362_p12 = por %p161_p11, %p160_p10  ;;  %p955_p13 = scmp.ge.s32.totalorder %s1240_s25, 6 }
  0x19   : > { %183 = sbr.rel (%p955_p13) target bundleno = 62 (0x3e), region = 16 }
  0x20   : > { %186 = sbr.rel (!%p1335_p5) target bundleno = 39 (0x27), region = 20  ;;  %s188_s29 = sand.u32 (%p1335_p5), 1, %s1220_s20  }
  0x21   : > { %s1011_s30 = sshll.u32 (%p1335_p5), %s1232_s23, 3  ;;  %s956_s8 = sshll.u32 (%p1335_p5), %s188_s29, 4 }
  0x22   : > { %s196_s11 = scalar_lea.vmem (%p1335_p5), %s1568_s0, %s1011_s30  ;;  %s190_s26 = scalar_lea.vmem (%p1335_p5), [#allocation3], %s956_s8 }
  0x23   : > { %v226_v0 = vld [vmem:[%s196_s11] sm:$0xff] (%p1335_p5)  ;;  %v228_v1 = vld [vmem:[%s196_s11 + $0x18] sm:$0xff] (%p1335_p5) }
  0x24   : > { %227 = vst [vmem:[%s190_s26] sm:$0xff] (%p1335_p5), %v226_v0  ;;  %229 = vst [vmem:[%s190_s26 + $0x8] sm:$0xff] (%p1335_p5), %v228_v1 }
  0x27 PF: > { %235 = sbr.rel (!%p1349_p9) target bundleno = 62 (0x3e), region = 58  ;;  %s237_s5 = sand.u32 (%p1349_p9), 1, %s1212_s18  }
  0x28   : > { %s961_s28 = sshll.u32 (%p1349_p9), %s1236_s24, 1  ;;  %s959_s27 = sshll.u32 (%p1349_p9), %s237_s5, 8 }
  0x29   : > { %s1012_s29 = sshll.u32 (%p1349_p9), %s1232_s23, 7  ;;  %s1387_s10 = scalar_lea.vmem (%p1349_p9), [#allocation4], %s959_s27 }
  0x2a   : > { %s243_s7 = sadd.s32 (%p1349_p9), %s1012_s29, %s961_s28 }
  0x2b   : > { %s963_s20 = sshll.u32 (%p1349_p9), %s243_s7, 2 }
  0x2c   : > { %s1382_s9 = scalar_lea.vmem (%p1349_p9), %s1569_s1, %s963_s20 }
  0x2d   : > { %v335_v2 = vld [vmem:[%s1382_s9] sm:$0xff] (%p1349_p9)  ;;  %v337_v3 = vld [vmem:[%s1382_s9 + $0x10] sm:$0xff] (%p1349_p9) }
  0x2e   : > { %v339_v4 = vld [vmem:[%s1382_s9 + $0x20] sm:$0xff]  ;;  %336 = vst [vmem:[%s1387_s10] sm:$0xff] %v335_v2  ;;  %338 = vst [vmem:[%s1387_s10 + $0x8] sm:$0xff] %v337_v3  ;;  %v341_v5 = vld [vmem:[%s1382_s9 + $0x30] sm:$0xff] }
  0x2f   : > { %340 = vst [vmem:[%s1387_s10 + $0x10] sm:$0xff] %v339_v4  ;;  %v343_v6 = vld [vmem:[%s1382_s9 + $0x40] sm:$0xff]  ;;  %v345_v7 = vld [vmem:[%s1382_s9 + $0x50] sm:$0xff]  ;;  %342 = vst [vmem:[%s1387_s10 + $0x18] sm:$0xff] %v341_v5 }
  0x30   : > { %344 = vst [vmem:[%s1387_s10 + $0x20] sm:$0xff] %v343_v6  ;;  %346 = vst [vmem:[%s1387_s10 + $0x28] sm:$0xff] %v345_v7  ;;  %v347_v8 = vld [vmem:[%s1382_s9 + $0x60] sm:$0xff]  ;;  %v349_v9 = vld [vmem:[%s1382_s9 + $0x70] sm:$0xff] }
  0x31   : > { %v351_v10 = vld [vmem:[%s1382_s9 + $0x80] sm:$0xff]  ;;  %348 = vst [vmem:[%s1387_s10 + $0x30] sm:$0xff] %v347_v8  ;;  %350 = vst [vmem:[%s1387_s10 + $0x38] sm:$0xff] %v349_v9  ;;  %v353_v11 = vld [vmem:[%s1382_s9 + $0x90] sm:$0xff] }
  0x32   : > { %352 = vst [vmem:[%s1387_s10 + $0x40] sm:$0xff] %v351_v10  ;;  %v355_v12 = vld [vmem:[%s1382_s9 + $0xa0] sm:$0xff]  ;;  %v357_v13 = vld [vmem:[%s1382_s9 + $0xb0] sm:$0xff]  ;;  %354 = vst [vmem:[%s1387_s10 + $0x48] sm:$0xff] %v353_v11 }
  0x33   : > { %356 = vst [vmem:[%s1387_s10 + $0x50] sm:$0xff] %v355_v12  ;;  %358 = vst [vmem:[%s1387_s10 + $0x58] sm:$0xff] %v357_v13  ;;  %v359_v14 = vld [vmem:[%s1382_s9 + $0xc0] sm:$0xff]  ;;  %v361_v15 = vld [vmem:[%s1382_s9 + $0xd0] sm:$0xff] }
  0x34   : > { %v363_v16 = vld [vmem:[%s1382_s9 + $0xe0] sm:$0xff]  ;;  %360 = vst [vmem:[%s1387_s10 + $0x60] sm:$0xff] %v359_v14  ;;  %362 = vst [vmem:[%s1387_s10 + $0x68] sm:$0xff] %v361_v15  ;;  %v365_v17 = vld [vmem:[%s1382_s9 + $0xf0] sm:$0xff] }
  0x35   : > { %364 = vst [vmem:[%s1387_s10 + $0x70] sm:$0xff] %v363_v16  ;;  %v367_v18 = vld [vmem:[%s1382_s9 + $0x100] sm:$0xff]  ;;  %v369_v19 = vld [vmem:[%s1382_s9 + $0x110] sm:$0xff]  ;;  %366 = vst [vmem:[%s1387_s10 + $0x78] sm:$0xff] %v365_v17 }
  0x36   : > { %368 = vst [vmem:[%s1387_s10 + $0x80] sm:$0xff] %v367_v18  ;;  %370 = vst [vmem:[%s1387_s10 + $0x88] sm:$0xff] %v369_v19  ;;  %v371_v20 = vld [vmem:[%s1382_s9 + $0x120] sm:$0xff]  ;;  %v373_v21 = vld [vmem:[%s1382_s9 + $0x130] sm:$0xff] }
  0x37   : > { %v375_v22 = vld [vmem:[%s1382_s9 + $0x140] sm:$0xff]  ;;  %372 = vst [vmem:[%s1387_s10 + $0x90] sm:$0xff] %v371_v20  ;;  %374 = vst [vmem:[%s1387_s10 + $0x98] sm:$0xff] %v373_v21  ;;  %v377_v23 = vld [vmem:[%s1382_s9 + $0x150] sm:$0xff] }
  0x38   : > { %376 = vst [vmem:[%s1387_s10 + $0xa0] sm:$0xff] %v375_v22  ;;  %v379_v24 = vld [vmem:[%s1382_s9 + $0x160] sm:$0xff]  ;;  %v381_v25 = vld [vmem:[%s1382_s9 + $0x170] sm:$0xff]  ;;  %378 = vst [vmem:[%s1387_s10 + $0xa8] sm:$0xff] %v377_v23 }
  0x39   : > { %380 = vst [vmem:[%s1387_s10 + $0xb0] sm:$0xff] %v379_v24  ;;  %382 = vst [vmem:[%s1387_s10 + $0xb8] sm:$0xff] %v381_v25  ;;  %v383_v26 = vld [vmem:[%s1382_s9 + $0x180] sm:$0xff]  ;;  %v385_v27 = vld [vmem:[%s1382_s9 + $0x190] sm:$0xff] }
  0x3a   : > { %v387_v28 = vld [vmem:[%s1382_s9 + $0x1a0] sm:$0xff]  ;;  %384 = vst [vmem:[%s1387_s10 + $0xc0] sm:$0xff] %v383_v26  ;;  %386 = vst [vmem:[%s1387_s10 + $0xc8] sm:$0xff] %v385_v27  ;;  %v389_v29 = vld [vmem:[%s1382_s9 + $0x1b0] sm:$0xff] }
  0x3b   : > { %388 = vst [vmem:[%s1387_s10 + $0xd0] sm:$0xff] %v387_v28  ;;  %v391_v30 = vld [vmem:[%s1382_s9 + $0x1c0] sm:$0xff]  ;;  %v393_v31 = vld [vmem:[%s1382_s9 + $0x1d0] sm:$0xff]  ;;  %390 = vst [vmem:[%s1387_s10 + $0xd8] sm:$0xff] %v389_v29 }
  0x3c   : > { %392 = vst [vmem:[%s1387_s10 + $0xe0] sm:$0xff] %v391_v30  ;;  %394 = vst [vmem:[%s1387_s10 + $0xe8] sm:$0xff] %v393_v31  ;;  %v395_v32 = vld [vmem:[%s1382_s9 + $0x1e0] sm:$0xff]  ;;  %v397_v33 = vld [vmem:[%s1382_s9 + $0x1f0] sm:$0xff] }
  0x3d   : > { %396 = vst [vmem:[%s1387_s10 + $0xf0] sm:$0xff] %v395_v32  ;;  %398 = vst [vmem:[%s1387_s10 + $0xf8] sm:$0xff] %v397_v33 }
  0x3e PF: > { %p964_p0 = scmp.ge.s32.totalorder %s1240_s25, 1  ;;  %p419_p1 = scmp.lt.s32.totalorder %s1240_s25, 7 }
  0x40   : > { %p420_p2 = pnand %p964_p0, %p419_p1 }
  0x41   : > { %s426_s20 = sand.u32 (!%p420_p2), 1, %s1216_s19   ;;  %s433_s27 = sand.u32 (!%p420_p2), 1, %s1208_s17  }
  0x42   : > { %423 = sbr.rel (%p420_p2) target bundleno = 385 (0x181), region = 104  ;;  %s1454_s28 = sshll.u32 (!%p420_p2), %s426_s20, 4 }
  0x43   : > { %s966_s7 = sshll.u32 (!%p420_p2), %s433_s27, 8  ;;  %s466_s8 = sand.u32 (!%p420_p2), 1, %s1200_s15  }
  0x44   : > { %s968_s11 = sshll.u32 (!%p420_p2), %s1228_s22, 1  ;;  %s967_s26 = sshll.u32 (!%p420_p2), %s466_s8, 5 }
  0x45   : > { %p474_p3 = scmp.lt.s32.totalorder (!%p420_p2), %s968_s11, 3  ;;  %s428_s19 = scalar_lea.vmem (!%p420_p2), [#allocation3], %s1454_s28 }
  0x46   : > { %s1469_s10 = scalar_lea.vmem (!%p420_p2), [#allocation4], %s966_s7  ;;  %s1471_s20 = scalar_lea.vmem (!%p420_p2), [#allocation5], %s967_s26 }
  0x47   : > { %p970_p4 = scmp.ne.s32.totalorder (!%p420_p2), %s1224_s21, 0 }
  0x49   : > { %s1602_s11 = smov (!%p474_p3, %s968_s11), 3  ;;  %488 = sbr.rel (%p970_p4) target bundleno = 80 (0x50), region = 116 }
  0x4a   : > { %s476_s6 = scalar_lea.vmem %s1570_s2, %s1602_s11  ;;  %s481_s17 = scalar_lea.vmem %s1571_s3, %s1602_s11  ;;  %v1242_v34 = vmov (!%p970_p4), 0.0  }
  0x4b   : > { %489 = vst [vmem:[#allocation2] sm:$0xff] (!%p970_p4), %v1242_v34  ;;  %490 = vst [vmem:[#allocation2 + $0x8] sm:$0xff] (!%p970_p4), %v1242_v34 }
  0x4c   : > { %491 = vst [vmem:[#allocation2 + $0x10] sm:$0xff] (!%p970_p4), %v1242_v34  ;;  %492 = vst [vmem:[#allocation2 + $0x18] sm:$0xff] (!%p970_p4), %v1242_v34 }
  0x50 PF: > { %v1103_v35 = vld [vmem:[%s1469_s10 + $0x4] ss:$8 sps:$4 sm:$0xff]   ;;  %v1105_v36 = vld [vmem:[%s1469_s10] ss:$8 sps:$4 sm:$0xff]   ;;  %v1106_v37 = vld [vmem:[%s1469_s10 + $0x14] ss:$8 sps:$4 sm:$0xff]  }
  0x51   : > { %701 = vmatprep.subr.bf16.mxu0 %v1103_v35  ;;  %v1108_v38 = vld [vmem:[%s1469_s10 + $0x10] ss:$8 sps:$4 sm:$0xff]   ;;  %v1109_v39 = vld [vmem:[%s1469_s10 + $0x24] ss:$8 sps:$4 sm:$0xff]   ;;  %v1111_v40 = vld [vmem:[%s1469_s10 + $0x20] ss:$8 sps:$4 sm:$0xff]  }
  0x52   : > { %702 = vmatpush1.bf16.msra.mxu0 %v1105_v36  ;;  %v1112_v41 = vld [vmem:[%s1469_s10 + $0x34] ss:$8 sps:$4 sm:$0xff]   ;;  %v1114_v42 = vld [vmem:[%s1469_s10 + $0x30] ss:$8 sps:$4 sm:$0xff]   ;;  %v1115_v43 = vld [vmem:[%s1469_s10 + $0x44] ss:$8 sps:$4 sm:$0xff]  }
  0x53   : > { %703 = vmatprep.subr.bf16.mxu0 %v1106_v37  ;;  %v1117_v44 = vld [vmem:[%s1469_s10 + $0x40] ss:$8 sps:$4 sm:$0xff]   ;;  %v1118_v45 = vld [vmem:[%s1469_s10 + $0x54] ss:$8 sps:$4 sm:$0xff]   ;;  %v1120_v46 = vld [vmem:[%s1469_s10 + $0x50] ss:$8 sps:$4 sm:$0xff]  }
  0x54   : > { %v1121_v47 = vld [vmem:[%s1469_s10 + $0x64] ss:$8 sps:$4 sm:$0xff]   ;;  %v1123_v49 = vld [vmem:[%s1469_s10 + $0x60] ss:$8 sps:$4 sm:$0xff]   ;;  %v1124_v50 = vld [vmem:[%s1469_s10 + $0x74] ss:$8 sps:$4 sm:$0xff]  }
  0x55   : > { %v1153_v48 = vld [vmem:[%s428_s19 + $0x4] ss:$8 sps:$4 sm:$0xff]   ;;  %v1126_v51 = vld [vmem:[%s1469_s10 + $0x70] ss:$8 sps:$4 sm:$0xff]   ;;  %v1129_v53 = vld [vmem:[%s1469_s10 + $0x80] ss:$8 sps:$4 sm:$0xff]  }
  0x56   : > { %704 = vmatpush1.bf16.msra.mxu0 %v1108_v38  ;;  %733 = vmatprep.mubr.bf16.mxu0 %v1153_v48  ;;  %v1127_v52 = vld [vmem:[%s1469_s10 + $0x84] ss:$8 sps:$4 sm:$0xff]   ;;  %v1130_v54 = vld [vmem:[%s1469_s10 + $0x94] ss:$8 sps:$4 sm:$0xff]   ;;  %v1132_v55 = vld [vmem:[%s1469_s10 + $0x90] ss:$8 sps:$4 sm:$0xff]  }
  0x57   : > { %705 = vmatprep.subr.bf16.mxu0 %v1109_v39  ;;  %v1133_v56 = vld [vmem:[%s1469_s10 + $0xa4] ss:$8 sps:$4 sm:$0xff]   ;;  %v1135_v57 = vld [vmem:[%s1469_s10 + $0xa0] ss:$8 sps:$4 sm:$0xff]   ;;  %v1136_v58 = vld [vmem:[%s1469_s10 + $0xb4] ss:$8 sps:$4 sm:$0xff]  }
  0x58   : > { %v1138_v59 = vld [vmem:[%s1469_s10 + $0xb0] ss:$8 sps:$4 sm:$0xff]   ;;  %v1139_v60 = vld [vmem:[%s1469_s10 + $0xc4] ss:$8 sps:$4 sm:$0xff]   ;;  %v1141_v61 = vld [vmem:[%s1469_s10 + $0xc0] ss:$8 sps:$4 sm:$0xff]  }
  0x59   : > { %v1142_v62 = vld [vmem:[%s1469_s10 + $0xd4] ss:$8 sps:$4 sm:$0xff]   ;;  %v1144_v63 = vld [vmem:[%s1469_s10 + $0xd0] ss:$8 sps:$4 sm:$0xff]   ;;  %v1145_v0 = vld [vmem:[%s1469_s10 + $0xe4] ss:$8 sps:$4 sm:$0xff]  }
  0x5a   : > { %706 = vmatpush1.bf16.msra.mxu0 %v1111_v40  ;;  %v1147_v1 = vld [vmem:[%s1469_s10 + $0xe0] ss:$8 sps:$4 sm:$0xff]   ;;  %v1148_v2 = vld [vmem:[%s1469_s10 + $0xf4] ss:$8 sps:$4 sm:$0xff]   ;;  %v1150_v3 = vld [vmem:[%s1469_s10 + $0xf0] ss:$8 sps:$4 sm:$0xff]  }
  0x5b   : > { %707 = vmatprep.subr.bf16.mxu0 %v1112_v41  ;;  %v1151_v4 = vld [vmem:[%s428_s19] ss:$8 sps:$4 sm:$0xff]   ;;  %p1005_p5 = scmp.ne.s32.totalorder %s1224_s21, 2 }
  0x5c   : > { %v493_v5 = vld [vmem:[#allocation2] sm:$0xff]  ;;  %v494_v6 = vld [vmem:[#allocation2 + $0x8] sm:$0xff]  ;;  %v495_v8 = vld [vmem:[#allocation2 + $0x10] sm:$0xff]  ;;  %v762_v17 = vlaneseq (!%p1005_p5) }
  0x5d   : > { %v496_v11 = vld [vmem:[#allocation2 + $0x18] sm:$0xff]  ;;  %v760_v19 = vld [vmem:[%s476_s6] sm:$0x3] (!%p1005_p5) }
  0x5e   : > { %708 = vmatpush1.bf16.msra.mxu0 %v1114_v42  ;;  %v763_v18 = vshrl.u32 (!%p1005_p5), %v762_v17, 7  ;;  %v776_v20 = vld [vmem:[%s481_s17] sm:$0x3] (!%p1005_p5) }
  0x5f   : > { %709 = vmatprep.subr.bf16.mxu0 %v1115_v43 }
  0x60   : > { %v764_v22 = vsub.s32 (!%p1005_p5), 0, %v763_v18  ;;  %v768_v23 = vsub.s32 (!%p1005_p5), 1, %v763_v18 }
  0x62   : > { %710 = vmatpush1.bf16.msra.mxu0 %v1117_v44  ;;  %v765_v27 = vrot.slane (!%p1005_p5), %v760_v19, %v764_v22  ;;  %v781_v28 = vrot.slane (!%p1005_p5), %v776_v20, %v764_v22  ;;  %v769_v29 = vrot.slane (!%p1005_p5), %v760_v19, %v768_v23  ;;  %v785_v30 = vrot.slane (!%p1005_p5), %v776_v20, %v768_v23 }
  0x63   : > { %711 = vmatprep.subr.bf16.mxu0 %v1118_v45 }
  0x66   : > { %712 = vmatpush1.bf16.msra.mxu0 %v1120_v46 }
  0x67   : > { %713 = vmatprep.subr.bf16.mxu0 %v1121_v47 }
  0x6a   : > { %714 = vmatpush1.bf16.msra.mxu0 %v1123_v49 }
  0x6b   : > { %715 = vmatprep.subr.bf16.mxu0 %v1124_v50 }
  0x6e   : > { %716 = vmatpush1.bf16.msra.mxu0 %v1126_v51 }
  0x6f   : > { %717 = vmatprep.subr.bf16.mxu0 %v1127_v52 }
  0x72   : > { %718 = vmatpush1.bf16.msra.mxu0 %v1129_v53 }
  0x73   : > { %719 = vmatprep.subr.bf16.mxu0 %v1130_v54 }
  0x76   : > { %720 = vmatpush1.bf16.msra.mxu0 %v1132_v55 }
  0x77   : > { %721 = vmatprep.subr.bf16.mxu0 %v1133_v56 }
  0x7a   : > { %722 = vmatpush1.bf16.msra.mxu0 %v1135_v57 }
  0x7b   : > { %723 = vmatprep.subr.bf16.mxu0 %v1136_v58 }
  0x7e   : > { %724 = vmatpush1.bf16.msra.mxu0 %v1138_v59 }
  0x7f   : > { %725 = vmatprep.subr.bf16.mxu0 %v1139_v60 }
  0x82   : > { %726 = vmatpush1.bf16.msra.mxu0 %v1141_v61 }
  0x83   : > { %727 = vmatprep.subr.bf16.mxu0 %v1142_v62 }
  0x86   : > { %728 = vmatpush1.bf16.msra.mxu0 %v1144_v63 }
  0x87   : > { %729 = vmatprep.subr.bf16.mxu0 %v1145_v0 }
  0x8a   : > { %730 = vmatpush1.bf16.msra.mxu0 %v1147_v1 }
  0x8b   : > { %731 = vmatprep.subr.bf16.mxu0 %v1148_v2 }
  0x8e   : > { %732 = vmatpush1.bf16.msra.mxu0 %v1150_v3 }
  0x91   : > { %734 = vmatmul.mubr.bf16.vlgmr.msra.gmra.mrb[0].mxu0 %v1151_v4 }
 0x164   : > { %v735_v7 = vpop.f32.mrb[0].mxu0  ;;  %755 = sbr.rel (%p1005_p5) target bundleno = 377 (0x179), region = 120 }
 0x165   : > { %v744_v9 = vadd.f32 %v735_v7, %v493_v5  ;;  %v737_v10 = vpop.f32.mrb[1].mxu0 }
 0x166   : > { %v745_v12 = vadd.f32 %v737_v10, %v494_v6  ;;  %v739_v13 = vpop.f32.mrb[2].mxu0 }
 0x167   : > { %748 = vst [vmem:[#allocation2] sm:$0xff] %v744_v9  ;;  %v746_v14 = vadd.f32 %v739_v13, %v495_v8  ;;  %v741_v15 = vpop.f32.mrb[3].mxu0 }
 0x168   : > { %749 = vst [vmem:[#allocation2 + $0x8] sm:$0xff] %v745_v12  ;;  %v747_v16 = vadd.f32 %v741_v15, %v496_v11 }
 0x169   : > { %750 = vst [vmem:[#allocation2 + $0x10] sm:$0xff] %v746_v14 }
 0x16a   : > { %751 = vst [vmem:[#allocation2 + $0x18] sm:$0xff] %v747_v16 }
 0x16e   : > { %v756_v21 = vld [vmem:[#allocation2] sm:$0xff] }
 0x16f   : > { %v757_v24 = vld [vmem:[#allocation2 + $0x8] sm:$0xff]  ;;  %v772_v31 = vmul.f32 %v765_v27, %v756_v21 }
 0x170   : > { %v758_v25 = vld [vmem:[#allocation2 + $0x10] sm:$0xff]  ;;  %v773_v32 = vmul.f32 %v769_v29, %v757_v24 }
 0x171   : > { %v759_v26 = vld [vmem:[#allocation2 + $0x18] sm:$0xff]  ;;  %v774_v33 = vmul.f32 %v765_v27, %v758_v25  ;;  %v788_v35 = vadd.f32 %v781_v28, %v772_v31 }
 0x172   : > { %v775_v34 = vmul.f32 %v769_v29, %v759_v26  ;;  %v789_v36 = vadd.f32 %v785_v30, %v773_v32 }
 0x173   : > { %v790_v37 = vadd.f32 %v781_v28, %v774_v33  ;;  %v792_v39 = vmax.f32 %v788_v35, 0.0 }
 0x174   : > { %v791_v38 = vadd.f32 %v785_v30, %v775_v34  ;;  %v793_v40 = vmax.f32 %v789_v36, 0.0 }
 0x175   : > { %v794_v41 = vmax.f32 %v790_v37, 0.0  ;;  %796 = vst [vmem:[%s1471_s20] sm:$0xff] %v792_v39 }
 0x176   : > { %v795_v42 = vmax.f32 %v791_v38, 0.0  ;;  %797 = vst [vmem:[%s1471_s20 + $0x8] sm:$0xff] %v793_v40 }
 0x177   : > { %798 = vst [vmem:[%s1471_s20 + $0x10] sm:$0xff] %v794_v41 }
 0x178   : > { %799 = vst [vmem:[%s1471_s20 + $0x18] sm:$0xff] %v795_v42 }
 0x179 PF: > { %806 = sbr.rel (!%p1362_p12) target bundleno = 385 (0x181), region = 124  ;;  %s1013_s21 = sshll.u32 (%p1362_p12), %s1228_s22, 4 }
 0x17a   : > { %s812_s26 = scalar_lea.vmem (%p1362_p12), %s1572_s4, %s1013_s21 }
 0x17c   : > { %v825_v43 = vld [vmem:[%s1471_s20] sm:$0xff] (%p1362_p12) }
 0x17d   : > { %v827_v44 = vld [vmem:[%s1471_s20 + $0x8] sm:$0xff] (%p1362_p12)  ;;  %826 = vst [vmem:[%s812_s26] sm:$0xff] (%p1362_p12), %v825_v43 }
 0x17e   : > { %v829_v45 = vld [vmem:[%s1471_s20 + $0x10] sm:$0xff] (%p1362_p12)  ;;  %828 = vst [vmem:[%s812_s26 + $0x8] sm:$0xff] (%p1362_p12), %v827_v44 }
 0x17f   : > { %v831_v46 = vld [vmem:[%s1471_s20 + $0x18] sm:$0xff] (%p1362_p12)  ;;  %830 = vst [vmem:[%s812_s26 + $0x20] sm:$0xff] (%p1362_p12), %v829_v45 }
 0x180   : > { %832 = vst [vmem:[%s812_s26 + $0x28] sm:$0xff] %v831_v46 }
 0x181 PF: > { %s14_s25 = sadd.s32 1, %s1240_s25   ;;  %s1583_s19 = sld [smem:[#allocation6_spill]] }
 0x182   : > { %p11_p6 = scmp.ge.s32.totalorder %s14_s25, 8   ;;  %s1584_s20 = sld [smem:[#allocation9_spill]] }
 0x183   : > { %s1585_s14 = sld [smem:[#allocation7_spill]]  ;;  %s1586_s5 = sld [smem:[#allocation8_spill]] }
 0x184   : > { %s1587_s15 = smov %s1204_s16  ;;  %s1588_s16 = smov %s1360_s13 }
 0x185   : > { %s1589_s17 = smov %s1212_s18  ;;  %s1590_s18 = smov %s1357_s12 }
 0x186   : > { %s1591_s21 = smov %s1232_s23  ;;  %s1592_s22 = smov %s1236_s24 }
 0x187   :  { %13 = sbr.rel (!%p11_p6) target bundleno = 6 (0x6), region = 192 }
 0x189   : > { %s1593_s23 = smov %s1585_s14  ;;  %s1594_s24 = smov %s1586_s5 }

// kernel: combined_forward.92
= control target key start
LH: loop header
LB: loop body
LE: loop exit
PB: predicated region body
PF: predicated region fallthrough
CT: control target
= control target key end

     0   :  { %s1268_s15 = smov 0   ;;  %s1270_s16 = smov 0   ;;  %s1568_s0 = inlined_call_operand.vmem [shape: bf16[16,1536], index: 0, kind: input, shape index: {}]   ;;  %s1569_s1 = inlined_call_operand.vmem [shape: bf16[1536,512], index: 1, kind: input, shape index: {}]   ;;  %s1570_s2 = inlined_call_operand.vmem [shape: f32[1,512], index: 2, kind: input, shape index: {}]   ;;  %s1571_s3 = inlined_call_operand.vmem [shape: f32[1,512], index: 3, kind: input, shape index: {}]   ;;  %s1572_s4 = inlined_call_operand.vmem [shape: f32[16,512], index: 4, kind: output, shape index: {}]  }
   0x1   :  { %s1272_s17 = smov 0   ;;  %s1274_s18 = smov 0  }
   0x2   :  { %s1276_s19 = smov 0   ;;  %s1278_s20 = smov 0  }
   0x3   :  { %s1280_s21 = smov 0   ;;  %s1282_s22 = smov 0  }
   0x4   :  { %s1284_s23 = smov 0   ;;  %s1286_s24 = smov 0  }
   0x5   :  { %s1288_s25 = smov 0  }
   0x6 LB: > { %1576 = sst [smem:[#allocation6_spill]] %s1220_s20  ;;  %s952_s26 = sadd.s32 4294967295, %s1240_s25   ;;  %s1240_s25 = sphi %s1288_s25, %s14_s25   ;;  %s1236_s24 = sphi %s1286_s24, %s1594_s24   ;;  %s1232_s23 = sphi %s1284_s23, %s1593_s23   ;;  %s1228_s22 = sphi %s1282_s22, %s1592_s22   ;;  %s1224_s21 = sphi %s1280_s21, %s1591_s21   ;;  %s1220_s20 = sphi %s1278_s20, %s1584_s20   ;;  %s1216_s19 = sphi %s1276_s19, %s1583_s19   ;;  %s1212_s18 = sphi %s1274_s18, %s1590_s18   ;;  %s1208_s17 = sphi %s1272_s17, %s1589_s17   ;;  %s1204_s16 = sphi %s1270_s16, %s1588_s16   ;;  %s1200_s15 = sphi %s1268_s15, %s1587_s15  }
   0x7   : > { %s26_s27 = sadd.s32 1, %s1232_s23  ;;  %s29_s28 = sadd.s32 1, %s1236_s24 }
   0x8   : > { %p27_p0 = scmp.ge.s32.totalorder %s26_s27, 6  ;;  %s42_s29 = sadd.s32 1, %s1220_s20 }
   0x9   : > { %p49_p1 = scmp.ne.s32.totalorder %s1220_s20, %s1216_s19  ;;  %p50_p2 = scmp.eq.s32.totalorder %s1240_s25, 0 }
   0xa   : > { %s1596_s27 = smov (%p27_p0, %s26_s27), 0  ;;  %s1598_s28 = smov (!%p27_p0, %s29_s28), %s1236_s24 }
   0xb   : > { %1577 = sst [smem:[#allocation7_spill]] %s1596_s27  ;;  %s38_s30 = ssub.s32 %s1232_s23, %s1596_s27 }
   0xc   : > { %p31_p3 = scmp.ge.s32.totalorder %s1598_s28, 2  ;;  %p40_p4 = scmp.eq.s32.totalorder %s38_s30, 0 }
   0xd   : > { %p1335_p5 = por %p50_p2, %p49_p1  ;;  %s70_s6 = sadd.s32 1, %s1212_s18 }
   0xe   : > { %s1600_s28 = smov (%p31_p3, %s1598_s28), 0  ;;  %p77_p6 = scmp.ne.s32.totalorder %s1212_s18, %s1208_s17 }
   0xf   : > { %1579 = sst [smem:[#allocation8_spill]] %s1600_s28  ;;  %s66_s8 = ssub.s32 %s1236_s24, %s1600_s28 }
  0x10   : > { %s1343_s7 = scalar_select %p40_p4, %s1220_s20, %s42_s29  }
  0x11   : > { %s67_s9 = sor.u32 %s66_s8, %s38_s30  ;;  %p148_p7 = scmp.eq.s32.totalorder %s66_s8, 0 }
  0x12   : > { %1580 = sst [smem:[#allocation9_spill]] %s1343_s7  ;;  %p68_p8 = scmp.eq.s32.totalorder %s67_s9, 0 }
  0x13   : > { %p1349_p9 = por %p77_p6, %p50_p2  ;;  %s150_s11 = sadd.s32 1, %s1204_s16 }
  0x14   : > { %p160_p10 = scmp.ne.s32.totalorder %s1204_s16, %s1200_s15  ;;  %p161_p11 = scmp.eq.s32.totalorder %s952_s26, 11 }
  0x15   : > { %s1357_s12 = scalar_select %p68_p8, %s1212_s18, %s70_s6  }
  0x16   : > { %s1360_s13 = scalar_select %p148_p7, %s1204_s16, %s150_s11  }
  0x17   : > { %p1362_p12 = por %p161_p11, %p160_p10  ;;  %p955_p13 = scmp.ge.s32.totalorder %s1240_s25, 12 }
  0x19   : > { %183 = sbr.rel (%p955_p13) target bundleno = 62 (0x3e), region = 16 }
  0x20   : > { %186 = sbr.rel (!%p1335_p5) target bundleno = 39 (0x27), region = 20  ;;  %s188_s29 = sand.u32 (%p1335_p5), 1, %s1220_s20  }
  0x21   : > { %s1011_s30 = sshll.u32 (%p1335_p5), %s1232_s23, 3  ;;  %s956_s8 = sshll.u32 (%p1335_p5), %s188_s29, 4 }
  0x22   : > { %s196_s11 = scalar_lea.vmem (%p1335_p5), %s1568_s0, %s1011_s30  ;;  %s190_s26 = scalar_lea.vmem (%p1335_p5), [#allocation3], %s956_s8 }
  0x23   : > { %v226_v0 = vld [vmem:[%s196_s11] sm:$0xff] (%p1335_p5)  ;;  %v228_v1 = vld [vmem:[%s196_s11 + $0x30] sm:$0xff] (%p1335_p5) }
  0x24   : > { %227 = vst [vmem:[%s190_s26] sm:$0xff] (%p1335_p5), %v226_v0  ;;  %229 = vst [vmem:[%s190_s26 + $0x8] sm:$0xff] (%p1335_p5), %v228_v1 }
  0x27 PF: > { %235 = sbr.rel (!%p1349_p9) target bundleno = 62 (0x3e), region = 58  ;;  %s237_s5 = sand.u32 (%p1349_p9), 1, %s1212_s18  }
  0x28   : > { %s961_s28 = sshll.u32 (%p1349_p9), %s1236_s24, 1  ;;  %s959_s27 = sshll.u32 (%p1349_p9), %s237_s5, 8 }
  0x29   : > { %s1012_s29 = sshll.u32 (%p1349_p9), %s1232_s23, 7  ;;  %s1387_s10 = scalar_lea.vmem (%p1349_p9), [#allocation4], %s959_s27 }
  0x2a   : > { %s243_s7 = sadd.s32 (%p1349_p9), %s1012_s29, %s961_s28 }
  0x2b   : > { %s963_s20 = sshll.u32 (%p1349_p9), %s243_s7, 2 }
  0x2c   : > { %s1382_s9 = scalar_lea.vmem (%p1349_p9), %s1569_s1, %s963_s20 }
  0x2d   : > { %v335_v2 = vld [vmem:[%s1382_s9] sm:$0xff] (%p1349_p9)  ;;  %v337_v3 = vld [vmem:[%s1382_s9 + $0x10] sm:$0xff] (%p1349_p9) }
  0x2e   : > { %v339_v4 = vld [vmem:[%s1382_s9 + $0x20] sm:$0xff]  ;;  %336 = vst [vmem:[%s1387_s10] sm:$0xff] %v335_v2  ;;  %338 = vst [vmem:[%s1387_s10 + $0x8] sm:$0xff] %v337_v3  ;;  %v341_v5 = vld [vmem:[%s1382_s9 + $0x30] sm:$0xff] }
  0x2f   : > { %340 = vst [vmem:[%s1387_s10 + $0x10] sm:$0xff] %v339_v4  ;;  %v343_v6 = vld [vmem:[%s1382_s9 + $0x40] sm:$0xff]  ;;  %v345_v7 = vld [vmem:[%s1382_s9 + $0x50] sm:$0xff]  ;;  %342 = vst [vmem:[%s1387_s10 + $0x18] sm:$0xff] %v341_v5 }
  0x30   : > { %344 = vst [vmem:[%s1387_s10 + $0x20] sm:$0xff] %v343_v6  ;;  %346 = vst [vmem:[%s1387_s10 + $0x28] sm:$0xff] %v345_v7  ;;  %v347_v8 = vld [vmem:[%s1382_s9 + $0x60] sm:$0xff]  ;;  %v349_v9 = vld [vmem:[%s1382_s9 + $0x70] sm:$0xff] }
  0x31   : > { %v351_v10 = vld [vmem:[%s1382_s9 + $0x80] sm:$0xff]  ;;  %348 = vst [vmem:[%s1387_s10 + $0x30] sm:$0xff] %v347_v8  ;;  %350 = vst [vmem:[%s1387_s10 + $0x38] sm:$0xff] %v349_v9  ;;  %v353_v11 = vld [vmem:[%s1382_s9 + $0x90] sm:$0xff] }
  0x32   : > { %352 = vst [vmem:[%s1387_s10 + $0x40] sm:$0xff] %v351_v10  ;;  %v355_v12 = vld [vmem:[%s1382_s9 + $0xa0] sm:$0xff]  ;;  %v357_v13 = vld [vmem:[%s1382_s9 + $0xb0] sm:$0xff]  ;;  %354 = vst [vmem:[%s1387_s10 + $0x48] sm:$0xff] %v353_v11 }
  0x33   : > { %356 = vst [vmem:[%s1387_s10 + $0x50] sm:$0xff] %v355_v12  ;;  %358 = vst [vmem:[%s1387_s10 + $0x58] sm:$0xff] %v357_v13  ;;  %v359_v14 = vld [vmem:[%s1382_s9 + $0xc0] sm:$0xff]  ;;  %v361_v15 = vld [vmem:[%s1382_s9 + $0xd0] sm:$0xff] }
  0x34   : > { %v363_v16 = vld [vmem:[%s1382_s9 + $0xe0] sm:$0xff]  ;;  %360 = vst [vmem:[%s1387_s10 + $0x60] sm:$0xff] %v359_v14  ;;  %362 = vst [vmem:[%s1387_s10 + $0x68] sm:$0xff] %v361_v15  ;;  %v365_v17 = vld [vmem:[%s1382_s9 + $0xf0] sm:$0xff] }
  0x35   : > { %364 = vst [vmem:[%s1387_s10 + $0x70] sm:$0xff] %v363_v16  ;;  %v367_v18 = vld [vmem:[%s1382_s9 + $0x100] sm:$0xff]  ;;  %v369_v19 = vld [vmem:[%s1382_s9 + $0x110] sm:$0xff]  ;;  %366 = vst [vmem:[%s1387_s10 + $0x78] sm:$0xff] %v365_v17 }
  0x36   : > { %368 = vst [vmem:[%s1387_s10 + $0x80] sm:$0xff] %v367_v18  ;;  %370 = vst [vmem:[%s1387_s10 + $0x88] sm:$0xff] %v369_v19  ;;  %v371_v20 = vld [vmem:[%s1382_s9 + $0x120] sm:$0xff]  ;;  %v373_v21 = vld [vmem:[%s1382_s9 + $0x130] sm:$0xff] }
  0x37   : > { %v375_v22 = vld [vmem:[%s1382_s9 + $0x140] sm:$0xff]  ;;  %372 = vst [vmem:[%s1387_s10 + $0x90] sm:$0xff] %v371_v20  ;;  %374 = vst [vmem:[%s1387_s10 + $0x98] sm:$0xff] %v373_v21  ;;  %v377_v23 = vld [vmem:[%s1382_s9 + $0x150] sm:$0xff] }
  0x38   : > { %376 = vst [vmem:[%s1387_s10 + $0xa0] sm:$0xff] %v375_v22  ;;  %v379_v24 = vld [vmem:[%s1382_s9 + $0x160] sm:$0xff]  ;;  %v381_v25 = vld [vmem:[%s1382_s9 + $0x170] sm:$0xff]  ;;  %378 = vst [vmem:[%s1387_s10 + $0xa8] sm:$0xff] %v377_v23 }
  0x39   : > { %380 = vst [vmem:[%s1387_s10 + $0xb0] sm:$0xff] %v379_v24  ;;  %382 = vst [vmem:[%s1387_s10 + $0xb8] sm:$0xff] %v381_v25  ;;  %v383_v26 = vld [vmem:[%s1382_s9 + $0x180] sm:$0xff]  ;;  %v385_v27 = vld [vmem:[%s1382_s9 + $0x190] sm:$0xff] }
  0x3a   : > { %v387_v28 = vld [vmem:[%s1382_s9 + $0x1a0] sm:$0xff]  ;;  %384 = vst [vmem:[%s1387_s10 + $0xc0] sm:$0xff] %v383_v26  ;;  %386 = vst [vmem:[%s1387_s10 + $0xc8] sm:$0xff] %v385_v27  ;;  %v389_v29 = vld [vmem:[%s1382_s9 + $0x1b0] sm:$0xff] }
  0x3b   : > { %388 = vst [vmem:[%s1387_s10 + $0xd0] sm:$0xff] %v387_v28  ;;  %v391_v30 = vld [vmem:[%s1382_s9 + $0x1c0] sm:$0xff]  ;;  %v393_v31 = vld [vmem:[%s1382_s9 + $0x1d0] sm:$0xff]  ;;  %390 = vst [vmem:[%s1387_s10 + $0xd8] sm:$0xff] %v389_v29 }
  0x3c   : > { %392 = vst [vmem:[%s1387_s10 + $0xe0] sm:$0xff] %v391_v30  ;;  %394 = vst [vmem:[%s1387_s10 + $0xe8] sm:$0xff] %v393_v31  ;;  %v395_v32 = vld [vmem:[%s1382_s9 + $0x1e0] sm:$0xff]  ;;  %v397_v33 = vld [vmem:[%s1382_s9 + $0x1f0] sm:$0xff] }
  0x3d   : > { %396 = vst [vmem:[%s1387_s10 + $0xf0] sm:$0xff] %v395_v32  ;;  %398 = vst [vmem:[%s1387_s10 + $0xf8] sm:$0xff] %v397_v33 }
  0x3e PF: > { %p964_p0 = scmp.ge.s32.totalorder %s1240_s25, 1  ;;  %p419_p1 = scmp.lt.s32.totalorder %s1240_s25, 13 }
  0x40   : > { %p420_p2 = pnand %p964_p0, %p419_p1 }
  0x41   : > { %s426_s20 = sand.u32 (!%p420_p2), 1, %s1216_s19   ;;  %s433_s27 = sand.u32 (!%p420_p2), 1, %s1208_s17  }
  0x42   : > { %423 = sbr.rel (%p420_p2) target bundleno = 385 (0x181), region = 104  ;;  %s1454_s28 = sshll.u32 (!%p420_p2), %s426_s20, 4 }
  0x43   : > { %s966_s7 = sshll.u32 (!%p420_p2), %s433_s27, 8  ;;  %s466_s8 = sand.u32 (!%p420_p2), 1, %s1200_s15  }
  0x44   : > { %s968_s11 = sshll.u32 (!%p420_p2), %s1228_s22, 1  ;;  %s967_s26 = sshll.u32 (!%p420_p2), %s466_s8, 5 }
  0x45   : > { %p474_p3 = scmp.lt.s32.totalorder (!%p420_p2), %s968_s11, 3  ;;  %s428_s19 = scalar_lea.vmem (!%p420_p2), [#allocation3], %s1454_s28 }
  0x46   : > { %s1469_s10 = scalar_lea.vmem (!%p420_p2), [#allocation4], %s966_s7  ;;  %s1471_s20 = scalar_lea.vmem (!%p420_p2), [#allocation5], %s967_s26 }
  0x47   : > { %p970_p4 = scmp.ne.s32.totalorder (!%p420_p2), %s1224_s21, 0 }
  0x49   : > { %s1602_s11 = smov (!%p474_p3, %s968_s11), 3  ;;  %488 = sbr.rel (%p970_p4) target bundleno = 80 (0x50), region = 116 }
  0x4a   : > { %s476_s6 = scalar_lea.vmem %s1570_s2, %s1602_s11  ;;  %s481_s17 = scalar_lea.vmem %s1571_s3, %s1602_s11  ;;  %v1242_v34 = vmov (!%p970_p4), 0.0  }
  0x4b   : > { %489 = vst [vmem:[#allocation2] sm:$0xff] (!%p970_p4), %v1242_v34  ;;  %490 = vst [vmem:[#allocation2 + $0x8] sm:$0xff] (!%p970_p4), %v1242_v34 }
  0x4c   : > { %491 = vst [vmem:[#allocation2 + $0x10] sm:$0xff] (!%p970_p4), %v1242_v34  ;;  %492 = vst [vmem:[#allocation2 + $0x18] sm:$0xff] (!%p970_p4), %v1242_v34 }
  0x50 PF: > { %v1103_v35 = vld [vmem:[%s1469_s10 + $0x4] ss:$8 sps:$4 sm:$0xff]   ;;  %v1105_v36 = vld [vmem:[%s1469_s10] ss:$8 sps:$4 sm:$0xff]   ;;  %v1106_v37 = vld [vmem:[%s1469_s10 + $0x14] ss:$8 sps:$4 sm:$0xff]  }
  0x51   : > { %701 = vmatprep.subr.bf16.mxu0 %v1103_v35  ;;  %v1108_v38 = vld [vmem:[%s1469_s10 + $0x10] ss:$8 sps:$4 sm:$0xff]   ;;  %v1109_v39 = vld [vmem:[%s1469_s10 + $0x24] ss:$8 sps:$4 sm:$0xff]   ;;  %v1111_v40 = vld [vmem:[%s1469_s10 + $0x20] ss:$8 sps:$4 sm:$0xff]  }
  0x52   : > { %702 = vmatpush1.bf16.msra.mxu0 %v1105_v36  ;;  %v1112_v41 = vld [vmem:[%s1469_s10 + $0x34] ss:$8 sps:$4 sm:$0xff]   ;;  %v1114_v42 = vld [vmem:[%s1469_s10 + $0x30] ss:$8 sps:$4 sm:$0xff]   ;;  %v1115_v43 = vld [vmem:[%s1469_s10 + $0x44] ss:$8 sps:$4 sm:$0xff]  }
  0x53   : > { %703 = vmatprep.subr.bf16.mxu0 %v1106_v37  ;;  %v1117_v44 = vld [vmem:[%s1469_s10 + $0x40] ss:$8 sps:$4 sm:$0xff]   ;;  %v1118_v45 = vld [vmem:[%s1469_s10 + $0x54] ss:$8 sps:$4 sm:$0xff]   ;;  %v1120_v46 = vld [vmem:[%s1469_s10 + $0x50] ss:$8 sps:$4 sm:$0xff]  }
  0x54   : > { %v1121_v47 = vld [vmem:[%s1469_s10 + $0x64] ss:$8 sps:$4 sm:$0xff]   ;;  %v1123_v49 = vld [vmem:[%s1469_s10 + $0x60] ss:$8 sps:$4 sm:$0xff]   ;;  %v1124_v50 = vld [vmem:[%s1469_s10 + $0x74] ss:$8 sps:$4 sm:$0xff]  }
  0x55   : > { %v1153_v48 = vld [vmem:[%s428_s19 + $0x4] ss:$8 sps:$4 sm:$0xff]   ;;  %v1126_v51 = vld [vmem:[%s1469_s10 + $0x70] ss:$8 sps:$4 sm:$0xff]   ;;  %v1129_v53 = vld [vmem:[%s1469_s10 + $0x80] ss:$8 sps:$4 sm:$0xff]  }
  0x56   : > { %704 = vmatpush1.bf16.msra.mxu0 %v1108_v38  ;;  %733 = vmatprep.mubr.bf16.mxu0 %v1153_v48  ;;  %v1127_v52 = vld [vmem:[%s1469_s10 + $0x84] ss:$8 sps:$4 sm:$0xff]   ;;  %v1130_v54 = vld [vmem:[%s1469_s10 + $0x94] ss:$8 sps:$4 sm:$0xff]   ;;  %v1132_v55 = vld [vmem:[%s1469_s10 + $0x90] ss:$8 sps:$4 sm:$0xff]  }
  0x57   : > { %705 = vmatprep.subr.bf16.mxu0 %v1109_v39  ;;  %v1133_v56 = vld [vmem:[%s1469_s10 + $0xa4] ss:$8 sps:$4 sm:$0xff]   ;;  %v1135_v57 = vld [vmem:[%s1469_s10 + $0xa0] ss:$8 sps:$4 sm:$0xff]   ;;  %v1136_v58 = vld [vmem:[%s1469_s10 + $0xb4] ss:$8 sps:$4 sm:$0xff]  }
  0x58   : > { %v1138_v59 = vld [vmem:[%s1469_s10 + $0xb0] ss:$8 sps:$4 sm:$0xff]   ;;  %v1139_v60 = vld [vmem:[%s1469_s10 + $0xc4] ss:$8 sps:$4 sm:$0xff]   ;;  %v1141_v61 = vld [vmem:[%s1469_s10 + $0xc0] ss:$8 sps:$4 sm:$0xff]  }
  0x59   : > { %v1142_v62 = vld [vmem:[%s1469_s10 + $0xd4] ss:$8 sps:$4 sm:$0xff]   ;;  %v1144_v63 = vld [vmem:[%s1469_s10 + $0xd0] ss:$8 sps:$4 sm:$0xff]   ;;  %v1145_v0 = vld [vmem:[%s1469_s10 + $0xe4] ss:$8 sps:$4 sm:$0xff]  }
  0x5a   : > { %706 = vmatpush1.bf16.msra.mxu0 %v1111_v40  ;;  %v1147_v1 = vld [vmem:[%s1469_s10 + $0xe0] ss:$8 sps:$4 sm:$0xff]   ;;  %v1148_v2 = vld [vmem:[%s1469_s10 + $0xf4] ss:$8 sps:$4 sm:$0xff]   ;;  %v1150_v3 = vld [vmem:[%s1469_s10 + $0xf0] ss:$8 sps:$4 sm:$0xff]  }
  0x5b   : > { %707 = vmatprep.subr.bf16.mxu0 %v1112_v41  ;;  %v1151_v4 = vld [vmem:[%s428_s19] ss:$8 sps:$4 sm:$0xff]   ;;  %p1005_p5 = scmp.ne.s32.totalorder %s1224_s21, 5 }
  0x5c   : > { %v493_v5 = vld [vmem:[#allocation2] sm:$0xff]  ;;  %v494_v6 = vld [vmem:[#allocation2 + $0x8] sm:$0xff]  ;;  %v495_v8 = vld [vmem:[#allocation2 + $0x10] sm:$0xff]  ;;  %v762_v17 = vlaneseq (!%p1005_p5) }
  0x5d   : > { %v496_v11 = vld [vmem:[#allocation2 + $0x18] sm:$0xff]  ;;  %v760_v19 = vld [vmem:[%s476_s6] sm:$0x3] (!%p1005_p5) }
  0x5e   : > { %708 = vmatpush1.bf16.msra.mxu0 %v1114_v42  ;;  %v763_v18 = vshrl.u32 (!%p1005_p5), %v762_v17, 7  ;;  %v776_v20 = vld [vmem:[%s481_s17] sm:$0x3] (!%p1005_p5) }
  0x5f   : > { %709 = vmatprep.subr.bf16.mxu0 %v1115_v43 }
  0x60   : > { %v764_v22 = vsub.s32 (!%p1005_p5), 0, %v763_v18  ;;  %v768_v23 = vsub.s32 (!%p1005_p5), 1, %v763_v18 }
  0x62   : > { %710 = vmatpush1.bf16.msra.mxu0 %v1117_v44  ;;  %v765_v27 = vrot.slane (!%p1005_p5), %v760_v19, %v764_v22  ;;  %v781_v28 = vrot.slane (!%p1005_p5), %v776_v20, %v764_v22  ;;  %v769_v29 = vrot.slane (!%p1005_p5), %v760_v19, %v768_v23  ;;  %v785_v30 = vrot.slane (!%p1005_p5), %v776_v20, %v768_v23 }
  0x63   : > { %711 = vmatprep.subr.bf16.mxu0 %v1118_v45 }
  0x66   : > { %712 = vmatpush1.bf16.msra.mxu0 %v1120_v46 }
  0x67   : > { %713 = vmatprep.subr.bf16.mxu0 %v1121_v47 }
  0x6a   : > { %714 = vmatpush1.bf16.msra.mxu0 %v1123_v49 }
  0x6b   : > { %715 = vmatprep.subr.bf16.mxu0 %v1124_v50 }
  0x6e   : > { %716 = vmatpush1.bf16.msra.mxu0 %v1126_v51 }
  0x6f   : > { %717 = vmatprep.subr.bf16.mxu0 %v1127_v52 }
  0x72   : > { %718 = vmatpush1.bf16.msra.mxu0 %v1129_v53 }
  0x73   : > { %719 = vmatprep.subr.bf16.mxu0 %v1130_v54 }
  0x76   : > { %720 = vmatpush1.bf16.msra.mxu0 %v1132_v55 }
  0x77   : > { %721 = vmatprep.subr.bf16.mxu0 %v1133_v56 }
  0x7a   : > { %722 = vmatpush1.bf16.msra.mxu0 %v1135_v57 }
  0x7b   : > { %723 = vmatprep.subr.bf16.mxu0 %v1136_v58 }
  0x7e   : > { %724 = vmatpush1.bf16.msra.mxu0 %v1138_v59 }
  0x7f   : > { %725 = vmatprep.subr.bf16.mxu0 %v1139_v60 }
  0x82   : > { %726 = vmatpush1.bf16.msra.mxu0 %v1141_v61 }
  0x83   : > { %727 = vmatprep.subr.bf16.mxu0 %v1142_v62 }
  0x86   : > { %728 = vmatpush1.bf16.msra.mxu0 %v1144_v63 }
  0x87   : > { %729 = vmatprep.subr.bf16.mxu0 %v1145_v0 }
  0x8a   : > { %730 = vmatpush1.bf16.msra.mxu0 %v1147_v1 }
  0x8b   : > { %731 = vmatprep.subr.bf16.mxu0 %v1148_v2 }
  0x8e   : > { %732 = vmatpush1.bf16.msra.mxu0 %v1150_v3 }
  0x91   : > { %734 = vmatmul.mubr.bf16.vlgmr.msra.gmra.mrb[0].mxu0 %v1151_v4 }
 0x164   : > { %v735_v7 = vpop.f32.mrb[0].mxu0  ;;  %755 = sbr.rel (%p1005_p5) target bundleno = 377 (0x179), region = 120 }
 0x165   : > { %v744_v9 = vadd.f32 %v735_v7, %v493_v5  ;;  %v737_v10 = vpop.f32.mrb[1].mxu0 }
 0x166   : > { %v745_v12 = vadd.f32 %v737_v10, %v494_v6  ;;  %v739_v13 = vpop.f32.mrb[2].mxu0 }
 0x167   : > { %748 = vst [vmem:[#allocation2] sm:$0xff] %v744_v9  ;;  %v746_v14 = vadd.f32 %v739_v13, %v495_v8  ;;  %v741_v15 = vpop.f32.mrb[3].mxu0 }
 0x168   : > { %749 = vst [vmem:[#allocation2 + $0x8] sm:$0xff] %v745_v12  ;;  %v747_v16 = vadd.f32 %v741_v15, %v496_v11 }
 0x169   : > { %750 = vst [vmem:[#allocation2 + $0x10] sm:$0xff] %v746_v14 }
 0x16a   : > { %751 = vst [vmem:[#allocation2 + $0x18] sm:$0xff] %v747_v16 }
 0x16e   : > { %v756_v21 = vld [vmem:[#allocation2] sm:$0xff] }
 0x16f   : > { %v757_v24 = vld [vmem:[#allocation2 + $0x8] sm:$0xff]  ;;  %v772_v31 = vmul.f32 %v765_v27, %v756_v21 }
 0x170   : > { %v758_v25 = vld [vmem:[#allocation2 + $0x10] sm:$0xff]  ;;  %v773_v32 = vmul.f32 %v769_v29, %v757_v24 }
 0x171   : > { %v759_v26 = vld [vmem:[#allocation2 + $0x18] sm:$0xff]  ;;  %v774_v33 = vmul.f32 %v765_v27, %v758_v25  ;;  %v788_v35 = vadd.f32 %v781_v28, %v772_v31 }
 0x172   : > { %v775_v34 = vmul.f32 %v769_v29, %v759_v26  ;;  %v789_v36 = vadd.f32 %v785_v30, %v773_v32 }
 0x173   : > { %v790_v37 = vadd.f32 %v781_v28, %v774_v33  ;;  %v792_v39 = vmax.f32 %v788_v35, 0.0 }
 0x174   : > { %v791_v38 = vadd.f32 %v785_v30, %v775_v34  ;;  %v793_v40 = vmax.f32 %v789_v36, 0.0 }
 0x175   : > { %v794_v41 = vmax.f32 %v790_v37, 0.0  ;;  %796 = vst [vmem:[%s1471_s20] sm:$0xff] %v792_v39 }
 0x176   : > { %v795_v42 = vmax.f32 %v791_v38, 0.0  ;;  %797 = vst [vmem:[%s1471_s20 + $0x8] sm:$0xff] %v793_v40 }
 0x177   : > { %798 = vst [vmem:[%s1471_s20 + $0x10] sm:$0xff] %v794_v41 }
 0x178   : > { %799 = vst [vmem:[%s1471_s20 + $0x18] sm:$0xff] %v795_v42 }
 0x179 PF: > { %806 = sbr.rel (!%p1362_p12) target bundleno = 385 (0x181), region = 124  ;;  %s1013_s21 = sshll.u32 (%p1362_p12), %s1228_s22, 4 }
 0x17a   : > { %s812_s26 = scalar_lea.vmem (%p1362_p12), %s1572_s4, %s1013_s21 }
 0x17c   : > { %v825_v43 = vld [vmem:[%s1471_s20] sm:$0xff] (%p1362_p12) }
 0x17d   : > { %v827_v44 = vld [vmem:[%s1471_s20 + $0x8] sm:$0xff] (%p1362_p12)  ;;  %826 = vst [vmem:[%s812_s26] sm:$0xff] (%p1362_p12), %v825_v43 }
 0x17e   : > { %v829_v45 = vld [vmem:[%s1471_s20 + $0x10] sm:$0xff] (%p1362_p12)  ;;  %828 = vst [vmem:[%s812_s26 + $0x8] sm:$0xff] (%p1362_p12), %v827_v44 }
 0x17f   : > { %v831_v46 = vld [vmem:[%s1471_s20 + $0x18] sm:$0xff] (%p1362_p12)  ;;  %830 = vst [vmem:[%s812_s26 + $0x20] sm:$0xff] (%p1362_p12), %v829_v45 }
 0x180   : > { %832 = vst [vmem:[%s812_s26 + $0x28] sm:$0xff] %v831_v46 }
 0x181 PF: > { %s14_s25 = sadd.s32 1, %s1240_s25   ;;  %s1583_s19 = sld [smem:[#allocation6_spill]] }
 0x182   : > { %p11_p6 = scmp.ge.s32.totalorder %s14_s25, 14   ;;  %s1584_s20 = sld [smem:[#allocation9_spill]] }
 0x183   : > { %s1585_s14 = sld [smem:[#allocation7_spill]]  ;;  %s1586_s5 = sld [smem:[#allocation8_spill]] }
 0x184   : > { %s1587_s15 = smov %s1204_s16  ;;  %s1588_s16 = smov %s1360_s13 }
 0x185   : > { %s1589_s17 = smov %s1212_s18  ;;  %s1590_s18 = smov %s1357_s12 }
 0x186   : > { %s1591_s21 = smov %s1232_s23  ;;  %s1592_s22 = smov %s1236_s24 }
 0x187   :  { %13 = sbr.rel (!%p11_p6) target bundleno = 6 (0x6), region = 192 }
 0x189   : > { %s1593_s23 = smov %s1585_s14  ;;  %s1594_s24 = smov %s1586_s5 }

// kernel: combined_forward.89
= control target key start
LH: loop header
LB: loop body
LE: loop exit
PB: predicated region body
PF: predicated region fallthrough
CT: control target
= control target key end

     0   :  { %s1129_s15 = smov 0   ;;  %s1131_s16 = smov 0   ;;  %s1320_s0 = inlined_call_operand.vmem [shape: bf16[16,256], index: 0, kind: input, shape index: {}]   ;;  %s1321_s1 = inlined_call_operand.vmem [shape: bf16[256,512], index: 1, kind: input, shape index: {}]   ;;  %s1322_s2 = inlined_call_operand.vmem [shape: f32[1,512], index: 2, kind: input, shape index: {}]   ;;  %s1323_s3 = inlined_call_operand.vmem [shape: f32[1,512], index: 3, kind: input, shape index: {}]   ;;  %s1324_s4 = inlined_call_operand.vmem [shape: f32[16,512], index: 4, kind: output, shape index: {}]  }
   0x1   :  { %s1133_s17 = smov 0   ;;  %s1135_s18 = smov 0  }
   0x2   :  { %s1137_s19 = smov 0  }
   0x3 LB: > { %s29_s20 = sadd.s32 1, %s1098_s18  ;;  %s919_s21 = sadd.s32 4294967295, %s1102_s19   ;;  %s1102_s19 = sphi %s1137_s19, %s14_s19   ;;  %s1098_s18 = sphi %s1135_s18, %s1329_s18   ;;  %s1094_s17 = sphi %s1133_s17, %s1328_s17   ;;  %s1090_s16 = sphi %s1131_s16, %s1327_s16   ;;  %s1086_s15 = sphi %s1129_s15, %s1326_s15  }
   0x4   : > { %p31_p0 = scmp.ge.s32.totalorder %s29_s20, 2  ;;  %p77_p1 = scmp.ne.s32.totalorder %s1090_s16, %s1086_s15 }
   0x5   : > { %p78_p2 = scmp.eq.s32.totalorder %s1102_s19, 0  ;;  %p161_p4 = scmp.eq.s32.totalorder %s919_s21, 1 }
   0x6   : > { %s1331_s20 = smov (%p31_p0, %s29_s20), 0  ;;  %s70_s23 = sadd.s32 1, %s1090_s16 }
   0x7   : > { %p79_p3 = por %p78_p2, %p77_p1  ;;  %s66_s22 = ssub.s32 %s1098_s18, %s1331_s20 }
   0x8   : > { %p68_p5 = scmp.eq.s32.totalorder %s66_s22, 0  ;;  %p1164_p6 = por %p161_p4, %p77_p1 }
   0x9   : > { %p923_p7 = scmp.ge.s32.totalorder %s1102_s19, 2 }
   0xa   : > { %s1169_s25 = scalar_select %p68_p5, %s1090_s16, %s70_s23  }
   0xb   : > { %198 = sbr.rel (%p923_p7) target bundleno = 38 (0x26), region = 20 }
  0x12   : > { %201 = sbr.rel (!%p79_p3) target bundleno = 38 (0x26), region = 24  ;;  %s203_s26 = sand.u32 (%p79_p3), 1, %s1090_s16  }
  0x13   : > { %s971_s27 = sshll.u32 (%p79_p3), %s1098_s18, 3  ;;  %s924_s28 = sshll.u32 (%p79_p3), %s203_s26, 8 }
  0x14   : > { %s1177_s5 = scalar_lea.vmem (%p79_p3), %s1321_s1, %s971_s27  ;;  %s1182_s6 = scalar_lea.vmem (%p79_p3), [#allocation3], %s924_s28 }
  0x15   : > { %v301_v0 = vld [vmem:[%s1177_s5] sm:$0xff] (%p79_p3)  ;;  %v303_v1 = vld [vmem:[%s1177_s5 + $0x10] sm:$0xff] (%p79_p3) }
  0x16   : > { %v305_v2 = vld [vmem:[%s1177_s5 + $0x20] sm:$0xff] (%p79_p3)  ;;  %302 = vst [vmem:[%s1182_s6] sm:$0xff] (%p79_p3), %v301_v0  ;;  %304 = vst [vmem:[%s1182_s6 + $0x8] sm:$0xff] (%p79_p3), %v303_v1  ;;  %v307_v3 = vld [vmem:[%s1177_s5 + $0x30] sm:$0xff] (%p79_p3) }
  0x17   : > { %306 = vst [vmem:[%s1182_s6 + $0x10] sm:$0xff] (%p79_p3), %v305_v2  ;;  %v309_v4 = vld [vmem:[%s1177_s5 + $0x40] sm:$0xff] (%p79_p3)  ;;  %v311_v5 = vld [vmem:[%s1177_s5 + $0x50] sm:$0xff] (%p79_p3)  ;;  %308 = vst [vmem:[%s1182_s6 + $0x18] sm:$0xff] (%p79_p3), %v307_v3 }
  0x18   : > { %310 = vst [vmem:[%s1182_s6 + $0x20] sm:$0xff] (%p79_p3), %v309_v4  ;;  %312 = vst [vmem:[%s1182_s6 + $0x28] sm:$0xff] (%p79_p3), %v311_v5  ;;  %v313_v6 = vld [vmem:[%s1177_s5 + $0x60] sm:$0xff] (%p79_p3)  ;;  %v315_v7 = vld [vmem:[%s1177_s5 + $0x70] sm:$0xff] (%p79_p3) }
  0x19   : > { %v317_v8 = vld [vmem:[%s1177_s5 + $0x80] sm:$0xff]  ;;  %314 = vst [vmem:[%s1182_s6 + $0x30] sm:$0xff] %v313_v6  ;;  %316 = vst [vmem:[%s1182_s6 + $0x38] sm:$0xff] %v315_v7  ;;  %v319_v9 = vld [vmem:[%s1177_s5 + $0x90] sm:$0xff] }
  0x1a   : > { %318 = vst [vmem:[%s1182_s6 + $0x40] sm:$0xff] %v317_v8  ;;  %v321_v10 = vld [vmem:[%s1177_s5 + $0xa0] sm:$0xff]  ;;  %v323_v11 = vld [vmem:[%s1177_s5 + $0xb0] sm:$0xff]  ;;  %320 = vst [vmem:[%s1182_s6 + $0x48] sm:$0xff] %v319_v9 }
  0x1b   : > { %322 = vst [vmem:[%s1182_s6 + $0x50] sm:$0xff] %v321_v10  ;;  %324 = vst [vmem:[%s1182_s6 + $0x58] sm:$0xff] %v323_v11  ;;  %v325_v12 = vld [vmem:[%s1177_s5 + $0xc0] sm:$0xff]  ;;  %v327_v13 = vld [vmem:[%s1177_s5 + $0xd0] sm:$0xff] }
  0x1c   : > { %v329_v14 = vld [vmem:[%s1177_s5 + $0xe0] sm:$0xff]  ;;  %326 = vst [vmem:[%s1182_s6 + $0x60] sm:$0xff] %v325_v12  ;;  %328 = vst [vmem:[%s1182_s6 + $0x68] sm:$0xff] %v327_v13  ;;  %v331_v15 = vld [vmem:[%s1177_s5 + $0xf0] sm:$0xff] }
  0x1d   : > { %330 = vst [vmem:[%s1182_s6 + $0x70] sm:$0xff] %v329_v14  ;;  %v333_v16 = vld [vmem:[%s1177_s5 + $0x100] sm:$0xff]  ;;  %v335_v17 = vld [vmem:[%s1177_s5 + $0x110] sm:$0xff]  ;;  %332 = vst [vmem:[%s1182_s6 + $0x78] sm:$0xff] %v331_v15 }
  0x1e   : > { %334 = vst [vmem:[%s1182_s6 + $0x80] sm:$0xff] %v333_v16  ;;  %336 = vst [vmem:[%s1182_s6 + $0x88] sm:$0xff] %v335_v17  ;;  %v337_v18 = vld [vmem:[%s1177_s5 + $0x120] sm:$0xff]  ;;  %v339_v19 = vld [vmem:[%s1177_s5 + $0x130] sm:$0xff] }
  0x1f   : > { %v341_v20 = vld [vmem:[%s1177_s5 + $0x140] sm:$0xff]  ;;  %338 = vst [vmem:[%s1182_s6 + $0x90] sm:$0xff] %v337_v18  ;;  %340 = vst [vmem:[%s1182_s6 + $0x98] sm:$0xff] %v339_v19  ;;  %v343_v21 = vld [vmem:[%s1177_s5 + $0x150] sm:$0xff] }
  0x20   : > { %342 = vst [vmem:[%s1182_s6 + $0xa0] sm:$0xff] %v341_v20  ;;  %v345_v22 = vld [vmem:[%s1177_s5 + $0x160] sm:$0xff]  ;;  %v347_v23 = vld [vmem:[%s1177_s5 + $0x170] sm:$0xff]  ;;  %344 = vst [vmem:[%s1182_s6 + $0xa8] sm:$0xff] %v343_v21 }
  0x21   : > { %346 = vst [vmem:[%s1182_s6 + $0xb0] sm:$0xff] %v345_v22  ;;  %348 = vst [vmem:[%s1182_s6 + $0xb8] sm:$0xff] %v347_v23  ;;  %v349_v24 = vld [vmem:[%s1177_s5 + $0x180] sm:$0xff]  ;;  %v351_v25 = vld [vmem:[%s1177_s5 + $0x190] sm:$0xff] }
  0x22   : > { %v353_v26 = vld [vmem:[%s1177_s5 + $0x1a0] sm:$0xff]  ;;  %350 = vst [vmem:[%s1182_s6 + $0xc0] sm:$0xff] %v349_v24  ;;  %352 = vst [vmem:[%s1182_s6 + $0xc8] sm:$0xff] %v351_v25  ;;  %v355_v27 = vld [vmem:[%s1177_s5 + $0x1b0] sm:$0xff] }
  0x23   : > { %354 = vst [vmem:[%s1182_s6 + $0xd0] sm:$0xff] %v353_v26  ;;  %v357_v28 = vld [vmem:[%s1177_s5 + $0x1c0] sm:$0xff]  ;;  %v359_v29 = vld [vmem:[%s1177_s5 + $0x1d0] sm:$0xff]  ;;  %356 = vst [vmem:[%s1182_s6 + $0xd8] sm:$0xff] %v355_v27 }
  0x24   : > { %358 = vst [vmem:[%s1182_s6 + $0xe0] sm:$0xff] %v357_v28  ;;  %360 = vst [vmem:[%s1182_s6 + $0xe8] sm:$0xff] %v359_v29  ;;  %v361_v30 = vld [vmem:[%s1177_s5 + $0x1e0] sm:$0xff]  ;;  %v363_v31 = vld [vmem:[%s1177_s5 + $0x1f0] sm:$0xff] }
  0x25   : > { %362 = vst [vmem:[%s1182_s6 + $0xf0] sm:$0xff] %v361_v30  ;;  %364 = vst [vmem:[%s1182_s6 + $0xf8] sm:$0xff] %v363_v31 }
  0x26 PF: > { %p927_p8 = scmp.ge.s32.totalorder %s1102_s19, 1  ;;  %p385_p9 = scmp.lt.s32.totalorder %s1102_s19, 3 }
  0x28   : > { %p386_p10 = pnand %p927_p8, %p385_p9 }
  0x29   : > { %s392_s7 = sand.u32 (!%p386_p10), 1, %s1086_s15   ;;  %v1063_v32 = vld [vmem:[%s1320_s0 + $0x4] ss:$8 sps:$4 sm:$0xff] (!%p386_p10)   ;;  %v1061_v1 = vld [vmem:[%s1320_s0] ss:$8 sps:$4 sm:$0xff] (!%p386_p10)   ;;  %s930_s14 = sshll.u32 (!%p386_p10), %s1094_s17, 1  ;;  %v736_v2 = vlaneseq (!%p386_p10) }
  0x2a   : > { %389 = sbr.rel (%p386_p10) target bundleno = 337 (0x151), region = 70  ;;  %s928_s8 = sshll.u32 (!%p386_p10), %s392_s7, 8  ;;  %708 = vmatprep.mubr.bf16.mxu0 (!%p386_p10), %v1063_v32 }
  0x2b   : > { %s1253_s11 = scalar_lea.vmem (!%p386_p10), [#allocation3], %s928_s8  ;;  %p449_p11 = scmp.lt.s32.totalorder (!%p386_p10), %s930_s14, 3  ;;  %v737_v3 = vshrl.u32 (!%p386_p10), %v736_v2, 7 }
  0x2c   : > { %v1013_v33 = vld [vmem:[%s1253_s11 + $0x4] ss:$8 sps:$4 sm:$0xff] (!%p386_p10)   ;;  %v1015_v34 = vld [vmem:[%s1253_s11] ss:$8 sps:$4 sm:$0xff] (!%p386_p10)   ;;  %v1016_v35 = vld [vmem:[%s1253_s11 + $0x14] ss:$8 sps:$4 sm:$0xff] (!%p386_p10)  }
  0x2d   : > { %676 = vmatprep.subr.bf16.mxu0 (!%p386_p10), %v1013_v33  ;;  %v1018_v36 = vld [vmem:[%s1253_s11 + $0x10] ss:$8 sps:$4 sm:$0xff] (!%p386_p10)   ;;  %v1019_v37 = vld [vmem:[%s1253_s11 + $0x24] ss:$8 sps:$4 sm:$0xff] (!%p386_p10)   ;;  %v1021_v38 = vld [vmem:[%s1253_s11 + $0x20] ss:$8 sps:$4 sm:$0xff] (!%p386_p10)  }
  0x2e   : > { %677 = vmatpush1.bf16.msra.mxu0 (!%p386_p10), %v1015_v34  ;;  %v1022_v39 = vld [vmem:[%s1253_s11 + $0x34] ss:$8 sps:$4 sm:$0xff] (!%p386_p10)   ;;  %v1024_v40 = vld [vmem:[%s1253_s11 + $0x30] ss:$8 sps:$4 sm:$0xff] (!%p386_p10)   ;;  %v1025_v41 = vld [vmem:[%s1253_s11 + $0x44] ss:$8 sps:$4 sm:$0xff] (!%p386_p10)  }
  0x2f   : > { %678 = vmatprep.subr.bf16.mxu0 (!%p386_p10), %v1016_v35  ;;  %v1027_v42 = vld [vmem:[%s1253_s11 + $0x40] ss:$8 sps:$4 sm:$0xff] (!%p386_p10)   ;;  %v1028_v43 = vld [vmem:[%s1253_s11 + $0x54] ss:$8 sps:$4 sm:$0xff] (!%p386_p10)   ;;  %v1030_v44 = vld [vmem:[%s1253_s11 + $0x50] ss:$8 sps:$4 sm:$0xff] (!%p386_p10)  }
  0x30   : > { %v1031_v45 = vld [vmem:[%s1253_s11 + $0x64] ss:$8 sps:$4 sm:$0xff] (!%p386_p10)   ;;  %v1033_v46 = vld [vmem:[%s1253_s11 + $0x60] ss:$8 sps:$4 sm:$0xff] (!%p386_p10)   ;;  %v1034_v47 = vld [vmem:[%s1253_s11 + $0x74] ss:$8 sps:$4 sm:$0xff] (!%p386_p10)  }
  0x31   : > { %v1036_v48 = vld [vmem:[%s1253_s11 + $0x70] ss:$8 sps:$4 sm:$0xff]   ;;  %v1037_v49 = vld [vmem:[%s1253_s11 + $0x84] ss:$8 sps:$4 sm:$0xff]   ;;  %v1039_v50 = vld [vmem:[%s1253_s11 + $0x80] ss:$8 sps:$4 sm:$0xff]  }
  0x32   : > { %679 = vmatpush1.bf16.msra.mxu0 %v1018_v36  ;;  %v1040_v51 = vld [vmem:[%s1253_s11 + $0x94] ss:$8 sps:$4 sm:$0xff]   ;;  %v1042_v52 = vld [vmem:[%s1253_s11 + $0x90] ss:$8 sps:$4 sm:$0xff]   ;;  %v1043_v53 = vld [vmem:[%s1253_s11 + $0xa4] ss:$8 sps:$4 sm:$0xff]  }
  0x33   : > { %680 = vmatprep.subr.bf16.mxu0 %v1019_v37  ;;  %v1045_v54 = vld [vmem:[%s1253_s11 + $0xa0] ss:$8 sps:$4 sm:$0xff]   ;;  %v1046_v55 = vld [vmem:[%s1253_s11 + $0xb4] ss:$8 sps:$4 sm:$0xff]   ;;  %v1048_v56 = vld [vmem:[%s1253_s11 + $0xb0] ss:$8 sps:$4 sm:$0xff]  }
  0x34   : > { %v1049_v57 = vld [vmem:[%s1253_s11 + $0xc4] ss:$8 sps:$4 sm:$0xff]   ;;  %v1051_v58 = vld [vmem:[%s1253_s11 + $0xc0] ss:$8 sps:$4 sm:$0xff]   ;;  %v1052_v59 = vld [vmem:[%s1253_s11 + $0xd4] ss:$8 sps:$4 sm:$0xff]  }
  0x35   : > { %v1054_v60 = vld [vmem:[%s1253_s11 + $0xd0] ss:$8 sps:$4 sm:$0xff]   ;;  %v1055_v61 = vld [vmem:[%s1253_s11 + $0xe4] ss:$8 sps:$4 sm:$0xff]   ;;  %v1057_v62 = vld [vmem:[%s1253_s11 + $0xe0] ss:$8 sps:$4 sm:$0xff]  }
  0x36   : > { %681 = vmatpush1.bf16.msra.mxu0 %v1021_v38  ;;  %v1058_v63 = vld [vmem:[%s1253_s11 + $0xf4] ss:$8 sps:$4 sm:$0xff]   ;;  %v1060_v0 = vld [vmem:[%s1253_s11 + $0xf0] ss:$8 sps:$4 sm:$0xff]   ;;  %s1333_s14 = smov (!%p449_p11, %s930_s14), 3  ;;  %v738_v4 = vsub.s32 0, %v737_v3 }
  0x37   : > { %682 = vmatprep.subr.bf16.mxu0 %v1022_v39  ;;  %s451_s23 = scalar_lea.vmem %s1322_s2, %s1333_s14  ;;  %s456_s28 = scalar_lea.vmem %s1323_s3, %s1333_s14  ;;  %v742_v6 = vsub.s32 1, %v737_v3 }
  0x38   : > { %v734_v5 = vld [vmem:[%s451_s23] sm:$0x3]  ;;  %s929_s29 = sshll.u32 %s392_s7, 5  ;;  %s972_s15 = sshll.u32 (%p1164_p6), %s1094_s17, 4 }
  0x39   : > { %v750_v7 = vld [vmem:[%s456_s28] sm:$0x3]  ;;  %v739_v8 = vrot.slane %v734_v5, %v738_v4  ;;  %v743_v9 = vrot.slane %v734_v5, %v742_v6  ;;  %s433_s30 = scalar_lea.vmem [#allocation4], %s929_s29  ;;  %s782_s7 = scalar_lea.vmem (%p1164_p6), %s1324_s4, %s972_s15 }
  0x3a   : > { %683 = vmatpush1.bf16.msra.mxu0 %v1024_v40  ;;  %v755_v10 = vrot.slane %v750_v7, %v738_v4  ;;  %v759_v12 = vrot.slane %v750_v7, %v742_v6 }
  0x3b   : > { %684 = vmatprep.subr.bf16.mxu0 %v1025_v41 }
  0x3e   : > { %685 = vmatpush1.bf16.msra.mxu0 %v1027_v42 }
  0x3f   : > { %686 = vmatprep.subr.bf16.mxu0 %v1028_v43 }
  0x42   : > { %687 = vmatpush1.bf16.msra.mxu0 %v1030_v44 }
  0x43   : > { %688 = vmatprep.subr.bf16.mxu0 %v1031_v45 }
  0x46   : > { %689 = vmatpush1.bf16.msra.mxu0 %v1033_v46 }
  0x47   : > { %690 = vmatprep.subr.bf16.mxu0 %v1034_v47 }
  0x4a   : > { %691 = vmatpush1.bf16.msra.mxu0 %v1036_v48 }
  0x4b   : > { %692 = vmatprep.subr.bf16.mxu0 %v1037_v49 }
  0x4e   : > { %693 = vmatpush1.bf16.msra.mxu0 %v1039_v50 }
  0x4f   : > { %694 = vmatprep.subr.bf16.mxu0 %v1040_v51 }
  0x52   : > { %695 = vmatpush1.bf16.msra.mxu0 %v1042_v52 }
  0x53   : > { %696 = vmatprep.subr.bf16.mxu0 %v1043_v53 }
  0x56   : > { %697 = vmatpush1.bf16.msra.mxu0 %v1045_v54 }
  0x57   : > { %698 = vmatprep.subr.bf16.mxu0 %v1046_v55 }
  0x5a   : > { %699 = vmatpush1.bf16.msra.mxu0 %v1048_v56 }
  0x5b   : > { %700 = vmatprep.subr.bf16.mxu0 %v1049_v57 }
  0x5e   : > { %701 = vmatpush1.bf16.msra.mxu0 %v1051_v58 }
  0x5f   : > { %702 = vmatprep.subr.bf16.mxu0 %v1052_v59 }
  0x62   : > { %703 = vmatpush1.bf16.msra.mxu0 %v1054_v60 }
  0x63   : > { %704 = vmatprep.subr.bf16.mxu0 %v1055_v61 }
  0x66   : > { %705 = vmatpush1.bf16.msra.mxu0 %v1057_v62 }
  0x67   : > { %706 = vmatprep.subr.bf16.mxu0 %v1058_v63 }
  0x6a   : > { %707 = vmatpush1.bf16.msra.mxu0 %v1060_v0 }
  0x6d   : > { %709 = vmatmul.mubr.bf16.vlgmr.msra.gmra.mrb[0].mxu0 %v1061_v1 }
 0x140   : > { %v710_v11 = vpop.f32.mrb[0].mxu0 }
 0x141   : > { %v746_v13 = vmul.f32 %v739_v8, %v710_v11  ;;  %v712_v14 = vpop.f32.mrb[1].mxu0 }
 0x142   : > { %v747_v15 = vmul.f32 %v743_v9, %v712_v14  ;;  %v714_v16 = vpop.f32.mrb[2].mxu0  ;;  %776 = sbr.rel (!%p1164_p6) target bundleno = 337 (0x151), region = 86 }
 0x143   : > { %v762_v17 = vadd.f32 %v755_v10, %v746_v13  ;;  %v748_v18 = vmul.f32 %v739_v8, %v714_v16  ;;  %v716_v19 = vpop.f32.mrb[3].mxu0 }
 0x144   : > { %v763_v20 = vadd.f32 %v759_v12, %v747_v15  ;;  %v749_v21 = vmul.f32 %v743_v9, %v716_v19 }
 0x145   : > { %766 = vst [vmem:[%s433_s30] sm:$0xff] %v762_v17  ;;  %v764_v22 = vadd.f32 %v755_v10, %v748_v18 }
 0x146   : > { %767 = vst [vmem:[%s433_s30 + $0x8] sm:$0xff] %v763_v20  ;;  %v765_v23 = vadd.f32 %v759_v12, %v749_v21 }
 0x147   : > { %768 = vst [vmem:[%s433_s30 + $0x10] sm:$0xff] %v764_v22 }
 0x148   : > { %769 = vst [vmem:[%s433_s30 + $0x18] sm:$0xff] %v765_v23 }
 0x14c   : > { %v795_v24 = vld [vmem:[%s433_s30] sm:$0xff] }
 0x14d   : > { %v797_v25 = vld [vmem:[%s433_s30 + $0x8] sm:$0xff]  ;;  %796 = vst [vmem:[%s782_s7] sm:$0xff] %v795_v24 }
 0x14e   : > { %v799_v26 = vld [vmem:[%s433_s30 + $0x10] sm:$0xff]  ;;  %798 = vst [vmem:[%s782_s7 + $0x8] sm:$0xff] %v797_v25 }
 0x14f   : > { %v801_v27 = vld [vmem:[%s433_s30 + $0x18] sm:$0xff]  ;;  %800 = vst [vmem:[%s782_s7 + $0x20] sm:$0xff] %v799_v26 }
 0x150   : > { %802 = vst [vmem:[%s782_s7 + $0x28] sm:$0xff] %v801_v27 }
 0x151 PF: > { %s14_s19 = sadd.s32 1, %s1102_s19   ;;  %s1326_s15 = smov %s1090_s16 }
 0x152   : > { %p11_p12 = scmp.ge.s32.totalorder %s14_s19, 4   ;;  %s1327_s16 = smov %s1169_s25 }
 0x153   : > { %s1328_s17 = smov %s1098_s18  ;;  %s1329_s18 = smov %s1331_s20 }
 0x154   :  { %13 = sbr.rel (!%p11_p12) target bundleno = 3 (0x3), region = 149 }

// kernel: combined_forward.91
= control target key start
LH: loop header
LB: loop body
LE: loop exit
PB: predicated region body
PF: predicated region fallthrough
CT: control target
= control target key end

     0   :  { %s1387_s18 = smov 0   ;;  %s1389_s19 = smov 0   ;;  %s1710_s0 = inlined_call_operand.vmem [shape: bf16[16,1536], index: 0, kind: input, shape index: {}]   ;;  %s1711_s1 = inlined_call_operand.vmem [shape: bf16[1536,512], index: 1, kind: input, shape index: {}]   ;;  %s1712_s2 = inlined_call_operand.vmem [shape: f32[1,512], index: 2, kind: input, shape index: {}]   ;;  %s1713_s3 = inlined_call_operand.vmem [shape: f32[1,512], index: 3, kind: input, shape index: {}]   ;;  %s1714_s4 = inlined_call_operand.vmem [shape: f32[16,512], index: 4, kind: input, shape index: {}]   ;;  %s1715_s5 = inlined_call_operand.vmem [shape: f32[16,512], index: 5, kind: output, shape index: {}]  }
   0x1   :  { %s1391_s20 = smov 0   ;;  %s1393_s21 = smov 0  }
   0x2   :  { %s1395_s22 = smov 0   ;;  %s1397_s23 = smov 0  }
   0x3   :  { %s1399_s24 = smov 0   ;;  %s1401_s25 = smov 0  }
   0x4   :  { %s1403_s26 = smov 0   ;;  %s1405_s27 = smov 0  }
   0x5   :  { %s1407_s28 = smov 0  }
   0x6 LB: > { %1719 = sst [smem:[#allocation7_spill]] %s1334_s23  ;;  %s1061_s29 = sadd.s32 4294967295, %s1354_s28   ;;  %s1354_s28 = sphi %s1407_s28, %s15_s28   ;;  %s1350_s27 = sphi %s1405_s27, %s1742_s27   ;;  %s1346_s26 = sphi %s1403_s26, %s1741_s26   ;;  %s1342_s25 = sphi %s1401_s25, %s1740_s25   ;;  %s1338_s24 = sphi %s1399_s24, %s1739_s24   ;;  %s1334_s23 = sphi %s1397_s23, %s1732_s23   ;;  %s1330_s22 = sphi %s1395_s22, %s1731_s22   ;;  %s1326_s21 = sphi %s1393_s21, %s1738_s21   ;;  %s1322_s20 = sphi %s1391_s20, %s1737_s20   ;;  %s1318_s19 = sphi %s1389_s19, %s1736_s19   ;;  %s1314_s18 = sphi %s1387_s18, %s1735_s18  }
   0x7   : > { %s27_s30 = sadd.s32 1, %s1346_s26  ;;  %s30_s6 = sadd.s32 1, %s1350_s27 }
   0x8   : > { %p28_p0 = scmp.ge.s32.totalorder %s27_s30, 6  ;;  %s43_s7 = sadd.s32 1, %s1334_s23 }
   0x9   : > { %p50_p1 = scmp.ne.s32.totalorder %s1334_s23, %s1330_s22  ;;  %p51_p2 = scmp.eq.s32.totalorder %s1354_s28, 0 }
   0xa   : > { %s1744_s30 = smov (%p28_p0, %s27_s30), 0  ;;  %s1746_s6 = smov (!%p28_p0, %s30_s6), %s1350_s27 }
   0xb   : > { %1720 = sst [smem:[#allocation8_spill]] %s1744_s30  ;;  %s39_s8 = ssub.s32 %s1346_s26, %s1744_s30 }
   0xc   : > { %p32_p3 = scmp.ge.s32.totalorder %s1746_s6, 2  ;;  %p41_p4 = scmp.eq.s32.totalorder %s39_s8, 0 }
   0xd   : > { %p1456_p5 = por %p51_p2, %p50_p1  ;;  %s71_s10 = sadd.s32 1, %s1326_s21 }
   0xe   : > { %s1748_s6 = smov (%p32_p3, %s1746_s6), 0  ;;  %p78_p6 = scmp.ne.s32.totalorder %s1326_s21, %s1322_s20 }
   0xf   : > { %1722 = sst [smem:[#allocation9_spill]] %s1748_s6  ;;  %s67_s12 = ssub.s32 %s1350_s27, %s1748_s6 }
  0x10   : > { %s1464_s11 = scalar_select %p41_p4, %s1334_s23, %s43_s7  }
  0x11   : > { %s68_s13 = sor.u32 %s67_s12, %s39_s8  ;;  %p149_p7 = scmp.eq.s32.totalorder %s67_s12, 0 }
  0x12   : > { %1723 = sst [smem:[#allocation10_spill]] %s1464_s11  ;;  %p69_p8 = scmp.eq.s32.totalorder %s68_s13, 0 }
  0x13   : > { %p1472_p9 = por %p78_p6, %p51_p2  ;;  %s151_s15 = sadd.s32 1, %s1318_s19 }
  0x14   : > { %p158_p10 = scmp.ne.s32.totalorder %s1318_s19, %s1314_s18  ;;  %p190_p12 = scmp.eq.s32.totalorder %s1061_s29, 11 }
  0x15   : > { %s1480_s16 = scalar_select %p69_p8, %s1326_s21, %s71_s10  }
  0x16   : > { %s1483_s17 = scalar_select %p149_p7, %s1318_s19, %s151_s15  }
  0x17   : > { %1725 = sst [smem:[#allocation11_spill]] %s1480_s16  ;;  %p1487_p11 = por %p158_p10, %p51_p2 }
  0x18   : > { %1726 = sst [smem:[#allocation12_spill]] %s1483_s17  ;;  %p1491_p13 = por %p190_p12, %p158_p10 }
  0x19   : > { %p1064_p0 = scmp.ge.s32.totalorder %s1354_s28, 12 }
  0x1b   : > { %212 = sbr.rel (%p1064_p0) target bundleno = 71 (0x47), region = 16 }
  0x22   : > { %215 = sbr.rel (!%p1456_p5) target bundleno = 41 (0x29), region = 20  ;;  %s217_s10 = sand.u32 (%p1456_p5), 1, %s1334_s23  }
  0x23   : > { %s1124_s12 = sshll.u32 (%p1456_p5), %s1346_s26, 3  ;;  %s1065_s13 = sshll.u32 (%p1456_p5), %s217_s10, 4 }
  0x24   : > { %s225_s30 = scalar_lea.vmem (%p1456_p5), %s1710_s0, %s1124_s12  ;;  %s219_s29 = scalar_lea.vmem (%p1456_p5), [#allocation3], %s1065_s13 }
  0x25   : > { %v255_v0 = vld [vmem:[%s225_s30] sm:$0xff] (%p1456_p5)  ;;  %v257_v1 = vld [vmem:[%s225_s30 + $0x30] sm:$0xff] (%p1456_p5) }
  0x26   : > { %256 = vst [vmem:[%s219_s29] sm:$0xff] (%p1456_p5), %v255_v0  ;;  %258 = vst [vmem:[%s219_s29 + $0x8] sm:$0xff] (%p1456_p5), %v257_v1 }
  0x29 PF: > { %264 = sbr.rel (!%p1472_p9) target bundleno = 64 (0x40), region = 58  ;;  %s266_s9 = sand.u32 (%p1472_p9), 1, %s1326_s21  }
  0x2a   : > { %s1070_s11 = sshll.u32 (%p1472_p9), %s1350_s27, 1  ;;  %s1068_s23 = sshll.u32 (%p1472_p9), %s266_s9, 8 }
  0x2b   : > { %s1125_s10 = sshll.u32 (%p1472_p9), %s1346_s26, 7  ;;  %s1516_s14 = scalar_lea.vmem (%p1472_p9), [#allocation4], %s1068_s23 }
  0x2c   : > { %s272_s16 = sadd.s32 (%p1472_p9), %s1125_s10, %s1070_s11 }
  0x2d   : > { %s1072_s17 = sshll.u32 (%p1472_p9), %s272_s16, 2 }
  0x2e   : > { %s1511_s30 = scalar_lea.vmem (%p1472_p9), %s1711_s1, %s1072_s17 }
  0x2f   : > { %v364_v2 = vld [vmem:[%s1511_s30] sm:$0xff] (%p1472_p9)  ;;  %v366_v3 = vld [vmem:[%s1511_s30 + $0x10] sm:$0xff] (%p1472_p9) }
  0x30   : > { %v368_v4 = vld [vmem:[%s1511_s30 + $0x20] sm:$0xff]  ;;  %365 = vst [vmem:[%s1516_s14] sm:$0xff] %v364_v2  ;;  %367 = vst [vmem:[%s1516_s14 + $0x8] sm:$0xff] %v366_v3  ;;  %v370_v5 = vld [vmem:[%s1511_s30 + $0x30] sm:$0xff] }
  0x31   : > { %369 = vst [vmem:[%s1516_s14 + $0x10] sm:$0xff] %v368_v4  ;;  %v372_v6 = vld [vmem:[%s1511_s30 + $0x40] sm:$0xff]  ;;  %v374_v7 = vld [vmem:[%s1511_s30 + $0x50] sm:$0xff]  ;;  %371 = vst [vmem:[%s1516_s14 + $0x18] sm:$0xff] %v370_v5 }
  0x32   : > { %373 = vst [vmem:[%s1516_s14 + $0x20] sm:$0xff] %v372_v6  ;;  %375 = vst [vmem:[%s1516_s14 + $0x28] sm:$0xff] %v374_v7  ;;  %v376_v8 = vld [vmem:[%s1511_s30 + $0x60] sm:$0xff]  ;;  %v378_v9 = vld [vmem:[%s1511_s30 + $0x70] sm:$0xff] }
  0x33   : > { %v380_v10 = vld [vmem:[%s1511_s30 + $0x80] sm:$0xff]  ;;  %377 = vst [vmem:[%s1516_s14 + $0x30] sm:$0xff] %v376_v8  ;;  %379 = vst [vmem:[%s1516_s14 + $0x38] sm:$0xff] %v378_v9  ;;  %v382_v11 = vld [vmem:[%s1511_s30 + $0x90] sm:$0xff] }
  0x34   : > { %381 = vst [vmem:[%s1516_s14 + $0x40] sm:$0xff] %v380_v10  ;;  %v384_v12 = vld [vmem:[%s1511_s30 + $0xa0] sm:$0xff]  ;;  %v386_v13 = vld [vmem:[%s1511_s30 + $0xb0] sm:$0xff]  ;;  %383 = vst [vmem:[%s1516_s14 + $0x48] sm:$0xff] %v382_v11 }
  0x35   : > { %385 = vst [vmem:[%s1516_s14 + $0x50] sm:$0xff] %v384_v12  ;;  %387 = vst [vmem:[%s1516_s14 + $0x58] sm:$0xff] %v386_v13  ;;  %v388_v14 = vld [vmem:[%s1511_s30 + $0xc0] sm:$0xff]  ;;  %v390_v15 = vld [vmem:[%s1511_s30 + $0xd0] sm:$0xff] }
  0x36   : > { %v392_v16 = vld [vmem:[%s1511_s30 + $0xe0] sm:$0xff]  ;;  %389 = vst [vmem:[%s1516_s14 + $0x60] sm:$0xff] %v388_v14  ;;  %391 = vst [vmem:[%s1516_s14 + $0x68] sm:$0xff] %v390_v15  ;;  %v394_v17 = vld [vmem:[%s1511_s30 + $0xf0] sm:$0xff] }
  0x37   : > { %393 = vst [vmem:[%s1516_s14 + $0x70] sm:$0xff] %v392_v16  ;;  %v396_v18 = vld [vmem:[%s1511_s30 + $0x100] sm:$0xff]  ;;  %v398_v19 = vld [vmem:[%s1511_s30 + $0x110] sm:$0xff]  ;;  %395 = vst [vmem:[%s1516_s14 + $0x78] sm:$0xff] %v394_v17 }
  0x38   : > { %397 = vst [vmem:[%s1516_s14 + $0x80] sm:$0xff] %v396_v18  ;;  %399 = vst [vmem:[%s1516_s14 + $0x88] sm:$0xff] %v398_v19  ;;  %v400_v20 = vld [vmem:[%s1511_s30 + $0x120] sm:$0xff]  ;;  %v402_v21 = vld [vmem:[%s1511_s30 + $0x130] sm:$0xff] }
  0x39   : > { %v404_v22 = vld [vmem:[%s1511_s30 + $0x140] sm:$0xff]  ;;  %401 = vst [vmem:[%s1516_s14 + $0x90] sm:$0xff] %v400_v20  ;;  %403 = vst [vmem:[%s1516_s14 + $0x98] sm:$0xff] %v402_v21  ;;  %v406_v23 = vld [vmem:[%s1511_s30 + $0x150] sm:$0xff] }
  0x3a   : > { %405 = vst [vmem:[%s1516_s14 + $0xa0] sm:$0xff] %v404_v22  ;;  %v408_v24 = vld [vmem:[%s1511_s30 + $0x160] sm:$0xff]  ;;  %v410_v25 = vld [vmem:[%s1511_s30 + $0x170] sm:$0xff]  ;;  %407 = vst [vmem:[%s1516_s14 + $0xa8] sm:$0xff] %v406_v23 }
  0x3b   : > { %409 = vst [vmem:[%s1516_s14 + $0xb0] sm:$0xff] %v408_v24  ;;  %411 = vst [vmem:[%s1516_s14 + $0xb8] sm:$0xff] %v410_v25  ;;  %v412_v26 = vld [vmem:[%s1511_s30 + $0x180] sm:$0xff]  ;;  %v414_v27 = vld [vmem:[%s1511_s30 + $0x190] sm:$0xff] }
  0x3c   : > { %v416_v28 = vld [vmem:[%s1511_s30 + $0x1a0] sm:$0xff]  ;;  %413 = vst [vmem:[%s1516_s14 + $0xc0] sm:$0xff] %v412_v26  ;;  %415 = vst [vmem:[%s1516_s14 + $0xc8] sm:$0xff] %v414_v27  ;;  %v418_v29 = vld [vmem:[%s1511_s30 + $0x1b0] sm:$0xff] }
  0x3d   : > { %417 = vst [vmem:[%s1516_s14 + $0xd0] sm:$0xff] %v416_v28  ;;  %v420_v30 = vld [vmem:[%s1511_s30 + $0x1c0] sm:$0xff]  ;;  %v422_v31 = vld [vmem:[%s1511_s30 + $0x1d0] sm:$0xff]  ;;  %419 = vst [vmem:[%s1516_s14 + $0xd8] sm:$0xff] %v418_v29 }
  0x3e   : > { %421 = vst [vmem:[%s1516_s14 + $0xe0] sm:$0xff] %v420_v30  ;;  %423 = vst [vmem:[%s1516_s14 + $0xe8] sm:$0xff] %v422_v31  ;;  %v424_v32 = vld [vmem:[%s1511_s30 + $0x1e0] sm:$0xff]  ;;  %v426_v33 = vld [vmem:[%s1511_s30 + $0x1f0] sm:$0xff] }
  0x3f   : > { %425 = vst [vmem:[%s1516_s14 + $0xf0] sm:$0xff] %v424_v32  ;;  %427 = vst [vmem:[%s1516_s14 + $0xf8] sm:$0xff] %v426_v33 }
  0x40 PF: > { %449 = sbr.rel (!%p1487_p11) target bundleno = 71 (0x47), region = 104  ;;  %s451_s23 = sand.u32 (%p1487_p11), 1, %s1318_s19  }
  0x41   : > { %s1126_s11 = sshll.u32 (%p1487_p11), %s1350_s27, 4  ;;  %s1073_s16 = sshll.u32 (%p1487_p11), %s451_s23, 5 }
  0x42   : > { %s459_s15 = scalar_lea.vmem (%p1487_p11), %s1714_s4, %s1126_s11  ;;  %s453_s29 = scalar_lea.vmem (%p1487_p11), [#allocation5], %s1073_s16 }
  0x43   : > { %v472_v34 = vld [vmem:[%s459_s15] sm:$0xff] (%p1487_p11)  ;;  %v474_v35 = vld [vmem:[%s459_s15 + $0x8] sm:$0xff] (%p1487_p11) }
  0x44   : > { %v476_v36 = vld [vmem:[%s459_s15 + $0x20] sm:$0xff] (%p1487_p11)  ;;  %473 = vst [vmem:[%s453_s29] sm:$0xff] (%p1487_p11), %v472_v34  ;;  %475 = vst [vmem:[%s453_s29 + $0x8] sm:$0xff] (%p1487_p11), %v474_v35  ;;  %v478_v37 = vld [vmem:[%s459_s15 + $0x28] sm:$0xff] (%p1487_p11) }
  0x45   : > { %477 = vst [vmem:[%s453_s29 + $0x10] sm:$0xff] (%p1487_p11), %v476_v36  ;;  %479 = vst [vmem:[%s453_s29 + $0x18] sm:$0xff] (%p1487_p11), %v478_v37 }
  0x47 PF: > { %p1076_p1 = scmp.ge.s32.totalorder %s1354_s28, 1  ;;  %p484_p2 = scmp.lt.s32.totalorder %s1354_s28, 13 }
  0x49   : > { %p485_p3 = pnand %p1076_p1, %p484_p2 }
  0x4a   : > { %s491_s7 = sand.u32 (!%p485_p3), 1, %s1330_s22   ;;  %s498_s9 = sand.u32 (!%p485_p3), 1, %s1322_s20  }
  0x4b   : > { %488 = sbr.rel (%p485_p3) target bundleno = 396 (0x18c), region = 127  ;;  %s1590_s10 = sshll.u32 (!%p485_p3), %s491_s7, 4 }
  0x4c   : > { %s1078_s6 = sshll.u32 (!%p485_p3), %s498_s9, 8  ;;  %s505_s12 = sand.u32 (!%p485_p3), 1, %s1314_s18  }
  0x4d   : > { %s1081_s30 = sshll.u32 (!%p485_p3), %s1342_s25, 1  ;;  %s1079_s14 = sshll.u32 (!%p485_p3), %s505_s12, 5 }
  0x4e   : > { %p552_p4 = scmp.lt.s32.totalorder (!%p485_p3), %s1081_s30, 3  ;;  %s493_s22 = scalar_lea.vmem (!%p485_p3), [#allocation3], %s1590_s10 }
  0x4f   : > { %s1605_s15 = scalar_lea.vmem (!%p485_p3), [#allocation4], %s1078_s6  ;;  %s1607_s29 = scalar_lea.vmem (!%p485_p3), [#allocation5], %s1079_s14 }
  0x50   : > { %s1609_s18 = scalar_lea.vmem (!%p485_p3), [#allocation6], %s1079_s14  ;;  %p1083_p5 = scmp.ne.s32.totalorder (!%p485_p3), %s1338_s24, 0 }
  0x52   : > { %s1750_s30 = smov (!%p552_p4, %s1081_s30), 3  ;;  %568 = sbr.rel (%p1083_p5) target bundleno = 89 (0x59), region = 143 }
  0x53   : > { %s554_s16 = scalar_lea.vmem %s1712_s2, %s1750_s30  ;;  %s559_s20 = scalar_lea.vmem %s1713_s3, %s1750_s30  ;;  %v1356_v38 = vmov (!%p1083_p5), 0.0  }
  0x54   : > { %569 = vst [vmem:[#allocation2] sm:$0xff] (!%p1083_p5), %v1356_v38  ;;  %570 = vst [vmem:[#allocation2 + $0x8] sm:$0xff] (!%p1083_p5), %v1356_v38 }
  0x55   : > { %571 = vst [vmem:[#allocation2 + $0x10] sm:$0xff] (!%p1083_p5), %v1356_v38  ;;  %572 = vst [vmem:[#allocation2 + $0x18] sm:$0xff] (!%p1083_p5), %v1356_v38 }
  0x59 PF: > { %v1217_v39 = vld [vmem:[%s1605_s15 + $0x4] ss:$8 sps:$4 sm:$0xff]   ;;  %v1219_v40 = vld [vmem:[%s1605_s15] ss:$8 sps:$4 sm:$0xff]   ;;  %v1220_v41 = vld [vmem:[%s1605_s15 + $0x14] ss:$8 sps:$4 sm:$0xff]  }
  0x5a   : > { %781 = vmatprep.subr.bf16.mxu0 %v1217_v39  ;;  %v1222_v42 = vld [vmem:[%s1605_s15 + $0x10] ss:$8 sps:$4 sm:$0xff]   ;;  %v1223_v43 = vld [vmem:[%s1605_s15 + $0x24] ss:$8 sps:$4 sm:$0xff]   ;;  %v1225_v44 = vld [vmem:[%s1605_s15 + $0x20] ss:$8 sps:$4 sm:$0xff]  }
  0x5b   : > { %782 = vmatpush1.bf16.msra.mxu0 %v1219_v40  ;;  %v1226_v45 = vld [vmem:[%s1605_s15 + $0x34] ss:$8 sps:$4 sm:$0xff]   ;;  %v1228_v46 = vld [vmem:[%s1605_s15 + $0x30] ss:$8 sps:$4 sm:$0xff]   ;;  %v1229_v47 = vld [vmem:[%s1605_s15 + $0x44] ss:$8 sps:$4 sm:$0xff]  }
  0x5c   : > { %783 = vmatprep.subr.bf16.mxu0 %v1220_v41  ;;  %v1231_v48 = vld [vmem:[%s1605_s15 + $0x40] ss:$8 sps:$4 sm:$0xff]   ;;  %v1232_v49 = vld [vmem:[%s1605_s15 + $0x54] ss:$8 sps:$4 sm:$0xff]   ;;  %v1234_v50 = vld [vmem:[%s1605_s15 + $0x50] ss:$8 sps:$4 sm:$0xff]  }
  0x5d   : > { %v1235_v51 = vld [vmem:[%s1605_s15 + $0x64] ss:$8 sps:$4 sm:$0xff]   ;;  %v1237_v53 = vld [vmem:[%s1605_s15 + $0x60] ss:$8 sps:$4 sm:$0xff]   ;;  %v1238_v54 = vld [vmem:[%s1605_s15 + $0x74] ss:$8 sps:$4 sm:$0xff]  }
  0x5e   : > { %v1267_v52 = vld [vmem:[%s493_s22 + $0x4] ss:$8 sps:$4 sm:$0xff]   ;;  %v1240_v55 = vld [vmem:[%s1605_s15 + $0x70] ss:$8 sps:$4 sm:$0xff]   ;;  %v1243_v57 = vld [vmem:[%s1605_s15 + $0x80] ss:$8 sps:$4 sm:$0xff]  }
  0x5f   : > { %784 = vmatpush1.bf16.msra.mxu0 %v1222_v42  ;;  %813 = vmatprep.mubr.bf16.mxu0 %v1267_v52  ;;  %v1241_v56 = vld [vmem:[%s1605_s15 + $0x84] ss:$8 sps:$4 sm:$0xff]   ;;  %v1244_v58 = vld [vmem:[%s1605_s15 + $0x94] ss:$8 sps:$4 sm:$0xff]   ;;  %v1246_v59 = vld [vmem:[%s1605_s15 + $0x90] ss:$8 sps:$4 sm:$0xff]  }
  0x60   : > { %785 = vmatprep.subr.bf16.mxu0 %v1223_v43  ;;  %v1247_v60 = vld [vmem:[%s1605_s15 + $0xa4] ss:$8 sps:$4 sm:$0xff]   ;;  %v1249_v61 = vld [vmem:[%s1605_s15 + $0xa0] ss:$8 sps:$4 sm:$0xff]   ;;  %v1250_v62 = vld [vmem:[%s1605_s15 + $0xb4] ss:$8 sps:$4 sm:$0xff]  }
  0x61   : > { %v1252_v63 = vld [vmem:[%s1605_s15 + $0xb0] ss:$8 sps:$4 sm:$0xff]   ;;  %v1253_v0 = vld [vmem:[%s1605_s15 + $0xc4] ss:$8 sps:$4 sm:$0xff]   ;;  %v1255_v1 = vld [vmem:[%s1605_s15 + $0xc0] ss:$8 sps:$4 sm:$0xff]  }
  0x62   : > { %v1256_v2 = vld [vmem:[%s1605_s15 + $0xd4] ss:$8 sps:$4 sm:$0xff]   ;;  %v1258_v3 = vld [vmem:[%s1605_s15 + $0xd0] ss:$8 sps:$4 sm:$0xff]   ;;  %v1259_v4 = vld [vmem:[%s1605_s15 + $0xe4] ss:$8 sps:$4 sm:$0xff]  }
  0x63   : > { %786 = vmatpush1.bf16.msra.mxu0 %v1225_v44  ;;  %v1261_v5 = vld [vmem:[%s1605_s15 + $0xe0] ss:$8 sps:$4 sm:$0xff]   ;;  %v1262_v6 = vld [vmem:[%s1605_s15 + $0xf4] ss:$8 sps:$4 sm:$0xff]   ;;  %v1264_v7 = vld [vmem:[%s1605_s15 + $0xf0] ss:$8 sps:$4 sm:$0xff]  }
  0x64   : > { %787 = vmatprep.subr.bf16.mxu0 %v1226_v45  ;;  %v1265_v8 = vld [vmem:[%s493_s22] ss:$8 sps:$4 sm:$0xff]   ;;  %p1118_p6 = scmp.ne.s32.totalorder %s1338_s24, 5 }
  0x65   : > { %v573_v9 = vld [vmem:[#allocation2] sm:$0xff]  ;;  %v574_v10 = vld [vmem:[#allocation2 + $0x8] sm:$0xff]  ;;  %v575_v12 = vld [vmem:[#allocation2 + $0x10] sm:$0xff]  ;;  %v842_v21 = vlaneseq (!%p1118_p6) }
  0x66   : > { %v576_v15 = vld [vmem:[#allocation2 + $0x18] sm:$0xff]  ;;  %v840_v23 = vld [vmem:[%s554_s16] sm:$0x3] (!%p1118_p6)  ;;  %v873_v40 = vld [vmem:[%s1607_s29 + $0x8] sm:$0xff] (!%p1118_p6) }
  0x67   : > { %788 = vmatpush1.bf16.msra.mxu0 %v1228_v46  ;;  %v843_v22 = vshrl.u32 (!%p1118_p6), %v842_v21, 7  ;;  %v856_v24 = vld [vmem:[%s559_s20] sm:$0x3] (!%p1118_p6)  ;;  %v874_v41 = vld [vmem:[%s1607_s29 + $0x10] sm:$0xff] (!%p1118_p6)  ;;  %v875_v42 = vld [vmem:[%s1607_s29 + $0x18] sm:$0xff] (!%p1118_p6) }
  0x68   : > { %789 = vmatprep.subr.bf16.mxu0 %v1229_v47  ;;  %v872_v36 = vld [vmem:[%s1607_s29] sm:$0xff] (!%p1118_p6) }
  0x69   : > { %v844_v26 = vsub.s32 (!%p1118_p6), 0, %v843_v22  ;;  %v848_v27 = vsub.s32 (!%p1118_p6), 1, %v843_v22 }
  0x6b   : > { %790 = vmatpush1.bf16.msra.mxu0 %v1231_v48  ;;  %v845_v31 = vrot.slane (!%p1118_p6), %v840_v23, %v844_v26  ;;  %v861_v32 = vrot.slane (!%p1118_p6), %v856_v24, %v844_v26  ;;  %v849_v33 = vrot.slane (!%p1118_p6), %v840_v23, %v848_v27  ;;  %v865_v34 = vrot.slane (!%p1118_p6), %v856_v24, %v848_v27 }
  0x6c   : > { %791 = vmatprep.subr.bf16.mxu0 %v1232_v49 }
  0x6f   : > { %792 = vmatpush1.bf16.msra.mxu0 %v1234_v50 }
  0x70   : > { %793 = vmatprep.subr.bf16.mxu0 %v1235_v51 }
  0x73   : > { %794 = vmatpush1.bf16.msra.mxu0 %v1237_v53 }
  0x74   : > { %795 = vmatprep.subr.bf16.mxu0 %v1238_v54 }
  0x77   : > { %796 = vmatpush1.bf16.msra.mxu0 %v1240_v55 }
  0x78   : > { %797 = vmatprep.subr.bf16.mxu0 %v1241_v56 }
  0x7b   : > { %798 = vmatpush1.bf16.msra.mxu0 %v1243_v57 }
  0x7c   : > { %799 = vmatprep.subr.bf16.mxu0 %v1244_v58 }
  0x7f   : > { %800 = vmatpush1.bf16.msra.mxu0 %v1246_v59 }
  0x80   : > { %801 = vmatprep.subr.bf16.mxu0 %v1247_v60 }
  0x83   : > { %802 = vmatpush1.bf16.msra.mxu0 %v1249_v61 }
  0x84   : > { %803 = vmatprep.subr.bf16.mxu0 %v1250_v62 }
  0x87   : > { %804 = vmatpush1.bf16.msra.mxu0 %v1252_v63 }
  0x88   : > { %805 = vmatprep.subr.bf16.mxu0 %v1253_v0 }
  0x8b   : > { %806 = vmatpush1.bf16.msra.mxu0 %v1255_v1 }
  0x8c   : > { %807 = vmatprep.subr.bf16.mxu0 %v1256_v2 }
  0x8f   : > { %808 = vmatpush1.bf16.msra.mxu0 %v1258_v3 }
  0x90   : > { %809 = vmatprep.subr.bf16.mxu0 %v1259_v4 }
  0x93   : > { %810 = vmatpush1.bf16.msra.mxu0 %v1261_v5 }
  0x94   : > { %811 = vmatprep.subr.bf16.mxu0 %v1262_v6 }
  0x97   : > { %812 = vmatpush1.bf16.msra.mxu0 %v1264_v7 }
  0x9a   : > { %814 = vmatmul.mubr.bf16.vlgmr.msra.gmra.mrb[0].mxu0 %v1265_v8 }
 0x16d   : > { %v815_v11 = vpop.f32.mrb[0].mxu0  ;;  %835 = sbr.rel (%p1118_p6) target bundleno = 388 (0x184), region = 147 }
 0x16e   : > { %v824_v13 = vadd.f32 %v815_v11, %v573_v9  ;;  %v817_v14 = vpop.f32.mrb[1].mxu0 }
 0x16f   : > { %v825_v16 = vadd.f32 %v817_v14, %v574_v10  ;;  %v819_v17 = vpop.f32.mrb[2].mxu0 }
 0x170   : > { %828 = vst [vmem:[#allocation2] sm:$0xff] %v824_v13  ;;  %v826_v18 = vadd.f32 %v819_v17, %v575_v12  ;;  %v821_v19 = vpop.f32.mrb[3].mxu0 }
 0x171   : > { %829 = vst [vmem:[#allocation2 + $0x8] sm:$0xff] %v825_v16  ;;  %v827_v20 = vadd.f32 %v821_v19, %v576_v15 }
 0x172   : > { %830 = vst [vmem:[#allocation2 + $0x10] sm:$0xff] %v826_v18 }
 0x173   : > { %831 = vst [vmem:[#allocation2 + $0x18] sm:$0xff] %v827_v20 }
 0x177   : > { %v836_v25 = vld [vmem:[#allocation2] sm:$0xff] }
 0x178   : > { %v837_v28 = vld [vmem:[#allocation2 + $0x8] sm:$0xff]  ;;  %v852_v35 = vmul.f32 %v845_v31, %v836_v25 }
 0x179   : > { %v838_v29 = vld [vmem:[#allocation2 + $0x10] sm:$0xff]  ;;  %v853_v37 = vmul.f32 %v849_v33, %v837_v28 }
 0x17a   : > { %v839_v30 = vld [vmem:[#allocation2 + $0x18] sm:$0xff]  ;;  %v854_v38 = vmul.f32 %v845_v31, %v838_v29  ;;  %v868_v43 = vadd.f32 %v861_v32, %v852_v35 }
 0x17b   : > { %v855_v39 = vmul.f32 %v849_v33, %v839_v30  ;;  %v869_v44 = vadd.f32 %v865_v34, %v853_v37 }
 0x17c   : > { %v870_v45 = vadd.f32 %v861_v32, %v854_v38  ;;  %v876_v47 = vadd.f32 %v872_v36, %v868_v43 }
 0x17d   : > { %v871_v46 = vadd.f32 %v865_v34, %v855_v39  ;;  %v877_v48 = vadd.f32 %v873_v40, %v869_v44 }
 0x17e   : > { %v878_v49 = vadd.f32 %v874_v41, %v870_v45  ;;  %v880_v51 = vmax.f32 %v876_v47, 0.0 }
 0x17f   : > { %v879_v50 = vadd.f32 %v875_v42, %v871_v46  ;;  %v881_v52 = vmax.f32 %v877_v48, 0.0 }
 0x180   : > { %v882_v53 = vmax.f32 %v878_v49, 0.0  ;;  %884 = vst [vmem:[%s1609_s18] sm:$0xff] %v880_v51 }
 0x181   : > { %v883_v54 = vmax.f32 %v879_v50, 0.0  ;;  %885 = vst [vmem:[%s1609_s18 + $0x8] sm:$0xff] %v881_v52 }
 0x182   : > { %886 = vst [vmem:[%s1609_s18 + $0x10] sm:$0xff] %v882_v53 }
 0x183   : > { %887 = vst [vmem:[%s1609_s18 + $0x18] sm:$0xff] %v883_v54 }
 0x184 PF: > { %894 = sbr.rel (!%p1491_p13) target bundleno = 396 (0x18c), region = 151  ;;  %s1127_s24 = sshll.u32 (%p1491_p13), %s1342_s25, 4 }
 0x185   : > { %s900_s14 = scalar_lea.vmem (%p1491_p13), %s1715_s5, %s1127_s24 }
 0x187   : > { %v913_v55 = vld [vmem:[%s1609_s18] sm:$0xff] (%p1491_p13) }
 0x188   : > { %v915_v56 = vld [vmem:[%s1609_s18 + $0x8] sm:$0xff] (%p1491_p13)  ;;  %914 = vst [vmem:[%s900_s14] sm:$0xff] (%p1491_p13), %v913_v55 }
 0x189   : > { %v917_v57 = vld [vmem:[%s1609_s18 + $0x10] sm:$0xff] (%p1491_p13)  ;;  %916 = vst [vmem:[%s900_s14 + $0x8] sm:$0xff] (%p1491_p13), %v915_v56 }
 0x18a   : > { %v919_v58 = vld [vmem:[%s1609_s18 + $0x18] sm:$0xff] (%p1491_p13)  ;;  %918 = vst [vmem:[%s900_s14 + $0x20] sm:$0xff] (%p1491_p13), %v917_v57 }
 0x18b   : > { %920 = vst [vmem:[%s900_s14 + $0x28] sm:$0xff] %v919_v58 }
 0x18c PF: > { %s15_s28 = sadd.s32 1, %s1354_s28   ;;  %s1729_s8 = sld [smem:[#allocation12_spill]] }
 0x18d   : > { %p12_p7 = scmp.ge.s32.totalorder %s15_s28, 14   ;;  %s1730_s25 = sld [smem:[#allocation11_spill]] }
 0x18e   : > { %s1731_s22 = sld [smem:[#allocation7_spill]]  ;;  %s1732_s23 = sld [smem:[#allocation10_spill]] }
 0x18f   : > { %s1733_s11 = sld [smem:[#allocation8_spill]]  ;;  %s1734_s16 = sld [smem:[#allocation9_spill]] }
 0x190   : > { %s1735_s18 = smov %s1318_s19  ;;  %s1737_s20 = smov %s1326_s21 }
 0x191   : > { %s1739_s24 = smov %s1346_s26  ;;  %14 = sbr.rel (!%p12_p7) target bundleno = 6 (0x6), region = 227 }
 0x192   : > { %s1736_s19 = smov %s1729_s8 }
 0x193   : > { %s1738_s21 = smov %s1730_s25  ;;  %s1740_s25 = smov %s1350_s27 }
 0x195   : > { %s1741_s26 = smov %s1733_s11  ;;  %s1742_s27 = smov %s1734_s16 }

// kernel: combined_forward.96
= control target key start
LH: loop header
LB: loop body
LE: loop exit
PB: predicated region body
PF: predicated region fallthrough
CT: control target
= control target key end

     0   :  { %s863_s15 = smov 0   ;;  %s865_s16 = smov 0   ;;  %s967_s0 = inlined_call_operand.vmem [shape: bf16[16,1024], index: 0, kind: input, shape index: {}]   ;;  %s968_s1 = inlined_call_operand.vmem [shape: bf16[1024,128], index: 1, kind: input, shape index: {}]   ;;  %s969_s2 = inlined_call_operand.vmem [shape: f32[1,128], index: 2, kind: input, shape index: {}]   ;;  %s970_s3 = inlined_call_operand.vmem [shape: f32[1,128], index: 3, kind: input, shape index: {}]   ;;  %s971_s4 = inlined_call_operand.vmem [shape: f32[16,128], index: 4, kind: output, shape index: {}]  }
   0x1   :  { %s867_s17 = smov 0   ;;  %s869_s18 = smov 0  }
   0x2   :  { %s871_s19 = smov 0  }
   0x3 LB: > { %s26_s20 = sadd.s32 1, %s831_s18  ;;  %p49_p1 = scmp.ne.s32.totalorder %s823_s16, %s819_s15  ;;  %s835_s19 = sphi %s871_s19, %s14_s19   ;;  %s831_s18 = sphi %s869_s18, %s975_s18   ;;  %s827_s17 = sphi %s867_s17, %s974_s17   ;;  %s823_s16 = sphi %s865_s16, %s973_s16   ;;  %s819_s15 = sphi %s863_s15, %s972_s15  }
   0x4   : > { %p27_p0 = scmp.ge.s32.totalorder %s26_s20, 4  ;;  %p50_p2 = scmp.eq.s32.totalorder %s835_s19, 0 }
   0x5   : > { %s42_s22 = sadd.s32 1, %s823_s16  ;;  %p680_p5 = scmp.ge.s32.totalorder %s835_s19, 4 }
   0x6   : > { %s977_s20 = smov (%p27_p0, %s26_s20), 0  ;;  %p51_p3 = por %p50_p2, %p49_p1 }
   0x7   : > { %s38_s21 = ssub.s32 %s831_s18, %s977_s20  ;;  %195 = sbr.rel (%p680_p5) target bundleno = 21 (0x15), region = 24 }
   0x8   : > { %p40_p4 = scmp.eq.s32.totalorder %s38_s21, 0 }
   0xa   : > { %s898_s23 = scalar_select %p40_p4, %s823_s16, %s42_s22  }
   0xe   : > { %198 = sbr.rel (!%p51_p3) target bundleno = 21 (0x15), region = 28  ;;  %s200_s24 = sand.u32 (%p51_p3), 1, %s823_s16  }
   0xf   : > { %s714_s25 = sshll.u32 (%p51_p3), %s831_s18, 3  ;;  %s681_s26 = sshll.u32 (%p51_p3), %s200_s24, 4 }
  0x10   : > { %s208_s29 = scalar_lea.vmem (%p51_p3), %s967_s0, %s714_s25  ;;  %s202_s30 = scalar_lea.vmem (%p51_p3), [#allocation3], %s681_s26 }
  0x11   : > { %v238_v0 = vld [vmem:[%s208_s29] sm:$0xff] (%p51_p3) }
  0x12   : > { %v240_v1 = vld [vmem:[%s208_s29 + $0x20] sm:$0xff] (%p51_p3)  ;;  %239 = vst [vmem:[%s202_s30] sm:$0xff] (%p51_p3), %v238_v0 }
  0x13   : > { %241 = vst [vmem:[%s202_s30 + $0x8] sm:$0xff] (%p51_p3), %v240_v1 }
  0x15 PF: > { %p684_p6 = scmp.ge.s32.totalorder %s835_s19, 1  ;;  %p258_p7 = scmp.lt.s32.totalorder %s835_s19, 5 }
  0x17   : > { %p259_p8 = pnand %p684_p6, %p258_p7 }
  0x18   : > { %s265_s5 = sand.u32 (!%p259_p8), 1, %s819_s15   ;;  %s686_s6 = sshll.u32 (!%p259_p8), %s827_s17, 5 }
  0x19   : > { %262 = sbr.rel (%p259_p8) target bundleno = 304 (0x130), region = 70  ;;  %s910_s7 = sshll.u32 (!%p259_p8), %s265_s5, 4 }
  0x1a   : > { %p310_p9 = scmp.lt.s32.totalorder (!%p259_p8), %s686_s6, 127  ;;  %s267_s12 = scalar_lea.vmem (!%p259_p8), [#allocation3], %s910_s7 }
  0x1b   : > { %p688_p10 = scmp.ne.s32.totalorder (!%p259_p8), %s827_s17, 0 }
  0x20   : > { %s979_s6 = smov (!%p310_p9, %s686_s6), 127  ;;  %337 = sbr.rel (%p688_p10) target bundleno = 39 (0x27), region = 78 }
  0x21   : > { %s687_s8 = sshll.u32 %s979_s6, 2  ;;  %v837_v2 = vmov (!%p688_p10), 0.0  }
  0x22   : > { %s915_s11 = scalar_lea.vmem %s968_s1, %s687_s8  ;;  %338 = vst [vmem:[#allocation2] sm:$0xff] (!%p688_p10), %v837_v2  ;;  %339 = vst [vmem:[#allocation2 + $0x8] sm:$0xff] (!%p688_p10), %v837_v2 }
  0x27 PF: > { %v778_v3 = vld [vmem:[%s915_s11 + $0x40] sm:$0xff]   ;;  %v780_v5 = vld [vmem:[%s915_s11 + $0x48] sm:$0xff]   ;;  %v782_v7 = vld [vmem:[%s915_s11 + $0x50] sm:$0xff]   ;;  %p707_p11 = scmp.ne.s32.totalorder %s827_s17, 3 }
  0x28   : > { %v779_v4 = vld [vmem:[%s915_s11] sm:$0xff]   ;;  %715 = vmatprep.subr.bf16.mxu0 %v778_v3  ;;  %v781_v6 = vld [vmem:[%s915_s11 + $0x8] sm:$0xff]   ;;  %v783_v8 = vld [vmem:[%s915_s11 + $0x10] sm:$0xff]  }
  0x29   : > { %716 = vmatpush3.bf16.msra.mxu0 %v779_v4  ;;  %v784_v9 = vld [vmem:[%s915_s11 + $0x58] sm:$0xff]   ;;  %v786_v11 = vld [vmem:[%s915_s11 + $0x60] sm:$0xff]   ;;  %v788_v13 = vld [vmem:[%s915_s11 + $0x68] sm:$0xff]  }
  0x2a   : > { %717 = vmatprep.subr.bf16.mxu0 %v780_v5  ;;  %v785_v10 = vld [vmem:[%s915_s11 + $0x18] sm:$0xff]   ;;  %v787_v12 = vld [vmem:[%s915_s11 + $0x20] sm:$0xff]   ;;  %v789_v15 = vld [vmem:[%s915_s11 + $0x28] sm:$0xff]  }
  0x2b   : > { %v796_v14 = vld [vmem:[%s267_s12 + $0x4] ss:$8 sps:$4 sm:$0xff]   ;;  %v794_v20 = vld [vmem:[%s267_s12] ss:$8 sps:$4 sm:$0xff]  }
  0x2c   : > { %514 = vmatprep.mubr.bf16.mxu0 %v796_v14  ;;  %v790_v16 = vld [vmem:[%s915_s11 + $0x70] sm:$0xff]   ;;  %v792_v18 = vld [vmem:[%s915_s11 + $0x78] sm:$0xff]   ;;  %v340_v22 = vld [vmem:[#allocation2] sm:$0xff] }
  0x2d   : > { %718 = vmatpush3.bf16.msra.mxu0 %v781_v6  ;;  %v791_v17 = vld [vmem:[%s915_s11 + $0x30] sm:$0xff]   ;;  %v793_v19 = vld [vmem:[%s915_s11 + $0x38] sm:$0xff]   ;;  %v341_v26 = vld [vmem:[#allocation2 + $0x8] sm:$0xff] }
  0x2e   : > { %719 = vmatprep.subr.bf16.mxu0 %v782_v7  ;;  %v708_v32 = vld [vmem:[%s969_s2] ss:$0 sm:$0xff] (!%p707_p11) }
  0x2f   : > { %v709_v33 = vld [vmem:[%s970_s3] ss:$0 sm:$0xff] (!%p707_p11) }
  0x31   : > { %720 = vmatpush3.bf16.msra.mxu0 %v783_v8 }
  0x32   : > { %721 = vmatprep.subr.bf16.mxu0 %v784_v9 }
  0x35   : > { %722 = vmatpush3.bf16.msra.mxu0 %v785_v10 }
  0x36   : > { %723 = vmatprep.subr.bf16.mxu0 %v786_v11 }
  0x39   : > { %724 = vmatpush3.bf16.msra.mxu0 %v787_v12 }
  0x3a   : > { %725 = vmatprep.subr.bf16.mxu0 %v788_v13 }
  0x3d   : > { %726 = vmatpush3.bf16.msra.mxu0 %v789_v15 }
  0x3e   : > { %727 = vmatprep.subr.bf16.mxu0 %v790_v16 }
  0x41   : > { %728 = vmatpush3.bf16.msra.mxu0 %v791_v17 }
  0x42   : > { %729 = vmatprep.subr.bf16.mxu0 %v792_v18 }
  0x45   : > { %730 = vmatpush3.bf16.msra.mxu0 %v793_v19 }
  0x48   : > { %515 = vmatmul.mubr.bf16.vlgmr.msra.gmra.mrb[0].mxu0 %v794_v20 }
 0x11b   : > { %v731_v21 = vpop.f32.mrb[0].mxu0 }
 0x11c   : > { %v732_v23 = vpop.f32.mrb[1].mxu0 }
 0x11d   : > { %v733_v24 = vadd.f32 %v732_v23, %v731_v21  ;;  %v734_v25 = vpop.f32.mrb[2].mxu0  ;;  %530 = sbr.rel (%p707_p11) target bundleno = 304 (0x130), region = 82 }
 0x11e   : > { %v735_v27 = vpop.f32.mrb[3].mxu0 }
 0x11f   : > { %v523_v28 = vadd.f32 %v733_v24, %v340_v22  ;;  %v736_v29 = vadd.f32 %v735_v27, %v734_v25 }
 0x121   : > { %525 = vst [vmem:[#allocation2] sm:$0xff] %v523_v28  ;;  %v524_v30 = vadd.f32 %v736_v29, %v341_v26 }
 0x123   : > { %526 = vst [vmem:[#allocation2 + $0x8] sm:$0xff] %v524_v30 }
 0x128   : > { %v531_v31 = vld [vmem:[#allocation2] sm:$0xff] }
 0x129   : > { %v540_v34 = vmul.f32 %v708_v32, %v531_v31 }
 0x12a   : > { %v532_v35 = vld [vmem:[#allocation2 + $0x8] sm:$0xff] }
 0x12b   : > { %v541_v36 = vmul.f32 %v708_v32, %v532_v35  ;;  %v549_v37 = vadd.f32 %v709_v33, %v540_v34 }
 0x12d   : > { %v550_v38 = vadd.f32 %v709_v33, %v541_v36  ;;  %551 = vst [vmem:[%s971_s4] sm:$0xff] %v549_v37 }
 0x12f   : > { %552 = vst [vmem:[%s971_s4 + $0x8] sm:$0xff] %v550_v38 }
 0x130 PF: > { %s14_s19 = sadd.s32 1, %s835_s19   ;;  %s972_s15 = smov %s823_s16 }
 0x131   : > { %p11_p12 = scmp.ge.s32.totalorder %s14_s19, 6   ;;  %s973_s16 = smov %s898_s23 }
 0x132   : > { %s974_s17 = smov %s831_s18  ;;  %s975_s18 = smov %s977_s20 }
 0x133   :  { %13 = sbr.rel (!%p11_p12) target bundleno = 3 (0x3), region = 126 }

// kernel: combined_forward.71
= control target key start
LH: loop header
LB: loop body
LE: loop exit
PB: predicated region body
PF: predicated region fallthrough
CT: control target
= control target key end

     0   :  { %v16_v0 = vlaneseq  ;;  %v184_v3 = vmov 1983009808   ;;  %vm54_vm0 = vcmask 1041408   ;;  %vm167_vm1 = vcmask 1041409   ;;  %s222_s0 = inlined_call_operand.vmem [shape: f32[2,2,512], index: 0, kind: input, shape index: {}]   ;;  %s223_s1 = inlined_call_operand.vmem [shape: f32[2,512], index: 1, kind: output, shape index: {}]  }
   0x1   :  { %v8_v1 = vld [vmem:[%s222_s0] sm:$0xff]  ;;  %v9_v2 = vld [vmem:[%s222_s0 + $0x8] sm:$0xff]  ;;  %v14_v4 = vunpack.c.l.s4 %v184_v3  ;;  %vm169_vm2 = vcmask 1043459   ;;  %vm171_vm3 = vcmask 1045509   ;;  %vm173_vm4 = vcmask 1047559  }
   0x2   :  { %v17_v5 = vshrl.u32 %v16_v0, 7  ;;  %v12_v6 = vcombine.high %v8_v1, %v8_v1  ;;  %v29_v8 = vcombine.high %v9_v2, %v9_v2 }
   0x3   :  { %v15_v7 = vunpack.c.0.s8 %v14_v4 }
   0x5   :  { %v201_v9 = vsub.s32 %v15_v7, %v17_v5 }
   0x7   :  { %v19_v10 = vrot.slane %v8_v1, %v201_v9  ;;  %v26_v11 = vrot.slane %v12_v6, %v201_v9  ;;  %v36_v12 = vrot.slane %v9_v2, %v201_v9  ;;  %v43_v13 = vrot.slane %v29_v8, %v201_v9 }
   0x9   :  { %v27_v14 = vcombine.high %v19_v10, %v19_v10  ;;  %v28_v15 = vcombine.high %v26_v11, %v26_v11  ;;  %v44_v16 = vcombine.high %v36_v12, %v36_v12  ;;  %v45_v17 = vcombine.high %v43_v13, %v43_v13 }
   0xa   :  { %v55_v18 = vsel %vm54_vm0, %v19_v10, 0.0  ;;  %v69_v19 = vsel %vm54_vm0, %v26_v11, 0.0  ;;  %v83_v20 = vsel %vm54_vm0, %v36_v12, 0.0  ;;  %v97_v21 = vsel %vm54_vm0, %v43_v13, 0.0 }
   0xb   :  { %v56_v22 = vrot.slane %v55_v18, 4  ;;  %v62_v23 = vsel %vm54_vm0, %v27_v14, 0.0  ;;  %v70_v24 = vrot.slane %v69_v19, 4  ;;  %v76_v25 = vsel %vm54_vm0, %v28_v15, 0.0 }
   0xc   :  { %v63_v26 = vrot.slane %v62_v23, 4  ;;  %v77_v27 = vrot.slane %v76_v25, 4  ;;  %v84_v28 = vrot.slane %v83_v20, 4  ;;  %v90_v29 = vsel %vm54_vm0, %v44_v16, 0.0 }
   0xd   :  { %v57_v30 = vadd.f32 %v56_v22, %v55_v18  ;;  %v71_v31 = vadd.f32 %v70_v24, %v69_v19  ;;  %v91_v32 = vrot.slane %v90_v29, 4  ;;  %v98_v33 = vrot.slane %v97_v21, 4 }
   0xe   :  { %v64_v34 = vadd.f32 %v63_v26, %v62_v23  ;;  %v78_v35 = vadd.f32 %v77_v27, %v76_v25  ;;  %v85_v36 = vadd.f32 %v84_v28, %v83_v20  ;;  %v104_v37 = vsel %vm54_vm0, %v45_v17, 0.0 }
   0xf   :  { %v58_v38 = vrot.slane %v57_v30, 2  ;;  %v72_v39 = vrot.slane %v71_v31, 2  ;;  %v92_v40 = vadd.f32 %v91_v32, %v90_v29  ;;  %v99_v41 = vadd.f32 %v98_v33, %v97_v21 }
  0x10   :  { %v65_v42 = vrot.slane %v64_v34, 2  ;;  %v79_v43 = vrot.slane %v78_v35, 2  ;;  %v86_v44 = vrot.slane %v85_v36, 2  ;;  %v105_v45 = vrot.slane %v104_v37, 4 }
  0x11   :  { %v59_v46 = vadd.f32 %v58_v38, %v57_v30  ;;  %v73_v47 = vadd.f32 %v72_v39, %v71_v31  ;;  %v93_v48 = vrot.slane %v92_v40, 2  ;;  %v100_v49 = vrot.slane %v99_v41, 2 }
  0x12   :  { %v66_v50 = vadd.f32 %v65_v42, %v64_v34  ;;  %v80_v51 = vadd.f32 %v79_v43, %v78_v35  ;;  %v87_v52 = vadd.f32 %v86_v44, %v85_v36  ;;  %v106_v53 = vadd.f32 %v105_v45, %v104_v37 }
  0x13   :  { %v60_v54 = vrot.slane %v59_v46, 1  ;;  %v74_v55 = vrot.slane %v73_v47, 1  ;;  %v94_v56 = vadd.f32 %v93_v48, %v92_v40  ;;  %v101_v57 = vadd.f32 %v100_v49, %v99_v41 }
  0x14   :  { %v67_v58 = vrot.slane %v66_v50, 1  ;;  %v81_v59 = vrot.slane %v80_v51, 1  ;;  %v88_v60 = vrot.slane %v87_v52, 1  ;;  %v107_v61 = vrot.slane %v106_v53, 2 }
  0x15   :  { %v61_v62 = vadd.f32 %v60_v54, %v59_v46  ;;  %v75_v63 = vadd.f32 %v74_v55, %v73_v47  ;;  %v95_v0 = vrot.slane %v94_v56, 1  ;;  %v102_v1 = vrot.slane %v101_v57, 1 }
  0x16   :  { %v68_v2 = vadd.f32 %v67_v58, %v66_v50  ;;  %v82_v3 = vadd.f32 %v81_v59, %v80_v51  ;;  %v89_v4 = vadd.f32 %v88_v60, %v87_v52  ;;  %v108_v5 = vadd.f32 %v107_v61, %v106_v53 }
  0x17   :  { %v96_v6 = vadd.f32 %v95_v0, %v94_v56  ;;  %v103_v7 = vadd.f32 %v102_v1, %v101_v57  ;;  %v112_v8 = vmul.f32 0.5, %v61_v62  ;;  %v114_v10 = vmul.f32 0.5, %v75_v63 }
  0x18   :  { %v109_v11 = vrot.slane %v108_v5, 1  ;;  %v113_v12 = vmul.f32 0.5, %v68_v2  ;;  %v115_v13 = vmul.f32 0.5, %v82_v3  ;;  %v116_v14 = vmul.f32 0.5, %v89_v4 }
  0x19   :  { %v117_v15 = vmul.f32 0.5, %v96_v6  ;;  %v118_v17 = vmul.f32 0.5, %v103_v7 }
  0x1a   :  { %v110_v16 = vadd.f32 %v109_v11, %v108_v5  ;;  %v128_v18 = vcombine.low %v112_v8, %v113_v12  ;;  %v129_v19 = vcombine.low %v114_v10, %v115_v13 }
  0x1b   :  { %v145_v20 = vcombine.low %v116_v14, %v117_v15 }
  0x1c   :  { %v119_v21 = vmul.f32 0.5, %v110_v16  ;;  %v136_v22 = vrot.slane %v128_v18, %v201_v9  ;;  %v143_v23 = vrot.slane %v129_v19, %v201_v9 }
  0x1d   :  { %v153_v25 = vrot.slane %v145_v20, %v201_v9 }
  0x1e   :  { %v146_v24 = vcombine.low %v118_v17, %v119_v21  ;;  %v144_v27 = vcombine.low %v136_v22, %v143_v23 }
  0x20   :  { %v160_v26 = vrot.slane %v146_v24, %v201_v9 }
  0x22   :  { %v161_v28 = vcombine.low %v153_v25, %v160_v26 }
  0x24   :  { %v166_v29 = vrot.slane %v161_v28, 7 }
  0x26   :  { %v168_v30 = vsel %vm167_vm1, %v166_v29, %v144_v27 }
  0x27   :  { %v170_v31 = vsel %vm169_vm2, %v166_v29, %v168_v30 }
  0x28   :  { %v172_v32 = vsel %vm171_vm3, %v166_v29, %v170_v31 }
  0x29   :  { %v174_v33 = vsel %vm173_vm4, %v166_v29, %v172_v32 }
  0x2a   :  { %176 = vst [vmem:[%s223_s1] sm:$0xff] %v174_v33 }

// kernel: combined_forward.97
= control target key start
LH: loop header
LB: loop body
LE: loop exit
PB: predicated region body
PF: predicated region fallthrough
CT: control target
= control target key end

     0   :  { %s43_s0 = inlined_call_operand.vmem [shape: f32[8,128], index: 0, kind: input, shape index: {}]   ;;  %s44_s1 = inlined_call_operand.vmem [shape: f32[8,128], index: 1, kind: output, shape index: {}]  }
   0x1   :  { %v8_v0 = vld [vmem:[%s43_s0] sm:$0xff] }
   0x2   :  { %9 = vmax.xlane.f32.xlu0 %v8_v0 }
  0x8f   :  { %v10_v1 = vpop.xlane.xlu0 %9 }
  0x90   :  { %v11_v2 = vsub.f32 %v8_v0, %v10_v1 }
  0x92   :  { %v12_v3 = vmul.f32 1.442695, %v11_v2 }
  0x94   :  { %23 = vpow2.f32 %v12_v3 }
  0x9e   :  { %v24_v4 = vpop.eup %23 }
  0x9f   :  { %14 = vadd.xlane.f32.xlu0 %v24_v4 }
 0x12c   :  { %v15_v5 = vpop.xlane.xlu0 %14 }
 0x12d   :  { %25 = vrcp.f32 %v15_v5 }
 0x137   :  { %v26_v6 = vpop.eup %25 }
 0x138   :  { %v17_v7 = vmul.f32 %v26_v6, %v24_v4 }
 0x13a   :  { %18 = vst [vmem:[%s44_s1] sm:$0xff] %v17_v7 }

// kernel: combined_forward.95
= control target key start
LH: loop header
LB: loop body
LE: loop exit
PB: predicated region body
PF: predicated region fallthrough
CT: control target
= control target key end

     0   :  { %s1268_s15 = smov 0   ;;  %s1270_s16 = smov 0   ;;  %s1568_s0 = inlined_call_operand.vmem [shape: bf16[16,1024], index: 0, kind: input, shape index: {}]   ;;  %s1569_s1 = inlined_call_operand.vmem [shape: bf16[1024,1024], index: 1, kind: input, shape index: {}]   ;;  %s1570_s2 = inlined_call_operand.vmem [shape: f32[1,1024], index: 2, kind: input, shape index: {}]   ;;  %s1571_s3 = inlined_call_operand.vmem [shape: f32[1,1024], index: 3, kind: input, shape index: {}]   ;;  %s1572_s4 = inlined_call_operand.vmem [shape: f32[16,1024], index: 4, kind: output, shape index: {}]  }
   0x1   :  { %s1272_s17 = smov 0   ;;  %s1274_s18 = smov 0  }
   0x2   :  { %s1276_s19 = smov 0   ;;  %s1278_s20 = smov 0  }
   0x3   :  { %s1280_s21 = smov 0   ;;  %s1282_s22 = smov 0  }
   0x4   :  { %s1284_s23 = smov 0   ;;  %s1286_s24 = smov 0  }
   0x5   :  { %s1288_s25 = smov 0  }
   0x6 LB: > { %1576 = sst [smem:[#allocation6_spill]] %s1220_s20  ;;  %s952_s26 = sadd.s32 4294967295, %s1240_s25   ;;  %s1240_s25 = sphi %s1288_s25, %s14_s25   ;;  %s1236_s24 = sphi %s1286_s24, %s1594_s24   ;;  %s1232_s23 = sphi %s1284_s23, %s1593_s23   ;;  %s1228_s22 = sphi %s1282_s22, %s1592_s22   ;;  %s1224_s21 = sphi %s1280_s21, %s1591_s21   ;;  %s1220_s20 = sphi %s1278_s20, %s1584_s20   ;;  %s1216_s19 = sphi %s1276_s19, %s1583_s19   ;;  %s1212_s18 = sphi %s1274_s18, %s1590_s18   ;;  %s1208_s17 = sphi %s1272_s17, %s1589_s17   ;;  %s1204_s16 = sphi %s1270_s16, %s1588_s16   ;;  %s1200_s15 = sphi %s1268_s15, %s1587_s15  }
   0x7   : > { %s26_s27 = sadd.s32 1, %s1232_s23  ;;  %s29_s28 = sadd.s32 1, %s1236_s24 }
   0x8   : > { %p27_p0 = scmp.ge.s32.totalorder %s26_s27, 4  ;;  %s42_s29 = sadd.s32 1, %s1220_s20 }
   0x9   : > { %p49_p1 = scmp.ne.s32.totalorder %s1220_s20, %s1216_s19  ;;  %p50_p2 = scmp.eq.s32.totalorder %s1240_s25, 0 }
   0xa   : > { %s1596_s27 = smov (%p27_p0, %s26_s27), 0  ;;  %s1598_s28 = smov (!%p27_p0, %s29_s28), %s1236_s24 }
   0xb   : > { %1577 = sst [smem:[#allocation7_spill]] %s1596_s27  ;;  %s38_s30 = ssub.s32 %s1232_s23, %s1596_s27 }
   0xc   : > { %p31_p3 = scmp.ge.s32.totalorder %s1598_s28, 4  ;;  %p40_p4 = scmp.eq.s32.totalorder %s38_s30, 0 }
   0xd   : > { %p1335_p5 = por %p50_p2, %p49_p1  ;;  %s70_s6 = sadd.s32 1, %s1212_s18 }
   0xe   : > { %s1600_s28 = smov (%p31_p3, %s1598_s28), 0  ;;  %p77_p6 = scmp.ne.s32.totalorder %s1212_s18, %s1208_s17 }
   0xf   : > { %1579 = sst [smem:[#allocation8_spill]] %s1600_s28  ;;  %s66_s8 = ssub.s32 %s1236_s24, %s1600_s28 }
  0x10   : > { %s1343_s7 = scalar_select %p40_p4, %s1220_s20, %s42_s29  }
  0x11   : > { %s67_s9 = sor.u32 %s66_s8, %s38_s30  ;;  %p148_p7 = scmp.eq.s32.totalorder %s66_s8, 0 }
  0x12   : > { %1580 = sst [smem:[#allocation9_spill]] %s1343_s7  ;;  %p68_p8 = scmp.eq.s32.totalorder %s67_s9, 0 }
  0x13   : > { %p1349_p9 = por %p77_p6, %p50_p2  ;;  %s150_s11 = sadd.s32 1, %s1204_s16 }
  0x14   : > { %p160_p10 = scmp.ne.s32.totalorder %s1204_s16, %s1200_s15  ;;  %p161_p11 = scmp.eq.s32.totalorder %s952_s26, 15 }
  0x15   : > { %s1357_s12 = scalar_select %p68_p8, %s1212_s18, %s70_s6  }
  0x16   : > { %s1360_s13 = scalar_select %p148_p7, %s1204_s16, %s150_s11  }
  0x17   : > { %p1362_p12 = por %p161_p11, %p160_p10  ;;  %p955_p13 = scmp.ge.s32.totalorder %s1240_s25, 16 }
  0x19   : > { %183 = sbr.rel (%p955_p13) target bundleno = 78 (0x4e), region = 16 }
  0x20   : > { %186 = sbr.rel (!%p1335_p5) target bundleno = 39 (0x27), region = 20  ;;  %s188_s29 = sand.u32 (%p1335_p5), 1, %s1220_s20  }
  0x21   : > { %s1011_s30 = sshll.u32 (%p1335_p5), %s1232_s23, 3  ;;  %s956_s8 = sshll.u32 (%p1335_p5), %s188_s29, 4 }
  0x22   : > { %s196_s11 = scalar_lea.vmem (%p1335_p5), %s1568_s0, %s1011_s30  ;;  %s190_s26 = scalar_lea.vmem (%p1335_p5), [#allocation3], %s956_s8 }
  0x23   : > { %v226_v0 = vld [vmem:[%s196_s11] sm:$0xff] (%p1335_p5) }
  0x24   : > { %v228_v1 = vld [vmem:[%s196_s11 + $0x20] sm:$0xff] (%p1335_p5)  ;;  %227 = vst [vmem:[%s190_s26] sm:$0xff] (%p1335_p5), %v226_v0 }
  0x25   : > { %229 = vst [vmem:[%s190_s26 + $0x8] sm:$0xff] (%p1335_p5), %v228_v1 }
  0x27 PF: > { %235 = sbr.rel (!%p1349_p9) target bundleno = 78 (0x4e), region = 58  ;;  %s237_s5 = sand.u32 (%p1349_p9), 1, %s1212_s18  }
  0x28   : > { %s961_s28 = sshll.u32 (%p1349_p9), %s1236_s24, 1  ;;  %s959_s27 = sshll.u32 (%p1349_p9), %s237_s5, 8 }
  0x29   : > { %s1012_s29 = sshll.u32 (%p1349_p9), %s1232_s23, 8  ;;  %s1387_s10 = scalar_lea.vmem (%p1349_p9), [#allocation4], %s959_s27 }
  0x2a   : > { %s243_s7 = sadd.s32 (%p1349_p9), %s1012_s29, %s961_s28 }
  0x2b   : > { %s963_s20 = sshll.u32 (%p1349_p9), %s243_s7, 2 }
  0x2c   : > { %s1382_s9 = scalar_lea.vmem (%p1349_p9), %s1569_s1, %s963_s20 }
  0x2d   : > { %v335_v2 = vld [vmem:[%s1382_s9] sm:$0xff] (%p1349_p9) }
  0x2e   : > { %v337_v3 = vld [vmem:[%s1382_s9 + $0x20] sm:$0xff]  ;;  %336 = vst [vmem:[%s1387_s10] sm:$0xff] %v335_v2 }
  0x2f   : > { %v339_v4 = vld [vmem:[%s1382_s9 + $0x40] sm:$0xff]  ;;  %338 = vst [vmem:[%s1387_s10 + $0x8] sm:$0xff] %v337_v3 }
  0x30   : > { %340 = vst [vmem:[%s1387_s10 + $0x10] sm:$0xff] %v339_v4  ;;  %v341_v5 = vld [vmem:[%s1382_s9 + $0x60] sm:$0xff] }
  0x31   : > { %v343_v6 = vld [vmem:[%s1382_s9 + $0x80] sm:$0xff]  ;;  %342 = vst [vmem:[%s1387_s10 + $0x18] sm:$0xff] %v341_v5 }
  0x32   : > { %v345_v7 = vld [vmem:[%s1382_s9 + $0xa0] sm:$0xff]  ;;  %344 = vst [vmem:[%s1387_s10 + $0x20] sm:$0xff] %v343_v6 }
  0x33   : > { %346 = vst [vmem:[%s1387_s10 + $0x28] sm:$0xff] %v345_v7  ;;  %v347_v8 = vld [vmem:[%s1382_s9 + $0xc0] sm:$0xff] }
  0x34   : > { %v349_v9 = vld [vmem:[%s1382_s9 + $0xe0] sm:$0xff]  ;;  %348 = vst [vmem:[%s1387_s10 + $0x30] sm:$0xff] %v347_v8 }
  0x35   : > { %v351_v10 = vld [vmem:[%s1382_s9 + $0x100] sm:$0xff]  ;;  %350 = vst [vmem:[%s1387_s10 + $0x38] sm:$0xff] %v349_v9 }
  0x36   : > { %352 = vst [vmem:[%s1387_s10 + $0x40] sm:$0xff] %v351_v10  ;;  %v353_v11 = vld [vmem:[%s1382_s9 + $0x120] sm:$0xff] }
  0x37   : > { %v355_v12 = vld [vmem:[%s1382_s9 + $0x140] sm:$0xff]  ;;  %354 = vst [vmem:[%s1387_s10 + $0x48] sm:$0xff] %v353_v11 }
  0x38   : > { %v357_v13 = vld [vmem:[%s1382_s9 + $0x160] sm:$0xff]  ;;  %356 = vst [vmem:[%s1387_s10 + $0x50] sm:$0xff] %v355_v12 }
  0x39   : > { %358 = vst [vmem:[%s1387_s10 + $0x58] sm:$0xff] %v357_v13  ;;  %v359_v14 = vld [vmem:[%s1382_s9 + $0x180] sm:$0xff] }
  0x3a   : > { %v361_v15 = vld [vmem:[%s1382_s9 + $0x1a0] sm:$0xff]  ;;  %360 = vst [vmem:[%s1387_s10 + $0x60] sm:$0xff] %v359_v14 }
  0x3b   : > { %v363_v16 = vld [vmem:[%s1382_s9 + $0x1c0] sm:$0xff]  ;;  %362 = vst [vmem:[%s1387_s10 + $0x68] sm:$0xff] %v361_v15 }
  0x3c   : > { %364 = vst [vmem:[%s1387_s10 + $0x70] sm:$0xff] %v363_v16  ;;  %v365_v17 = vld [vmem:[%s1382_s9 + $0x1e0] sm:$0xff] }
  0x3d   : > { %v367_v18 = vld [vmem:[%s1382_s9 + $0x200] sm:$0xff]  ;;  %366 = vst [vmem:[%s1387_s10 + $0x78] sm:$0xff] %v365_v17 }
  0x3e   : > { %v369_v19 = vld [vmem:[%s1382_s9 + $0x220] sm:$0xff]  ;;  %368 = vst [vmem:[%s1387_s10 + $0x80] sm:$0xff] %v367_v18 }
  0x3f   : > { %370 = vst [vmem:[%s1387_s10 + $0x88] sm:$0xff] %v369_v19  ;;  %v371_v20 = vld [vmem:[%s1382_s9 + $0x240] sm:$0xff] }
  0x40   : > { %v373_v21 = vld [vmem:[%s1382_s9 + $0x260] sm:$0xff]  ;;  %372 = vst [vmem:[%s1387_s10 + $0x90] sm:$0xff] %v371_v20 }
  0x41   : > { %v375_v22 = vld [vmem:[%s1382_s9 + $0x280] sm:$0xff]  ;;  %374 = vst [vmem:[%s1387_s10 + $0x98] sm:$0xff] %v373_v21 }
  0x42   : > { %376 = vst [vmem:[%s1387_s10 + $0xa0] sm:$0xff] %v375_v22  ;;  %v377_v23 = vld [vmem:[%s1382_s9 + $0x2a0] sm:$0xff] }
  0x43   : > { %v379_v24 = vld [vmem:[%s1382_s9 + $0x2c0] sm:$0xff]  ;;  %378 = vst [vmem:[%s1387_s10 + $0xa8] sm:$0xff] %v377_v23 }
  0x44   : > { %v381_v25 = vld [vmem:[%s1382_s9 + $0x2e0] sm:$0xff]  ;;  %380 = vst [vmem:[%s1387_s10 + $0xb0] sm:$0xff] %v379_v24 }
  0x45   : > { %382 = vst [vmem:[%s1387_s10 + $0xb8] sm:$0xff] %v381_v25  ;;  %v383_v26 = vld [vmem:[%s1382_s9 + $0x300] sm:$0xff] }
  0x46   : > { %v385_v27 = vld [vmem:[%s1382_s9 + $0x320] sm:$0xff]  ;;  %384 = vst [vmem:[%s1387_s10 + $0xc0] sm:$0xff] %v383_v26 }
  0x47   : > { %v387_v28 = vld [vmem:[%s1382_s9 + $0x340] sm:$0xff]  ;;  %386 = vst [vmem:[%s1387_s10 + $0xc8] sm:$0xff] %v385_v27 }
  0x48   : > { %388 = vst [vmem:[%s1387_s10 + $0xd0] sm:$0xff] %v387_v28  ;;  %v389_v29 = vld [vmem:[%s1382_s9 + $0x360] sm:$0xff] }
  0x49   : > { %v391_v30 = vld [vmem:[%s1382_s9 + $0x380] sm:$0xff]  ;;  %390 = vst [vmem:[%s1387_s10 + $0xd8] sm:$0xff] %v389_v29 }
  0x4a   : > { %v393_v31 = vld [vmem:[%s1382_s9 + $0x3a0] sm:$0xff]  ;;  %392 = vst [vmem:[%s1387_s10 + $0xe0] sm:$0xff] %v391_v30 }
  0x4b   : > { %394 = vst [vmem:[%s1387_s10 + $0xe8] sm:$0xff] %v393_v31  ;;  %v395_v32 = vld [vmem:[%s1382_s9 + $0x3c0] sm:$0xff] }
  0x4c   : > { %v397_v33 = vld [vmem:[%s1382_s9 + $0x3e0] sm:$0xff]  ;;  %396 = vst [vmem:[%s1387_s10 + $0xf0] sm:$0xff] %v395_v32 }
  0x4d   : > { %398 = vst [vmem:[%s1387_s10 + $0xf8] sm:$0xff] %v397_v33 }
  0x4e PF: > { %p964_p0 = scmp.ge.s32.totalorder %s1240_s25, 1  ;;  %p419_p1 = scmp.lt.s32.totalorder %s1240_s25, 17 }
  0x50   : > { %p420_p2 = pnand %p964_p0, %p419_p1 }
  0x51   : > { %s426_s20 = sand.u32 (!%p420_p2), 1, %s1216_s19   ;;  %s433_s27 = sand.u32 (!%p420_p2), 1, %s1208_s17  }
  0x52   : > { %423 = sbr.rel (%p420_p2) target bundleno = 401 (0x191), region = 104  ;;  %s1454_s28 = sshll.u32 (!%p420_p2), %s426_s20, 4 }
  0x53   : > { %s966_s7 = sshll.u32 (!%p420_p2), %s433_s27, 8  ;;  %s466_s8 = sand.u32 (!%p420_p2), 1, %s1200_s15  }
  0x54   : > { %s968_s11 = sshll.u32 (!%p420_p2), %s1228_s22, 1  ;;  %s967_s26 = sshll.u32 (!%p420_p2), %s466_s8, 5 }
  0x55   : > { %p474_p3 = scmp.lt.s32.totalorder (!%p420_p2), %s968_s11, 7  ;;  %s428_s19 = scalar_lea.vmem (!%p420_p2), [#allocation3], %s1454_s28 }
  0x56   : > { %s1469_s10 = scalar_lea.vmem (!%p420_p2), [#allocation4], %s966_s7  ;;  %s1471_s20 = scalar_lea.vmem (!%p420_p2), [#allocation5], %s967_s26 }
  0x57   : > { %p970_p4 = scmp.ne.s32.totalorder (!%p420_p2), %s1224_s21, 0 }
  0x59   : > { %s1602_s11 = smov (!%p474_p3, %s968_s11), 7  ;;  %488 = sbr.rel (%p970_p4) target bundleno = 96 (0x60), region = 116 }
  0x5a   : > { %s476_s6 = scalar_lea.vmem %s1570_s2, %s1602_s11  ;;  %s481_s17 = scalar_lea.vmem %s1571_s3, %s1602_s11  ;;  %v1242_v34 = vmov (!%p970_p4), 0.0  }
  0x5b   : > { %489 = vst [vmem:[#allocation2] sm:$0xff] (!%p970_p4), %v1242_v34  ;;  %490 = vst [vmem:[#allocation2 + $0x8] sm:$0xff] (!%p970_p4), %v1242_v34 }
  0x5c   : > { %491 = vst [vmem:[#allocation2 + $0x10] sm:$0xff] (!%p970_p4), %v1242_v34  ;;  %492 = vst [vmem:[#allocation2 + $0x18] sm:$0xff] (!%p970_p4), %v1242_v34 }
  0x60 PF: > { %v1103_v35 = vld [vmem:[%s1469_s10 + $0x4] ss:$8 sps:$4 sm:$0xff]   ;;  %v1105_v36 = vld [vmem:[%s1469_s10] ss:$8 sps:$4 sm:$0xff]   ;;  %v1106_v37 = vld [vmem:[%s1469_s10 + $0x14] ss:$8 sps:$4 sm:$0xff]  }
  0x61   : > { %701 = vmatprep.subr.bf16.mxu0 %v1103_v35  ;;  %v1108_v38 = vld [vmem:[%s1469_s10 + $0x10] ss:$8 sps:$4 sm:$0xff]   ;;  %v1109_v39 = vld [vmem:[%s1469_s10 + $0x24] ss:$8 sps:$4 sm:$0xff]   ;;  %v1111_v40 = vld [vmem:[%s1469_s10 + $0x20] ss:$8 sps:$4 sm:$0xff]  }
  0x62   : > { %702 = vmatpush1.bf16.msra.mxu0 %v1105_v36  ;;  %v1112_v41 = vld [vmem:[%s1469_s10 + $0x34] ss:$8 sps:$4 sm:$0xff]   ;;  %v1114_v42 = vld [vmem:[%s1469_s10 + $0x30] ss:$8 sps:$4 sm:$0xff]   ;;  %v1115_v43 = vld [vmem:[%s1469_s10 + $0x44] ss:$8 sps:$4 sm:$0xff]  }
  0x63   : > { %703 = vmatprep.subr.bf16.mxu0 %v1106_v37  ;;  %v1117_v44 = vld [vmem:[%s1469_s10 + $0x40] ss:$8 sps:$4 sm:$0xff]   ;;  %v1118_v45 = vld [vmem:[%s1469_s10 + $0x54] ss:$8 sps:$4 sm:$0xff]   ;;  %v1120_v46 = vld [vmem:[%s1469_s10 + $0x50] ss:$8 sps:$4 sm:$0xff]  }
  0x64   : > { %v1121_v47 = vld [vmem:[%s1469_s10 + $0x64] ss:$8 sps:$4 sm:$0xff]   ;;  %v1123_v49 = vld [vmem:[%s1469_s10 + $0x60] ss:$8 sps:$4 sm:$0xff]   ;;  %v1124_v50 = vld [vmem:[%s1469_s10 + $0x74] ss:$8 sps:$4 sm:$0xff]  }
  0x65   : > { %v1153_v48 = vld [vmem:[%s428_s19 + $0x4] ss:$8 sps:$4 sm:$0xff]   ;;  %v1126_v51 = vld [vmem:[%s1469_s10 + $0x70] ss:$8 sps:$4 sm:$0xff]   ;;  %v1129_v53 = vld [vmem:[%s1469_s10 + $0x80] ss:$8 sps:$4 sm:$0xff]  }
  0x66   : > { %704 = vmatpush1.bf16.msra.mxu0 %v1108_v38  ;;  %733 = vmatprep.mubr.bf16.mxu0 %v1153_v48  ;;  %v1127_v52 = vld [vmem:[%s1469_s10 + $0x84] ss:$8 sps:$4 sm:$0xff]   ;;  %v1130_v54 = vld [vmem:[%s1469_s10 + $0x94] ss:$8 sps:$4 sm:$0xff]   ;;  %v1132_v55 = vld [vmem:[%s1469_s10 + $0x90] ss:$8 sps:$4 sm:$0xff]  }
  0x67   : > { %705 = vmatprep.subr.bf16.mxu0 %v1109_v39  ;;  %v1133_v56 = vld [vmem:[%s1469_s10 + $0xa4] ss:$8 sps:$4 sm:$0xff]   ;;  %v1135_v57 = vld [vmem:[%s1469_s10 + $0xa0] ss:$8 sps:$4 sm:$0xff]   ;;  %v1136_v58 = vld [vmem:[%s1469_s10 + $0xb4] ss:$8 sps:$4 sm:$0xff]  }
  0x68   : > { %v1138_v59 = vld [vmem:[%s1469_s10 + $0xb0] ss:$8 sps:$4 sm:$0xff]   ;;  %v1139_v60 = vld [vmem:[%s1469_s10 + $0xc4] ss:$8 sps:$4 sm:$0xff]   ;;  %v1141_v61 = vld [vmem:[%s1469_s10 + $0xc0] ss:$8 sps:$4 sm:$0xff]  }
  0x69   : > { %v1142_v62 = vld [vmem:[%s1469_s10 + $0xd4] ss:$8 sps:$4 sm:$0xff]   ;;  %v1144_v63 = vld [vmem:[%s1469_s10 + $0xd0] ss:$8 sps:$4 sm:$0xff]   ;;  %v1145_v0 = vld [vmem:[%s1469_s10 + $0xe4] ss:$8 sps:$4 sm:$0xff]  }
  0x6a   : > { %706 = vmatpush1.bf16.msra.mxu0 %v1111_v40  ;;  %v1147_v1 = vld [vmem:[%s1469_s10 + $0xe0] ss:$8 sps:$4 sm:$0xff]   ;;  %v1148_v2 = vld [vmem:[%s1469_s10 + $0xf4] ss:$8 sps:$4 sm:$0xff]   ;;  %v1150_v3 = vld [vmem:[%s1469_s10 + $0xf0] ss:$8 sps:$4 sm:$0xff]  }
  0x6b   : > { %707 = vmatprep.subr.bf16.mxu0 %v1112_v41  ;;  %v1151_v4 = vld [vmem:[%s428_s19] ss:$8 sps:$4 sm:$0xff]   ;;  %p1005_p5 = scmp.ne.s32.totalorder %s1224_s21, 3 }
  0x6c   : > { %v493_v5 = vld [vmem:[#allocation2] sm:$0xff]  ;;  %v494_v6 = vld [vmem:[#allocation2 + $0x8] sm:$0xff]  ;;  %v495_v8 = vld [vmem:[#allocation2 + $0x10] sm:$0xff]  ;;  %v762_v17 = vlaneseq (!%p1005_p5) }
  0x6d   : > { %v496_v11 = vld [vmem:[#allocation2 + $0x18] sm:$0xff]  ;;  %v760_v19 = vld [vmem:[%s476_s6] sm:$0x3] (!%p1005_p5) }
  0x6e   : > { %708 = vmatpush1.bf16.msra.mxu0 %v1114_v42  ;;  %v763_v18 = vshrl.u32 (!%p1005_p5), %v762_v17, 7  ;;  %v776_v20 = vld [vmem:[%s481_s17] sm:$0x3] (!%p1005_p5) }
  0x6f   : > { %709 = vmatprep.subr.bf16.mxu0 %v1115_v43 }
  0x70   : > { %v764_v22 = vsub.s32 (!%p1005_p5), 0, %v763_v18  ;;  %v768_v23 = vsub.s32 (!%p1005_p5), 1, %v763_v18 }
  0x72   : > { %710 = vmatpush1.bf16.msra.mxu0 %v1117_v44  ;;  %v765_v27 = vrot.slane (!%p1005_p5), %v760_v19, %v764_v22  ;;  %v781_v28 = vrot.slane (!%p1005_p5), %v776_v20, %v764_v22  ;;  %v769_v29 = vrot.slane (!%p1005_p5), %v760_v19, %v768_v23  ;;  %v785_v30 = vrot.slane (!%p1005_p5), %v776_v20, %v768_v23 }
  0x73   : > { %711 = vmatprep.subr.bf16.mxu0 %v1118_v45 }
  0x76   : > { %712 = vmatpush1.bf16.msra.mxu0 %v1120_v46 }
  0x77   : > { %713 = vmatprep.subr.bf16.mxu0 %v1121_v47 }
  0x7a   : > { %714 = vmatpush1.bf16.msra.mxu0 %v1123_v49 }
  0x7b   : > { %715 = vmatprep.subr.bf16.mxu0 %v1124_v50 }
  0x7e   : > { %716 = vmatpush1.bf16.msra.mxu0 %v1126_v51 }
  0x7f   : > { %717 = vmatprep.subr.bf16.mxu0 %v1127_v52 }
  0x82   : > { %718 = vmatpush1.bf16.msra.mxu0 %v1129_v53 }
  0x83   : > { %719 = vmatprep.subr.bf16.mxu0 %v1130_v54 }
  0x86   : > { %720 = vmatpush1.bf16.msra.mxu0 %v1132_v55 }
  0x87   : > { %721 = vmatprep.subr.bf16.mxu0 %v1133_v56 }
  0x8a   : > { %722 = vmatpush1.bf16.msra.mxu0 %v1135_v57 }
  0x8b   : > { %723 = vmatprep.subr.bf16.mxu0 %v1136_v58 }
  0x8e   : > { %724 = vmatpush1.bf16.msra.mxu0 %v1138_v59 }
  0x8f   : > { %725 = vmatprep.subr.bf16.mxu0 %v1139_v60 }
  0x92   : > { %726 = vmatpush1.bf16.msra.mxu0 %v1141_v61 }
  0x93   : > { %727 = vmatprep.subr.bf16.mxu0 %v1142_v62 }
  0x96   : > { %728 = vmatpush1.bf16.msra.mxu0 %v1144_v63 }
  0x97   : > { %729 = vmatprep.subr.bf16.mxu0 %v1145_v0 }
  0x9a   : > { %730 = vmatpush1.bf16.msra.mxu0 %v1147_v1 }
  0x9b   : > { %731 = vmatprep.subr.bf16.mxu0 %v1148_v2 }
  0x9e   : > { %732 = vmatpush1.bf16.msra.mxu0 %v1150_v3 }
  0xa1   : > { %734 = vmatmul.mubr.bf16.vlgmr.msra.gmra.mrb[0].mxu0 %v1151_v4 }
 0x174   : > { %v735_v7 = vpop.f32.mrb[0].mxu0  ;;  %755 = sbr.rel (%p1005_p5) target bundleno = 393 (0x189), region = 120 }
 0x175   : > { %v744_v9 = vadd.f32 %v735_v7, %v493_v5  ;;  %v737_v10 = vpop.f32.mrb[1].mxu0 }
 0x176   : > { %v745_v12 = vadd.f32 %v737_v10, %v494_v6  ;;  %v739_v13 = vpop.f32.mrb[2].mxu0 }
 0x177   : > { %748 = vst [vmem:[#allocation2] sm:$0xff] %v744_v9  ;;  %v746_v14 = vadd.f32 %v739_v13, %v495_v8  ;;  %v741_v15 = vpop.f32.mrb[3].mxu0 }
 0x178   : > { %749 = vst [vmem:[#allocation2 + $0x8] sm:$0xff] %v745_v12  ;;  %v747_v16 = vadd.f32 %v741_v15, %v496_v11 }
 0x179   : > { %750 = vst [vmem:[#allocation2 + $0x10] sm:$0xff] %v746_v14 }
 0x17a   : > { %751 = vst [vmem:[#allocation2 + $0x18] sm:$0xff] %v747_v16 }
 0x17e   : > { %v756_v21 = vld [vmem:[#allocation2] sm:$0xff] }
 0x17f   : > { %v757_v24 = vld [vmem:[#allocation2 + $0x8] sm:$0xff]  ;;  %v772_v31 = vmul.f32 %v765_v27, %v756_v21 }
 0x180   : > { %v758_v25 = vld [vmem:[#allocation2 + $0x10] sm:$0xff]  ;;  %v773_v32 = vmul.f32 %v769_v29, %v757_v24 }
 0x181   : > { %v759_v26 = vld [vmem:[#allocation2 + $0x18] sm:$0xff]  ;;  %v774_v33 = vmul.f32 %v765_v27, %v758_v25  ;;  %v788_v35 = vadd.f32 %v781_v28, %v772_v31 }
 0x182   : > { %v775_v34 = vmul.f32 %v769_v29, %v759_v26  ;;  %v789_v36 = vadd.f32 %v785_v30, %v773_v32 }
 0x183   : > { %v790_v37 = vadd.f32 %v781_v28, %v774_v33  ;;  %v792_v39 = vmax.f32 %v788_v35, 0.0 }
 0x184   : > { %v791_v38 = vadd.f32 %v785_v30, %v775_v34  ;;  %v793_v40 = vmax.f32 %v789_v36, 0.0 }
 0x185   : > { %v794_v41 = vmax.f32 %v790_v37, 0.0  ;;  %796 = vst [vmem:[%s1471_s20] sm:$0xff] %v792_v39 }
 0x186   : > { %v795_v42 = vmax.f32 %v791_v38, 0.0  ;;  %797 = vst [vmem:[%s1471_s20 + $0x8] sm:$0xff] %v793_v40 }
 0x187   : > { %798 = vst [vmem:[%s1471_s20 + $0x10] sm:$0xff] %v794_v41 }
 0x188   : > { %799 = vst [vmem:[%s1471_s20 + $0x18] sm:$0xff] %v795_v42 }
 0x189 PF: > { %806 = sbr.rel (!%p1362_p12) target bundleno = 401 (0x191), region = 124  ;;  %s1013_s21 = sshll.u32 (%p1362_p12), %s1228_s22, 4 }
 0x18a   : > { %s812_s26 = scalar_lea.vmem (%p1362_p12), %s1572_s4, %s1013_s21 }
 0x18c   : > { %v825_v43 = vld [vmem:[%s1471_s20] sm:$0xff] (%p1362_p12) }
 0x18d   : > { %v827_v44 = vld [vmem:[%s1471_s20 + $0x8] sm:$0xff] (%p1362_p12)  ;;  %826 = vst [vmem:[%s812_s26] sm:$0xff] (%p1362_p12), %v825_v43 }
 0x18e   : > { %v829_v45 = vld [vmem:[%s1471_s20 + $0x10] sm:$0xff] (%p1362_p12)  ;;  %828 = vst [vmem:[%s812_s26 + $0x8] sm:$0xff] (%p1362_p12), %v827_v44 }
 0x18f   : > { %v831_v46 = vld [vmem:[%s1471_s20 + $0x18] sm:$0xff] (%p1362_p12)  ;;  %830 = vst [vmem:[%s812_s26 + $0x40] sm:$0xff] (%p1362_p12), %v829_v45 }
 0x190   : > { %832 = vst [vmem:[%s812_s26 + $0x48] sm:$0xff] %v831_v46 }
 0x191 PF: > { %s14_s25 = sadd.s32 1, %s1240_s25   ;;  %s1583_s19 = sld [smem:[#allocation6_spill]] }
 0x192   : > { %p11_p6 = scmp.ge.s32.totalorder %s14_s25, 18   ;;  %s1584_s20 = sld [smem:[#allocation9_spill]] }
 0x193   : > { %s1585_s14 = sld [smem:[#allocation7_spill]]  ;;  %s1586_s5 = sld [smem:[#allocation8_spill]] }
 0x194   : > { %s1587_s15 = smov %s1204_s16  ;;  %s1588_s16 = smov %s1360_s13 }
 0x195   : > { %s1589_s17 = smov %s1212_s18  ;;  %s1590_s18 = smov %s1357_s12 }
 0x196   : > { %s1591_s21 = smov %s1232_s23  ;;  %s1592_s22 = smov %s1236_s24 }
 0x197   :  { %13 = sbr.rel (!%p11_p6) target bundleno = 6 (0x6), region = 192 }
 0x199   : > { %s1593_s23 = smov %s1585_s14  ;;  %s1594_s24 = smov %s1586_s5 }

</bundles_post_ra>
